<compile_context>
chip_gen: v6e
topology: v6e:2x2x1
jax: 0.10.0
libtpu: 0.0.40
codegen_flags: <defaults>
</compile_context>

<pallas_src>
import functools

import jax
import jax.numpy as jnp
import numpy as np
from jax.experimental import pallas as pl
from jax.experimental.pallas import tpu as pltpu


def _encoder_dw_kernel(
    x_ref, sel_ref, e_ref, cmask_ref,
    bn1s_ref, bn1b_ref, w1_ref, b1_ref,
    bn2s_ref, bn2b_ref, w2_ref, b2_ref,
    bnss_ref, bnsb_ref, ws_ref, bs_ref,
    o_ref,
    pool_scr, scr1, scr23,
    *, cin, cout, h, w, pad,
):
    f32 = jnp.float32
    w2 = w // 2
    hw = h * w
    m2 = (h // 2) * (w // 2)

    # ---------------- helpers (channel dims are tiny -> VPU) -------------------
    def bn_relu(t, scale_ref, shift_ref):
        # t: (C, M2); scale/shift: (C, 1)
        return jnp.maximum(t * scale_ref[...] + shift_ref[...], 0.0)

    def channel_mix(w_mat, v):
        # (Cout, K) "matmul" (K, M2) as K unrolled outer-product FMAs on the VPU.
        acc = w_mat[:, 0:1] * v[0:1, :]
        for k in range(1, v.shape[0]):
            acc = acc + w_mat[:, k:k + 1] * v[k:k + 1, :]
        return acc

    def conv_kxk(scr, w_ref_, b_ref_, n_in, ksize):
        # Dense k x k cross-correlation with "same" padding, read as shifted
        # windows from a zero-haloed scratch (input stored at column `pad`).
        half = ksize // 2
        masks = [cmask_ref[i] for i in range(7)]          # hoisted: 7 loads/conv
        acc = jnp.zeros((cout, m2), f32) + b_ref_[...]
        for kdy in range(ksize):
            for kdx in range(ksize):
                dy, dx = kdy - half, kdx - half
                s = dy * w2 + dx
                patch = scr[0:n_in, pad + s:pad + s + m2]
                if dx != 0:                               # dx == 0 mask is all-ones
                    patch = patch * masks[dx + 3]
                acc = acc + channel_mix(w_ref_[kdy * ksize + kdx], patch)
        return acc

    def dwconv7(scr, w_ref_, b_ref_):
        # Depthwise 7x7 (groups == Cin) on the group-expanded (Cout, M2) map.
        masks = [cmask_ref[i] for i in range(7)]
        acc = jnp.zeros((cout, m2), f32) + b_ref_[...]
        for kdy in range(7):
            for kdx in range(7):
                dy, dx = kdy - 3, kdx - 3
                s = dy * w2 + dx
                patch = scr[0:cout, pad + s:pad + s + m2]
                if dx != 0:
                    patch = patch * masks[dx + 3]
                acc = acc + w_ref_[kdy * 7 + kdx] * patch
        return acc

    # ---------------- zero ONLY the halo / tail regions -------------------------
    # (centers are fully overwritten before any read; halos must be zero every
    #  step because with megacore sharding a core may never see program_id == 0)
    pool_scr[:, hw:hw + w + 1] = jnp.zeros((cin, w + 1), f32)
    scr1[:, 0:pad] = jnp.zeros((cin, pad), f32)
    scr1[:, pad + m2:pad + m2 + pad] = jnp.zeros((cin, pad), f32)
    scr23[:, 0:pad] = jnp.zeros((cout, pad), f32)
    scr23[:, pad + m2:pad + m2 + pad] = jnp.zeros((cout, pad), f32)

    # ---------------- MaxPool2d(2) in the flattened (C, H*W) layout ------------
    pool_scr[:, 0:hw] = x_ref[0]
    m = jnp.maximum(
        jnp.maximum(pool_scr[:, 0:hw], pool_scr[:, 1:1 + hw]),
        jnp.maximum(pool_scr[:, w:w + hw], pool_scr[:, w + 1:w + 1 + hw]),
    )
    # Exact one-hot selection matmul compacts even (row, col) positions.
    pooled = jnp.dot(m, sel_ref[...], preferred_element_type=f32)   # (Cin, M2)

    # ---------------- main branch: BN-ReLU-conv3x3-BN-ReLU-conv3x3 --------------
    a1 = bn_relu(pooled, bn1s_ref, bn1b_ref)
    scr1[:, pad:pad + m2] = a1
    z1 = conv_kxk(scr1, w1_ref, b1_ref, cin, 3)

    a2 = bn_relu(z1, bn2s_ref, bn2b_ref)
    scr23[:, pad:pad + m2] = a2
    z2 = conv_kxk(scr23, w2_ref, b2_ref, cout, 3)

    # ---------------- shortcut branch: BN-ReLU-depthwise 7x7 --------------------
    a_s = bn_relu(pooled, bnss_ref, bnsb_ref)
    a_exp = channel_mix(e_ref[...], a_s)     # a_exp[o] = a_s[o // (Cout // Cin)]
    scr23[:, pad:pad + m2] = a_exp           # reuse scratch (z2 already materialized)
    zs = dwconv7(scr23, ws_ref, bs_ref)

    # ---------------- residual add + lane-dense store ---------------------------
    o_ref[0] = (z2 + zs).astype(o_ref.dtype)


def encoder_dw_forward(x, params, eps=1e-5):
    """Forward of encoder_dw: MaxPool2d(2) -> en_dwconv(in_channels, out_channels)."""
    n, cin, h, w = x.shape
    cout = params["w1"].shape[0]
    assert h % 2 == 0 and w % 2 == 0, "spatial dims must be even for MaxPool2d(2)"
    assert cout % cin == 0, "grouped 7x7 conv needs out_channels % in_channels == 0"
    h2, w2 = h // 2, w // 2
    hw, m2 = h * w, h2 * w2
    r = cout // cin
    # Halo for shifted conv reads (7x7 needs 3*W2+3); round to 128 so the center
    # stores stay lane-aligned.
    pad = ((3 * w2 + 3 + 127) // 128) * 128

    # --- fold BatchNorm (inference mode) into per-channel scale/shift ----------
    def fold_bn(g, b, mu, var, c):
        s = g / jnp.sqrt(var + eps)
        return s.reshape(c, 1), (b - mu * s).reshape(c, 1)

    bn1s, bn1b = fold_bn(*params["bn1"], cin)
    bn2s, bn2b = fold_bn(*params["bn2"], cout)
    bnss, bnsb = fold_bn(*params["bns"], cin)

    # --- tiny host-built constants ----------------------------------------------
    q = np.arange(m2)
    sel = np.zeros((hw, m2), np.float32)            # max-pool compaction one-hots
    sel[2 * (q // w2) * w + 2 * (q % w2), q] = 1.0
    e_mat = np.zeros((cout, cin), np.float32)       # group expansion (depthwise)
    e_mat[np.arange(cout), np.arange(cout) // r] = 1.0
    col = np.arange(m2) % w2                        # column-validity masks per dx
    cmask = np.zeros((7, 1, m2), np.float32)
    for dx in range(-3, 4):
        cmask[dx + 3, 0] = ((col + dx >= 0) & (col + dx < w2)).astype(np.float32)

    # --- rearrange the (tiny) conv weights: tap-major, (Cout, Cin) per tap ------
    w1r = jnp.transpose(params["w1"], (2, 3, 0, 1)).reshape(9, cout, cin)
    w2r = jnp.transpose(params["w2"], (2, 3, 0, 1)).reshape(9, cout, cout)
    wsr = jnp.transpose(params["ws"], (2, 3, 0, 1)).reshape(49, cout, 1)
    b1c = params["b1"].reshape(cout, 1)
    b2c = params["b2"].reshape(cout, 1)
    bsc = params["bs"].reshape(cout, 1)

    # Free reshape of contiguous NCHW: flatten spatial onto the lane axis.
    x2 = x.reshape(n, cin, hw)

    def const_spec(shape):
        nd = len(shape)
        return pl.BlockSpec(shape, lambda i, _nd=nd: (0,) * _nd)

    kernel = functools.partial(
        _encoder_dw_kernel, cin=cin, cout=cout, h=h, w=w, pad=pad)

    out2 = pl.pallas_call(
        kernel,
        out_shape=jax.ShapeDtypeStruct((n, cout, m2), x.dtype),
        grid=(n,),
        in_specs=[
            pl.BlockSpec((1, cin, hw), lambda i: (i, 0, 0)),
            const_spec((hw, m2)),
            const_spec((cout, cin)),
            const_spec((7, 1, m2)),
            const_spec((cin, 1)), const_spec((cin, 1)),
            const_spec((9, cout, cin)), const_spec((cout, 1)),
            const_spec((cout, 1)), const_spec((cout, 1)),
            const_spec((9, cout, cout)), const_spec((cout, 1)),
            const_spec((cin, 1)), const_spec((cin, 1)),
            const_spec((49, cout, 1)), const_spec((cout, 1)),
        ],
        out_specs=pl.BlockSpec((1, cout, m2), lambda i: (i, 0, 0)),
        scratch_shapes=[
            pltpu.VMEM((cin, hw + w + 1), jnp.float32),       # pooling halo buf
            pltpu.VMEM((cin, m2 + 2 * pad), jnp.float32),     # conv1 haloed input
            pltpu.VMEM((cout, m2 + 2 * pad), jnp.float32),    # conv2 / dw7 (reused)
        ],
        compiler_params=pltpu.CompilerParams(
            dimension_semantics=("parallel",),
        ),
    )(x2, jnp.asarray(sel), jnp.asarray(e_mat), jnp.asarray(cmask),
      bn1s, bn1b, w1r, b1c, bn2s, bn2b, w2r, b2c, bnss, bnsb, wsr, bsc)

    # Free reshape back to NCHW.
    return out2.reshape(n, cout, h2, w2)


def encoder_dw_reference(x, params, eps=1e-5):
    """Plain-JAX reference (inference-mode BN), for correctness checking."""
    n, cin, h, w = x.shape
    xp = x.reshape(n, cin, h // 2, 2, w // 2, 2).max(axis=(3, 5))

    def bn_relu(t, g, b, mu, var):
        s = g / jnp.sqrt(var + eps)
        return jnp.maximum(
            t * s[None, :, None, None] + (b - mu * s)[None, :, None, None], 0.0)

    def conv(t, wgt, bias, p, groups=1):
        out = jax.lax.conv_general_dilated(
            t, wgt, window_strides=(1, 1), padding=((p, p), (p, p)),
            dimension_numbers=("NCHW", "OIHW", "NCHW"),
            feature_group_count=groups,
            precision=jax.lax.Precision.HIGHEST)
        return out + bias[None, :, None, None]

    a1 = bn_relu(xp, *params["bn1"])
    z1 = conv(a1, params["w1"], params["b1"], 1)
    a2 = bn_relu(z1, *params["bn2"])
    z2 = conv(a2, params["w2"], params["b2"], 1)
    a_s = bn_relu(xp, *params["bns"])
    zs = conv(a_s, params["ws"], params["bs"], 3, groups=cin)
    return z2 + zs


if __name__ == "__main__":
    N, C_IN, C_OUT, H, W = 2, 4, 8, 32, 32

    key = jax.random.PRNGKey(0)
    ks = jax.random.split(key, 10)
    x = jax.random.normal(ks[0], (N, C_IN, H, W), jnp.float32)

    def bn_params(k, c):
        k1, k2, k3, k4 = jax.random.split(k, 4)
        gamma = 1.0 + 0.1 * jax.random.normal(k1, (c,), jnp.float32)
        beta = 0.1 * jax.random.normal(k2, (c,), jnp.float32)
        mean = 0.1 * jax.random.normal(k3, (c,), jnp.float32)
        var = jax.random.uniform(k4, (c,), jnp.float32, minval=0.5, maxval=1.5)
        return gamma, beta, mean, var

    params = {
        "bn1": bn_params(ks[1], C_IN),
        "w1": 0.2 * jax.random.normal(ks[2], (C_OUT, C_IN, 3, 3), jnp.float32),
        "b1": 0.1 * jax.random.normal(ks[3], (C_OUT,), jnp.float32),
        "bn2": bn_params(ks[4], C_OUT),
        "w2": 0.2 * jax.random.normal(ks[5], (C_OUT, C_OUT, 3, 3), jnp.float32),
        "b2": 0.1 * jax.random.normal(ks[6], (C_OUT,), jnp.float32),
        "bns": bn_params(ks[7], C_IN),
        "ws": 0.2 * jax.random.normal(ks[8], (C_OUT, 1, 7, 7), jnp.float32),
        "bs": 0.1 * jax.random.normal(ks[9], (C_OUT,), jnp.float32),
    }

    y = encoder_dw_forward(x, params)
    y = jax.block_until_ready(y)

    y_ref = encoder_dw_reference(x, params)
    assert y.shape == (N, C_OUT, H // 2, W // 2)
    assert jnp.allclose(y, y_ref, atol=1e-4, rtol=1e-4), float(
        jnp.max(jnp.abs(y - y_ref)))
    print("KERNEL_OK")
</pallas_src>

<mosaic_0001>
module attributes {stable_mosaic.version = 11 : i64} {
  func.func @_encoder_dw_kernel(%arg0: i32, %arg1: memref<1x4x1024xf32, #tpu.memory_space<vmem>>, %arg2: memref<1024x256xf32, #tpu.memory_space<vmem>>, %arg3: memref<8x4xf32, #tpu.memory_space<vmem>>, %arg4: memref<7x1x256xf32, #tpu.memory_space<vmem>>, %arg5: memref<4x1xf32, #tpu.memory_space<vmem>>, %arg6: memref<4x1xf32, #tpu.memory_space<vmem>>, %arg7: memref<9x8x4xf32, #tpu.memory_space<vmem>>, %arg8: memref<8x1xf32, #tpu.memory_space<vmem>>, %arg9: memref<8x1xf32, #tpu.memory_space<vmem>>, %arg10: memref<8x1xf32, #tpu.memory_space<vmem>>, %arg11: memref<9x8x8xf32, #tpu.memory_space<vmem>>, %arg12: memref<8x1xf32, #tpu.memory_space<vmem>>, %arg13: memref<4x1xf32, #tpu.memory_space<vmem>>, %arg14: memref<4x1xf32, #tpu.memory_space<vmem>>, %arg15: memref<49x8x1xf32, #tpu.memory_space<vmem>>, %arg16: memref<8x1xf32, #tpu.memory_space<vmem>>, %arg17: memref<1x8x256xf32, #tpu.memory_space<vmem>>, %arg18: memref<4x1057xf32, #tpu.memory_space<vmem>>, %arg19: memref<4x512xf32, #tpu.memory_space<vmem>>, %arg20: memref<8x512xf32, #tpu.memory_space<vmem>>) attributes {dimension_semantics = [#tpu.dimension_semantics<parallel>], iteration_bounds = array<i64: 2>, scalar_prefetch = 0 : i64, scratch_operands = 3 : i64, tpu.core_type = #tpu.core_type<tc>, window_params = [{transform_indices = @transform_0, window_bounds = array<i64: 1, 4, 1024>}, {pipeline_mode = #tpu.pipeline_mode<synchronous>, transform_indices = @transform_1, window_bounds = array<i64: 1024, 256>}, {pipeline_mode = #tpu.pipeline_mode<synchronous>, transform_indices = @transform_2, window_bounds = array<i64: 8, 4>}, {pipeline_mode = #tpu.pipeline_mode<synchronous>, transform_indices = @transform_3, window_bounds = array<i64: 7, 1, 256>}, {pipeline_mode = #tpu.pipeline_mode<synchronous>, transform_indices = @transform_4, window_bounds = array<i64: 4, 1>}, {pipeline_mode = #tpu.pipeline_mode<synchronous>, transform_indices = @transform_5, window_bounds = array<i64: 4, 1>}, {pipeline_mode = #tpu.pipeline_mode<synchronous>, transform_indices = @transform_6, window_bounds = array<i64: 9, 8, 4>}, {pipeline_mode = #tpu.pipeline_mode<synchronous>, transform_indices = @transform_7, window_bounds = array<i64: 8, 1>}, {pipeline_mode = #tpu.pipeline_mode<synchronous>, transform_indices = @transform_8, window_bounds = array<i64: 8, 1>}, {pipeline_mode = #tpu.pipeline_mode<synchronous>, transform_indices = @transform_9, window_bounds = array<i64: 8, 1>}, {pipeline_mode = #tpu.pipeline_mode<synchronous>, transform_indices = @transform_10, window_bounds = array<i64: 9, 8, 8>}, {pipeline_mode = #tpu.pipeline_mode<synchronous>, transform_indices = @transform_11, window_bounds = array<i64: 8, 1>}, {pipeline_mode = #tpu.pipeline_mode<synchronous>, transform_indices = @transform_12, window_bounds = array<i64: 4, 1>}, {pipeline_mode = #tpu.pipeline_mode<synchronous>, transform_indices = @transform_13, window_bounds = array<i64: 4, 1>}, {pipeline_mode = #tpu.pipeline_mode<synchronous>, transform_indices = @transform_14, window_bounds = array<i64: 49, 8, 1>}, {pipeline_mode = #tpu.pipeline_mode<synchronous>, transform_indices = @transform_15, window_bounds = array<i64: 8, 1>}, {transform_indices = @transform_16, window_bounds = array<i64: 1, 8, 256>}]} {
    %cst = arith.constant 0.000000e+00 : f32
    %0 = vector.broadcast %cst : f32 to vector<4x33xf32>
    %c0 = arith.constant 0 : index
    %c1024 = arith.constant 1024 : index
    %1 = vector.load %arg18[%c0, %c1024] : memref<4x1057xf32, #tpu.memory_space<vmem>>, vector<4x33xf32>
    tpu.vector_store %arg18[%c0, %c1024], %0 {strides = array<i32>} : memref<4x1057xf32, #tpu.memory_space<vmem>>, vector<4x33xf32>,
    %cst_0 = arith.constant 0.000000e+00 : f32
    %2 = vector.broadcast %cst_0 : f32 to vector<4x128xf32>
    %c0_1 = arith.constant 0 : index
    %c0_2 = arith.constant 0 : index
    %3 = vector.load %arg19[%c0_1, %c0_2] : memref<4x512xf32, #tpu.memory_space<vmem>>, vector<4x128xf32>
    tpu.vector_store %arg19[%c0_1, %c0_2], %2 {strides = array<i32>} : memref<4x512xf32, #tpu.memory_space<vmem>>, vector<4x128xf32>,
    %cst_3 = arith.constant 0.000000e+00 : f32
    %4 = vector.broadcast %cst_3 : f32 to vector<4x128xf32>
    %c0_4 = arith.constant 0 : index
    %c384 = arith.constant 384 : index
    %5 = vector.load %arg19[%c0_4, %c384] : memref<4x512xf32, #tpu.memory_space<vmem>>, vector<4x128xf32>
    tpu.vector_store %arg19[%c0_4, %c384], %4 {strides = array<i32>} : memref<4x512xf32, #tpu.memory_space<vmem>>, vector<4x128xf32>,
    %cst_5 = arith.constant 0.000000e+00 : f32
    %6 = vector.broadcast %cst_5 : f32 to vector<8x128xf32>
    %c0_6 = arith.constant 0 : index
    %c0_7 = arith.constant 0 : index
    %7 = vector.load %arg20[%c0_6, %c0_7] : memref<8x512xf32, #tpu.memory_space<vmem>>, vector<8x128xf32>
    tpu.vector_store %arg20[%c0_6, %c0_7], %6 {strides = array<i32>} : memref<8x512xf32, #tpu.memory_space<vmem>>, vector<8x128xf32>,
    %cst_8 = arith.constant 0.000000e+00 : f32
    %8 = vector.broadcast %cst_8 : f32 to vector<8x128xf32>
    %c0_9 = arith.constant 0 : index
    %c384_10 = arith.constant 384 : index
    %9 = vector.load %arg20[%c0_9, %c384_10] : memref<8x512xf32, #tpu.memory_space<vmem>>, vector<8x128xf32>
    tpu.vector_store %arg20[%c0_9, %c384_10], %8 {strides = array<i32>} : memref<8x512xf32, #tpu.memory_space<vmem>>, vector<8x128xf32>,
    %c0_11 = arith.constant 0 : index
    %c0_12 = arith.constant 0 : index
    %c0_13 = arith.constant 0 : index
    %10 = vector.load %arg1[%c0_11, %c0_12, %c0_13] : memref<1x4x1024xf32, #tpu.memory_space<vmem>>, vector<1x4x1024xf32>
    %11 = vector.shape_cast %10 : vector<1x4x1024xf32> to vector<4x1024xf32>
    %c0_14 = arith.constant 0 : index
    %c0_15 = arith.constant 0 : index
    %12 = vector.load %arg18[%c0_14, %c0_15] : memref<4x1057xf32, #tpu.memory_space<vmem>>, vector<4x1024xf32>
    tpu.vector_store %arg18[%c0_14, %c0_15], %11 {strides = array<i32>} : memref<4x1057xf32, #tpu.memory_space<vmem>>, vector<4x1024xf32>,
    %c0_16 = arith.constant 0 : index
    %c0_17 = arith.constant 0 : index
    %13 = vector.load %arg18[%c0_16, %c0_17] : memref<4x1057xf32, #tpu.memory_space<vmem>>, vector<4x1024xf32>
    %c0_18 = arith.constant 0 : index
    %c1 = arith.constant 1 : index
    %14 = vector.load %arg18[%c0_18, %c1] : memref<4x1057xf32, #tpu.memory_space<vmem>>, vector<4x1024xf32>
    %15 = arith.maximumf %13, %14 : vector<4x1024xf32>
    %c0_19 = arith.constant 0 : index
    %c32 = arith.constant 32 : index
    %16 = vector.load %arg18[%c0_19, %c32] : memref<4x1057xf32, #tpu.memory_space<vmem>>, vector<4x1024xf32>
    %c0_20 = arith.constant 0 : index
    %c33 = arith.constant 33 : index
    %17 = vector.load %arg18[%c0_20, %c33] : memref<4x1057xf32, #tpu.memory_space<vmem>>, vector<4x1024xf32>
    %18 = arith.maximumf %16, %17 : vector<4x1024xf32>
    %19 = arith.maximumf %15, %18 : vector<4x1024xf32>
    %c0_21 = arith.constant 0 : index
    %c0_22 = arith.constant 0 : index
    %20 = vector.load %arg2[%c0_21, %c0_22] : memref<1024x256xf32, #tpu.memory_space<vmem>>, vector<1024x256xf32>
    %cst_23 = arith.constant dense<0.000000e+00> : vector<4x256xf32>
    %21 = tpu.matmul %19, %20, %cst_23 {dimension_numbers = #tpu.dot_dimension_numbers<[1], [0], [0], [1], [0, 0, 1, 1], [], []>} : vector<4x1024xf32>, vector<1024x256xf32>, vector<4x256xf32> -> vector<4x256xf32>
    %c0_24 = arith.constant 0 : index
    %c0_25 = arith.constant 0 : index
    %22 = vector.load %arg5[%c0_24, %c0_25] : memref<4x1xf32, #tpu.memory_space<vmem>>, vector<4x1xf32>
    %23 = vector.broadcast %22 : vector<4x1xf32> to vector<4x256xf32>
    %24 = arith.mulf %21, %23 : vector<4x256xf32>
    %c0_26 = arith.constant 0 : index
    %c0_27 = arith.constant 0 : index
    %25 = vector.load %arg6[%c0_26, %c0_27] : memref<4x1xf32, #tpu.memory_space<vmem>>, vector<4x1xf32>
    %26 = vector.broadcast %25 : vector<4x1xf32> to vector<4x256xf32>
    %27 = arith.addf %24, %26 : vector<4x256xf32>
    %cst_28 = arith.constant 0.000000e+00 : f32
    %28 = vector.broadcast %cst_28 : f32 to vector<4x256xf32>
    %29 = arith.maximumf %27, %28 : vector<4x256xf32>
    %c0_29 = arith.constant 0 : index
    %c128 = arith.constant 128 : index
    %30 = vector.load %arg19[%c0_29, %c128] : memref<4x512xf32, #tpu.memory_space<vmem>>, vector<4x256xf32>
    tpu.vector_store %arg19[%c0_29, %c128], %29 {strides = array<i32>} : memref<4x512xf32, #tpu.memory_space<vmem>>, vector<4x256xf32>,
    %c2 = arith.constant 2 : index
    %c0_30 = arith.constant 0 : index
    %c0_31 = arith.constant 0 : index
    %31 = vector.load %arg4[%c2, %c0_30, %c0_31] : memref<7x1x256xf32, #tpu.memory_space<vmem>>, vector<1x1x256xf32>
    %32 = vector.shape_cast %31 : vector<1x1x256xf32> to vector<1x256xf32>
    %c4 = arith.constant 4 : index
    %c0_32 = arith.constant 0 : index
    %c0_33 = arith.constant 0 : index
    %33 = vector.load %arg4[%c4, %c0_32, %c0_33] : memref<7x1x256xf32, #tpu.memory_space<vmem>>, vector<1x1x256xf32>
    %34 = vector.shape_cast %33 : vector<1x1x256xf32> to vector<1x256xf32>
    %cst_34 = arith.constant 0.000000e+00 : f32
    %35 = vector.broadcast %cst_34 : f32 to vector<8x256xf32>
    %c0_35 = arith.constant 0 : index
    %c0_36 = arith.constant 0 : index
    %36 = vector.load %arg8[%c0_35, %c0_36] : memref<8x1xf32, #tpu.memory_space<vmem>>, vector<8x1xf32>
    %37 = vector.broadcast %36 : vector<8x1xf32> to vector<8x256xf32>
    %38 = arith.addf %35, %37 : vector<8x256xf32>
    %c0_37 = arith.constant 0 : index
    %c111 = arith.constant 111 : index
    %39 = vector.load %arg19[%c0_37, %c111] : memref<4x512xf32, #tpu.memory_space<vmem>>, vector<4x256xf32>
    %40 = vector.broadcast %32 : vector<1x256xf32> to vector<4x256xf32>
    %41 = arith.mulf %39, %40 : vector<4x256xf32>
    %c0_38 = arith.constant 0 : index
    %c0_39 = arith.constant 0 : index
    %c0_40 = arith.constant 0 : index
    %42 = vector.load %arg7[%c0_38, %c0_39, %c0_40] : memref<9x8x4xf32, #tpu.memory_space<vmem>>, vector<1x8x4xf32>
    %43 = vector.shape_cast %42 : vector<1x8x4xf32> to vector<8x4xf32>
    %44 = vector.extract_strided_slice %43 {offsets = [0, 0], sizes = [8, 1], strides = [1, 1]} : vector<8x4xf32> to vector<8x1xf32>
    %45 = vector.extract_strided_slice %41 {offsets = [0, 0], sizes = [1, 256], strides = [1, 1]} : vector<4x256xf32> to vector<1x256xf32>
    %46 = vector.broadcast %44 : vector<8x1xf32> to vector<8x256xf32>
    %47 = vector.broadcast %45 : vector<1x256xf32> to vector<8x256xf32>
    %48 = arith.mulf %46, %47 : vector<8x256xf32>
    %49 = vector.extract_strided_slice %43 {offsets = [0, 1], sizes = [8, 1], strides = [1, 1]} : vector<8x4xf32> to vector<8x1xf32>
    %50 = vector.extract_strided_slice %41 {offsets = [1, 0], sizes = [1, 256], strides = [1, 1]} : vector<4x256xf32> to vector<1x256xf32>
    %51 = vector.broadcast %49 : vector<8x1xf32> to vector<8x256xf32>
    %52 = vector.broadcast %50 : vector<1x256xf32> to vector<8x256xf32>
    %53 = arith.mulf %51, %52 : vector<8x256xf32>
    %54 = arith.addf %48, %53 : vector<8x256xf32>
    %55 = vector.extract_strided_slice %43 {offsets = [0, 2], sizes = [8, 1], strides = [1, 1]} : vector<8x4xf32> to vector<8x1xf32>
    %56 = vector.extract_strided_slice %41 {offsets = [2, 0], sizes = [1, 256], strides = [1, 1]} : vector<4x256xf32> to vector<1x256xf32>
    %57 = vector.broadcast %55 : vector<8x1xf32> to vector<8x256xf32>
    %58 = vector.broadcast %56 : vector<1x256xf32> to vector<8x256xf32>
    %59 = arith.mulf %57, %58 : vector<8x256xf32>
    %60 = arith.addf %54, %59 : vector<8x256xf32>
    %61 = vector.extract_strided_slice %43 {offsets = [0, 3], sizes = [8, 1], strides = [1, 1]} : vector<8x4xf32> to vector<8x1xf32>
    %62 = vector.extract_strided_slice %41 {offsets = [3, 0], sizes = [1, 256], strides = [1, 1]} : vector<4x256xf32> to vector<1x256xf32>
    %63 = vector.broadcast %61 : vector<8x1xf32> to vector<8x256xf32>
    %64 = vector.broadcast %62 : vector<1x256xf32> to vector<8x256xf32>
    %65 = arith.mulf %63, %64 : vector<8x256xf32>
    %66 = arith.addf %60, %65 : vector<8x256xf32>
    %67 = arith.addf %38, %66 : vector<8x256xf32>
    %c0_41 = arith.constant 0 : index
    %c112 = arith.constant 112 : index
    %68 = vector.load %arg19[%c0_41, %c112] : memref<4x512xf32, #tpu.memory_space<vmem>>, vector<4x256xf32>
    %c1_42 = arith.constant 1 : index
    %c0_43 = arith.constant 0 : index
    %c0_44 = arith.constant 0 : index
    %69 = vector.load %arg7[%c1_42, %c0_43, %c0_44] : memref<9x8x4xf32, #tpu.memory_space<vmem>>, vector<1x8x4xf32>
    %70 = vector.shape_cast %69 : vector<1x8x4xf32> to vector<8x4xf32>
    %71 = vector.extract_strided_slice %70 {offsets = [0, 0], sizes = [8, 1], strides = [1, 1]} : vector<8x4xf32> to vector<8x1xf32>
    %72 = vector.extract_strided_slice %68 {offsets = [0, 0], sizes = [1, 256], strides = [1, 1]} : vector<4x256xf32> to vector<1x256xf32>
    %73 = vector.broadcast %71 : vector<8x1xf32> to vector<8x256xf32>
    %74 = vector.broadcast %72 : vector<1x256xf32> to vector<8x256xf32>
    %75 = arith.mulf %73, %74 : vector<8x256xf32>
    %76 = vector.extract_strided_slice %70 {offsets = [0, 1], sizes = [8, 1], strides = [1, 1]} : vector<8x4xf32> to vector<8x1xf32>
    %77 = vector.extract_strided_slice %68 {offsets = [1, 0], sizes = [1, 256], strides = [1, 1]} : vector<4x256xf32> to vector<1x256xf32>
    %78 = vector.broadcast %76 : vector<8x1xf32> to vector<8x256xf32>
    %79 = vector.broadcast %77 : vector<1x256xf32> to vector<8x256xf32>
    %80 = arith.mulf %78, %79 : vector<8x256xf32>
    %81 = arith.addf %75, %80 : vector<8x256xf32>
    %82 = vector.extract_strided_slice %70 {offsets = [0, 2], sizes = [8, 1], strides = [1, 1]} : vector<8x4xf32> to vector<8x1xf32>
    %83 = vector.extract_strided_slice %68 {offsets = [2, 0], sizes = [1, 256], strides = [1, 1]} : vector<4x256xf32> to vector<1x256xf32>
    %84 = vector.broadcast %82 : vector<8x1xf32> to vector<8x256xf32>
    %85 = vector.broadcast %83 : vector<1x256xf32> to vector<8x256xf32>
    %86 = arith.mulf %84, %85 : vector<8x256xf32>
    %87 = arith.addf %81, %86 : vector<8x256xf32>
    %88 = vector.extract_strided_slice %70 {offsets = [0, 3], sizes = [8, 1], strides = [1, 1]} : vector<8x4xf32> to vector<8x1xf32>
    %89 = vector.extract_strided_slice %68 {offsets = [3, 0], sizes = [1, 256], strides = [1, 1]} : vector<4x256xf32> to vector<1x256xf32>
    %90 = vector.broadcast %88 : vector<8x1xf32> to vector<8x256xf32>
    %91 = vector.broadcast %89 : vector<1x256xf32> to vector<8x256xf32>
    %92 = arith.mulf %90, %91 : vector<8x256xf32>
    %93 = arith.addf %87, %92 : vector<8x256xf32>
    %94 = arith.addf %67, %93 : vector<8x256xf32>
    %c0_45 = arith.constant 0 : index
    %c113 = arith.constant 113 : index
    %95 = vector.load %arg19[%c0_45, %c113] : memref<4x512xf32, #tpu.memory_space<vmem>>, vector<4x256xf32>
    %96 = vector.broadcast %34 : vector<1x256xf32> to vector<4x256xf32>
    %97 = arith.mulf %95, %96 : vector<4x256xf32>
    %c2_46 = arith.constant 2 : index
    %c0_47 = arith.constant 0 : index
    %c0_48 = arith.constant 0 : index
    %98 = vector.load %arg7[%c2_46, %c0_47, %c0_48] : memref<9x8x4xf32, #tpu.memory_space<vmem>>, vector<1x8x4xf32>
    %99 = vector.shape_cast %98 : vector<1x8x4xf32> to vector<8x4xf32>
    %100 = vector.extract_strided_slice %99 {offsets = [0, 0], sizes = [8, 1], strides = [1, 1]} : vector<8x4xf32> to vector<8x1xf32>
    %101 = vector.extract_strided_slice %97 {offsets = [0, 0], sizes = [1, 256], strides = [1, 1]} : vector<4x256xf32> to vector<1x256xf32>
    %102 = vector.broadcast %100 : vector<8x1xf32> to vector<8x256xf32>
    %103 = vector.broadcast %101 : vector<1x256xf32> to vector<8x256xf32>
    %104 = arith.mulf %102, %103 : vector<8x256xf32>
    %105 = vector.extract_strided_slice %99 {offsets = [0, 1], sizes = [8, 1], strides = [1, 1]} : vector<8x4xf32> to vector<8x1xf32>
    %106 = vector.extract_strided_slice %97 {offsets = [1, 0], sizes = [1, 256], strides = [1, 1]} : vector<4x256xf32> to vector<1x256xf32>
    %107 = vector.broadcast %105 : vector<8x1xf32> to vector<8x256xf32>
    %108 = vector.broadcast %106 : vector<1x256xf32> to vector<8x256xf32>
    %109 = arith.mulf %107, %108 : vector<8x256xf32>
    %110 = arith.addf %104, %109 : vector<8x256xf32>
    %111 = vector.extract_strided_slice %99 {offsets = [0, 2], sizes = [8, 1], strides = [1, 1]} : vector<8x4xf32> to vector<8x1xf32>
    %112 = vector.extract_strided_slice %97 {offsets = [2, 0], sizes = [1, 256], strides = [1, 1]} : vector<4x256xf32> to vector<1x256xf32>
    %113 = vector.broadcast %111 : vector<8x1xf32> to vector<8x256xf32>
    %114 = vector.broadcast %112 : vector<1x256xf32> to vector<8x256xf32>
    %115 = arith.mulf %113, %114 : vector<8x256xf32>
    %116 = arith.addf %110, %115 : vector<8x256xf32>
    %117 = vector.extract_strided_slice %99 {offsets = [0, 3], sizes = [8, 1], strides = [1, 1]} : vector<8x4xf32> to vector<8x1xf32>
    %118 = vector.extract_strided_slice %97 {offsets = [3, 0], sizes = [1, 256], strides = [1, 1]} : vector<4x256xf32> to vector<1x256xf32>
    %119 = vector.broadcast %117 : vector<8x1xf32> to vector<8x256xf32>
    %120 = vector.broadcast %118 : vector<1x256xf32> to vector<8x256xf32>
    %121 = arith.mulf %119, %120 : vector<8x256xf32>
    %122 = arith.addf %116, %121 : vector<8x256xf32>
    %123 = arith.addf %94, %122 : vector<8x256xf32>
    %c0_49 = arith.constant 0 : index
    %c127 = arith.constant 127 : index
    %124 = vector.load %arg19[%c0_49, %c127] : memref<4x512xf32, #tpu.memory_space<vmem>>, vector<4x256xf32>
    %125 = vector.broadcast %32 : vector<1x256xf32> to vector<4x256xf32>
    %126 = arith.mulf %124, %125 : vector<4x256xf32>
    %c3 = arith.constant 3 : index
    %c0_50 = arith.constant 0 : index
    %c0_51 = arith.constant 0 : index
    %127 = vector.load %arg7[%c3, %c0_50, %c0_51] : memref<9x8x4xf32, #tpu.memory_space<vmem>>, vector<1x8x4xf32>
    %128 = vector.shape_cast %127 : vector<1x8x4xf32> to vector<8x4xf32>
    %129 = vector.extract_strided_slice %128 {offsets = [0, 0], sizes = [8, 1], strides = [1, 1]} : vector<8x4xf32> to vector<8x1xf32>
    %130 = vector.extract_strided_slice %126 {offsets = [0, 0], sizes = [1, 256], strides = [1, 1]} : vector<4x256xf32> to vector<1x256xf32>
    %131 = vector.broadcast %129 : vector<8x1xf32> to vector<8x256xf32>
    %132 = vector.broadcast %130 : vector<1x256xf32> to vector<8x256xf32>
    %133 = arith.mulf %131, %132 : vector<8x256xf32>
    %134 = vector.extract_strided_slice %128 {offsets = [0, 1], sizes = [8, 1], strides = [1, 1]} : vector<8x4xf32> to vector<8x1xf32>
    %135 = vector.extract_strided_slice %126 {offsets = [1, 0], sizes = [1, 256], strides = [1, 1]} : vector<4x256xf32> to vector<1x256xf32>
    %136 = vector.broadcast %134 : vector<8x1xf32> to vector<8x256xf32>
    %137 = vector.broadcast %135 : vector<1x256xf32> to vector<8x256xf32>
    %138 = arith.mulf %136, %137 : vector<8x256xf32>
    %139 = arith.addf %133, %138 : vector<8x256xf32>
    %140 = vector.extract_strided_slice %128 {offsets = [0, 2], sizes = [8, 1], strides = [1, 1]} : vector<8x4xf32> to vector<8x1xf32>
    %141 = vector.extract_strided_slice %126 {offsets = [2, 0], sizes = [1, 256], strides = [1, 1]} : vector<4x256xf32> to vector<1x256xf32>
    %142 = vector.broadcast %140 : vector<8x1xf32> to vector<8x256xf32>
    %143 = vector.broadcast %141 : vector<1x256xf32> to vector<8x256xf32>
    %144 = arith.mulf %142, %143 : vector<8x256xf32>
    %145 = arith.addf %139, %144 : vector<8x256xf32>
    %146 = vector.extract_strided_slice %128 {offsets = [0, 3], sizes = [8, 1], strides = [1, 1]} : vector<8x4xf32> to vector<8x1xf32>
    %147 = vector.extract_strided_slice %126 {offsets = [3, 0], sizes = [1, 256], strides = [1, 1]} : vector<4x256xf32> to vector<1x256xf32>
    %148 = vector.broadcast %146 : vector<8x1xf32> to vector<8x256xf32>
    %149 = vector.broadcast %147 : vector<1x256xf32> to vector<8x256xf32>
    %150 = arith.mulf %148, %149 : vector<8x256xf32>
    %151 = arith.addf %145, %150 : vector<8x256xf32>
    %152 = arith.addf %123, %151 : vector<8x256xf32>
    %c0_52 = arith.constant 0 : index
    %c128_53 = arith.constant 128 : index
    %153 = vector.load %arg19[%c0_52, %c128_53] : memref<4x512xf32, #tpu.memory_space<vmem>>, vector<4x256xf32>
    %c4_54 = arith.constant 4 : index
    %c0_55 = arith.constant 0 : index
    %c0_56 = arith.constant 0 : index
    %154 = vector.load %arg7[%c4_54, %c0_55, %c0_56] : memref<9x8x4xf32, #tpu.memory_space<vmem>>, vector<1x8x4xf32>
    %155 = vector.shape_cast %154 : vector<1x8x4xf32> to vector<8x4xf32>
    %156 = vector.extract_strided_slice %155 {offsets = [0, 0], sizes = [8, 1], strides = [1, 1]} : vector<8x4xf32> to vector<8x1xf32>
    %157 = vector.extract_strided_slice %153 {offsets = [0, 0], sizes = [1, 256], strides = [1, 1]} : vector<4x256xf32> to vector<1x256xf32>
    %158 = vector.broadcast %156 : vector<8x1xf32> to vector<8x256xf32>
    %159 = vector.broadcast %157 : vector<1x256xf32> to vector<8x256xf32>
    %160 = arith.mulf %158, %159 : vector<8x256xf32>
    %161 = vector.extract_strided_slice %155 {offsets = [0, 1], sizes = [8, 1], strides = [1, 1]} : vector<8x4xf32> to vector<8x1xf32>
    %162 = vector.extract_strided_slice %153 {offsets = [1, 0], sizes = [1, 256], strides = [1, 1]} : vector<4x256xf32> to vector<1x256xf32>
    %163 = vector.broadcast %161 : vector<8x1xf32> to vector<8x256xf32>
    %164 = vector.broadcast %162 : vector<1x256xf32> to vector<8x256xf32>
    %165 = arith.mulf %163, %164 : vector<8x256xf32>
    %166 = arith.addf %160, %165 : vector<8x256xf32>
    %167 = vector.extract_strided_slice %155 {offsets = [0, 2], sizes = [8, 1], strides = [1, 1]} : vector<8x4xf32> to vector<8x1xf32>
    %168 = vector.extract_strided_slice %153 {offsets = [2, 0], sizes = [1, 256], strides = [1, 1]} : vector<4x256xf32> to vector<1x256xf32>
    %169 = vector.broadcast %167 : vector<8x1xf32> to vector<8x256xf32>
    %170 = vector.broadcast %168 : vector<1x256xf32> to vector<8x256xf32>
    %171 = arith.mulf %169, %170 : vector<8x256xf32>
    %172 = arith.addf %166, %171 : vector<8x256xf32>
    %173 = vector.extract_strided_slice %155 {offsets = [0, 3], sizes = [8, 1], strides = [1, 1]} : vector<8x4xf32> to vector<8x1xf32>
    %174 = vector.extract_strided_slice %153 {offsets = [3, 0], sizes = [1, 256], strides = [1, 1]} : vector<4x256xf32> to vector<1x256xf32>
    %175 = vector.broadcast %173 : vector<8x1xf32> to vector<8x256xf32>
    %176 = vector.broadcast %174 : vector<1x256xf32> to vector<8x256xf32>
    %177 = arith.mulf %175, %176 : vector<8x256xf32>
    %178 = arith.addf %172, %177 : vector<8x256xf32>
    %179 = arith.addf %152, %178 : vector<8x256xf32>
    %c0_57 = arith.constant 0 : index
    %c129 = arith.constant 129 : index
    %180 = vector.load %arg19[%c0_57, %c129] : memref<4x512xf32, #tpu.memory_space<vmem>>, vector<4x256xf32>
    %181 = vector.broadcast %34 : vector<1x256xf32> to vector<4x256xf32>
    %182 = arith.mulf %180, %181 : vector<4x256xf32>
    %c5 = arith.constant 5 : index
    %c0_58 = arith.constant 0 : index
    %c0_59 = arith.constant 0 : index
    %183 = vector.load %arg7[%c5, %c0_58, %c0_59] : memref<9x8x4xf32, #tpu.memory_space<vmem>>, vector<1x8x4xf32>
    %184 = vector.shape_cast %183 : vector<1x8x4xf32> to vector<8x4xf32>
    %185 = vector.extract_strided_slice %184 {offsets = [0, 0], sizes = [8, 1], strides = [1, 1]} : vector<8x4xf32> to vector<8x1xf32>
    %186 = vector.extract_strided_slice %182 {offsets = [0, 0], sizes = [1, 256], strides = [1, 1]} : vector<4x256xf32> to vector<1x256xf32>
    %187 = vector.broadcast %185 : vector<8x1xf32> to vector<8x256xf32>
    %188 = vector.broadcast %186 : vector<1x256xf32> to vector<8x256xf32>
    %189 = arith.mulf %187, %188 : vector<8x256xf32>
    %190 = vector.extract_strided_slice %184 {offsets = [0, 1], sizes = [8, 1], strides = [1, 1]} : vector<8x4xf32> to vector<8x1xf32>
    %191 = vector.extract_strided_slice %182 {offsets = [1, 0], sizes = [1, 256], strides = [1, 1]} : vector<4x256xf32> to vector<1x256xf32>
    %192 = vector.broadcast %190 : vector<8x1xf32> to vector<8x256xf32>
    %193 = vector.broadcast %191 : vector<1x256xf32> to vector<8x256xf32>
    %194 = arith.mulf %192, %193 : vector<8x256xf32>
    %195 = arith.addf %189, %194 : vector<8x256xf32>
    %196 = vector.extract_strided_slice %184 {offsets = [0, 2], sizes = [8, 1], strides = [1, 1]} : vector<8x4xf32> to vector<8x1xf32>
    %197 = vector.extract_strided_slice %182 {offsets = [2, 0], sizes = [1, 256], strides = [1, 1]} : vector<4x256xf32> to vector<1x256xf32>
    %198 = vector.broadcast %196 : vector<8x1xf32> to vector<8x256xf32>
    %199 = vector.broadcast %197 : vector<1x256xf32> to vector<8x256xf32>
    %200 = arith.mulf %198, %199 : vector<8x256xf32>
    %201 = arith.addf %195, %200 : vector<8x256xf32>
    %202 = vector.extract_strided_slice %184 {offsets = [0, 3], sizes = [8, 1], strides = [1, 1]} : vector<8x4xf32> to vector<8x1xf32>
    %203 = vector.extract_strided_slice %182 {offsets = [3, 0], sizes = [1, 256], strides = [1, 1]} : vector<4x256xf32> to vector<1x256xf32>
    %204 = vector.broadcast %202 : vector<8x1xf32> to vector<8x256xf32>
    %205 = vector.broadcast %203 : vector<1x256xf32> to vector<8x256xf32>
    %206 = arith.mulf %204, %205 : vector<8x256xf32>
    %207 = arith.addf %201, %206 : vector<8x256xf32>
    %208 = arith.addf %179, %207 : vector<8x256xf32>
    %c0_60 = arith.constant 0 : index
    %c143 = arith.constant 143 : index
    %209 = vector.load %arg19[%c0_60, %c143] : memref<4x512xf32, #tpu.memory_space<vmem>>, vector<4x256xf32>
    %210 = vector.broadcast %32 : vector<1x256xf32> to vector<4x256xf32>
    %211 = arith.mulf %209, %210 : vector<4x256xf32>
    %c6 = arith.constant 6 : index
    %c0_61 = arith.constant 0 : index
    %c0_62 = arith.constant 0 : index
    %212 = vector.load %arg7[%c6, %c0_61, %c0_62] : memref<9x8x4xf32, #tpu.memory_space<vmem>>, vector<1x8x4xf32>
    %213 = vector.shape_cast %212 : vector<1x8x4xf32> to vector<8x4xf32>
    %214 = vector.extract_strided_slice %213 {offsets = [0, 0], sizes = [8, 1], strides = [1, 1]} : vector<8x4xf32> to vector<8x1xf32>
    %215 = vector.extract_strided_slice %211 {offsets = [0, 0], sizes = [1, 256], strides = [1, 1]} : vector<4x256xf32> to vector<1x256xf32>
    %216 = vector.broadcast %214 : vector<8x1xf32> to vector<8x256xf32>
    %217 = vector.broadcast %215 : vector<1x256xf32> to vector<8x256xf32>
    %218 = arith.mulf %216, %217 : vector<8x256xf32>
    %219 = vector.extract_strided_slice %213 {offsets = [0, 1], sizes = [8, 1], strides = [1, 1]} : vector<8x4xf32> to vector<8x1xf32>
    %220 = vector.extract_strided_slice %211 {offsets = [1, 0], sizes = [1, 256], strides = [1, 1]} : vector<4x256xf32> to vector<1x256xf32>
    %221 = vector.broadcast %219 : vector<8x1xf32> to vector<8x256xf32>
    %222 = vector.broadcast %220 : vector<1x256xf32> to vector<8x256xf32>
    %223 = arith.mulf %221, %222 : vector<8x256xf32>
    %224 = arith.addf %218, %223 : vector<8x256xf32>
    %225 = vector.extract_strided_slice %213 {offsets = [0, 2], sizes = [8, 1], strides = [1, 1]} : vector<8x4xf32> to vector<8x1xf32>
    %226 = vector.extract_strided_slice %211 {offsets = [2, 0], sizes = [1, 256], strides = [1, 1]} : vector<4x256xf32> to vector<1x256xf32>
    %227 = vector.broadcast %225 : vector<8x1xf32> to vector<8x256xf32>
    %228 = vector.broadcast %226 : vector<1x256xf32> to vector<8x256xf32>
    %229 = arith.mulf %227, %228 : vector<8x256xf32>
    %230 = arith.addf %224, %229 : vector<8x256xf32>
    %231 = vector.extract_strided_slice %213 {offsets = [0, 3], sizes = [8, 1], strides = [1, 1]} : vector<8x4xf32> to vector<8x1xf32>
    %232 = vector.extract_strided_slice %211 {offsets = [3, 0], sizes = [1, 256], strides = [1, 1]} : vector<4x256xf32> to vector<1x256xf32>
    %233 = vector.broadcast %231 : vector<8x1xf32> to vector<8x256xf32>
    %234 = vector.broadcast %232 : vector<1x256xf32> to vector<8x256xf32>
    %235 = arith.mulf %233, %234 : vector<8x256xf32>
    %236 = arith.addf %230, %235 : vector<8x256xf32>
    %237 = arith.addf %208, %236 : vector<8x256xf32>
    %c0_63 = arith.constant 0 : index
    %c144 = arith.constant 144 : index
    %238 = vector.load %arg19[%c0_63, %c144] : memref<4x512xf32, #tpu.memory_space<vmem>>, vector<4x256xf32>
    %c7 = arith.constant 7 : index
    %c0_64 = arith.constant 0 : index
    %c0_65 = arith.constant 0 : index
    %239 = vector.load %arg7[%c7, %c0_64, %c0_65] : memref<9x8x4xf32, #tpu.memory_space<vmem>>, vector<1x8x4xf32>
    %240 = vector.shape_cast %239 : vector<1x8x4xf32> to vector<8x4xf32>
    %241 = vector.extract_strided_slice %240 {offsets = [0, 0], sizes = [8, 1], strides = [1, 1]} : vector<8x4xf32> to vector<8x1xf32>
    %242 = vector.extract_strided_slice %238 {offsets = [0, 0], sizes = [1, 256], strides = [1, 1]} : vector<4x256xf32> to vector<1x256xf32>
    %243 = vector.broadcast %241 : vector<8x1xf32> to vector<8x256xf32>
    %244 = vector.broadcast %242 : vector<1x256xf32> to vector<8x256xf32>
    %245 = arith.mulf %243, %244 : vector<8x256xf32>
    %246 = vector.extract_strided_slice %240 {offsets = [0, 1], sizes = [8, 1], strides = [1, 1]} : vector<8x4xf32> to vector<8x1xf32>
    %247 = vector.extract_strided_slice %238 {offsets = [1, 0], sizes = [1, 256], strides = [1, 1]} : vector<4x256xf32> to vector<1x256xf32>
    %248 = vector.broadcast %246 : vector<8x1xf32> to vector<8x256xf32>
    %249 = vector.broadcast %247 : vector<1x256xf32> to vector<8x256xf32>
    %250 = arith.mulf %248, %249 : vector<8x256xf32>
    %251 = arith.addf %245, %250 : vector<8x256xf32>
    %252 = vector.extract_strided_slice %240 {offsets = [0, 2], sizes = [8, 1], strides = [1, 1]} : vector<8x4xf32> to vector<8x1xf32>
    %253 = vector.extract_strided_slice %238 {offsets = [2, 0], sizes = [1, 256], strides = [1, 1]} : vector<4x256xf32> to vector<1x256xf32>
    %254 = vector.broadcast %252 : vector<8x1xf32> to vector<8x256xf32>
    %255 = vector.broadcast %253 : vector<1x256xf32> to vector<8x256xf32>
    %256 = arith.mulf %254, %255 : vector<8x256xf32>
    %257 = arith.addf %251, %256 : vector<8x256xf32>
    %258 = vector.extract_strided_slice %240 {offsets = [0, 3], sizes = [8, 1], strides = [1, 1]} : vector<8x4xf32> to vector<8x1xf32>
    %259 = vector.extract_strided_slice %238 {offsets = [3, 0], sizes = [1, 256], strides = [1, 1]} : vector<4x256xf32> to vector<1x256xf32>
    %260 = vector.broadcast %258 : vector<8x1xf32> to vector<8x256xf32>
    %261 = vector.broadcast %259 : vector<1x256xf32> to vector<8x256xf32>
    %262 = arith.mulf %260, %261 : vector<8x256xf32>
    %263 = arith.addf %257, %262 : vector<8x256xf32>
    %264 = arith.addf %237, %263 : vector<8x256xf32>
    %c0_66 = arith.constant 0 : index
    %c145 = arith.constant 145 : index
    %265 = vector.load %arg19[%c0_66, %c145] : memref<4x512xf32, #tpu.memory_space<vmem>>, vector<4x256xf32>
    %266 = vector.broadcast %34 : vector<1x256xf32> to vector<4x256xf32>
    %267 = arith.mulf %265, %266 : vector<4x256xf32>
    %c8 = arith.constant 8 : index
    %c0_67 = arith.constant 0 : index
    %c0_68 = arith.constant 0 : index
    %268 = vector.load %arg7[%c8, %c0_67, %c0_68] : memref<9x8x4xf32, #tpu.memory_space<vmem>>, vector<1x8x4xf32>
    %269 = vector.shape_cast %268 : vector<1x8x4xf32> to vector<8x4xf32>
    %270 = vector.extract_strided_slice %269 {offsets = [0, 0], sizes = [8, 1], strides = [1, 1]} : vector<8x4xf32> to vector<8x1xf32>
    %271 = vector.extract_strided_slice %267 {offsets = [0, 0], sizes = [1, 256], strides = [1, 1]} : vector<4x256xf32> to vector<1x256xf32>
    %272 = vector.broadcast %270 : vector<8x1xf32> to vector<8x256xf32>
    %273 = vector.broadcast %271 : vector<1x256xf32> to vector<8x256xf32>
    %274 = arith.mulf %272, %273 : vector<8x256xf32>
    %275 = vector.extract_strided_slice %269 {offsets = [0, 1], sizes = [8, 1], strides = [1, 1]} : vector<8x4xf32> to vector<8x1xf32>
    %276 = vector.extract_strided_slice %267 {offsets = [1, 0], sizes = [1, 256], strides = [1, 1]} : vector<4x256xf32> to vector<1x256xf32>
    %277 = vector.broadcast %275 : vector<8x1xf32> to vector<8x256xf32>
    %278 = vector.broadcast %276 : vector<1x256xf32> to vector<8x256xf32>
    %279 = arith.mulf %277, %278 : vector<8x256xf32>
    %280 = arith.addf %274, %279 : vector<8x256xf32>
    %281 = vector.extract_strided_slice %269 {offsets = [0, 2], sizes = [8, 1], strides = [1, 1]} : vector<8x4xf32> to vector<8x1xf32>
    %282 = vector.extract_strided_slice %267 {offsets = [2, 0], sizes = [1, 256], strides = [1, 1]} : vector<4x256xf32> to vector<1x256xf32>
    %283 = vector.broadcast %281 : vector<8x1xf32> to vector<8x256xf32>
    %284 = vector.broadcast %282 : vector<1x256xf32> to vector<8x256xf32>
    %285 = arith.mulf %283, %284 : vector<8x256xf32>
    %286 = arith.addf %280, %285 : vector<8x256xf32>
    %287 = vector.extract_strided_slice %269 {offsets = [0, 3], sizes = [8, 1], strides = [1, 1]} : vector<8x4xf32> to vector<8x1xf32>
    %288 = vector.extract_strided_slice %267 {offsets = [3, 0], sizes = [1, 256], strides = [1, 1]} : vector<4x256xf32> to vector<1x256xf32>
    %289 = vector.broadcast %287 : vector<8x1xf32> to vector<8x256xf32>
    %290 = vector.broadcast %288 : vector<1x256xf32> to vector<8x256xf32>
    %291 = arith.mulf %289, %290 : vector<8x256xf32>
    %292 = arith.addf %286, %291 : vector<8x256xf32>
    %293 = arith.addf %264, %292 : vector<8x256xf32>
    %c0_69 = arith.constant 0 : index
    %c0_70 = arith.constant 0 : index
    %294 = vector.load %arg9[%c0_69, %c0_70] : memref<8x1xf32, #tpu.memory_space<vmem>>, vector<8x1xf32>
    %295 = vector.broadcast %294 : vector<8x1xf32> to vector<8x256xf32>
    %296 = arith.mulf %293, %295 : vector<8x256xf32>
    %c0_71 = arith.constant 0 : index
    %c0_72 = arith.constant 0 : index
    %297 = vector.load %arg10[%c0_71, %c0_72] : memref<8x1xf32, #tpu.memory_space<vmem>>, vector<8x1xf32>
    %298 = vector.broadcast %297 : vector<8x1xf32> to vector<8x256xf32>
    %299 = arith.addf %296, %298 : vector<8x256xf32>
    %cst_73 = arith.constant 0.000000e+00 : f32
    %300 = vector.broadcast %cst_73 : f32 to vector<8x256xf32>
    %301 = arith.maximumf %299, %300 : vector<8x256xf32>
    %c0_74 = arith.constant 0 : index
    %c128_75 = arith.constant 128 : index
    %302 = vector.load %arg20[%c0_74, %c128_75] : memref<8x512xf32, #tpu.memory_space<vmem>>, vector<8x256xf32>
    tpu.vector_store %arg20[%c0_74, %c128_75], %301 {strides = array<i32>} : memref<8x512xf32, #tpu.memory_space<vmem>>, vector<8x256xf32>,
    %c2_76 = arith.constant 2 : index
    %c0_77 = arith.constant 0 : index
    %c0_78 = arith.constant 0 : index
    %303 = vector.load %arg4[%c2_76, %c0_77, %c0_78] : memref<7x1x256xf32, #tpu.memory_space<vmem>>, vector<1x1x256xf32>
    %304 = vector.shape_cast %303 : vector<1x1x256xf32> to vector<1x256xf32>
    %c4_79 = arith.constant 4 : index
    %c0_80 = arith.constant 0 : index
    %c0_81 = arith.constant 0 : index
    %305 = vector.load %arg4[%c4_79, %c0_80, %c0_81] : memref<7x1x256xf32, #tpu.memory_space<vmem>>, vector<1x1x256xf32>
    %306 = vector.shape_cast %305 : vector<1x1x256xf32> to vector<1x256xf32>
    %cst_82 = arith.constant 0.000000e+00 : f32
    %307 = vector.broadcast %cst_82 : f32 to vector<8x256xf32>
    %c0_83 = arith.constant 0 : index
    %c0_84 = arith.constant 0 : index
    %308 = vector.load %arg12[%c0_83, %c0_84] : memref<8x1xf32, #tpu.memory_space<vmem>>, vector<8x1xf32>
    %309 = vector.broadcast %308 : vector<8x1xf32> to vector<8x256xf32>
    %310 = arith.addf %307, %309 : vector<8x256xf32>
    %c0_85 = arith.constant 0 : index
    %c111_86 = arith.constant 111 : index
    %311 = vector.load %arg20[%c0_85, %c111_86] : memref<8x512xf32, #tpu.memory_space<vmem>>, vector<8x256xf32>
    %312 = vector.broadcast %304 : vector<1x256xf32> to vector<8x256xf32>
    %313 = arith.mulf %311, %312 : vector<8x256xf32>
    %c0_87 = arith.constant 0 : index
    %c0_88 = arith.constant 0 : index
    %c0_89 = arith.constant 0 : index
    %314 = vector.load %arg11[%c0_87, %c0_88, %c0_89] : memref<9x8x8xf32, #tpu.memory_space<vmem>>, vector<1x8x8xf32>
    %315 = vector.shape_cast %314 : vector<1x8x8xf32> to vector<8x8xf32>
    %316 = vector.extract_strided_slice %315 {offsets = [0, 0], sizes = [8, 1], strides = [1, 1]} : vector<8x8xf32> to vector<8x1xf32>
    %317 = vector.extract_strided_slice %313 {offsets = [0, 0], sizes = [1, 256], strides = [1, 1]} : vector<8x256xf32> to vector<1x256xf32>
    %318 = vector.broadcast %316 : vector<8x1xf32> to vector<8x256xf32>
    %319 = vector.broadcast %317 : vector<1x256xf32> to vector<8x256xf32>
    %320 = arith.mulf %318, %319 : vector<8x256xf32>
    %321 = vector.extract_strided_slice %315 {offsets = [0, 1], sizes = [8, 1], strides = [1, 1]} : vector<8x8xf32> to vector<8x1xf32>
    %322 = vector.extract_strided_slice %313 {offsets = [1, 0], sizes = [1, 256], strides = [1, 1]} : vector<8x256xf32> to vector<1x256xf32>
    %323 = vector.broadcast %321 : vector<8x1xf32> to vector<8x256xf32>
    %324 = vector.broadcast %322 : vector<1x256xf32> to vector<8x256xf32>
    %325 = arith.mulf %323, %324 : vector<8x256xf32>
    %326 = arith.addf %320, %325 : vector<8x256xf32>
    %327 = vector.extract_strided_slice %315 {offsets = [0, 2], sizes = [8, 1], strides = [1, 1]} : vector<8x8xf32> to vector<8x1xf32>
    %328 = vector.extract_strided_slice %313 {offsets = [2, 0], sizes = [1, 256], strides = [1, 1]} : vector<8x256xf32> to vector<1x256xf32>
    %329 = vector.broadcast %327 : vector<8x1xf32> to vector<8x256xf32>
    %330 = vector.broadcast %328 : vector<1x256xf32> to vector<8x256xf32>
    %331 = arith.mulf %329, %330 : vector<8x256xf32>
    %332 = arith.addf %326, %331 : vector<8x256xf32>
    %333 = vector.extract_strided_slice %315 {offsets = [0, 3], sizes = [8, 1], strides = [1, 1]} : vector<8x8xf32> to vector<8x1xf32>
    %334 = vector.extract_strided_slice %313 {offsets = [3, 0], sizes = [1, 256], strides = [1, 1]} : vector<8x256xf32> to vector<1x256xf32>
    %335 = vector.broadcast %333 : vector<8x1xf32> to vector<8x256xf32>
    %336 = vector.broadcast %334 : vector<1x256xf32> to vector<8x256xf32>
    %337 = arith.mulf %335, %336 : vector<8x256xf32>
    %338 = arith.addf %332, %337 : vector<8x256xf32>
    %339 = vector.extract_strided_slice %315 {offsets = [0, 4], sizes = [8, 1], strides = [1, 1]} : vector<8x8xf32> to vector<8x1xf32>
    %340 = vector.extract_strided_slice %313 {offsets = [4, 0], sizes = [1, 256], strides = [1, 1]} : vector<8x256xf32> to vector<1x256xf32>
    %341 = vector.broadcast %339 : vector<8x1xf32> to vector<8x256xf32>
    %342 = vector.broadcast %340 : vector<1x256xf32> to vector<8x256xf32>
    %343 = arith.mulf %341, %342 : vector<8x256xf32>
    %344 = arith.addf %338, %343 : vector<8x256xf32>
    %345 = vector.extract_strided_slice %315 {offsets = [0, 5], sizes = [8, 1], strides = [1, 1]} : vector<8x8xf32> to vector<8x1xf32>
    %346 = vector.extract_strided_slice %313 {offsets = [5, 0], sizes = [1, 256], strides = [1, 1]} : vector<8x256xf32> to vector<1x256xf32>
    %347 = vector.broadcast %345 : vector<8x1xf32> to vector<8x256xf32>
    %348 = vector.broadcast %346 : vector<1x256xf32> to vector<8x256xf32>
    %349 = arith.mulf %347, %348 : vector<8x256xf32>
    %350 = arith.addf %344, %349 : vector<8x256xf32>
    %351 = vector.extract_strided_slice %315 {offsets = [0, 6], sizes = [8, 1], strides = [1, 1]} : vector<8x8xf32> to vector<8x1xf32>
    %352 = vector.extract_strided_slice %313 {offsets = [6, 0], sizes = [1, 256], strides = [1, 1]} : vector<8x256xf32> to vector<1x256xf32>
    %353 = vector.broadcast %351 : vector<8x1xf32> to vector<8x256xf32>
    %354 = vector.broadcast %352 : vector<1x256xf32> to vector<8x256xf32>
    %355 = arith.mulf %353, %354 : vector<8x256xf32>
    %356 = arith.addf %350, %355 : vector<8x256xf32>
    %357 = vector.extract_strided_slice %315 {offsets = [0, 7], sizes = [8, 1], strides = [1, 1]} : vector<8x8xf32> to vector<8x1xf32>
    %358 = vector.extract_strided_slice %313 {offsets = [7, 0], sizes = [1, 256], strides = [1, 1]} : vector<8x256xf32> to vector<1x256xf32>
    %359 = vector.broadcast %357 : vector<8x1xf32> to vector<8x256xf32>
    %360 = vector.broadcast %358 : vector<1x256xf32> to vector<8x256xf32>
    %361 = arith.mulf %359, %360 : vector<8x256xf32>
    %362 = arith.addf %356, %361 : vector<8x256xf32>
    %363 = arith.addf %310, %362 : vector<8x256xf32>
    %c0_90 = arith.constant 0 : index
    %c112_91 = arith.constant 112 : index
    %364 = vector.load %arg20[%c0_90, %c112_91] : memref<8x512xf32, #tpu.memory_space<vmem>>, vector<8x256xf32>
    %c1_92 = arith.constant 1 : index
    %c0_93 = arith.constant 0 : index
    %c0_94 = arith.constant 0 : index
    %365 = vector.load %arg11[%c1_92, %c0_93, %c0_94] : memref<9x8x8xf32, #tpu.memory_space<vmem>>, vector<1x8x8xf32>
    %366 = vector.shape_cast %365 : vector<1x8x8xf32> to vector<8x8xf32>
    %367 = vector.extract_strided_slice %366 {offsets = [0, 0], sizes = [8, 1], strides = [1, 1]} : vector<8x8xf32> to vector<8x1xf32>
    %368 = vector.extract_strided_slice %364 {offsets = [0, 0], sizes = [1, 256], strides = [1, 1]} : vector<8x256xf32> to vector<1x256xf32>
    %369 = vector.broadcast %367 : vector<8x1xf32> to vector<8x256xf32>
    %370 = vector.broadcast %368 : vector<1x256xf32> to vector<8x256xf32>
    %371 = arith.mulf %369, %370 : vector<8x256xf32>
    %372 = vector.extract_strided_slice %366 {offsets = [0, 1], sizes = [8, 1], strides = [1, 1]} : vector<8x8xf32> to vector<8x1xf32>
    %373 = vector.extract_strided_slice %364 {offsets = [1, 0], sizes = [1, 256], strides = [1, 1]} : vector<8x256xf32> to vector<1x256xf32>
    %374 = vector.broadcast %372 : vector<8x1xf32> to vector<8x256xf32>
    %375 = vector.broadcast %373 : vector<1x256xf32> to vector<8x256xf32>
    %376 = arith.mulf %374, %375 : vector<8x256xf32>
    %377 = arith.addf %371, %376 : vector<8x256xf32>
    %378 = vector.extract_strided_slice %366 {offsets = [0, 2], sizes = [8, 1], strides = [1, 1]} : vector<8x8xf32> to vector<8x1xf32>
    %379 = vector.extract_strided_slice %364 {offsets = [2, 0], sizes = [1, 256], strides = [1, 1]} : vector<8x256xf32> to vector<1x256xf32>
    %380 = vector.broadcast %378 : vector<8x1xf32> to vector<8x256xf32>
    %381 = vector.broadcast %379 : vector<1x256xf32> to vector<8x256xf32>
    %382 = arith.mulf %380, %381 : vector<8x256xf32>
    %383 = arith.addf %377, %382 : vector<8x256xf32>
    %384 = vector.extract_strided_slice %366 {offsets = [0, 3], sizes = [8, 1], strides = [1, 1]} : vector<8x8xf32> to vector<8x1xf32>
    %385 = vector.extract_strided_slice %364 {offsets = [3, 0], sizes = [1, 256], strides = [1, 1]} : vector<8x256xf32> to vector<1x256xf32>
    %386 = vector.broadcast %384 : vector<8x1xf32> to vector<8x256xf32>
    %387 = vector.broadcast %385 : vector<1x256xf32> to vector<8x256xf32>
    %388 = arith.mulf %386, %387 : vector<8x256xf32>
    %389 = arith.addf %383, %388 : vector<8x256xf32>
    %390 = vector.extract_strided_slice %366 {offsets = [0, 4], sizes = [8, 1], strides = [1, 1]} : vector<8x8xf32> to vector<8x1xf32>
    %391 = vector.extract_strided_slice %364 {offsets = [4, 0], sizes = [1, 256], strides = [1, 1]} : vector<8x256xf32> to vector<1x256xf32>
    %392 = vector.broadcast %390 : vector<8x1xf32> to vector<8x256xf32>
    %393 = vector.broadcast %391 : vector<1x256xf32> to vector<8x256xf32>
    %394 = arith.mulf %392, %393 : vector<8x256xf32>
    %395 = arith.addf %389, %394 : vector<8x256xf32>
    %396 = vector.extract_strided_slice %366 {offsets = [0, 5], sizes = [8, 1], strides = [1, 1]} : vector<8x8xf32> to vector<8x1xf32>
    %397 = vector.extract_strided_slice %364 {offsets = [5, 0], sizes = [1, 256], strides = [1, 1]} : vector<8x256xf32> to vector<1x256xf32>
    %398 = vector.broadcast %396 : vector<8x1xf32> to vector<8x256xf32>
    %399 = vector.broadcast %397 : vector<1x256xf32> to vector<8x256xf32>
    %400 = arith.mulf %398, %399 : vector<8x256xf32>
    %401 = arith.addf %395, %400 : vector<8x256xf32>
    %402 = vector.extract_strided_slice %366 {offsets = [0, 6], sizes = [8, 1], strides = [1, 1]} : vector<8x8xf32> to vector<8x1xf32>
    %403 = vector.extract_strided_slice %364 {offsets = [6, 0], sizes = [1, 256], strides = [1, 1]} : vector<8x256xf32> to vector<1x256xf32>
    %404 = vector.broadcast %402 : vector<8x1xf32> to vector<8x256xf32>
    %405 = vector.broadcast %403 : vector<1x256xf32> to vector<8x256xf32>
    %406 = arith.mulf %404, %405 : vector<8x256xf32>
    %407 = arith.addf %401, %406 : vector<8x256xf32>
    %408 = vector.extract_strided_slice %366 {offsets = [0, 7], sizes = [8, 1], strides = [1, 1]} : vector<8x8xf32> to vector<8x1xf32>
    %409 = vector.extract_strided_slice %364 {offsets = [7, 0], sizes = [1, 256], strides = [1, 1]} : vector<8x256xf32> to vector<1x256xf32>
    %410 = vector.broadcast %408 : vector<8x1xf32> to vector<8x256xf32>
    %411 = vector.broadcast %409 : vector<1x256xf32> to vector<8x256xf32>
    %412 = arith.mulf %410, %411 : vector<8x256xf32>
    %413 = arith.addf %407, %412 : vector<8x256xf32>
    %414 = arith.addf %363, %413 : vector<8x256xf32>
    %c0_95 = arith.constant 0 : index
    %c113_96 = arith.constant 113 : index
    %415 = vector.load %arg20[%c0_95, %c113_96] : memref<8x512xf32, #tpu.memory_space<vmem>>, vector<8x256xf32>
    %416 = vector.broadcast %306 : vector<1x256xf32> to vector<8x256xf32>
    %417 = arith.mulf %415, %416 : vector<8x256xf32>
    %c2_97 = arith.constant 2 : index
    %c0_98 = arith.constant 0 : index
    %c0_99 = arith.constant 0 : index
    %418 = vector.load %arg11[%c2_97, %c0_98, %c0_99] : memref<9x8x8xf32, #tpu.memory_space<vmem>>, vector<1x8x8xf32>
    %419 = vector.shape_cast %418 : vector<1x8x8xf32> to vector<8x8xf32>
    %420 = vector.extract_strided_slice %419 {offsets = [0, 0], sizes = [8, 1], strides = [1, 1]} : vector<8x8xf32> to vector<8x1xf32>
    %421 = vector.extract_strided_slice %417 {offsets = [0, 0], sizes = [1, 256], strides = [1, 1]} : vector<8x256xf32> to vector<1x256xf32>
    %422 = vector.broadcast %420 : vector<8x1xf32> to vector<8x256xf32>
    %423 = vector.broadcast %421 : vector<1x256xf32> to vector<8x256xf32>
    %424 = arith.mulf %422, %423 : vector<8x256xf32>
    %425 = vector.extract_strided_slice %419 {offsets = [0, 1], sizes = [8, 1], strides = [1, 1]} : vector<8x8xf32> to vector<8x1xf32>
    %426 = vector.extract_strided_slice %417 {offsets = [1, 0], sizes = [1, 256], strides = [1, 1]} : vector<8x256xf32> to vector<1x256xf32>
    %427 = vector.broadcast %425 : vector<8x1xf32> to vector<8x256xf32>
    %428 = vector.broadcast %426 : vector<1x256xf32> to vector<8x256xf32>
    %429 = arith.mulf %427, %428 : vector<8x256xf32>
    %430 = arith.addf %424, %429 : vector<8x256xf32>
    %431 = vector.extract_strided_slice %419 {offsets = [0, 2], sizes = [8, 1], strides = [1, 1]} : vector<8x8xf32> to vector<8x1xf32>
    %432 = vector.extract_strided_slice %417 {offsets = [2, 0], sizes = [1, 256], strides = [1, 1]} : vector<8x256xf32> to vector<1x256xf32>
    %433 = vector.broadcast %431 : vector<8x1xf32> to vector<8x256xf32>
    %434 = vector.broadcast %432 : vector<1x256xf32> to vector<8x256xf32>
    %435 = arith.mulf %433, %434 : vector<8x256xf32>
    %436 = arith.addf %430, %435 : vector<8x256xf32>
    %437 = vector.extract_strided_slice %419 {offsets = [0, 3], sizes = [8, 1], strides = [1, 1]} : vector<8x8xf32> to vector<8x1xf32>
    %438 = vector.extract_strided_slice %417 {offsets = [3, 0], sizes = [1, 256], strides = [1, 1]} : vector<8x256xf32> to vector<1x256xf32>
    %439 = vector.broadcast %437 : vector<8x1xf32> to vector<8x256xf32>
    %440 = vector.broadcast %438 : vector<1x256xf32> to vector<8x256xf32>
    %441 = arith.mulf %439, %440 : vector<8x256xf32>
    %442 = arith.addf %436, %441 : vector<8x256xf32>
    %443 = vector.extract_strided_slice %419 {offsets = [0, 4], sizes = [8, 1], strides = [1, 1]} : vector<8x8xf32> to vector<8x1xf32>
    %444 = vector.extract_strided_slice %417 {offsets = [4, 0], sizes = [1, 256], strides = [1, 1]} : vector<8x256xf32> to vector<1x256xf32>
    %445 = vector.broadcast %443 : vector<8x1xf32> to vector<8x256xf32>
    %446 = vector.broadcast %444 : vector<1x256xf32> to vector<8x256xf32>
    %447 = arith.mulf %445, %446 : vector<8x256xf32>
    %448 = arith.addf %442, %447 : vector<8x256xf32>
    %449 = vector.extract_strided_slice %419 {offsets = [0, 5], sizes = [8, 1], strides = [1, 1]} : vector<8x8xf32> to vector<8x1xf32>
    %450 = vector.extract_strided_slice %417 {offsets = [5, 0], sizes = [1, 256], strides = [1, 1]} : vector<8x256xf32> to vector<1x256xf32>
    %451 = vector.broadcast %449 : vector<8x1xf32> to vector<8x256xf32>
    %452 = vector.broadcast %450 : vector<1x256xf32> to vector<8x256xf32>
    %453 = arith.mulf %451, %452 : vector<8x256xf32>
    %454 = arith.addf %448, %453 : vector<8x256xf32>
    %455 = vector.extract_strided_slice %419 {offsets = [0, 6], sizes = [8, 1], strides = [1, 1]} : vector<8x8xf32> to vector<8x1xf32>
    %456 = vector.extract_strided_slice %417 {offsets = [6, 0], sizes = [1, 256], strides = [1, 1]} : vector<8x256xf32> to vector<1x256xf32>
    %457 = vector.broadcast %455 : vector<8x1xf32> to vector<8x256xf32>
    %458 = vector.broadcast %456 : vector<1x256xf32> to vector<8x256xf32>
    %459 = arith.mulf %457, %458 : vector<8x256xf32>
    %460 = arith.addf %454, %459 : vector<8x256xf32>
    %461 = vector.extract_strided_slice %419 {offsets = [0, 7], sizes = [8, 1], strides = [1, 1]} : vector<8x8xf32> to vector<8x1xf32>
    %462 = vector.extract_strided_slice %417 {offsets = [7, 0], sizes = [1, 256], strides = [1, 1]} : vector<8x256xf32> to vector<1x256xf32>
    %463 = vector.broadcast %461 : vector<8x1xf32> to vector<8x256xf32>
    %464 = vector.broadcast %462 : vector<1x256xf32> to vector<8x256xf32>
    %465 = arith.mulf %463, %464 : vector<8x256xf32>
    %466 = arith.addf %460, %465 : vector<8x256xf32>
    %467 = arith.addf %414, %466 : vector<8x256xf32>
    %c0_100 = arith.constant 0 : index
    %c127_101 = arith.constant 127 : index
    %468 = vector.load %arg20[%c0_100, %c127_101] : memref<8x512xf32, #tpu.memory_space<vmem>>, vector<8x256xf32>
    %469 = vector.broadcast %304 : vector<1x256xf32> to vector<8x256xf32>
    %470 = arith.mulf %468, %469 : vector<8x256xf32>
    %c3_102 = arith.constant 3 : index
    %c0_103 = arith.constant 0 : index
    %c0_104 = arith.constant 0 : index
    %471 = vector.load %arg11[%c3_102, %c0_103, %c0_104] : memref<9x8x8xf32, #tpu.memory_space<vmem>>, vector<1x8x8xf32>
    %472 = vector.shape_cast %471 : vector<1x8x8xf32> to vector<8x8xf32>
    %473 = vector.extract_strided_slice %472 {offsets = [0, 0], sizes = [8, 1], strides = [1, 1]} : vector<8x8xf32> to vector<8x1xf32>
    %474 = vector.extract_strided_slice %470 {offsets = [0, 0], sizes = [1, 256], strides = [1, 1]} : vector<8x256xf32> to vector<1x256xf32>
    %475 = vector.broadcast %473 : vector<8x1xf32> to vector<8x256xf32>
    %476 = vector.broadcast %474 : vector<1x256xf32> to vector<8x256xf32>
    %477 = arith.mulf %475, %476 : vector<8x256xf32>
    %478 = vector.extract_strided_slice %472 {offsets = [0, 1], sizes = [8, 1], strides = [1, 1]} : vector<8x8xf32> to vector<8x1xf32>
    %479 = vector.extract_strided_slice %470 {offsets = [1, 0], sizes = [1, 256], strides = [1, 1]} : vector<8x256xf32> to vector<1x256xf32>
    %480 = vector.broadcast %478 : vector<8x1xf32> to vector<8x256xf32>
    %481 = vector.broadcast %479 : vector<1x256xf32> to vector<8x256xf32>
    %482 = arith.mulf %480, %481 : vector<8x256xf32>
    %483 = arith.addf %477, %482 : vector<8x256xf32>
    %484 = vector.extract_strided_slice %472 {offsets = [0, 2], sizes = [8, 1], strides = [1, 1]} : vector<8x8xf32> to vector<8x1xf32>
    %485 = vector.extract_strided_slice %470 {offsets = [2, 0], sizes = [1, 256], strides = [1, 1]} : vector<8x256xf32> to vector<1x256xf32>
    %486 = vector.broadcast %484 : vector<8x1xf32> to vector<8x256xf32>
    %487 = vector.broadcast %485 : vector<1x256xf32> to vector<8x256xf32>
    %488 = arith.mulf %486, %487 : vector<8x256xf32>
    %489 = arith.addf %483, %488 : vector<8x256xf32>
    %490 = vector.extract_strided_slice %472 {offsets = [0, 3], sizes = [8, 1], strides = [1, 1]} : vector<8x8xf32> to vector<8x1xf32>
    %491 = vector.extract_strided_slice %470 {offsets = [3, 0], sizes = [1, 256], strides = [1, 1]} : vector<8x256xf32> to vector<1x256xf32>
    %492 = vector.broadcast %490 : vector<8x1xf32> to vector<8x256xf32>
    %493 = vector.broadcast %491 : vector<1x256xf32> to vector<8x256xf32>
    %494 = arith.mulf %492, %493 : vector<8x256xf32>
    %495 = arith.addf %489, %494 : vector<8x256xf32>
    %496 = vector.extract_strided_slice %472 {offsets = [0, 4], sizes = [8, 1], strides = [1, 1]} : vector<8x8xf32> to vector<8x1xf32>
    %497 = vector.extract_strided_slice %470 {offsets = [4, 0], sizes = [1, 256], strides = [1, 1]} : vector<8x256xf32> to vector<1x256xf32>
    %498 = vector.broadcast %496 : vector<8x1xf32> to vector<8x256xf32>
    %499 = vector.broadcast %497 : vector<1x256xf32> to vector<8x256xf32>
    %500 = arith.mulf %498, %499 : vector<8x256xf32>
    %501 = arith.addf %495, %500 : vector<8x256xf32>
    %502 = vector.extract_strided_slice %472 {offsets = [0, 5], sizes = [8, 1], strides = [1, 1]} : vector<8x8xf32> to vector<8x1xf32>
    %503 = vector.extract_strided_slice %470 {offsets = [5, 0], sizes = [1, 256], strides = [1, 1]} : vector<8x256xf32> to vector<1x256xf32>
    %504 = vector.broadcast %502 : vector<8x1xf32> to vector<8x256xf32>
    %505 = vector.broadcast %503 : vector<1x256xf32> to vector<8x256xf32>
    %506 = arith.mulf %504, %505 : vector<8x256xf32>
    %507 = arith.addf %501, %506 : vector<8x256xf32>
    %508 = vector.extract_strided_slice %472 {offsets = [0, 6], sizes = [8, 1], strides = [1, 1]} : vector<8x8xf32> to vector<8x1xf32>
    %509 = vector.extract_strided_slice %470 {offsets = [6, 0], sizes = [1, 256], strides = [1, 1]} : vector<8x256xf32> to vector<1x256xf32>
    %510 = vector.broadcast %508 : vector<8x1xf32> to vector<8x256xf32>
    %511 = vector.broadcast %509 : vector<1x256xf32> to vector<8x256xf32>
    %512 = arith.mulf %510, %511 : vector<8x256xf32>
    %513 = arith.addf %507, %512 : vector<8x256xf32>
    %514 = vector.extract_strided_slice %472 {offsets = [0, 7], sizes = [8, 1], strides = [1, 1]} : vector<8x8xf32> to vector<8x1xf32>
    %515 = vector.extract_strided_slice %470 {offsets = [7, 0], sizes = [1, 256], strides = [1, 1]} : vector<8x256xf32> to vector<1x256xf32>
    %516 = vector.broadcast %514 : vector<8x1xf32> to vector<8x256xf32>
    %517 = vector.broadcast %515 : vector<1x256xf32> to vector<8x256xf32>
    %518 = arith.mulf %516, %517 : vector<8x256xf32>
    %519 = arith.addf %513, %518 : vector<8x256xf32>
    %520 = arith.addf %467, %519 : vector<8x256xf32>
    %c0_105 = arith.constant 0 : index
    %c128_106 = arith.constant 128 : index
    %521 = vector.load %arg20[%c0_105, %c128_106] : memref<8x512xf32, #tpu.memory_space<vmem>>, vector<8x256xf32>
    %c4_107 = arith.constant 4 : index
    %c0_108 = arith.constant 0 : index
    %c0_109 = arith.constant 0 : index
    %522 = vector.load %arg11[%c4_107, %c0_108, %c0_109] : memref<9x8x8xf32, #tpu.memory_space<vmem>>, vector<1x8x8xf32>
    %523 = vector.shape_cast %522 : vector<1x8x8xf32> to vector<8x8xf32>
    %524 = vector.extract_strided_slice %523 {offsets = [0, 0], sizes = [8, 1], strides = [1, 1]} : vector<8x8xf32> to vector<8x1xf32>
    %525 = vector.extract_strided_slice %521 {offsets = [0, 0], sizes = [1, 256], strides = [1, 1]} : vector<8x256xf32> to vector<1x256xf32>
    %526 = vector.broadcast %524 : vector<8x1xf32> to vector<8x256xf32>
    %527 = vector.broadcast %525 : vector<1x256xf32> to vector<8x256xf32>
    %528 = arith.mulf %526, %527 : vector<8x256xf32>
    %529 = vector.extract_strided_slice %523 {offsets = [0, 1], sizes = [8, 1], strides = [1, 1]} : vector<8x8xf32> to vector<8x1xf32>
    %530 = vector.extract_strided_slice %521 {offsets = [1, 0], sizes = [1, 256], strides = [1, 1]} : vector<8x256xf32> to vector<1x256xf32>
    %531 = vector.broadcast %529 : vector<8x1xf32> to vector<8x256xf32>
    %532 = vector.broadcast %530 : vector<1x256xf32> to vector<8x256xf32>
    %533 = arith.mulf %531, %532 : vector<8x256xf32>
    %534 = arith.addf %528, %533 : vector<8x256xf32>
    %535 = vector.extract_strided_slice %523 {offsets = [0, 2], sizes = [8, 1], strides = [1, 1]} : vector<8x8xf32> to vector<8x1xf32>
    %536 = vector.extract_strided_slice %521 {offsets = [2, 0], sizes = [1, 256], strides = [1, 1]} : vector<8x256xf32> to vector<1x256xf32>
    %537 = vector.broadcast %535 : vector<8x1xf32> to vector<8x256xf32>
    %538 = vector.broadcast %536 : vector<1x256xf32> to vector<8x256xf32>
    %539 = arith.mulf %537, %538 : vector<8x256xf32>
    %540 = arith.addf %534, %539 : vector<8x256xf32>
    %541 = vector.extract_strided_slice %523 {offsets = [0, 3], sizes = [8, 1], strides = [1, 1]} : vector<8x8xf32> to vector<8x1xf32>
    %542 = vector.extract_strided_slice %521 {offsets = [3, 0], sizes = [1, 256], strides = [1, 1]} : vector<8x256xf32> to vector<1x256xf32>
    %543 = vector.broadcast %541 : vector<8x1xf32> to vector<8x256xf32>
    %544 = vector.broadcast %542 : vector<1x256xf32> to vector<8x256xf32>
    %545 = arith.mulf %543, %544 : vector<8x256xf32>
    %546 = arith.addf %540, %545 : vector<8x256xf32>
    %547 = vector.extract_strided_slice %523 {offsets = [0, 4], sizes = [8, 1], strides = [1, 1]} : vector<8x8xf32> to vector<8x1xf32>
    %548 = vector.extract_strided_slice %521 {offsets = [4, 0], sizes = [1, 256], strides = [1, 1]} : vector<8x256xf32> to vector<1x256xf32>
    %549 = vector.broadcast %547 : vector<8x1xf32> to vector<8x256xf32>
    %550 = vector.broadcast %548 : vector<1x256xf32> to vector<8x256xf32>
    %551 = arith.mulf %549, %550 : vector<8x256xf32>
    %552 = arith.addf %546, %551 : vector<8x256xf32>
    %553 = vector.extract_strided_slice %523 {offsets = [0, 5], sizes = [8, 1], strides = [1, 1]} : vector<8x8xf32> to vector<8x1xf32>
    %554 = vector.extract_strided_slice %521 {offsets = [5, 0], sizes = [1, 256], strides = [1, 1]} : vector<8x256xf32> to vector<1x256xf32>
    %555 = vector.broadcast %553 : vector<8x1xf32> to vector<8x256xf32>
    %556 = vector.broadcast %554 : vector<1x256xf32> to vector<8x256xf32>
    %557 = arith.mulf %555, %556 : vector<8x256xf32>
    %558 = arith.addf %552, %557 : vector<8x256xf32>
    %559 = vector.extract_strided_slice %523 {offsets = [0, 6], sizes = [8, 1], strides = [1, 1]} : vector<8x8xf32> to vector<8x1xf32>
    %560 = vector.extract_strided_slice %521 {offsets = [6, 0], sizes = [1, 256], strides = [1, 1]} : vector<8x256xf32> to vector<1x256xf32>
    %561 = vector.broadcast %559 : vector<8x1xf32> to vector<8x256xf32>
    %562 = vector.broadcast %560 : vector<1x256xf32> to vector<8x256xf32>
    %563 = arith.mulf %561, %562 : vector<8x256xf32>
    %564 = arith.addf %558, %563 : vector<8x256xf32>
    %565 = vector.extract_strided_slice %523 {offsets = [0, 7], sizes = [8, 1], strides = [1, 1]} : vector<8x8xf32> to vector<8x1xf32>
    %566 = vector.extract_strided_slice %521 {offsets = [7, 0], sizes = [1, 256], strides = [1, 1]} : vector<8x256xf32> to vector<1x256xf32>
    %567 = vector.broadcast %565 : vector<8x1xf32> to vector<8x256xf32>
    %568 = vector.broadcast %566 : vector<1x256xf32> to vector<8x256xf32>
    %569 = arith.mulf %567, %568 : vector<8x256xf32>
    %570 = arith.addf %564, %569 : vector<8x256xf32>
    %571 = arith.addf %520, %570 : vector<8x256xf32>
    %c0_110 = arith.constant 0 : index
    %c129_111 = arith.constant 129 : index
    %572 = vector.load %arg20[%c0_110, %c129_111] : memref<8x512xf32, #tpu.memory_space<vmem>>, vector<8x256xf32>
    %573 = vector.broadcast %306 : vector<1x256xf32> to vector<8x256xf32>
    %574 = arith.mulf %572, %573 : vector<8x256xf32>
    %c5_112 = arith.constant 5 : index
    %c0_113 = arith.constant 0 : index
    %c0_114 = arith.constant 0 : index
    %575 = vector.load %arg11[%c5_112, %c0_113, %c0_114] : memref<9x8x8xf32, #tpu.memory_space<vmem>>, vector<1x8x8xf32>
    %576 = vector.shape_cast %575 : vector<1x8x8xf32> to vector<8x8xf32>
    %577 = vector.extract_strided_slice %576 {offsets = [0, 0], sizes = [8, 1], strides = [1, 1]} : vector<8x8xf32> to vector<8x1xf32>
    %578 = vector.extract_strided_slice %574 {offsets = [0, 0], sizes = [1, 256], strides = [1, 1]} : vector<8x256xf32> to vector<1x256xf32>
    %579 = vector.broadcast %577 : vector<8x1xf32> to vector<8x256xf32>
    %580 = vector.broadcast %578 : vector<1x256xf32> to vector<8x256xf32>
    %581 = arith.mulf %579, %580 : vector<8x256xf32>
    %582 = vector.extract_strided_slice %576 {offsets = [0, 1], sizes = [8, 1], strides = [1, 1]} : vector<8x8xf32> to vector<8x1xf32>
    %583 = vector.extract_strided_slice %574 {offsets = [1, 0], sizes = [1, 256], strides = [1, 1]} : vector<8x256xf32> to vector<1x256xf32>
    %584 = vector.broadcast %582 : vector<8x1xf32> to vector<8x256xf32>
    %585 = vector.broadcast %583 : vector<1x256xf32> to vector<8x256xf32>
    %586 = arith.mulf %584, %585 : vector<8x256xf32>
    %587 = arith.addf %581, %586 : vector<8x256xf32>
    %588 = vector.extract_strided_slice %576 {offsets = [0, 2], sizes = [8, 1], strides = [1, 1]} : vector<8x8xf32> to vector<8x1xf32>
    %589 = vector.extract_strided_slice %574 {offsets = [2, 0], sizes = [1, 256], strides = [1, 1]} : vector<8x256xf32> to vector<1x256xf32>
    %590 = vector.broadcast %588 : vector<8x1xf32> to vector<8x256xf32>
    %591 = vector.broadcast %589 : vector<1x256xf32> to vector<8x256xf32>
    %592 = arith.mulf %590, %591 : vector<8x256xf32>
    %593 = arith.addf %587, %592 : vector<8x256xf32>
    %594 = vector.extract_strided_slice %576 {offsets = [0, 3], sizes = [8, 1], strides = [1, 1]} : vector<8x8xf32> to vector<8x1xf32>
    %595 = vector.extract_strided_slice %574 {offsets = [3, 0], sizes = [1, 256], strides = [1, 1]} : vector<8x256xf32> to vector<1x256xf32>
    %596 = vector.broadcast %594 : vector<8x1xf32> to vector<8x256xf32>
    %597 = vector.broadcast %595 : vector<1x256xf32> to vector<8x256xf32>
    %598 = arith.mulf %596, %597 : vector<8x256xf32>
    %599 = arith.addf %593, %598 : vector<8x256xf32>
    %600 = vector.extract_strided_slice %576 {offsets = [0, 4], sizes = [8, 1], strides = [1, 1]} : vector<8x8xf32> to vector<8x1xf32>
    %601 = vector.extract_strided_slice %574 {offsets = [4, 0], sizes = [1, 256], strides = [1, 1]} : vector<8x256xf32> to vector<1x256xf32>
    %602 = vector.broadcast %600 : vector<8x1xf32> to vector<8x256xf32>
    %603 = vector.broadcast %601 : vector<1x256xf32> to vector<8x256xf32>
    %604 = arith.mulf %602, %603 : vector<8x256xf32>
    %605 = arith.addf %599, %604 : vector<8x256xf32>
    %606 = vector.extract_strided_slice %576 {offsets = [0, 5], sizes = [8, 1], strides = [1, 1]} : vector<8x8xf32> to vector<8x1xf32>
    %607 = vector.extract_strided_slice %574 {offsets = [5, 0], sizes = [1, 256], strides = [1, 1]} : vector<8x256xf32> to vector<1x256xf32>
    %608 = vector.broadcast %606 : vector<8x1xf32> to vector<8x256xf32>
    %609 = vector.broadcast %607 : vector<1x256xf32> to vector<8x256xf32>
    %610 = arith.mulf %608, %609 : vector<8x256xf32>
    %611 = arith.addf %605, %610 : vector<8x256xf32>
    %612 = vector.extract_strided_slice %576 {offsets = [0, 6], sizes = [8, 1], strides = [1, 1]} : vector<8x8xf32> to vector<8x1xf32>
    %613 = vector.extract_strided_slice %574 {offsets = [6, 0], sizes = [1, 256], strides = [1, 1]} : vector<8x256xf32> to vector<1x256xf32>
    %614 = vector.broadcast %612 : vector<8x1xf32> to vector<8x256xf32>
    %615 = vector.broadcast %613 : vector<1x256xf32> to vector<8x256xf32>
    %616 = arith.mulf %614, %615 : vector<8x256xf32>
    %617 = arith.addf %611, %616 : vector<8x256xf32>
    %618 = vector.extract_strided_slice %576 {offsets = [0, 7], sizes = [8, 1], strides = [1, 1]} : vector<8x8xf32> to vector<8x1xf32>
    %619 = vector.extract_strided_slice %574 {offsets = [7, 0], sizes = [1, 256], strides = [1, 1]} : vector<8x256xf32> to vector<1x256xf32>
    %620 = vector.broadcast %618 : vector<8x1xf32> to vector<8x256xf32>
    %621 = vector.broadcast %619 : vector<1x256xf32> to vector<8x256xf32>
    %622 = arith.mulf %620, %621 : vector<8x256xf32>
    %623 = arith.addf %617, %622 : vector<8x256xf32>
    %624 = arith.addf %571, %623 : vector<8x256xf32>
    %c0_115 = arith.constant 0 : index
    %c143_116 = arith.constant 143 : index
    %625 = vector.load %arg20[%c0_115, %c143_116] : memref<8x512xf32, #tpu.memory_space<vmem>>, vector<8x256xf32>
    %626 = vector.broadcast %304 : vector<1x256xf32> to vector<8x256xf32>
    %627 = arith.mulf %625, %626 : vector<8x256xf32>
    %c6_117 = arith.constant 6 : index
    %c0_118 = arith.constant 0 : index
    %c0_119 = arith.constant 0 : index
    %628 = vector.load %arg11[%c6_117, %c0_118, %c0_119] : memref<9x8x8xf32, #tpu.memory_space<vmem>>, vector<1x8x8xf32>
    %629 = vector.shape_cast %628 : vector<1x8x8xf32> to vector<8x8xf32>
    %630 = vector.extract_strided_slice %629 {offsets = [0, 0], sizes = [8, 1], strides = [1, 1]} : vector<8x8xf32> to vector<8x1xf32>
    %631 = vector.extract_strided_slice %627 {offsets = [0, 0], sizes = [1, 256], strides = [1, 1]} : vector<8x256xf32> to vector<1x256xf32>
    %632 = vector.broadcast %630 : vector<8x1xf32> to vector<8x256xf32>
    %633 = vector.broadcast %631 : vector<1x256xf32> to vector<8x256xf32>
    %634 = arith.mulf %632, %633 : vector<8x256xf32>
    %635 = vector.extract_strided_slice %629 {offsets = [0, 1], sizes = [8, 1], strides = [1, 1]} : vector<8x8xf32> to vector<8x1xf32>
    %636 = vector.extract_strided_slice %627 {offsets = [1, 0], sizes = [1, 256], strides = [1, 1]} : vector<8x256xf32> to vector<1x256xf32>
    %637 = vector.broadcast %635 : vector<8x1xf32> to vector<8x256xf32>
    %638 = vector.broadcast %636 : vector<1x256xf32> to vector<8x256xf32>
    %639 = arith.mulf %637, %638 : vector<8x256xf32>
    %640 = arith.addf %634, %639 : vector<8x256xf32>
    %641 = vector.extract_strided_slice %629 {offsets = [0, 2], sizes = [8, 1], strides = [1, 1]} : vector<8x8xf32> to vector<8x1xf32>
    %642 = vector.extract_strided_slice %627 {offsets = [2, 0], sizes = [1, 256], strides = [1, 1]} : vector<8x256xf32> to vector<1x256xf32>
    %643 = vector.broadcast %641 : vector<8x1xf32> to vector<8x256xf32>
    %644 = vector.broadcast %642 : vector<1x256xf32> to vector<8x256xf32>
    %645 = arith.mulf %643, %644 : vector<8x256xf32>
    %646 = arith.addf %640, %645 : vector<8x256xf32>
    %647 = vector.extract_strided_slice %629 {offsets = [0, 3], sizes = [8, 1], strides = [1, 1]} : vector<8x8xf32> to vector<8x1xf32>
    %648 = vector.extract_strided_slice %627 {offsets = [3, 0], sizes = [1, 256], strides = [1, 1]} : vector<8x256xf32> to vector<1x256xf32>
    %649 = vector.broadcast %647 : vector<8x1xf32> to vector<8x256xf32>
    %650 = vector.broadcast %648 : vector<1x256xf32> to vector<8x256xf32>
    %651 = arith.mulf %649, %650 : vector<8x256xf32>
    %652 = arith.addf %646, %651 : vector<8x256xf32>
    %653 = vector.extract_strided_slice %629 {offsets = [0, 4], sizes = [8, 1], strides = [1, 1]} : vector<8x8xf32> to vector<8x1xf32>
    %654 = vector.extract_strided_slice %627 {offsets = [4, 0], sizes = [1, 256], strides = [1, 1]} : vector<8x256xf32> to vector<1x256xf32>
    %655 = vector.broadcast %653 : vector<8x1xf32> to vector<8x256xf32>
    %656 = vector.broadcast %654 : vector<1x256xf32> to vector<8x256xf32>
    %657 = arith.mulf %655, %656 : vector<8x256xf32>
    %658 = arith.addf %652, %657 : vector<8x256xf32>
    %659 = vector.extract_strided_slice %629 {offsets = [0, 5], sizes = [8, 1], strides = [1, 1]} : vector<8x8xf32> to vector<8x1xf32>
    %660 = vector.extract_strided_slice %627 {offsets = [5, 0], sizes = [1, 256], strides = [1, 1]} : vector<8x256xf32> to vector<1x256xf32>
    %661 = vector.broadcast %659 : vector<8x1xf32> to vector<8x256xf32>
    %662 = vector.broadcast %660 : vector<1x256xf32> to vector<8x256xf32>
    %663 = arith.mulf %661, %662 : vector<8x256xf32>
    %664 = arith.addf %658, %663 : vector<8x256xf32>
    %665 = vector.extract_strided_slice %629 {offsets = [0, 6], sizes = [8, 1], strides = [1, 1]} : vector<8x8xf32> to vector<8x1xf32>
    %666 = vector.extract_strided_slice %627 {offsets = [6, 0], sizes = [1, 256], strides = [1, 1]} : vector<8x256xf32> to vector<1x256xf32>
    %667 = vector.broadcast %665 : vector<8x1xf32> to vector<8x256xf32>
    %668 = vector.broadcast %666 : vector<1x256xf32> to vector<8x256xf32>
    %669 = arith.mulf %667, %668 : vector<8x256xf32>
    %670 = arith.addf %664, %669 : vector<8x256xf32>
    %671 = vector.extract_strided_slice %629 {offsets = [0, 7], sizes = [8, 1], strides = [1, 1]} : vector<8x8xf32> to vector<8x1xf32>
    %672 = vector.extract_strided_slice %627 {offsets = [7, 0], sizes = [1, 256], strides = [1, 1]} : vector<8x256xf32> to vector<1x256xf32>
    %673 = vector.broadcast %671 : vector<8x1xf32> to vector<8x256xf32>
    %674 = vector.broadcast %672 : vector<1x256xf32> to vector<8x256xf32>
    %675 = arith.mulf %673, %674 : vector<8x256xf32>
    %676 = arith.addf %670, %675 : vector<8x256xf32>
    %677 = arith.addf %624, %676 : vector<8x256xf32>
    %c0_120 = arith.constant 0 : index
    %c144_121 = arith.constant 144 : index
    %678 = vector.load %arg20[%c0_120, %c144_121] : memref<8x512xf32, #tpu.memory_space<vmem>>, vector<8x256xf32>
    %c7_122 = arith.constant 7 : index
    %c0_123 = arith.constant 0 : index
    %c0_124 = arith.constant 0 : index
    %679 = vector.load %arg11[%c7_122, %c0_123, %c0_124] : memref<9x8x8xf32, #tpu.memory_space<vmem>>, vector<1x8x8xf32>
    %680 = vector.shape_cast %679 : vector<1x8x8xf32> to vector<8x8xf32>
    %681 = vector.extract_strided_slice %680 {offsets = [0, 0], sizes = [8, 1], strides = [1, 1]} : vector<8x8xf32> to vector<8x1xf32>
    %682 = vector.extract_strided_slice %678 {offsets = [0, 0], sizes = [1, 256], strides = [1, 1]} : vector<8x256xf32> to vector<1x256xf32>
    %683 = vector.broadcast %681 : vector<8x1xf32> to vector<8x256xf32>
    %684 = vector.broadcast %682 : vector<1x256xf32> to vector<8x256xf32>
    %685 = arith.mulf %683, %684 : vector<8x256xf32>
    %686 = vector.extract_strided_slice %680 {offsets = [0, 1], sizes = [8, 1], strides = [1, 1]} : vector<8x8xf32> to vector<8x1xf32>
    %687 = vector.extract_strided_slice %678 {offsets = [1, 0], sizes = [1, 256], strides = [1, 1]} : vector<8x256xf32> to vector<1x256xf32>
    %688 = vector.broadcast %686 : vector<8x1xf32> to vector<8x256xf32>
    %689 = vector.broadcast %687 : vector<1x256xf32> to vector<8x256xf32>
    %690 = arith.mulf %688, %689 : vector<8x256xf32>
    %691 = arith.addf %685, %690 : vector<8x256xf32>
    %692 = vector.extract_strided_slice %680 {offsets = [0, 2], sizes = [8, 1], strides = [1, 1]} : vector<8x8xf32> to vector<8x1xf32>
    %693 = vector.extract_strided_slice %678 {offsets = [2, 0], sizes = [1, 256], strides = [1, 1]} : vector<8x256xf32> to vector<1x256xf32>
    %694 = vector.broadcast %692 : vector<8x1xf32> to vector<8x256xf32>
    %695 = vector.broadcast %693 : vector<1x256xf32> to vector<8x256xf32>
    %696 = arith.mulf %694, %695 : vector<8x256xf32>
    %697 = arith.addf %691, %696 : vector<8x256xf32>
    %698 = vector.extract_strided_slice %680 {offsets = [0, 3], sizes = [8, 1], strides = [1, 1]} : vector<8x8xf32> to vector<8x1xf32>
    %699 = vector.extract_strided_slice %678 {offsets = [3, 0], sizes = [1, 256], strides = [1, 1]} : vector<8x256xf32> to vector<1x256xf32>
    %700 = vector.broadcast %698 : vector<8x1xf32> to vector<8x256xf32>
    %701 = vector.broadcast %699 : vector<1x256xf32> to vector<8x256xf32>
    %702 = arith.mulf %700, %701 : vector<8x256xf32>
    %703 = arith.addf %697, %702 : vector<8x256xf32>
    %704 = vector.extract_strided_slice %680 {offsets = [0, 4], sizes = [8, 1], strides = [1, 1]} : vector<8x8xf32> to vector<8x1xf32>
    %705 = vector.extract_strided_slice %678 {offsets = [4, 0], sizes = [1, 256], strides = [1, 1]} : vector<8x256xf32> to vector<1x256xf32>
    %706 = vector.broadcast %704 : vector<8x1xf32> to vector<8x256xf32>
    %707 = vector.broadcast %705 : vector<1x256xf32> to vector<8x256xf32>
    %708 = arith.mulf %706, %707 : vector<8x256xf32>
    %709 = arith.addf %703, %708 : vector<8x256xf32>
    %710 = vector.extract_strided_slice %680 {offsets = [0, 5], sizes = [8, 1], strides = [1, 1]} : vector<8x8xf32> to vector<8x1xf32>
    %711 = vector.extract_strided_slice %678 {offsets = [5, 0], sizes = [1, 256], strides = [1, 1]} : vector<8x256xf32> to vector<1x256xf32>
    %712 = vector.broadcast %710 : vector<8x1xf32> to vector<8x256xf32>
    %713 = vector.broadcast %711 : vector<1x256xf32> to vector<8x256xf32>
    %714 = arith.mulf %712, %713 : vector<8x256xf32>
    %715 = arith.addf %709, %714 : vector<8x256xf32>
    %716 = vector.extract_strided_slice %680 {offsets = [0, 6], sizes = [8, 1], strides = [1, 1]} : vector<8x8xf32> to vector<8x1xf32>
    %717 = vector.extract_strided_slice %678 {offsets = [6, 0], sizes = [1, 256], strides = [1, 1]} : vector<8x256xf32> to vector<1x256xf32>
    %718 = vector.broadcast %716 : vector<8x1xf32> to vector<8x256xf32>
    %719 = vector.broadcast %717 : vector<1x256xf32> to vector<8x256xf32>
    %720 = arith.mulf %718, %719 : vector<8x256xf32>
    %721 = arith.addf %715, %720 : vector<8x256xf32>
    %722 = vector.extract_strided_slice %680 {offsets = [0, 7], sizes = [8, 1], strides = [1, 1]} : vector<8x8xf32> to vector<8x1xf32>
    %723 = vector.extract_strided_slice %678 {offsets = [7, 0], sizes = [1, 256], strides = [1, 1]} : vector<8x256xf32> to vector<1x256xf32>
    %724 = vector.broadcast %722 : vector<8x1xf32> to vector<8x256xf32>
    %725 = vector.broadcast %723 : vector<1x256xf32> to vector<8x256xf32>
    %726 = arith.mulf %724, %725 : vector<8x256xf32>
    %727 = arith.addf %721, %726 : vector<8x256xf32>
    %728 = arith.addf %677, %727 : vector<8x256xf32>
    %c0_125 = arith.constant 0 : index
    %c145_126 = arith.constant 145 : index
    %729 = vector.load %arg20[%c0_125, %c145_126] : memref<8x512xf32, #tpu.memory_space<vmem>>, vector<8x256xf32>
    %730 = vector.broadcast %306 : vector<1x256xf32> to vector<8x256xf32>
    %731 = arith.mulf %729, %730 : vector<8x256xf32>
    %c8_127 = arith.constant 8 : index
    %c0_128 = arith.constant 0 : index
    %c0_129 = arith.constant 0 : index
    %732 = vector.load %arg11[%c8_127, %c0_128, %c0_129] : memref<9x8x8xf32, #tpu.memory_space<vmem>>, vector<1x8x8xf32>
    %733 = vector.shape_cast %732 : vector<1x8x8xf32> to vector<8x8xf32>
    %734 = vector.extract_strided_slice %733 {offsets = [0, 0], sizes = [8, 1], strides = [1, 1]} : vector<8x8xf32> to vector<8x1xf32>
    %735 = vector.extract_strided_slice %731 {offsets = [0, 0], sizes = [1, 256], strides = [1, 1]} : vector<8x256xf32> to vector<1x256xf32>
    %736 = vector.broadcast %734 : vector<8x1xf32> to vector<8x256xf32>
    %737 = vector.broadcast %735 : vector<1x256xf32> to vector<8x256xf32>
    %738 = arith.mulf %736, %737 : vector<8x256xf32>
    %739 = vector.extract_strided_slice %733 {offsets = [0, 1], sizes = [8, 1], strides = [1, 1]} : vector<8x8xf32> to vector<8x1xf32>
    %740 = vector.extract_strided_slice %731 {offsets = [1, 0], sizes = [1, 256], strides = [1, 1]} : vector<8x256xf32> to vector<1x256xf32>
    %741 = vector.broadcast %739 : vector<8x1xf32> to vector<8x256xf32>
    %742 = vector.broadcast %740 : vector<1x256xf32> to vector<8x256xf32>
    %743 = arith.mulf %741, %742 : vector<8x256xf32>
    %744 = arith.addf %738, %743 : vector<8x256xf32>
    %745 = vector.extract_strided_slice %733 {offsets = [0, 2], sizes = [8, 1], strides = [1, 1]} : vector<8x8xf32> to vector<8x1xf32>
    %746 = vector.extract_strided_slice %731 {offsets = [2, 0], sizes = [1, 256], strides = [1, 1]} : vector<8x256xf32> to vector<1x256xf32>
    %747 = vector.broadcast %745 : vector<8x1xf32> to vector<8x256xf32>
    %748 = vector.broadcast %746 : vector<1x256xf32> to vector<8x256xf32>
    %749 = arith.mulf %747, %748 : vector<8x256xf32>
    %750 = arith.addf %744, %749 : vector<8x256xf32>
    %751 = vector.extract_strided_slice %733 {offsets = [0, 3], sizes = [8, 1], strides = [1, 1]} : vector<8x8xf32> to vector<8x1xf32>
    %752 = vector.extract_strided_slice %731 {offsets = [3, 0], sizes = [1, 256], strides = [1, 1]} : vector<8x256xf32> to vector<1x256xf32>
    %753 = vector.broadcast %751 : vector<8x1xf32> to vector<8x256xf32>
    %754 = vector.broadcast %752 : vector<1x256xf32> to vector<8x256xf32>
    %755 = arith.mulf %753, %754 : vector<8x256xf32>
    %756 = arith.addf %750, %755 : vector<8x256xf32>
    %757 = vector.extract_strided_slice %733 {offsets = [0, 4], sizes = [8, 1], strides = [1, 1]} : vector<8x8xf32> to vector<8x1xf32>
    %758 = vector.extract_strided_slice %731 {offsets = [4, 0], sizes = [1, 256], strides = [1, 1]} : vector<8x256xf32> to vector<1x256xf32>
    %759 = vector.broadcast %757 : vector<8x1xf32> to vector<8x256xf32>
    %760 = vector.broadcast %758 : vector<1x256xf32> to vector<8x256xf32>
    %761 = arith.mulf %759, %760 : vector<8x256xf32>
    %762 = arith.addf %756, %761 : vector<8x256xf32>
    %763 = vector.extract_strided_slice %733 {offsets = [0, 5], sizes = [8, 1], strides = [1, 1]} : vector<8x8xf32> to vector<8x1xf32>
    %764 = vector.extract_strided_slice %731 {offsets = [5, 0], sizes = [1, 256], strides = [1, 1]} : vector<8x256xf32> to vector<1x256xf32>
    %765 = vector.broadcast %763 : vector<8x1xf32> to vector<8x256xf32>
    %766 = vector.broadcast %764 : vector<1x256xf32> to vector<8x256xf32>
    %767 = arith.mulf %765, %766 : vector<8x256xf32>
    %768 = arith.addf %762, %767 : vector<8x256xf32>
    %769 = vector.extract_strided_slice %733 {offsets = [0, 6], sizes = [8, 1], strides = [1, 1]} : vector<8x8xf32> to vector<8x1xf32>
    %770 = vector.extract_strided_slice %731 {offsets = [6, 0], sizes = [1, 256], strides = [1, 1]} : vector<8x256xf32> to vector<1x256xf32>
    %771 = vector.broadcast %769 : vector<8x1xf32> to vector<8x256xf32>
    %772 = vector.broadcast %770 : vector<1x256xf32> to vector<8x256xf32>
    %773 = arith.mulf %771, %772 : vector<8x256xf32>
    %774 = arith.addf %768, %773 : vector<8x256xf32>
    %775 = vector.extract_strided_slice %733 {offsets = [0, 7], sizes = [8, 1], strides = [1, 1]} : vector<8x8xf32> to vector<8x1xf32>
    %776 = vector.extract_strided_slice %731 {offsets = [7, 0], sizes = [1, 256], strides = [1, 1]} : vector<8x256xf32> to vector<1x256xf32>
    %777 = vector.broadcast %775 : vector<8x1xf32> to vector<8x256xf32>
    %778 = vector.broadcast %776 : vector<1x256xf32> to vector<8x256xf32>
    %779 = arith.mulf %777, %778 : vector<8x256xf32>
    %780 = arith.addf %774, %779 : vector<8x256xf32>
    %781 = arith.addf %728, %780 : vector<8x256xf32>
    %c0_130 = arith.constant 0 : index
    %c0_131 = arith.constant 0 : index
    %782 = vector.load %arg13[%c0_130, %c0_131] : memref<4x1xf32, #tpu.memory_space<vmem>>, vector<4x1xf32>
    %783 = vector.broadcast %782 : vector<4x1xf32> to vector<4x256xf32>
    %784 = arith.mulf %21, %783 : vector<4x256xf32>
    %c0_132 = arith.constant 0 : index
    %c0_133 = arith.constant 0 : index
    %785 = vector.load %arg14[%c0_132, %c0_133] : memref<4x1xf32, #tpu.memory_space<vmem>>, vector<4x1xf32>
    %786 = vector.broadcast %785 : vector<4x1xf32> to vector<4x256xf32>
    %787 = arith.addf %784, %786 : vector<4x256xf32>
    %cst_134 = arith.constant 0.000000e+00 : f32
    %788 = vector.broadcast %cst_134 : f32 to vector<4x256xf32>
    %789 = arith.maximumf %787, %788 : vector<4x256xf32>
    %c0_135 = arith.constant 0 : index
    %c0_136 = arith.constant 0 : index
    %790 = vector.load %arg3[%c0_135, %c0_136] : memref<8x4xf32, #tpu.memory_space<vmem>>, vector<8x4xf32>
    %791 = vector.extract_strided_slice %790 {offsets = [0, 0], sizes = [8, 1], strides = [1, 1]} : vector<8x4xf32> to vector<8x1xf32>
    %792 = vector.extract_strided_slice %789 {offsets = [0, 0], sizes = [1, 256], strides = [1, 1]} : vector<4x256xf32> to vector<1x256xf32>
    %793 = vector.broadcast %791 : vector<8x1xf32> to vector<8x256xf32>
    %794 = vector.broadcast %792 : vector<1x256xf32> to vector<8x256xf32>
    %795 = arith.mulf %793, %794 : vector<8x256xf32>
    %796 = vector.extract_strided_slice %790 {offsets = [0, 1], sizes = [8, 1], strides = [1, 1]} : vector<8x4xf32> to vector<8x1xf32>
    %797 = vector.extract_strided_slice %789 {offsets = [1, 0], sizes = [1, 256], strides = [1, 1]} : vector<4x256xf32> to vector<1x256xf32>
    %798 = vector.broadcast %796 : vector<8x1xf32> to vector<8x256xf32>
    %799 = vector.broadcast %797 : vector<1x256xf32> to vector<8x256xf32>
    %800 = arith.mulf %798, %799 : vector<8x256xf32>
    %801 = arith.addf %795, %800 : vector<8x256xf32>
    %802 = vector.extract_strided_slice %790 {offsets = [0, 2], sizes = [8, 1], strides = [1, 1]} : vector<8x4xf32> to vector<8x1xf32>
    %803 = vector.extract_strided_slice %789 {offsets = [2, 0], sizes = [1, 256], strides = [1, 1]} : vector<4x256xf32> to vector<1x256xf32>
    %804 = vector.broadcast %802 : vector<8x1xf32> to vector<8x256xf32>
    %805 = vector.broadcast %803 : vector<1x256xf32> to vector<8x256xf32>
    %806 = arith.mulf %804, %805 : vector<8x256xf32>
    %807 = arith.addf %801, %806 : vector<8x256xf32>
    %808 = vector.extract_strided_slice %790 {offsets = [0, 3], sizes = [8, 1], strides = [1, 1]} : vector<8x4xf32> to vector<8x1xf32>
    %809 = vector.extract_strided_slice %789 {offsets = [3, 0], sizes = [1, 256], strides = [1, 1]} : vector<4x256xf32> to vector<1x256xf32>
    %810 = vector.broadcast %808 : vector<8x1xf32> to vector<8x256xf32>
    %811 = vector.broadcast %809 : vector<1x256xf32> to vector<8x256xf32>
    %812 = arith.mulf %810, %811 : vector<8x256xf32>
    %813 = arith.addf %807, %812 : vector<8x256xf32>
    %c0_137 = arith.constant 0 : index
    %c128_138 = arith.constant 128 : index
    %814 = vector.load %arg20[%c0_137, %c128_138] : memref<8x512xf32, #tpu.memory_space<vmem>>, vector<8x256xf32>
    tpu.vector_store %arg20[%c0_137, %c128_138], %813 {strides = array<i32>} : memref<8x512xf32, #tpu.memory_space<vmem>>, vector<8x256xf32>,
    %c0_139 = arith.constant 0 : index
    %c0_140 = arith.constant 0 : index
    %c0_141 = arith.constant 0 : index
    %815 = vector.load %arg4[%c0_139, %c0_140, %c0_141] : memref<7x1x256xf32, #tpu.memory_space<vmem>>, vector<1x1x256xf32>
    %816 = vector.shape_cast %815 : vector<1x1x256xf32> to vector<1x256xf32>
    %c1_142 = arith.constant 1 : index
    %c0_143 = arith.constant 0 : index
    %c0_144 = arith.constant 0 : index
    %817 = vector.load %arg4[%c1_142, %c0_143, %c0_144] : memref<7x1x256xf32, #tpu.memory_space<vmem>>, vector<1x1x256xf32>
    %818 = vector.shape_cast %817 : vector<1x1x256xf32> to vector<1x256xf32>
    %c2_145 = arith.constant 2 : index
    %c0_146 = arith.constant 0 : index
    %c0_147 = arith.constant 0 : index
    %819 = vector.load %arg4[%c2_145, %c0_146, %c0_147] : memref<7x1x256xf32, #tpu.memory_space<vmem>>, vector<1x1x256xf32>
    %820 = vector.shape_cast %819 : vector<1x1x256xf32> to vector<1x256xf32>
    %c4_148 = arith.constant 4 : index
    %c0_149 = arith.constant 0 : index
    %c0_150 = arith.constant 0 : index
    %821 = vector.load %arg4[%c4_148, %c0_149, %c0_150] : memref<7x1x256xf32, #tpu.memory_space<vmem>>, vector<1x1x256xf32>
    %822 = vector.shape_cast %821 : vector<1x1x256xf32> to vector<1x256xf32>
    %c5_151 = arith.constant 5 : index
    %c0_152 = arith.constant 0 : index
    %c0_153 = arith.constant 0 : index
    %823 = vector.load %arg4[%c5_151, %c0_152, %c0_153] : memref<7x1x256xf32, #tpu.memory_space<vmem>>, vector<1x1x256xf32>
    %824 = vector.shape_cast %823 : vector<1x1x256xf32> to vector<1x256xf32>
    %c6_154 = arith.constant 6 : index
    %c0_155 = arith.constant 0 : index
    %c0_156 = arith.constant 0 : index
    %825 = vector.load %arg4[%c6_154, %c0_155, %c0_156] : memref<7x1x256xf32, #tpu.memory_space<vmem>>, vector<1x1x256xf32>
    %826 = vector.shape_cast %825 : vector<1x1x256xf32> to vector<1x256xf32>
    %cst_157 = arith.constant 0.000000e+00 : f32
    %827 = vector.broadcast %cst_157 : f32 to vector<8x256xf32>
    %c0_158 = arith.constant 0 : index
    %c0_159 = arith.constant 0 : index
    %828 = vector.load %arg16[%c0_158, %c0_159] : memref<8x1xf32, #tpu.memory_space<vmem>>, vector<8x1xf32>
    %829 = vector.broadcast %828 : vector<8x1xf32> to vector<8x256xf32>
    %830 = arith.addf %827, %829 : vector<8x256xf32>
    %c0_160 = arith.constant 0 : index
    %c77 = arith.constant 77 : index
    %831 = vector.load %arg20[%c0_160, %c77] : memref<8x512xf32, #tpu.memory_space<vmem>>, vector<8x256xf32>
    %832 = vector.broadcast %816 : vector<1x256xf32> to vector<8x256xf32>
    %833 = arith.mulf %831, %832 : vector<8x256xf32>
    %c0_161 = arith.constant 0 : index
    %c0_162 = arith.constant 0 : index
    %c0_163 = arith.constant 0 : index
    %834 = vector.load %arg15[%c0_161, %c0_162, %c0_163] : memref<49x8x1xf32, #tpu.memory_space<vmem>>, vector<1x8x1xf32>
    %835 = vector.shape_cast %834 : vector<1x8x1xf32> to vector<8x1xf32>
    %836 = vector.broadcast %835 : vector<8x1xf32> to vector<8x256xf32>
    %837 = arith.mulf %836, %833 : vector<8x256xf32>
    %838 = arith.addf %830, %837 : vector<8x256xf32>
    %c0_164 = arith.constant 0 : index
    %c78 = arith.constant 78 : index
    %839 = vector.load %arg20[%c0_164, %c78] : memref<8x512xf32, #tpu.memory_space<vmem>>, vector<8x256xf32>
    %840 = vector.broadcast %818 : vector<1x256xf32> to vector<8x256xf32>
    %841 = arith.mulf %839, %840 : vector<8x256xf32>
    %c1_165 = arith.constant 1 : index
    %c0_166 = arith.constant 0 : index
    %c0_167 = arith.constant 0 : index
    %842 = vector.load %arg15[%c1_165, %c0_166, %c0_167] : memref<49x8x1xf32, #tpu.memory_space<vmem>>, vector<1x8x1xf32>
    %843 = vector.shape_cast %842 : vector<1x8x1xf32> to vector<8x1xf32>
    %844 = vector.broadcast %843 : vector<8x1xf32> to vector<8x256xf32>
    %845 = arith.mulf %844, %841 : vector<8x256xf32>
    %846 = arith.addf %838, %845 : vector<8x256xf32>
    %c0_168 = arith.constant 0 : index
    %c79 = arith.constant 79 : index
    %847 = vector.load %arg20[%c0_168, %c79] : memref<8x512xf32, #tpu.memory_space<vmem>>, vector<8x256xf32>
    %848 = vector.broadcast %820 : vector<1x256xf32> to vector<8x256xf32>
    %849 = arith.mulf %847, %848 : vector<8x256xf32>
    %c2_169 = arith.constant 2 : index
    %c0_170 = arith.constant 0 : index
    %c0_171 = arith.constant 0 : index
    %850 = vector.load %arg15[%c2_169, %c0_170, %c0_171] : memref<49x8x1xf32, #tpu.memory_space<vmem>>, vector<1x8x1xf32>
    %851 = vector.shape_cast %850 : vector<1x8x1xf32> to vector<8x1xf32>
    %852 = vector.broadcast %851 : vector<8x1xf32> to vector<8x256xf32>
    %853 = arith.mulf %852, %849 : vector<8x256xf32>
    %854 = arith.addf %846, %853 : vector<8x256xf32>
    %c0_172 = arith.constant 0 : index
    %c80 = arith.constant 80 : index
    %855 = vector.load %arg20[%c0_172, %c80] : memref<8x512xf32, #tpu.memory_space<vmem>>, vector<8x256xf32>
    %c3_173 = arith.constant 3 : index
    %c0_174 = arith.constant 0 : index
    %c0_175 = arith.constant 0 : index
    %856 = vector.load %arg15[%c3_173, %c0_174, %c0_175] : memref<49x8x1xf32, #tpu.memory_space<vmem>>, vector<1x8x1xf32>
    %857 = vector.shape_cast %856 : vector<1x8x1xf32> to vector<8x1xf32>
    %858 = vector.broadcast %857 : vector<8x1xf32> to vector<8x256xf32>
    %859 = arith.mulf %858, %855 : vector<8x256xf32>
    %860 = arith.addf %854, %859 : vector<8x256xf32>
    %c0_176 = arith.constant 0 : index
    %c81 = arith.constant 81 : index
    %861 = vector.load %arg20[%c0_176, %c81] : memref<8x512xf32, #tpu.memory_space<vmem>>, vector<8x256xf32>
    %862 = vector.broadcast %822 : vector<1x256xf32> to vector<8x256xf32>
    %863 = arith.mulf %861, %862 : vector<8x256xf32>
    %c4_177 = arith.constant 4 : index
    %c0_178 = arith.constant 0 : index
    %c0_179 = arith.constant 0 : index
    %864 = vector.load %arg15[%c4_177, %c0_178, %c0_179] : memref<49x8x1xf32, #tpu.memory_space<vmem>>, vector<1x8x1xf32>
    %865 = vector.shape_cast %864 : vector<1x8x1xf32> to vector<8x1xf32>
    %866 = vector.broadcast %865 : vector<8x1xf32> to vector<8x256xf32>
    %867 = arith.mulf %866, %863 : vector<8x256xf32>
    %868 = arith.addf %860, %867 : vector<8x256xf32>
    %c0_180 = arith.constant 0 : index
    %c82 = arith.constant 82 : index
    %869 = vector.load %arg20[%c0_180, %c82] : memref<8x512xf32, #tpu.memory_space<vmem>>, vector<8x256xf32>
    %870 = vector.broadcast %824 : vector<1x256xf32> to vector<8x256xf32>
    %871 = arith.mulf %869, %870 : vector<8x256xf32>
    %c5_181 = arith.constant 5 : index
    %c0_182 = arith.constant 0 : index
    %c0_183 = arith.constant 0 : index
    %872 = vector.load %arg15[%c5_181, %c0_182, %c0_183] : memref<49x8x1xf32, #tpu.memory_space<vmem>>, vector<1x8x1xf32>
    %873 = vector.shape_cast %872 : vector<1x8x1xf32> to vector<8x1xf32>
    %874 = vector.broadcast %873 : vector<8x1xf32> to vector<8x256xf32>
    %875 = arith.mulf %874, %871 : vector<8x256xf32>
    %876 = arith.addf %868, %875 : vector<8x256xf32>
    %c0_184 = arith.constant 0 : index
    %c83 = arith.constant 83 : index
    %877 = vector.load %arg20[%c0_184, %c83] : memref<8x512xf32, #tpu.memory_space<vmem>>, vector<8x256xf32>
    %878 = vector.broadcast %826 : vector<1x256xf32> to vector<8x256xf32>
    %879 = arith.mulf %877, %878 : vector<8x256xf32>
    %c6_185 = arith.constant 6 : index
    %c0_186 = arith.constant 0 : index
    %c0_187 = arith.constant 0 : index
    %880 = vector.load %arg15[%c6_185, %c0_186, %c0_187] : memref<49x8x1xf32, #tpu.memory_space<vmem>>, vector<1x8x1xf32>
    %881 = vector.shape_cast %880 : vector<1x8x1xf32> to vector<8x1xf32>
    %882 = vector.broadcast %881 : vector<8x1xf32> to vector<8x256xf32>
    %883 = arith.mulf %882, %879 : vector<8x256xf32>
    %884 = arith.addf %876, %883 : vector<8x256xf32>
    %c0_188 = arith.constant 0 : index
    %c93 = arith.constant 93 : index
    %885 = vector.load %arg20[%c0_188, %c93] : memref<8x512xf32, #tpu.memory_space<vmem>>, vector<8x256xf32>
    %886 = vector.broadcast %816 : vector<1x256xf32> to vector<8x256xf32>
    %887 = arith.mulf %885, %886 : vector<8x256xf32>
    %c7_189 = arith.constant 7 : index
    %c0_190 = arith.constant 0 : index
    %c0_191 = arith.constant 0 : index
    %888 = vector.load %arg15[%c7_189, %c0_190, %c0_191] : memref<49x8x1xf32, #tpu.memory_space<vmem>>, vector<1x8x1xf32>
    %889 = vector.shape_cast %888 : vector<1x8x1xf32> to vector<8x1xf32>
    %890 = vector.broadcast %889 : vector<8x1xf32> to vector<8x256xf32>
    %891 = arith.mulf %890, %887 : vector<8x256xf32>
    %892 = arith.addf %884, %891 : vector<8x256xf32>
    %c0_192 = arith.constant 0 : index
    %c94 = arith.constant 94 : index
    %893 = vector.load %arg20[%c0_192, %c94] : memref<8x512xf32, #tpu.memory_space<vmem>>, vector<8x256xf32>
    %894 = vector.broadcast %818 : vector<1x256xf32> to vector<8x256xf32>
    %895 = arith.mulf %893, %894 : vector<8x256xf32>
    %c8_193 = arith.constant 8 : index
    %c0_194 = arith.constant 0 : index
    %c0_195 = arith.constant 0 : index
    %896 = vector.load %arg15[%c8_193, %c0_194, %c0_195] : memref<49x8x1xf32, #tpu.memory_space<vmem>>, vector<1x8x1xf32>
    %897 = vector.shape_cast %896 : vector<1x8x1xf32> to vector<8x1xf32>
    %898 = vector.broadcast %897 : vector<8x1xf32> to vector<8x256xf32>
    %899 = arith.mulf %898, %895 : vector<8x256xf32>
    %900 = arith.addf %892, %899 : vector<8x256xf32>
    %c0_196 = arith.constant 0 : index
    %c95 = arith.constant 95 : index
    %901 = vector.load %arg20[%c0_196, %c95] : memref<8x512xf32, #tpu.memory_space<vmem>>, vector<8x256xf32>
    %902 = vector.broadcast %820 : vector<1x256xf32> to vector<8x256xf32>
    %903 = arith.mulf %901, %902 : vector<8x256xf32>
    %c9 = arith.constant 9 : index
    %c0_197 = arith.constant 0 : index
    %c0_198 = arith.constant 0 : index
    %904 = vector.load %arg15[%c9, %c0_197, %c0_198] : memref<49x8x1xf32, #tpu.memory_space<vmem>>, vector<1x8x1xf32>
    %905 = vector.shape_cast %904 : vector<1x8x1xf32> to vector<8x1xf32>
    %906 = vector.broadcast %905 : vector<8x1xf32> to vector<8x256xf32>
    %907 = arith.mulf %906, %903 : vector<8x256xf32>
    %908 = arith.addf %900, %907 : vector<8x256xf32>
    %c0_199 = arith.constant 0 : index
    %c96 = arith.constant 96 : index
    %909 = vector.load %arg20[%c0_199, %c96] : memref<8x512xf32, #tpu.memory_space<vmem>>, vector<8x256xf32>
    %c10 = arith.constant 10 : index
    %c0_200 = arith.constant 0 : index
    %c0_201 = arith.constant 0 : index
    %910 = vector.load %arg15[%c10, %c0_200, %c0_201] : memref<49x8x1xf32, #tpu.memory_space<vmem>>, vector<1x8x1xf32>
    %911 = vector.shape_cast %910 : vector<1x8x1xf32> to vector<8x1xf32>
    %912 = vector.broadcast %911 : vector<8x1xf32> to vector<8x256xf32>
    %913 = arith.mulf %912, %909 : vector<8x256xf32>
    %914 = arith.addf %908, %913 : vector<8x256xf32>
    %c0_202 = arith.constant 0 : index
    %c97 = arith.constant 97 : index
    %915 = vector.load %arg20[%c0_202, %c97] : memref<8x512xf32, #tpu.memory_space<vmem>>, vector<8x256xf32>
    %916 = vector.broadcast %822 : vector<1x256xf32> to vector<8x256xf32>
    %917 = arith.mulf %915, %916 : vector<8x256xf32>
    %c11 = arith.constant 11 : index
    %c0_203 = arith.constant 0 : index
    %c0_204 = arith.constant 0 : index
    %918 = vector.load %arg15[%c11, %c0_203, %c0_204] : memref<49x8x1xf32, #tpu.memory_space<vmem>>, vector<1x8x1xf32>
    %919 = vector.shape_cast %918 : vector<1x8x1xf32> to vector<8x1xf32>
    %920 = vector.broadcast %919 : vector<8x1xf32> to vector<8x256xf32>
    %921 = arith.mulf %920, %917 : vector<8x256xf32>
    %922 = arith.addf %914, %921 : vector<8x256xf32>
    %c0_205 = arith.constant 0 : index
    %c98 = arith.constant 98 : index
    %923 = vector.load %arg20[%c0_205, %c98] : memref<8x512xf32, #tpu.memory_space<vmem>>, vector<8x256xf32>
    %924 = vector.broadcast %824 : vector<1x256xf32> to vector<8x256xf32>
    %925 = arith.mulf %923, %924 : vector<8x256xf32>
    %c12 = arith.constant 12 : index
    %c0_206 = arith.constant 0 : index
    %c0_207 = arith.constant 0 : index
    %926 = vector.load %arg15[%c12, %c0_206, %c0_207] : memref<49x8x1xf32, #tpu.memory_space<vmem>>, vector<1x8x1xf32>
    %927 = vector.shape_cast %926 : vector<1x8x1xf32> to vector<8x1xf32>
    %928 = vector.broadcast %927 : vector<8x1xf32> to vector<8x256xf32>
    %929 = arith.mulf %928, %925 : vector<8x256xf32>
    %930 = arith.addf %922, %929 : vector<8x256xf32>
    %c0_208 = arith.constant 0 : index
    %c99 = arith.constant 99 : index
    %931 = vector.load %arg20[%c0_208, %c99] : memref<8x512xf32, #tpu.memory_space<vmem>>, vector<8x256xf32>
    %932 = vector.broadcast %826 : vector<1x256xf32> to vector<8x256xf32>
    %933 = arith.mulf %931, %932 : vector<8x256xf32>
    %c13 = arith.constant 13 : index
    %c0_209 = arith.constant 0 : index
    %c0_210 = arith.constant 0 : index
    %934 = vector.load %arg15[%c13, %c0_209, %c0_210] : memref<49x8x1xf32, #tpu.memory_space<vmem>>, vector<1x8x1xf32>
    %935 = vector.shape_cast %934 : vector<1x8x1xf32> to vector<8x1xf32>
    %936 = vector.broadcast %935 : vector<8x1xf32> to vector<8x256xf32>
    %937 = arith.mulf %936, %933 : vector<8x256xf32>
    %938 = arith.addf %930, %937 : vector<8x256xf32>
    %c0_211 = arith.constant 0 : index
    %c109 = arith.constant 109 : index
    %939 = vector.load %arg20[%c0_211, %c109] : memref<8x512xf32, #tpu.memory_space<vmem>>, vector<8x256xf32>
    %940 = vector.broadcast %816 : vector<1x256xf32> to vector<8x256xf32>
    %941 = arith.mulf %939, %940 : vector<8x256xf32>
    %c14 = arith.constant 14 : index
    %c0_212 = arith.constant 0 : index
    %c0_213 = arith.constant 0 : index
    %942 = vector.load %arg15[%c14, %c0_212, %c0_213] : memref<49x8x1xf32, #tpu.memory_space<vmem>>, vector<1x8x1xf32>
    %943 = vector.shape_cast %942 : vector<1x8x1xf32> to vector<8x1xf32>
    %944 = vector.broadcast %943 : vector<8x1xf32> to vector<8x256xf32>
    %945 = arith.mulf %944, %941 : vector<8x256xf32>
    %946 = arith.addf %938, %945 : vector<8x256xf32>
    %c0_214 = arith.constant 0 : index
    %c110 = arith.constant 110 : index
    %947 = vector.load %arg20[%c0_214, %c110] : memref<8x512xf32, #tpu.memory_space<vmem>>, vector<8x256xf32>
    %948 = vector.broadcast %818 : vector<1x256xf32> to vector<8x256xf32>
    %949 = arith.mulf %947, %948 : vector<8x256xf32>
    %c15 = arith.constant 15 : index
    %c0_215 = arith.constant 0 : index
    %c0_216 = arith.constant 0 : index
    %950 = vector.load %arg15[%c15, %c0_215, %c0_216] : memref<49x8x1xf32, #tpu.memory_space<vmem>>, vector<1x8x1xf32>
    %951 = vector.shape_cast %950 : vector<1x8x1xf32> to vector<8x1xf32>
    %952 = vector.broadcast %951 : vector<8x1xf32> to vector<8x256xf32>
    %953 = arith.mulf %952, %949 : vector<8x256xf32>
    %954 = arith.addf %946, %953 : vector<8x256xf32>
    %c0_217 = arith.constant 0 : index
    %c111_218 = arith.constant 111 : index
    %955 = vector.load %arg20[%c0_217, %c111_218] : memref<8x512xf32, #tpu.memory_space<vmem>>, vector<8x256xf32>
    %956 = vector.broadcast %820 : vector<1x256xf32> to vector<8x256xf32>
    %957 = arith.mulf %955, %956 : vector<8x256xf32>
    %c16 = arith.constant 16 : index
    %c0_219 = arith.constant 0 : index
    %c0_220 = arith.constant 0 : index
    %958 = vector.load %arg15[%c16, %c0_219, %c0_220] : memref<49x8x1xf32, #tpu.memory_space<vmem>>, vector<1x8x1xf32>
    %959 = vector.shape_cast %958 : vector<1x8x1xf32> to vector<8x1xf32>
    %960 = vector.broadcast %959 : vector<8x1xf32> to vector<8x256xf32>
    %961 = arith.mulf %960, %957 : vector<8x256xf32>
    %962 = arith.addf %954, %961 : vector<8x256xf32>
    %c0_221 = arith.constant 0 : index
    %c112_222 = arith.constant 112 : index
    %963 = vector.load %arg20[%c0_221, %c112_222] : memref<8x512xf32, #tpu.memory_space<vmem>>, vector<8x256xf32>
    %c17 = arith.constant 17 : index
    %c0_223 = arith.constant 0 : index
    %c0_224 = arith.constant 0 : index
    %964 = vector.load %arg15[%c17, %c0_223, %c0_224] : memref<49x8x1xf32, #tpu.memory_space<vmem>>, vector<1x8x1xf32>
    %965 = vector.shape_cast %964 : vector<1x8x1xf32> to vector<8x1xf32>
    %966 = vector.broadcast %965 : vector<8x1xf32> to vector<8x256xf32>
    %967 = arith.mulf %966, %963 : vector<8x256xf32>
    %968 = arith.addf %962, %967 : vector<8x256xf32>
    %c0_225 = arith.constant 0 : index
    %c113_226 = arith.constant 113 : index
    %969 = vector.load %arg20[%c0_225, %c113_226] : memref<8x512xf32, #tpu.memory_space<vmem>>, vector<8x256xf32>
    %970 = vector.broadcast %822 : vector<1x256xf32> to vector<8x256xf32>
    %971 = arith.mulf %969, %970 : vector<8x256xf32>
    %c18 = arith.constant 18 : index
    %c0_227 = arith.constant 0 : index
    %c0_228 = arith.constant 0 : index
    %972 = vector.load %arg15[%c18, %c0_227, %c0_228] : memref<49x8x1xf32, #tpu.memory_space<vmem>>, vector<1x8x1xf32>
    %973 = vector.shape_cast %972 : vector<1x8x1xf32> to vector<8x1xf32>
    %974 = vector.broadcast %973 : vector<8x1xf32> to vector<8x256xf32>
    %975 = arith.mulf %974, %971 : vector<8x256xf32>
    %976 = arith.addf %968, %975 : vector<8x256xf32>
    %c0_229 = arith.constant 0 : index
    %c114 = arith.constant 114 : index
    %977 = vector.load %arg20[%c0_229, %c114] : memref<8x512xf32, #tpu.memory_space<vmem>>, vector<8x256xf32>
    %978 = vector.broadcast %824 : vector<1x256xf32> to vector<8x256xf32>
    %979 = arith.mulf %977, %978 : vector<8x256xf32>
    %c19 = arith.constant 19 : index
    %c0_230 = arith.constant 0 : index
    %c0_231 = arith.constant 0 : index
    %980 = vector.load %arg15[%c19, %c0_230, %c0_231] : memref<49x8x1xf32, #tpu.memory_space<vmem>>, vector<1x8x1xf32>
    %981 = vector.shape_cast %980 : vector<1x8x1xf32> to vector<8x1xf32>
    %982 = vector.broadcast %981 : vector<8x1xf32> to vector<8x256xf32>
    %983 = arith.mulf %982, %979 : vector<8x256xf32>
    %984 = arith.addf %976, %983 : vector<8x256xf32>
    %c0_232 = arith.constant 0 : index
    %c115 = arith.constant 115 : index
    %985 = vector.load %arg20[%c0_232, %c115] : memref<8x512xf32, #tpu.memory_space<vmem>>, vector<8x256xf32>
    %986 = vector.broadcast %826 : vector<1x256xf32> to vector<8x256xf32>
    %987 = arith.mulf %985, %986 : vector<8x256xf32>
    %c20 = arith.constant 20 : index
    %c0_233 = arith.constant 0 : index
    %c0_234 = arith.constant 0 : index
    %988 = vector.load %arg15[%c20, %c0_233, %c0_234] : memref<49x8x1xf32, #tpu.memory_space<vmem>>, vector<1x8x1xf32>
    %989 = vector.shape_cast %988 : vector<1x8x1xf32> to vector<8x1xf32>
    %990 = vector.broadcast %989 : vector<8x1xf32> to vector<8x256xf32>
    %991 = arith.mulf %990, %987 : vector<8x256xf32>
    %992 = arith.addf %984, %991 : vector<8x256xf32>
    %c0_235 = arith.constant 0 : index
    %c125 = arith.constant 125 : index
    %993 = vector.load %arg20[%c0_235, %c125] : memref<8x512xf32, #tpu.memory_space<vmem>>, vector<8x256xf32>
    %994 = vector.broadcast %816 : vector<1x256xf32> to vector<8x256xf32>
    %995 = arith.mulf %993, %994 : vector<8x256xf32>
    %c21 = arith.constant 21 : index
    %c0_236 = arith.constant 0 : index
    %c0_237 = arith.constant 0 : index
    %996 = vector.load %arg15[%c21, %c0_236, %c0_237] : memref<49x8x1xf32, #tpu.memory_space<vmem>>, vector<1x8x1xf32>
    %997 = vector.shape_cast %996 : vector<1x8x1xf32> to vector<8x1xf32>
    %998 = vector.broadcast %997 : vector<8x1xf32> to vector<8x256xf32>
    %999 = arith.mulf %998, %995 : vector<8x256xf32>
    %1000 = arith.addf %992, %999 : vector<8x256xf32>
    %c0_238 = arith.constant 0 : index
    %c126 = arith.constant 126 : index
    %1001 = vector.load %arg20[%c0_238, %c126] : memref<8x512xf32, #tpu.memory_space<vmem>>, vector<8x256xf32>
    %1002 = vector.broadcast %818 : vector<1x256xf32> to vector<8x256xf32>
    %1003 = arith.mulf %1001, %1002 : vector<8x256xf32>
    %c22 = arith.constant 22 : index
    %c0_239 = arith.constant 0 : index
    %c0_240 = arith.constant 0 : index
    %1004 = vector.load %arg15[%c22, %c0_239, %c0_240] : memref<49x8x1xf32, #tpu.memory_space<vmem>>, vector<1x8x1xf32>
    %1005 = vector.shape_cast %1004 : vector<1x8x1xf32> to vector<8x1xf32>
    %1006 = vector.broadcast %1005 : vector<8x1xf32> to vector<8x256xf32>
    %1007 = arith.mulf %1006, %1003 : vector<8x256xf32>
    %1008 = arith.addf %1000, %1007 : vector<8x256xf32>
    %c0_241 = arith.constant 0 : index
    %c127_242 = arith.constant 127 : index
    %1009 = vector.load %arg20[%c0_241, %c127_242] : memref<8x512xf32, #tpu.memory_space<vmem>>, vector<8x256xf32>
    %1010 = vector.broadcast %820 : vector<1x256xf32> to vector<8x256xf32>
    %1011 = arith.mulf %1009, %1010 : vector<8x256xf32>
    %c23 = arith.constant 23 : index
    %c0_243 = arith.constant 0 : index
    %c0_244 = arith.constant 0 : index
    %1012 = vector.load %arg15[%c23, %c0_243, %c0_244] : memref<49x8x1xf32, #tpu.memory_space<vmem>>, vector<1x8x1xf32>
    %1013 = vector.shape_cast %1012 : vector<1x8x1xf32> to vector<8x1xf32>
    %1014 = vector.broadcast %1013 : vector<8x1xf32> to vector<8x256xf32>
    %1015 = arith.mulf %1014, %1011 : vector<8x256xf32>
    %1016 = arith.addf %1008, %1015 : vector<8x256xf32>
    %c0_245 = arith.constant 0 : index
    %c128_246 = arith.constant 128 : index
    %1017 = vector.load %arg20[%c0_245, %c128_246] : memref<8x512xf32, #tpu.memory_space<vmem>>, vector<8x256xf32>
    %c24 = arith.constant 24 : index
    %c0_247 = arith.constant 0 : index
    %c0_248 = arith.constant 0 : index
    %1018 = vector.load %arg15[%c24, %c0_247, %c0_248] : memref<49x8x1xf32, #tpu.memory_space<vmem>>, vector<1x8x1xf32>
    %1019 = vector.shape_cast %1018 : vector<1x8x1xf32> to vector<8x1xf32>
    %1020 = vector.broadcast %1019 : vector<8x1xf32> to vector<8x256xf32>
    %1021 = arith.mulf %1020, %1017 : vector<8x256xf32>
    %1022 = arith.addf %1016, %1021 : vector<8x256xf32>
    %c0_249 = arith.constant 0 : index
    %c129_250 = arith.constant 129 : index
    %1023 = vector.load %arg20[%c0_249, %c129_250] : memref<8x512xf32, #tpu.memory_space<vmem>>, vector<8x256xf32>
    %1024 = vector.broadcast %822 : vector<1x256xf32> to vector<8x256xf32>
    %1025 = arith.mulf %1023, %1024 : vector<8x256xf32>
    %c25 = arith.constant 25 : index
    %c0_251 = arith.constant 0 : index
    %c0_252 = arith.constant 0 : index
    %1026 = vector.load %arg15[%c25, %c0_251, %c0_252] : memref<49x8x1xf32, #tpu.memory_space<vmem>>, vector<1x8x1xf32>
    %1027 = vector.shape_cast %1026 : vector<1x8x1xf32> to vector<8x1xf32>
    %1028 = vector.broadcast %1027 : vector<8x1xf32> to vector<8x256xf32>
    %1029 = arith.mulf %1028, %1025 : vector<8x256xf32>
    %1030 = arith.addf %1022, %1029 : vector<8x256xf32>
    %c0_253 = arith.constant 0 : index
    %c130 = arith.constant 130 : index
    %1031 = vector.load %arg20[%c0_253, %c130] : memref<8x512xf32, #tpu.memory_space<vmem>>, vector<8x256xf32>
    %1032 = vector.broadcast %824 : vector<1x256xf32> to vector<8x256xf32>
    %1033 = arith.mulf %1031, %1032 : vector<8x256xf32>
    %c26 = arith.constant 26 : index
    %c0_254 = arith.constant 0 : index
    %c0_255 = arith.constant 0 : index
    %1034 = vector.load %arg15[%c26, %c0_254, %c0_255] : memref<49x8x1xf32, #tpu.memory_space<vmem>>, vector<1x8x1xf32>
    %1035 = vector.shape_cast %1034 : vector<1x8x1xf32> to vector<8x1xf32>
    %1036 = vector.broadcast %1035 : vector<8x1xf32> to vector<8x256xf32>
    %1037 = arith.mulf %1036, %1033 : vector<8x256xf32>
    %1038 = arith.addf %1030, %1037 : vector<8x256xf32>
    %c0_256 = arith.constant 0 : index
    %c131 = arith.constant 131 : index
    %1039 = vector.load %arg20[%c0_256, %c131] : memref<8x512xf32, #tpu.memory_space<vmem>>, vector<8x256xf32>
    %1040 = vector.broadcast %826 : vector<1x256xf32> to vector<8x256xf32>
    %1041 = arith.mulf %1039, %1040 : vector<8x256xf32>
    %c27 = arith.constant 27 : index
    %c0_257 = arith.constant 0 : index
    %c0_258 = arith.constant 0 : index
    %1042 = vector.load %arg15[%c27, %c0_257, %c0_258] : memref<49x8x1xf32, #tpu.memory_space<vmem>>, vector<1x8x1xf32>
    %1043 = vector.shape_cast %1042 : vector<1x8x1xf32> to vector<8x1xf32>
    %1044 = vector.broadcast %1043 : vector<8x1xf32> to vector<8x256xf32>
    %1045 = arith.mulf %1044, %1041 : vector<8x256xf32>
    %1046 = arith.addf %1038, %1045 : vector<8x256xf32>
    %c0_259 = arith.constant 0 : index
    %c141 = arith.constant 141 : index
    %1047 = vector.load %arg20[%c0_259, %c141] : memref<8x512xf32, #tpu.memory_space<vmem>>, vector<8x256xf32>
    %1048 = vector.broadcast %816 : vector<1x256xf32> to vector<8x256xf32>
    %1049 = arith.mulf %1047, %1048 : vector<8x256xf32>
    %c28 = arith.constant 28 : index
    %c0_260 = arith.constant 0 : index
    %c0_261 = arith.constant 0 : index
    %1050 = vector.load %arg15[%c28, %c0_260, %c0_261] : memref<49x8x1xf32, #tpu.memory_space<vmem>>, vector<1x8x1xf32>
    %1051 = vector.shape_cast %1050 : vector<1x8x1xf32> to vector<8x1xf32>
    %1052 = vector.broadcast %1051 : vector<8x1xf32> to vector<8x256xf32>
    %1053 = arith.mulf %1052, %1049 : vector<8x256xf32>
    %1054 = arith.addf %1046, %1053 : vector<8x256xf32>
    %c0_262 = arith.constant 0 : index
    %c142 = arith.constant 142 : index
    %1055 = vector.load %arg20[%c0_262, %c142] : memref<8x512xf32, #tpu.memory_space<vmem>>, vector<8x256xf32>
    %1056 = vector.broadcast %818 : vector<1x256xf32> to vector<8x256xf32>
    %1057 = arith.mulf %1055, %1056 : vector<8x256xf32>
    %c29 = arith.constant 29 : index
    %c0_263 = arith.constant 0 : index
    %c0_264 = arith.constant 0 : index
    %1058 = vector.load %arg15[%c29, %c0_263, %c0_264] : memref<49x8x1xf32, #tpu.memory_space<vmem>>, vector<1x8x1xf32>
    %1059 = vector.shape_cast %1058 : vector<1x8x1xf32> to vector<8x1xf32>
    %1060 = vector.broadcast %1059 : vector<8x1xf32> to vector<8x256xf32>
    %1061 = arith.mulf %1060, %1057 : vector<8x256xf32>
    %1062 = arith.addf %1054, %1061 : vector<8x256xf32>
    %c0_265 = arith.constant 0 : index
    %c143_266 = arith.constant 143 : index
    %1063 = vector.load %arg20[%c0_265, %c143_266] : memref<8x512xf32, #tpu.memory_space<vmem>>, vector<8x256xf32>
    %1064 = vector.broadcast %820 : vector<1x256xf32> to vector<8x256xf32>
    %1065 = arith.mulf %1063, %1064 : vector<8x256xf32>
    %c30 = arith.constant 30 : index
    %c0_267 = arith.constant 0 : index
    %c0_268 = arith.constant 0 : index
    %1066 = vector.load %arg15[%c30, %c0_267, %c0_268] : memref<49x8x1xf32, #tpu.memory_space<vmem>>, vector<1x8x1xf32>
    %1067 = vector.shape_cast %1066 : vector<1x8x1xf32> to vector<8x1xf32>
    %1068 = vector.broadcast %1067 : vector<8x1xf32> to vector<8x256xf32>
    %1069 = arith.mulf %1068, %1065 : vector<8x256xf32>
    %1070 = arith.addf %1062, %1069 : vector<8x256xf32>
    %c0_269 = arith.constant 0 : index
    %c144_270 = arith.constant 144 : index
    %1071 = vector.load %arg20[%c0_269, %c144_270] : memref<8x512xf32, #tpu.memory_space<vmem>>, vector<8x256xf32>
    %c31 = arith.constant 31 : index
    %c0_271 = arith.constant 0 : index
    %c0_272 = arith.constant 0 : index
    %1072 = vector.load %arg15[%c31, %c0_271, %c0_272] : memref<49x8x1xf32, #tpu.memory_space<vmem>>, vector<1x8x1xf32>
    %1073 = vector.shape_cast %1072 : vector<1x8x1xf32> to vector<8x1xf32>
    %1074 = vector.broadcast %1073 : vector<8x1xf32> to vector<8x256xf32>
    %1075 = arith.mulf %1074, %1071 : vector<8x256xf32>
    %1076 = arith.addf %1070, %1075 : vector<8x256xf32>
    %c0_273 = arith.constant 0 : index
    %c145_274 = arith.constant 145 : index
    %1077 = vector.load %arg20[%c0_273, %c145_274] : memref<8x512xf32, #tpu.memory_space<vmem>>, vector<8x256xf32>
    %1078 = vector.broadcast %822 : vector<1x256xf32> to vector<8x256xf32>
    %1079 = arith.mulf %1077, %1078 : vector<8x256xf32>
    %c32_275 = arith.constant 32 : index
    %c0_276 = arith.constant 0 : index
    %c0_277 = arith.constant 0 : index
    %1080 = vector.load %arg15[%c32_275, %c0_276, %c0_277] : memref<49x8x1xf32, #tpu.memory_space<vmem>>, vector<1x8x1xf32>
    %1081 = vector.shape_cast %1080 : vector<1x8x1xf32> to vector<8x1xf32>
    %1082 = vector.broadcast %1081 : vector<8x1xf32> to vector<8x256xf32>
    %1083 = arith.mulf %1082, %1079 : vector<8x256xf32>
    %1084 = arith.addf %1076, %1083 : vector<8x256xf32>
    %c0_278 = arith.constant 0 : index
    %c146 = arith.constant 146 : index
    %1085 = vector.load %arg20[%c0_278, %c146] : memref<8x512xf32, #tpu.memory_space<vmem>>, vector<8x256xf32>
    %1086 = vector.broadcast %824 : vector<1x256xf32> to vector<8x256xf32>
    %1087 = arith.mulf %1085, %1086 : vector<8x256xf32>
    %c33_279 = arith.constant 33 : index
    %c0_280 = arith.constant 0 : index
    %c0_281 = arith.constant 0 : index
    %1088 = vector.load %arg15[%c33_279, %c0_280, %c0_281] : memref<49x8x1xf32, #tpu.memory_space<vmem>>, vector<1x8x1xf32>
    %1089 = vector.shape_cast %1088 : vector<1x8x1xf32> to vector<8x1xf32>
    %1090 = vector.broadcast %1089 : vector<8x1xf32> to vector<8x256xf32>
    %1091 = arith.mulf %1090, %1087 : vector<8x256xf32>
    %1092 = arith.addf %1084, %1091 : vector<8x256xf32>
    %c0_282 = arith.constant 0 : index
    %c147 = arith.constant 147 : index
    %1093 = vector.load %arg20[%c0_282, %c147] : memref<8x512xf32, #tpu.memory_space<vmem>>, vector<8x256xf32>
    %1094 = vector.broadcast %826 : vector<1x256xf32> to vector<8x256xf32>
    %1095 = arith.mulf %1093, %1094 : vector<8x256xf32>
    %c34 = arith.constant 34 : index
    %c0_283 = arith.constant 0 : index
    %c0_284 = arith.constant 0 : index
    %1096 = vector.load %arg15[%c34, %c0_283, %c0_284] : memref<49x8x1xf32, #tpu.memory_space<vmem>>, vector<1x8x1xf32>
    %1097 = vector.shape_cast %1096 : vector<1x8x1xf32> to vector<8x1xf32>
    %1098 = vector.broadcast %1097 : vector<8x1xf32> to vector<8x256xf32>
    %1099 = arith.mulf %1098, %1095 : vector<8x256xf32>
    %1100 = arith.addf %1092, %1099 : vector<8x256xf32>
    %c0_285 = arith.constant 0 : index
    %c157 = arith.constant 157 : index
    %1101 = vector.load %arg20[%c0_285, %c157] : memref<8x512xf32, #tpu.memory_space<vmem>>, vector<8x256xf32>
    %1102 = vector.broadcast %816 : vector<1x256xf32> to vector<8x256xf32>
    %1103 = arith.mulf %1101, %1102 : vector<8x256xf32>
    %c35 = arith.constant 35 : index
    %c0_286 = arith.constant 0 : index
    %c0_287 = arith.constant 0 : index
    %1104 = vector.load %arg15[%c35, %c0_286, %c0_287] : memref<49x8x1xf32, #tpu.memory_space<vmem>>, vector<1x8x1xf32>
    %1105 = vector.shape_cast %1104 : vector<1x8x1xf32> to vector<8x1xf32>
    %1106 = vector.broadcast %1105 : vector<8x1xf32> to vector<8x256xf32>
    %1107 = arith.mulf %1106, %1103 : vector<8x256xf32>
    %1108 = arith.addf %1100, %1107 : vector<8x256xf32>
    %c0_288 = arith.constant 0 : index
    %c158 = arith.constant 158 : index
    %1109 = vector.load %arg20[%c0_288, %c158] : memref<8x512xf32, #tpu.memory_space<vmem>>, vector<8x256xf32>
    %1110 = vector.broadcast %818 : vector<1x256xf32> to vector<8x256xf32>
    %1111 = arith.mulf %1109, %1110 : vector<8x256xf32>
    %c36 = arith.constant 36 : index
    %c0_289 = arith.constant 0 : index
    %c0_290 = arith.constant 0 : index
    %1112 = vector.load %arg15[%c36, %c0_289, %c0_290] : memref<49x8x1xf32, #tpu.memory_space<vmem>>, vector<1x8x1xf32>
    %1113 = vector.shape_cast %1112 : vector<1x8x1xf32> to vector<8x1xf32>
    %1114 = vector.broadcast %1113 : vector<8x1xf32> to vector<8x256xf32>
    %1115 = arith.mulf %1114, %1111 : vector<8x256xf32>
    %1116 = arith.addf %1108, %1115 : vector<8x256xf32>
    %c0_291 = arith.constant 0 : index
    %c159 = arith.constant 159 : index
    %1117 = vector.load %arg20[%c0_291, %c159] : memref<8x512xf32, #tpu.memory_space<vmem>>, vector<8x256xf32>
    %1118 = vector.broadcast %820 : vector<1x256xf32> to vector<8x256xf32>
    %1119 = arith.mulf %1117, %1118 : vector<8x256xf32>
    %c37 = arith.constant 37 : index
    %c0_292 = arith.constant 0 : index
    %c0_293 = arith.constant 0 : index
    %1120 = vector.load %arg15[%c37, %c0_292, %c0_293] : memref<49x8x1xf32, #tpu.memory_space<vmem>>, vector<1x8x1xf32>
    %1121 = vector.shape_cast %1120 : vector<1x8x1xf32> to vector<8x1xf32>
    %1122 = vector.broadcast %1121 : vector<8x1xf32> to vector<8x256xf32>
    %1123 = arith.mulf %1122, %1119 : vector<8x256xf32>
    %1124 = arith.addf %1116, %1123 : vector<8x256xf32>
    %c0_294 = arith.constant 0 : index
    %c160 = arith.constant 160 : index
    %1125 = vector.load %arg20[%c0_294, %c160] : memref<8x512xf32, #tpu.memory_space<vmem>>, vector<8x256xf32>
    %c38 = arith.constant 38 : index
    %c0_295 = arith.constant 0 : index
    %c0_296 = arith.constant 0 : index
    %1126 = vector.load %arg15[%c38, %c0_295, %c0_296] : memref<49x8x1xf32, #tpu.memory_space<vmem>>, vector<1x8x1xf32>
    %1127 = vector.shape_cast %1126 : vector<1x8x1xf32> to vector<8x1xf32>
    %1128 = vector.broadcast %1127 : vector<8x1xf32> to vector<8x256xf32>
    %1129 = arith.mulf %1128, %1125 : vector<8x256xf32>
    %1130 = arith.addf %1124, %1129 : vector<8x256xf32>
    %c0_297 = arith.constant 0 : index
    %c161 = arith.constant 161 : index
    %1131 = vector.load %arg20[%c0_297, %c161] : memref<8x512xf32, #tpu.memory_space<vmem>>, vector<8x256xf32>
    %1132 = vector.broadcast %822 : vector<1x256xf32> to vector<8x256xf32>
    %1133 = arith.mulf %1131, %1132 : vector<8x256xf32>
    %c39 = arith.constant 39 : index
    %c0_298 = arith.constant 0 : index
    %c0_299 = arith.constant 0 : index
    %1134 = vector.load %arg15[%c39, %c0_298, %c0_299] : memref<49x8x1xf32, #tpu.memory_space<vmem>>, vector<1x8x1xf32>
    %1135 = vector.shape_cast %1134 : vector<1x8x1xf32> to vector<8x1xf32>
    %1136 = vector.broadcast %1135 : vector<8x1xf32> to vector<8x256xf32>
    %1137 = arith.mulf %1136, %1133 : vector<8x256xf32>
    %1138 = arith.addf %1130, %1137 : vector<8x256xf32>
    %c0_300 = arith.constant 0 : index
    %c162 = arith.constant 162 : index
    %1139 = vector.load %arg20[%c0_300, %c162] : memref<8x512xf32, #tpu.memory_space<vmem>>, vector<8x256xf32>
    %1140 = vector.broadcast %824 : vector<1x256xf32> to vector<8x256xf32>
    %1141 = arith.mulf %1139, %1140 : vector<8x256xf32>
    %c40 = arith.constant 40 : index
    %c0_301 = arith.constant 0 : index
    %c0_302 = arith.constant 0 : index
    %1142 = vector.load %arg15[%c40, %c0_301, %c0_302] : memref<49x8x1xf32, #tpu.memory_space<vmem>>, vector<1x8x1xf32>
    %1143 = vector.shape_cast %1142 : vector<1x8x1xf32> to vector<8x1xf32>
    %1144 = vector.broadcast %1143 : vector<8x1xf32> to vector<8x256xf32>
    %1145 = arith.mulf %1144, %1141 : vector<8x256xf32>
    %1146 = arith.addf %1138, %1145 : vector<8x256xf32>
    %c0_303 = arith.constant 0 : index
    %c163 = arith.constant 163 : index
    %1147 = vector.load %arg20[%c0_303, %c163] : memref<8x512xf32, #tpu.memory_space<vmem>>, vector<8x256xf32>
    %1148 = vector.broadcast %826 : vector<1x256xf32> to vector<8x256xf32>
    %1149 = arith.mulf %1147, %1148 : vector<8x256xf32>
    %c41 = arith.constant 41 : index
    %c0_304 = arith.constant 0 : index
    %c0_305 = arith.constant 0 : index
    %1150 = vector.load %arg15[%c41, %c0_304, %c0_305] : memref<49x8x1xf32, #tpu.memory_space<vmem>>, vector<1x8x1xf32>
    %1151 = vector.shape_cast %1150 : vector<1x8x1xf32> to vector<8x1xf32>
    %1152 = vector.broadcast %1151 : vector<8x1xf32> to vector<8x256xf32>
    %1153 = arith.mulf %1152, %1149 : vector<8x256xf32>
    %1154 = arith.addf %1146, %1153 : vector<8x256xf32>
    %c0_306 = arith.constant 0 : index
    %c173 = arith.constant 173 : index
    %1155 = vector.load %arg20[%c0_306, %c173] : memref<8x512xf32, #tpu.memory_space<vmem>>, vector<8x256xf32>
    %1156 = vector.broadcast %816 : vector<1x256xf32> to vector<8x256xf32>
    %1157 = arith.mulf %1155, %1156 : vector<8x256xf32>
    %c42 = arith.constant 42 : index
    %c0_307 = arith.constant 0 : index
    %c0_308 = arith.constant 0 : index
    %1158 = vector.load %arg15[%c42, %c0_307, %c0_308] : memref<49x8x1xf32, #tpu.memory_space<vmem>>, vector<1x8x1xf32>
    %1159 = vector.shape_cast %1158 : vector<1x8x1xf32> to vector<8x1xf32>
    %1160 = vector.broadcast %1159 : vector<8x1xf32> to vector<8x256xf32>
    %1161 = arith.mulf %1160, %1157 : vector<8x256xf32>
    %1162 = arith.addf %1154, %1161 : vector<8x256xf32>
    %c0_309 = arith.constant 0 : index
    %c174 = arith.constant 174 : index
    %1163 = vector.load %arg20[%c0_309, %c174] : memref<8x512xf32, #tpu.memory_space<vmem>>, vector<8x256xf32>
    %1164 = vector.broadcast %818 : vector<1x256xf32> to vector<8x256xf32>
    %1165 = arith.mulf %1163, %1164 : vector<8x256xf32>
    %c43 = arith.constant 43 : index
    %c0_310 = arith.constant 0 : index
    %c0_311 = arith.constant 0 : index
    %1166 = vector.load %arg15[%c43, %c0_310, %c0_311] : memref<49x8x1xf32, #tpu.memory_space<vmem>>, vector<1x8x1xf32>
    %1167 = vector.shape_cast %1166 : vector<1x8x1xf32> to vector<8x1xf32>
    %1168 = vector.broadcast %1167 : vector<8x1xf32> to vector<8x256xf32>
    %1169 = arith.mulf %1168, %1165 : vector<8x256xf32>
    %1170 = arith.addf %1162, %1169 : vector<8x256xf32>
    %c0_312 = arith.constant 0 : index
    %c175 = arith.constant 175 : index
    %1171 = vector.load %arg20[%c0_312, %c175] : memref<8x512xf32, #tpu.memory_space<vmem>>, vector<8x256xf32>
    %1172 = vector.broadcast %820 : vector<1x256xf32> to vector<8x256xf32>
    %1173 = arith.mulf %1171, %1172 : vector<8x256xf32>
    %c44 = arith.constant 44 : index
    %c0_313 = arith.constant 0 : index
    %c0_314 = arith.constant 0 : index
    %1174 = vector.load %arg15[%c44, %c0_313, %c0_314] : memref<49x8x1xf32, #tpu.memory_space<vmem>>, vector<1x8x1xf32>
    %1175 = vector.shape_cast %1174 : vector<1x8x1xf32> to vector<8x1xf32>
    %1176 = vector.broadcast %1175 : vector<8x1xf32> to vector<8x256xf32>
    %1177 = arith.mulf %1176, %1173 : vector<8x256xf32>
    %1178 = arith.addf %1170, %1177 : vector<8x256xf32>
    %c0_315 = arith.constant 0 : index
    %c176 = arith.constant 176 : index
    %1179 = vector.load %arg20[%c0_315, %c176] : memref<8x512xf32, #tpu.memory_space<vmem>>, vector<8x256xf32>
    %c45 = arith.constant 45 : index
    %c0_316 = arith.constant 0 : index
    %c0_317 = arith.constant 0 : index
    %1180 = vector.load %arg15[%c45, %c0_316, %c0_317] : memref<49x8x1xf32, #tpu.memory_space<vmem>>, vector<1x8x1xf32>
    %1181 = vector.shape_cast %1180 : vector<1x8x1xf32> to vector<8x1xf32>
    %1182 = vector.broadcast %1181 : vector<8x1xf32> to vector<8x256xf32>
    %1183 = arith.mulf %1182, %1179 : vector<8x256xf32>
    %1184 = arith.addf %1178, %1183 : vector<8x256xf32>
    %c0_318 = arith.constant 0 : index
    %c177 = arith.constant 177 : index
    %1185 = vector.load %arg20[%c0_318, %c177] : memref<8x512xf32, #tpu.memory_space<vmem>>, vector<8x256xf32>
    %1186 = vector.broadcast %822 : vector<1x256xf32> to vector<8x256xf32>
    %1187 = arith.mulf %1185, %1186 : vector<8x256xf32>
    %c46 = arith.constant 46 : index
    %c0_319 = arith.constant 0 : index
    %c0_320 = arith.constant 0 : index
    %1188 = vector.load %arg15[%c46, %c0_319, %c0_320] : memref<49x8x1xf32, #tpu.memory_space<vmem>>, vector<1x8x1xf32>
    %1189 = vector.shape_cast %1188 : vector<1x8x1xf32> to vector<8x1xf32>
    %1190 = vector.broadcast %1189 : vector<8x1xf32> to vector<8x256xf32>
    %1191 = arith.mulf %1190, %1187 : vector<8x256xf32>
    %1192 = arith.addf %1184, %1191 : vector<8x256xf32>
    %c0_321 = arith.constant 0 : index
    %c178 = arith.constant 178 : index
    %1193 = vector.load %arg20[%c0_321, %c178] : memref<8x512xf32, #tpu.memory_space<vmem>>, vector<8x256xf32>
    %1194 = vector.broadcast %824 : vector<1x256xf32> to vector<8x256xf32>
    %1195 = arith.mulf %1193, %1194 : vector<8x256xf32>
    %c47 = arith.constant 47 : index
    %c0_322 = arith.constant 0 : index
    %c0_323 = arith.constant 0 : index
    %1196 = vector.load %arg15[%c47, %c0_322, %c0_323] : memref<49x8x1xf32, #tpu.memory_space<vmem>>, vector<1x8x1xf32>
    %1197 = vector.shape_cast %1196 : vector<1x8x1xf32> to vector<8x1xf32>
    %1198 = vector.broadcast %1197 : vector<8x1xf32> to vector<8x256xf32>
    %1199 = arith.mulf %1198, %1195 : vector<8x256xf32>
    %1200 = arith.addf %1192, %1199 : vector<8x256xf32>
    %c0_324 = arith.constant 0 : index
    %c179 = arith.constant 179 : index
    %1201 = vector.load %arg20[%c0_324, %c179] : memref<8x512xf32, #tpu.memory_space<vmem>>, vector<8x256xf32>
    %1202 = vector.broadcast %826 : vector<1x256xf32> to vector<8x256xf32>
    %1203 = arith.mulf %1201, %1202 : vector<8x256xf32>
    %c48 = arith.constant 48 : index
    %c0_325 = arith.constant 0 : index
    %c0_326 = arith.constant 0 : index
    %1204 = vector.load %arg15[%c48, %c0_325, %c0_326] : memref<49x8x1xf32, #tpu.memory_space<vmem>>, vector<1x8x1xf32>
    %1205 = vector.shape_cast %1204 : vector<1x8x1xf32> to vector<8x1xf32>
    %1206 = vector.broadcast %1205 : vector<8x1xf32> to vector<8x256xf32>
    %1207 = arith.mulf %1206, %1203 : vector<8x256xf32>
    %1208 = arith.addf %1200, %1207 : vector<8x256xf32>
    %1209 = arith.addf %781, %1208 : vector<8x256xf32>
    %c0_327 = arith.constant 0 : index
    %c0_328 = arith.constant 0 : index
    %c0_329 = arith.constant 0 : index
    %1210 = vector.load %arg17[%c0_327, %c0_328, %c0_329] : memref<1x8x256xf32, #tpu.memory_space<vmem>>, vector<1x8x256xf32>
    %1211 = vector.shape_cast %1210 : vector<1x8x256xf32> to vector<8x256xf32>
    %1212 = vector.shape_cast %1209 : vector<8x256xf32> to vector<1x8x256xf32>
    tpu.vector_store %arg17[%c0_327, %c0_328, %c0_329], %1212 {strides = array<i32>} : memref<1x8x256xf32, #tpu.memory_space<vmem>>, vector<1x8x256xf32>,
    return
  }
  func.func @transform_0(%arg0: i32) -> (i32, i32, i32) {
    %c0_i32 = arith.constant 0 : i32
    %c0_i32_0 = arith.constant 0 : i32
    %c0_i32_1 = arith.constant 0 : i32
    return %arg0, %c0_i32, %c0_i32_0 : i32, i32, i32
  }
  func.func @transform_1(%arg0: i32) -> (i32, i32) {
    %c0_i32 = arith.constant 0 : i32
    %c0_i32_0 = arith.constant 0 : i32
    %c0_i32_1 = arith.constant 0 : i32
    return %c0_i32, %c0_i32_0 : i32, i32
  }
  func.func @transform_2(%arg0: i32) -> (i32, i32) {
    %c0_i32 = arith.constant 0 : i32
    %c0_i32_0 = arith.constant 0 : i32
    %c0_i32_1 = arith.constant 0 : i32
    return %c0_i32, %c0_i32_0 : i32, i32
  }
  func.func @transform_3(%arg0: i32) -> (i32, i32, i32) {
    %c0_i32 = arith.constant 0 : i32
    %c0_i32_0 = arith.constant 0 : i32
    %c0_i32_1 = arith.constant 0 : i32
    %c0_i32_2 = arith.constant 0 : i32
    return %c0_i32, %c0_i32_0, %c0_i32_1 : i32, i32, i32
  }
  func.func @transform_4(%arg0: i32) -> (i32, i32) {
    %c0_i32 = arith.constant 0 : i32
    %c0_i32_0 = arith.constant 0 : i32
    %c0_i32_1 = arith.constant 0 : i32
    return %c0_i32, %c0_i32_0 : i32, i32
  }
  func.func @transform_5(%arg0: i32) -> (i32, i32) {
    %c0_i32 = arith.constant 0 : i32
    %c0_i32_0 = arith.constant 0 : i32
    %c0_i32_1 = arith.constant 0 : i32
    return %c0_i32, %c0_i32_0 : i32, i32
  }
  func.func @transform_6(%arg0: i32) -> (i32, i32, i32) {
    %c0_i32 = arith.constant 0 : i32
    %c0_i32_0 = arith.constant 0 : i32
    %c0_i32_1 = arith.constant 0 : i32
    %c0_i32_2 = arith.constant 0 : i32
    return %c0_i32, %c0_i32_0, %c0_i32_1 : i32, i32, i32
  }
  func.func @transform_7(%arg0: i32) -> (i32, i32) {
    %c0_i32 = arith.constant 0 : i32
    %c0_i32_0 = arith.constant 0 : i32
    %c0_i32_1 = arith.constant 0 : i32
    return %c0_i32, %c0_i32_0 : i32, i32
  }
  func.func @transform_8(%arg0: i32) -> (i32, i32) {
    %c0_i32 = arith.constant 0 : i32
    %c0_i32_0 = arith.constant 0 : i32
    %c0_i32_1 = arith.constant 0 : i32
    return %c0_i32, %c0_i32_0 : i32, i32
  }
  func.func @transform_9(%arg0: i32) -> (i32, i32) {
    %c0_i32 = arith.constant 0 : i32
    %c0_i32_0 = arith.constant 0 : i32
    %c0_i32_1 = arith.constant 0 : i32
    return %c0_i32, %c0_i32_0 : i32, i32
  }
  func.func @transform_10(%arg0: i32) -> (i32, i32, i32) {
    %c0_i32 = arith.constant 0 : i32
    %c0_i32_0 = arith.constant 0 : i32
    %c0_i32_1 = arith.constant 0 : i32
    %c0_i32_2 = arith.constant 0 : i32
    return %c0_i32, %c0_i32_0, %c0_i32_1 : i32, i32, i32
  }
  func.func @transform_11(%arg0: i32) -> (i32, i32) {
    %c0_i32 = arith.constant 0 : i32
    %c0_i32_0 = arith.constant 0 : i32
    %c0_i32_1 = arith.constant 0 : i32
    return %c0_i32, %c0_i32_0 : i32, i32
  }
  func.func @transform_12(%arg0: i32) -> (i32, i32) {
    %c0_i32 = arith.constant 0 : i32
    %c0_i32_0 = arith.constant 0 : i32
    %c0_i32_1 = arith.constant 0 : i32
    return %c0_i32, %c0_i32_0 : i32, i32
  }
  func.func @transform_13(%arg0: i32) -> (i32, i32) {
    %c0_i32 = arith.constant 0 : i32
    %c0_i32_0 = arith.constant 0 : i32
    %c0_i32_1 = arith.constant 0 : i32
    return %c0_i32, %c0_i32_0 : i32, i32
  }
  func.func @transform_14(%arg0: i32) -> (i32, i32, i32) {
    %c0_i32 = arith.constant 0 : i32
    %c0_i32_0 = arith.constant 0 : i32
    %c0_i32_1 = arith.constant 0 : i32
    %c0_i32_2 = arith.constant 0 : i32
    return %c0_i32, %c0_i32_0, %c0_i32_1 : i32, i32, i32
  }
  func.func @transform_15(%arg0: i32) -> (i32, i32) {
    %c0_i32 = arith.constant 0 : i32
    %c0_i32_0 = arith.constant 0 : i32
    %c0_i32_1 = arith.constant 0 : i32
    return %c0_i32, %c0_i32_0 : i32, i32
  }
  func.func @transform_16(%arg0: i32) -> (i32, i32, i32) {
    %c0_i32 = arith.constant 0 : i32
    %c0_i32_0 = arith.constant 0 : i32
    %c0_i32_1 = arith.constant 0 : i32
    return %arg0, %c0_i32, %c0_i32_0 : i32, i32, i32
  }
}

</mosaic_0001>

<bundles_post_ra>
// kernel: tpu_custom_call.1
= control target key start
LH: loop header
LB: loop body
LE: loop exit
PB: predicated region body
PF: predicated region fallthrough
CT: control target
= control target key end

     0   :  { %s10626_s0 = inlined_call_operand.vmem [shape: f32[2,4,1024], index: 0, kind: input, shape index: {}]   ;;  %s10627_s1 = inlined_call_operand.hbm [shape: f32[1024,256], index: 1, kind: input, shape index: {}]   ;;  %s10628_s2 = inlined_call_operand.vmem [shape: f32[8,4], index: 2, kind: input, shape index: {}]   ;;  %s10629_s3 = inlined_call_operand.vmem [shape: f32[7,1,256], index: 3, kind: input, shape index: {}]   ;;  %s10630_s4 = inlined_call_operand.vmem [shape: f32[4,1], index: 4, kind: input, shape index: {}]   ;;  %s10631_s5 = inlined_call_operand.vmem [shape: f32[4,1], index: 5, kind: input, shape index: {}]   ;;  %s10632_s6 = inlined_call_operand.vmem [shape: f32[9,8,4], index: 6, kind: input, shape index: {}]   ;;  %s10633_s7 = inlined_call_operand.vmem [shape: f32[8,1], index: 7, kind: input, shape index: {}]   ;;  %s10634_s8 = inlined_call_operand.vmem [shape: f32[8,1], index: 8, kind: input, shape index: {}]   ;;  %s10635_s9 = inlined_call_operand.vmem [shape: f32[8,1], index: 9, kind: input, shape index: {}]   ;;  %s10636_s10 = inlined_call_operand.vmem [shape: f32[9,8,8], index: 10, kind: input, shape index: {}]   ;;  %s10637_s11 = inlined_call_operand.vmem [shape: f32[8,1], index: 11, kind: input, shape index: {}]   ;;  %s10638_s12 = inlined_call_operand.vmem [shape: f32[4,1], index: 12, kind: input, shape index: {}]   ;;  %s10639_s13 = inlined_call_operand.vmem [shape: f32[4,1], index: 13, kind: input, shape index: {}]   ;;  %s10640_s14 = inlined_call_operand.vmem [shape: f32[49,8,1], index: 14, kind: input, shape index: {}]   ;;  %s10641_s15 = inlined_call_operand.vmem [shape: f32[8,1], index: 15, kind: input, shape index: {}]   ;;  %s10642_s16 = inlined_call_operand.hbm [shape: f32[2,8,256], index: 16, kind: output, shape index: {}]  }
   0x1   :  { %11021 = sst [smem:[#allocation195_spill]] %s10626_s0 }
   0x2   :  { %11022 = sst [smem:[#allocation196_spill]] %s10627_s1 }
   0x3   :  { %11023 = sst [smem:[#allocation197_spill]] %s10628_s2 }
   0x4   :  { %11024 = sst [smem:[#allocation198_spill]] %s10629_s3 }
   0x5   :  { %21 = vsyncpa [#allocation6], 0 }
   0x6   :  { %22 = vsyncpa [#allocation7], 0 }
   0x7   :  { %24 = vsyncpa [#allocation7 + $0x1], 0  ;;  %s7175_s21 = smov 0   ;;  %s7177_s22 = smov 0  }
   0x8   :  { %s7179_s23 = smov 0   ;;  %s7181_s24 = smov 0  }
   0x9 LB: > { %11025 = sst [smem:[#allocation11_spill]] %s6991_s21  ;;  %s7196_s25 = sadd.s32 4294967295, %s7003_s24   ;;  %s7003_s24 = sphi %s7181_s24, %s11617_s24   ;;  %s6999_s23 = sphi %s7179_s23, %s11619_s23   ;;  %s6995_s22 = sphi %s7177_s22, %s11621_s22   ;;  %s6991_s21 = sphi %s7175_s21, %s11620_s21  }
   0xa   : > { %11026 = sst [smem:[#allocation12_spill]] %s6999_s23  ;;  %s6593_s26 = sadd.s32 4294967294, %s7003_s24  }
   0xb   : > { %s7200_s27 = sadd.s32 1, %s7003_s24   ;;  %s378_s28 = sadd.s32 1, %s6999_s23 }
   0xc   : > { %11027 = sst [smem:[#allocation13_spill]] %s7200_s27  ;;  %s375_s29 = ssub.s32 %s7003_s24, %s7200_s27 }
   0xd   : > { %p388_p0 = scmp.ne.s32.totalorder %s6999_s23, %s6995_s22  ;;  %p376_p1 = scmp.eq.s32.totalorder %s375_s29, 0 }
   0xe   : > { %p389_p2 = scmp.eq.s32.totalorder %s7196_s25, 1  ;;  %p394_p3 = scmp.ne.s32.totalorder %s6995_s22, %s6991_s21 }
   0xf   : > { %p395_p4 = scmp.eq.s32.totalorder %s6593_s26, 1  ;;  %p6594_p7 = scmp.ge.s32.totalorder %s7003_s24, 1 }
  0x10   : > { %s7211_s30 = scalar_select %p376_p1, %s6999_s23, %s378_s28  }
  0x11   : > { %p7213_p5 = por %p389_p2, %p388_p0  ;;  %p7217_p6 = por %p395_p4, %p394_p3 }
  0x12   : > { %11028 = sst [smem:[#allocation14_spill]] %s7211_s30  ;;  %p402_p8 = scmp.lt.s32.totalorder %s7003_s24, 3 }
  0x13   : > { %s11030_s17 = scalar_select %p7217_p6, 1, 0 }
  0x14   : > { %p6696_p9 = scmp.eq.s32.totalorder %s7196_s25, 0  ;;  %p7224_p10 = pnand %p6594_p7, %p402_p8 }
  0x15   : > { %11031 = sst [smem:[#allocation15_spill]] %s11030_s17  ;;  %s7005_s19 = smov [#allocation5]  }
  0x16   : > { %s414_s20 = sshll.u32 %s7005_s19, 4  ;;  %p6688_p11 = pneg %p7224_p10  ;;  %s415_s20 = int_to_ptr.vmem [resolvable:$true] %s414_s20 }
  0x17   : > { %s6924_s26 = scalar_lea.vmem %s415_s20, 32768  ;;  %p6932_p3 = scmp.lt.s32.totalorder %s415_s20, %s415_s20 }
  0x18   : > { %p6689_p12 = pnand %p6696_p9, %p6688_p11  ;;  %p6925_p0 = scmp.ne.s32.totalorder %s415_s20, %s6924_s26 }
  0x19   : > { %p6933_p4 = scmp.lt.s32.totalorder %s6924_s26, %s6924_s26 }
  0x1a   : > { %p6915_p13 = pneg %p6689_p12 }
  0x1b   : > { %p6934_p6 = por %p6933_p4, %p6932_p3 }
  0x1c   : > { %p6927_p1 = pnand %p6925_p0, %p6915_p13 }
  0x1e   : > { %p6928_p2 = pneg %p6927_p1 }
  0x20   : > { %p6935_p7 = pnand %p6934_p6, %p6928_p2 }
  0x22   : > { %6938 = shalt.err (!%p6935_p7)
}
  0x23   : > { %s7006_s28 = smov 256   ;;  %s7007_s29 = smov 16  }
  0x24   : > { %s11033_s1 = sld [smem:[#allocation196_spill]] }
  0x26   : > { %480 = sbr.rel (%p7224_p10) target bundleno = 5320 (0x14c8), region = 84 }
  0x2a   : > { %6691 = dma.hbm_to_vmem [thread:$0]  (!%p6689_p12), %s11033_s1, 32768, %s415_s20, [#allocation6], %s7006_s28, %s7006_s28, %s7007_s29  }
  0x2b   : > { %6982 = dma.done.wait (%p6696_p9), [#allocation6], 32768  }
  0x2c   : > { %6984 = vsyncadd (%p6696_p9), [#allocation6], 4294934528  ;;  %vm535_vm0 = vcmask 265216   ;;  %v1220_v0 = vlaneseq  ;;  %v10656_v1 = vmov 0   ;;  %v10654_v2 = vmov 0.0   ;;  %p530_p6 = scmp.lt.s32.totalorder %s7196_s25, 1 }
  0x2d   : > { %6815 = vset.pattern.permute.xlu1 %v10656_v1  ;;  %536 = vst.msk [vmem:[#allocation2 + $0x20] sm:$0xf] %vm535_vm0, %v10654_v2  ;;  %537 = vst [vmem:[#allocation3] sm:$0xf] %v10654_v2  ;;  %v10665_v4 = vmov 3   ;;  %s11036_s20 = sld [smem:[#allocation195_spill]] }
  0x2e   : > { %538 = vst [vmem:[#allocation3 + $0xc] sm:$0xf] %v10654_v2  ;;  %v7246_v3 = vshrl.u32 %v1220_v0, 7  ;;  %6820 = vset.pattern.permute.xlu0 %v10665_v4  ;;  %s531_s23 = scalar_select %p530_p6, %s7196_s25, 1  ;;  %v1191_v7 = vld [vmem:[%s10631_s5] sm:$0xf] }
  0x2f   : > { %v1210_v8 = vld [vmem:[%s10633_s7] sm:$0xff]  ;;  %1194 = vperm.xlu1 %6815, %v1191_v7   ;;  %s11037_s3 = sld [smem:[#allocation198_spill]]  ;;  %s10846_s21 = smov 127   ;;  %v10658_v19 = vmov 2   ;;  %v6604_v20 = vld [vmem:[%s10632_s6 + $0x8] sm:$0xff]  ;;  %v6605_v21 = vld [vmem:[%s10632_s6 + $0x10] sm:$0xff] }
  0x30   : > { %s6680_s30 = sshll.u32 %s531_s23, 5  ;;  %v7251_v5 = vsub.s32 0, %v7246_v3  ;;  %v7254_v6 = vsub.s32 1, %v7246_v3  ;;  %v1238_v18 = vld [vmem:[%s10632_s6] sm:$0xff]  ;;  %s10826_s17 = smov 111   ;;  %v6606_v25 = vld [vmem:[%s10632_s6 + $0x18] sm:$0xff] }
  0x31   : > { %v10660_v27 = vmov 1   ;;  %s10772_s1 = smov 1   ;;  %v7321_v28 = vld [vmem:[%s10632_s6 + $0x28] sm:$0xff]  ;;  %v7328_v29 = vld [vmem:[%s10632_s6 + $0x30] sm:$0xff]  ;;  %v6607_v30 = vld [vmem:[%s10632_s6 + $0x20] sm:$0xff]  ;;  %s10818_s18 = smov 15  }
  0x32   : > { %11034 = vst [vmem:[#allocation16_spill] sm:$0xff] %v7251_v5  ;;  %11035 = vst [vmem:[#allocation17_spill] sm:$0xff] %v7254_v6  ;;  %v7343_v31 = vld [vmem:[%s10632_s6 + $0x38] sm:$0xff]  ;;  %v1183_v32 = vld [vmem:[%s10630_s4] sm:$0xf]  ;;  %s10822_s19 = smov 96  }
  0x33   : > { %s534_s26 = scalar_lea.vmem %s11036_s20, %s6680_s30  ;;  %1213 = vperm.xlu1 %6815, %v1210_v8   ;;  %s10820_s20 = smov 113   ;;  %v662_v33 = vld [vmem:[#allocation5 + $0xf8] sm:$0xff]  ;;  %v661_v34 = vld [vmem:[#allocation5 + $0xf0] sm:$0xff]  ;;  %v660_v35 = vld [vmem:[#allocation5 + $0xe8] sm:$0xff]  ;;  %vm574_vm1 = vcmask 1043456   ;;  %vm11004_vm2 = vcmask 1039360  }
  0x34   : > { %v7265_v9 = vld [vmem:[#allocation2 + $0x20] sm:$0xf]  ;;  %v7267_v10 = vld [vmem:[%s534_s26 + $0x10] sm:$0xff]  ;;  %v7276_v14 = vld [vmem:[%s534_s26 + $0x18] sm:$0xff]  ;;  %899 = vmatprep.subr.mxu0 %v662_v33  ;;  %s10648_s23 = smov 110   ;;  %s10824_s27 = smov 95  }
  0x35   : > { %v6602_v11 = vld [vmem:[%s11037_s3 + $0x4] sm:$0x3]  ;;  %567 = vrot.lane.b32.xlu0 %v7265_v9, %s10846_s21  ;;  %v7280_v16 = vld [vmem:[%s534_s26 + $0x8] sm:$0xff]  ;;  %900 = vmatpush1.msra.mxu0 %v661_v34  ;;  %v659_v36 = vld [vmem:[#allocation5 + $0xe0] sm:$0xff]  ;;  %vm615_vm3 = vcmask 785408   ;;  %s10925_s29 = smov 94  }
  0x36   : > { %v1223_v12 = vrot.slane %v6602_v11, %v7251_v5  ;;  %v1227_v13 = vrot.slane %v6602_v11, %v7254_v6  ;;  %v7278_v15 = vld [vmem:[%s534_s26] sm:$0xff]  ;;  %v6603_v22 = vld [vmem:[%s11037_s3 + $0x8] sm:$0x3]  ;;  %901 = vmatprep.subr.mxu0 %v660_v35  ;;  %v658_v37 = vld [vmem:[#allocation5 + $0xd8] sm:$0xff]  ;;  %s10650_s26 = smov 17   ;;  %vm2049_vm4 = vcmask 7168  }
  0x37   : > { %1241 = vperm.xlu1 %6815, %v1238_v18   ;;  %v1563_v23 = vrot.slane %v6603_v22, %v7251_v5  ;;  %v1567_v24 = vrot.slane %v6603_v22, %v7254_v6  ;;  %902 = vmatpush1.msra.mxu0 %v659_v36  ;;  %v726_v38 = vld [vmem:[#allocation5 + $0x2f8] sm:$0xff]  ;;  %v657_v39 = vld [vmem:[#allocation5 + $0xd0] sm:$0xff]  ;;  %v656_v41 = vld [vmem:[#allocation5 + $0xc8] sm:$0xff]  ;;  %vm2228_vm5 = vcmask 121856   ;;  %vm11003_vm6 = vcmask 138240   ;;  %s10844_s30 = smov 126  }
  0x38   : > { %v7282_v17 = vcombine.low %v1223_v12, %v1227_v13  ;;  %903 = vmatprep.subr.mxu0 %v658_v37  ;;  %970 = vmatprep.subr.mxu1 %v726_v38  ;;  %v725_v40 = vld [vmem:[#allocation5 + $0x2f0] sm:$0xff]  ;;  %v724_v42 = vld [vmem:[#allocation5 + $0x2e8] sm:$0xff]  ;;  %v655_v43 = vld [vmem:[#allocation5 + $0xc0] sm:$0xff]  ;;  %s11127_s28 = smov 17   ;;  %s11167_s2 = sld [smem:[#allocation197_spill]]  ;;  %vm10957_vm7 = vcmask 637952  }
  0x39   : > { %v7313_v26 = vcombine.low %v1563_v23, %v1567_v24  ;;  %904 = vmatpush1.msra.mxu0 %v657_v39  ;;  %971 = vmatpush1.msra.mxu1 %v725_v40  ;;  %v723_v44 = vld [vmem:[#allocation5 + $0x2e0] sm:$0xff]  ;;  %v654_v45 = vld [vmem:[#allocation5 + $0xb8] sm:$0xff]  ;;  %v653_v47 = vld [vmem:[#allocation5 + $0xb0] sm:$0xff]  ;;  %vm10958_vm8 = vcmask 646144   ;;  %vm4763_vm9 = vcmask 662528   ;;  %vm1572_vm10 = vcmask 924672  }
  0x3a   : > { %1229 = vrot.lane.b32.xlu0 %v7282_v17, %s10826_s17  ;;  %905 = vmatprep.subr.mxu0 %v656_v41  ;;  %v722_v46 = vld [vmem:[#allocation5 + $0x2d8] sm:$0xff]  ;;  %v721_v48 = vld [vmem:[#allocation5 + $0x2d0] sm:$0xff]  ;;  %v652_v49 = vld [vmem:[#allocation5 + $0xa8] sm:$0xff]  ;;  %vm4812_vm11 = vcmask 670720   ;;  %vm4861_vm12 = vcmask 678912   ;;  %vm4901_vm13 = vcmask 760832  }
  0x3b   : > { %563 = vrot.lane.b32.xlu1 %v7267_v10, %s10846_s21  ;;  %972 = vmatprep.subr.mxu1 %v724_v42  ;;  %v720_v50 = vld [vmem:[#allocation5 + $0x2c8] sm:$0xff]  ;;  %v651_v51 = vld [vmem:[#allocation5 + $0xa0] sm:$0xff]  ;;  %v650_v53 = vld [vmem:[#allocation5 + $0x98] sm:$0xff]  ;;  %vm2739_vm14 = vcmask 769024   ;;  %vm2562_vm15 = vcmask 777216   ;;  %vm5044_vm0 = vcmask 793600  }
  0x3c   : > { %6816 = vset.pattern.permute.xlu1 %v10658_v19  ;;  %906 = vmatpush1.msra.mxu0 %v655_v43  ;;  %v719_v52 = vld [vmem:[#allocation5 + $0x2c0] sm:$0xff]  ;;  %v718_v54 = vld [vmem:[#allocation5 + $0x2b8] sm:$0xff]  ;;  %v649_v55 = vld [vmem:[#allocation5 + $0x90] sm:$0xff] }
  0x3d   : > { %973 = vmatpush1.msra.mxu1 %v723_v44  ;;  %907 = vmatprep.subr.mxu0 %v654_v45  ;;  %v717_v56 = vld [vmem:[#allocation5 + $0x2b0] sm:$0xff]  ;;  %v648_v57 = vld [vmem:[#allocation5 + $0x88] sm:$0xff]  ;;  %v647_v59 = vld [vmem:[#allocation5 + $0x80] sm:$0xff] }
  0x3e   : > { %559 = vrot.lane.b32.xlu0 %v7278_v15, %s10846_s21  ;;  %974 = vmatprep.subr.mxu1 %v722_v46  ;;  %v716_v58 = vld [vmem:[#allocation5 + $0x2a8] sm:$0xff]  ;;  %v715_v60 = vld [vmem:[#allocation5 + $0x2a0] sm:$0xff]  ;;  %v646_v61 = vld [vmem:[#allocation5 + $0x78] sm:$0xff] }
  0x3f   : > { %565 = vrot.lane.b32.xlu1 %v7276_v14, %s10846_s21  ;;  %908 = vmatpush1.msra.mxu0 %v653_v47  ;;  %v714_v62 = vld [vmem:[#allocation5 + $0x298] sm:$0xff]  ;;  %v645_v63 = vld [vmem:[#allocation5 + $0x70] sm:$0xff]  ;;  %v644_v7 = vld [vmem:[#allocation5 + $0x68] sm:$0xff] }
  0x40   : > { %975 = vmatpush1.msra.mxu1 %v721_v48  ;;  %909 = vmatprep.subr.mxu0 %v652_v49  ;;  %v713_v0 = vld [vmem:[#allocation5 + $0x290] sm:$0xff]  ;;  %v712_v8 = vld [vmem:[#allocation5 + $0x288] sm:$0xff]  ;;  %v643_v11 = vld [vmem:[#allocation5 + $0x60] sm:$0xff] }
  0x41   : > { %976 = vmatprep.subr.mxu1 %v720_v50  ;;  %910 = vmatpush1.msra.mxu0 %v651_v51  ;;  %v711_v12 = vld [vmem:[#allocation5 + $0x280] sm:$0xff]  ;;  %v642_v13 = vld [vmem:[#allocation5 + $0x58] sm:$0xff]  ;;  %v708_v22 = vld [vmem:[#allocation5 + $0x268] sm:$0xff] }
  0x42   : > { %561 = vrot.lane.b32.xlu0 %v7280_v16, %s10846_s21  ;;  %977 = vmatpush1.msra.mxu1 %v719_v52  ;;  %v639_v23 = vld [vmem:[#allocation5 + $0x40] sm:$0xff]  ;;  %v636_v33 = vld [vmem:[#allocation5 + $0x28] sm:$0xff]  ;;  %v634_v37 = vld [vmem:[#allocation5 + $0x18] sm:$0xff] }
  0x43   : > { %1314 = vperm.xlu1 %6816, %v1238_v18   ;;  %911 = vmatprep.subr.mxu0 %v650_v53  ;;  %v707_v24 = vld [vmem:[#allocation5 + $0x260] sm:$0xff]  ;;  %v704_v34 = vld [vmem:[#allocation5 + $0x248] sm:$0xff]  ;;  %v633_v38 = vld [vmem:[#allocation5 + $0x10] sm:$0xff] }
  0x44   : > { %978 = vmatprep.subr.mxu1 %v718_v54  ;;  %912 = vmatpush1.msra.mxu0 %v649_v55  ;;  %v635_v35 = vld [vmem:[#allocation5 + $0x20] sm:$0xff]  ;;  %v701_v39 = vld [vmem:[#allocation5 + $0x230] sm:$0xff]  ;;  %v632_v40 = vld [vmem:[#allocation5 + $0x8] sm:$0xff] }
  0x45   : > { %979 = vmatpush1.msra.mxu1 %v717_v56  ;;  %913 = vmatprep.subr.mxu0 %v648_v57  ;;  %v703_v36 = vld [vmem:[#allocation5 + $0x240] sm:$0xff]  ;;  %v700_v41 = vld [vmem:[#allocation5 + $0x228] sm:$0xff]  ;;  %v694_v44 = vld [vmem:[#allocation5 + $0x1f8] sm:$0xff] }
  0x46   : > { %1506 = vperm.xlu0 %6820, %v6604_v20   ;;  %980 = vmatprep.subr.mxu1 %v716_v58  ;;  %v631_v42 = vld [vmem:[#allocation5] sm:$0xff]  ;;  %v698_v45 = vld [vmem:[#allocation5 + $0x218] sm:$0xff]  ;;  %v693_v46 = vld [vmem:[#allocation5 + $0x1f0] sm:$0xff] }
  0x47   : > { %6817 = vset.pattern.permute.xlu1 %v10665_v4  ;;  %914 = vmatpush1.msra.mxu0 %v647_v59  ;;  %v699_v43 = vld [vmem:[#allocation5 + $0x220] sm:$0xff]  ;;  %v697_v47 = vld [vmem:[#allocation5 + $0x210] sm:$0xff]  ;;  %v692_v48 = vld [vmem:[#allocation5 + $0x1e8] sm:$0xff] }
  0x48   : > { %1351 = vperm.xlu1 %6817, %v1238_v18   ;;  %981 = vmatpush1.msra.mxu1 %v715_v60  ;;  %v696_v49 = vld [vmem:[#allocation5 + $0x208] sm:$0xff]  ;;  %v691_v50 = vld [vmem:[#allocation5 + $0x1e0] sm:$0xff]  ;;  %v690_v52 = vld [vmem:[#allocation5 + $0x1d8] sm:$0xff] }
  0x49   : > { %915 = vmatprep.subr.mxu0 %v646_v61  ;;  %982 = vmatprep.subr.mxu1 %v714_v62  ;;  %v695_v51 = vld [vmem:[#allocation5 + $0x200] sm:$0xff]  ;;  %v758_v53 = vld [vmem:[#allocation5 + $0x3f8] sm:$0xff]  ;;  %v689_v54 = vld [vmem:[#allocation5 + $0x1d0] sm:$0xff] }
  0x4a   : > { %1692 = vperm.xlu0 %6820, %v6605_v21   ;;  %916 = vmatpush1.msra.mxu0 %v645_v63  ;;  %v757_v56 = vld [vmem:[#allocation5 + $0x3f0] sm:$0xff]  ;;  %v688_v58 = vld [vmem:[#allocation5 + $0x1c8] sm:$0xff]  ;;  %v687_v60 = vld [vmem:[#allocation5 + $0x1c0] sm:$0xff] }
  0x4b   : > { %983 = vmatpush1.msra.mxu1 %v713_v0  ;;  %917 = vmatprep.subr.mxu0 %v644_v7  ;;  %v756_v59 = vld [vmem:[#allocation5 + $0x3e8] sm:$0xff]  ;;  %v686_v61 = vld [vmem:[#allocation5 + $0x1b8] sm:$0xff]  ;;  %v753_v0 = vld [vmem:[#allocation5 + $0x3d0] sm:$0xff] }
  0x4c   : > { %6818 = vset.pattern.permute.xlu1 %v10660_v27  ;;  %984 = vmatprep.subr.mxu1 %v712_v8  ;;  %v754_v63 = vld [vmem:[#allocation5 + $0x3d8] sm:$0xff]  ;;  %v684_v7 = vld [vmem:[#allocation5 + $0x1a8] sm:$0xff] }
  0x4d   : > { %1432 = vperm.xlu1 %6818, %v6604_v20   ;;  %918 = vmatpush1.msra.mxu0 %v643_v11  ;;  %v752_v8 = vld [vmem:[#allocation5 + $0x3c8] sm:$0xff]  ;;  %v683_v11 = vld [vmem:[#allocation5 + $0x1a0] sm:$0xff] }
  0x4e   : > { %1870 = vperm.xlu0 %6820, %v6606_v25   ;;  %985 = vmatpush1.msra.mxu1 %v711_v12  ;;  %v751_v12 = vld [vmem:[#allocation5 + $0x3c0] sm:$0xff] }
  0x4f   : > { %919 = vmatprep.subr.mxu0 %v642_v13  ;;  %v682_v13 = vld [vmem:[#allocation5 + $0x198] sm:$0xff] }
  0x51   : > { %6819 = vset.pattern.permute.xlu1 %v10658_v19 }
  0x52   : > { %2046 = vrot.lane.b32.xlu0 %v7313_v26, %s10772_s1  ;;  %1469 = vperm.xlu1 %6819, %v6604_v20  }
  0x56   : > { %2169 = vperm.xlu0 %6820, %v7321_v28   ;;  %1569 = vrot.lane.b32.xlu1 %v7313_v26, %s10820_s20 }
  0x57   : > { %6821 = vset.pattern.permute.xlu1 %v10660_v27 }
  0x5a   : > { %2348 = vperm.xlu0 %6820, %v7328_v29   ;;  %1618 = vperm.xlu1 %6821, %v6605_v21  }
  0x5e   : > { %6832 = vset.pattern.permute.xlu0 %v10660_v27  ;;  %6822 = vset.pattern.permute.xlu1 %v10658_v19 }
  0x5f   : > { %1277 = vperm.xlu0 %6832, %v1238_v18   ;;  %1655 = vperm.xlu1 %6822, %v6605_v21   ;;  %v710_v18 = vld [vmem:[#allocation5 + $0x278] sm:$0xff] }
  0x60   : > { %986 = vmatprep.subr.mxu1 %v710_v18 }
  0x63   : > { %1954 = vperm.xlu0 %6832, %v6607_v30   ;;  %1748 = vrot.lane.b32.xlu1 %v7282_v17, %s10846_s21 }
  0x64   : > { %6823 = vset.pattern.permute.xlu1 %v10660_v27 }
  0x67   : > { %2095 = vperm.xlu0 %6832, %v7321_v28   ;;  %1796 = vperm.xlu1 %6823, %v6606_v25  }
  0x6b   : > { %2443 = vperm.xlu0 %6832, %v7343_v31   ;;  %6824 = vset.pattern.permute.xlu1 %v10658_v19 }
  0x6c   : > { %1833 = vperm.xlu1 %6824, %v6606_v25  }
  0x6f   : > { %6834 = vset.pattern.permute.xlu0 %v10656_v1 }
  0x70   : > { %1186 = vperm.xlu0 %6834, %v1183_v32   ;;  %6825 = vset.pattern.permute.xlu1 %v10656_v1  ;;  %v705_v32 = vld [vmem:[#allocation5 + $0x250] sm:$0xff] }
  0x71   : > { %1929 = vperm.xlu1 %6825, %v6607_v30  }
  0x74   : > { %1396 = vperm.xlu0 %6834, %v6604_v20   ;;  %v709_v20 = vld [vmem:[#allocation5 + $0x270] sm:$0xff] }
  0x75   : > { %6826 = vset.pattern.permute.xlu1 %v10658_v19  ;;  %987 = vmatpush1.msra.mxu1 %v709_v20  ;;  %v750_v20 = vld [vmem:[#allocation5 + $0x3b8] sm:$0xff] }
  0x76   : > { %1980 = vperm.xlu1 %6826, %v6607_v30   ;;  %988 = vmatprep.subr.mxu1 %v708_v22  ;;  %v749_v22 = vld [vmem:[#allocation5 + $0x3b0] sm:$0xff] }
  0x77   : > { %989 = vmatpush1.msra.mxu1 %v707_v24  ;;  %v748_v24 = vld [vmem:[#allocation5 + $0x3a8] sm:$0xff] }
  0x78   : > { %1582 = vperm.xlu0 %6834, %v6605_v21   ;;  %v640_v21 = vld [vmem:[#allocation5 + $0x48] sm:$0xff] }
  0x7a   : > { %6827 = vset.pattern.permute.xlu1 %v10665_v4 }
  0x7b   : > { %2006 = vperm.xlu1 %6827, %v6607_v30   ;;  %v637_v30 = vld [vmem:[#allocation5 + $0x30] sm:$0xff] }
  0x7c   : > { %1760 = vperm.xlu0 %6834, %v6606_v25   ;;  %v638_v25 = vld [vmem:[#allocation5 + $0x38] sm:$0xff] }
  0x7f   : > { %6828 = vset.pattern.permute.xlu1 %v10656_v1 }
  0x80   : > { %2238 = vperm.xlu0 %6834, %v7328_v29   ;;  %2059 = vperm.xlu1 %6828, %v7321_v28  }
  0x84   : > { %6829 = vset.pattern.permute.xlu1 %v10658_v19 }
  0x85   : > { %2132 = vperm.xlu1 %6829, %v7321_v28   ;;  %v706_v28 = vld [vmem:[#allocation5 + $0x258] sm:$0xff] }
  0x86   : > { %990 = vmatprep.subr.mxu1 %v706_v28 }
  0x87   : > { %991 = vmatpush1.msra.mxu1 %v705_v32  ;;  %v678_v32 = vld [vmem:[#allocation5 + $0x178] sm:$0xff] }
  0x88   : > { %992 = vmatprep.subr.mxu1 %v704_v34 }
  0x89   : > { %2225 = vrot.lane.b32.xlu1 %v7282_v17, %s10818_s18  ;;  %v641_v17 = vld [vmem:[#allocation5 + $0x50] sm:$0xff]  ;;  %993 = vmatpush1.msra.mxu1 %v703_v36 }
  0x8a   : > { %6830 = vset.pattern.permute.xlu1 %v10660_v27  ;;  %920 = vmatpush1.msra.mxu0 %v641_v17  ;;  %v677_v36 = vld [vmem:[#allocation5 + $0x170] sm:$0xff] }
  0x8b   : > { %921 = vmatprep.subr.mxu0 %v640_v21  ;;  %v681_v21 = vld [vmem:[#allocation5 + $0x190] sm:$0xff] }
  0x8c   : > { %922 = vmatpush1.msra.mxu0 %v639_v23  ;;  %v680_v23 = vld [vmem:[#allocation5 + $0x188] sm:$0xff] }
  0x8d   : > { %2274 = vperm.xlu1 %6830, %v7328_v29   ;;  %923 = vmatprep.subr.mxu0 %v638_v25  ;;  %v679_v25 = vld [vmem:[#allocation5 + $0x180] sm:$0xff] }
  0x8e   : > { %924 = vmatpush1.msra.mxu0 %v637_v30  ;;  %v747_v30 = vld [vmem:[#allocation5 + $0x3a0] sm:$0xff] }
  0x8f   : > { %925 = vmatprep.subr.mxu0 %v636_v33 }
  0x90   : > { %926 = vmatpush1.msra.mxu0 %v635_v35  ;;  %v746_v35 = vld [vmem:[#allocation5 + $0x398] sm:$0xff] }
  0x91   : > { %6831 = vset.pattern.permute.xlu1 %v10658_v19  ;;  %927 = vmatprep.subr.mxu0 %v634_v37 }
  0x92   : > { %2311 = vperm.xlu1 %6831, %v7328_v29   ;;  %v702_v29 = vld [vmem:[#allocation5 + $0x238] sm:$0xff]  ;;  %928 = vmatpush1.msra.mxu0 %v633_v38  ;;  %v676_v38 = vld [vmem:[#allocation5 + $0x168] sm:$0xff] }
  0x93   : > { %994 = vmatprep.subr.mxu1 %v702_v29  ;;  %929 = vmatprep.subr.mxu0 %v632_v40  ;;  %v745_v29 = vld [vmem:[#allocation5 + $0x390] sm:$0xff]  ;;  %v675_v40 = vld [vmem:[#allocation5 + $0x160] sm:$0xff] }
  0x94   : > { %995 = vmatpush1.msra.mxu1 %v701_v39  ;;  %930 = vmatpush1.msra.mxu0 %v631_v42  ;;  %v744_v39 = vld [vmem:[#allocation5 + $0x388] sm:$0xff]  ;;  %v743_v42 = vld [vmem:[#allocation5 + $0x380] sm:$0xff] }
  0x95   : > { %996 = vmatprep.subr.mxu1 %v700_v41  ;;  %931 = vmatprep.subr.mxu0 %v694_v44 }
  0x96   : > { %6833 = vset.pattern.permute.xlu1 %v10656_v1  ;;  %997 = vmatpush1.msra.mxu1 %v699_v43  ;;  %v674_v43 = vld [vmem:[#allocation5 + $0x158] sm:$0xff] }
  0x97   : > { %2407 = vperm.xlu1 %6833, %v7343_v31   ;;  %998 = vmatprep.subr.mxu1 %v698_v45 }
  0x98   : > { %932 = vmatpush2.msra.mxu0 %v693_v46  ;;  %999 = vmatpush1.msra.mxu1 %v697_v47  ;;  %v742_v46 = vld [vmem:[#allocation5 + $0x378] sm:$0xff] }
  0x99   : > { %933 = vmatprep.subr.mxu0 %v692_v48  ;;  %1000 = vmatprep.subr.mxu1 %v696_v49  ;;  %v673_v48 = vld [vmem:[#allocation5 + $0x150] sm:$0xff] }
  0x9a   : > { %934 = vmatpush2.msra.mxu0 %v691_v50  ;;  %1001 = vmatpush1.msra.mxu1 %v695_v51  ;;  %v741_v49 = vld [vmem:[#allocation5 + $0x370] sm:$0xff]  ;;  %v672_v50 = vld [vmem:[#allocation5 + $0x148] sm:$0xff] }
  0x9b   : > { %6835 = vset.pattern.permute.xlu1 %v10658_v19  ;;  %935 = vmatprep.subr.mxu0 %v690_v52  ;;  %v740_v51 = vld [vmem:[#allocation5 + $0x368] sm:$0xff]  ;;  %v671_v52 = vld [vmem:[#allocation5 + $0x140] sm:$0xff] }
  0x9c   : > { %2480 = vperm.xlu1 %6835, %v7343_v31   ;;  %1002 = vmatprep.subr.mxu1 %v758_v53  ;;  %v739_v53 = vld [vmem:[#allocation5 + $0x360] sm:$0xff] }
  0x9d   : > { %936 = vmatpush2.msra.mxu0 %v689_v54  ;;  %1003 = vmatpush2.msra.mxu1 %v757_v56  ;;  %v670_v56 = vld [vmem:[#allocation5 + $0x138] sm:$0xff] }
  0x9e   : > { %937 = vmatprep.subr.mxu0 %v688_v58  ;;  %1004 = vmatprep.subr.mxu1 %v756_v59  ;;  %v669_v58 = vld [vmem:[#allocation5 + $0x130] sm:$0xff] }
  0x9f   : > { %938 = vmatpush2.msra.mxu0 %v687_v60  ;;  %v737_v59 = vld [vmem:[#allocation5 + $0x350] sm:$0xff]  ;;  %v668_v60 = vld [vmem:[#allocation5 + $0x128] sm:$0xff] }
  0xa0   : > { %6836 = vset.pattern.permute.xlu1 %v10665_v4  ;;  %939 = vmatprep.subr.mxu0 %v686_v61 }
  0xa1   : > { %2517 = vperm.xlu1 %6836, %v7343_v31   ;;  %v755_v31 = vld [vmem:[#allocation5 + $0x3e0] sm:$0xff] }
  0xa2   : > { %1005 = vmatpush2.msra.mxu1 %v755_v31  ;;  %v736_v31 = vld [vmem:[#allocation5 + $0x348] sm:$0xff] }
  0xa3   : > { %1006 = vmatprep.subr.mxu1 %v754_v63 }
  0xa4   : > { %1007 = vmatpush2.msra.mxu1 %v753_v0  ;;  %v735_v0 = vld [vmem:[#allocation5 + $0x340] sm:$0xff] }
  0xa5   : > { %6837 = vset.pattern.permute.xlu1 %v10660_v27  ;;  %1008 = vmatprep.subr.mxu1 %v752_v8 }
  0xa6   : > { %1009 = vmatpush2.msra.mxu1 %v751_v12 }
  0xa7   : > { %v7374_v55 = vpop.permute.xlu0 %567  ;;  %1010 = vmatprep.subr.mxu1 %v750_v20  ;;  %v665_v20 = vld [vmem:[#allocation5 + $0x110] sm:$0xff] }
  0xa8   : > { %v593_v57 = vmax.f32 %v7265_v9, %v7374_v55  ;;  %v685_v9 = vld [vmem:[#allocation5 + $0x1b0] sm:$0xff]  ;;  %1011 = vmatpush2.msra.mxu1 %v749_v22  ;;  %v573_v61 = vrot.slane %v7374_v55, 4  ;;  %v734_v55 = vld [vmem:[#allocation5 + $0x338] sm:$0xff]  ;;  %v664_v22 = vld [vmem:[#allocation5 + $0x108] sm:$0xff] }
  0xa9   : > { %940 = vmatpush2.msra.mxu0 %v685_v9  ;;  %1012 = vmatprep.subr.mxu1 %v748_v24  ;;  %v667_v9 = vld [vmem:[#allocation5 + $0x120] sm:$0xff] }
  0xaa   : > { %607 = vrot.lane.b32.xlu1 %v593_v57, %s10822_s19  ;;  %v7382_v18 = vpop.permute.xlu1 %1194  ;;  %941 = vmatprep.subr.mxu0 %v684_v7 }
  0xab   : > { %942 = vmatpush2.msra.mxu0 %v683_v11  ;;  %1013 = vmatpush2.msra.mxu1 %v747_v30  ;;  %v666_v11 = vld [vmem:[#allocation5 + $0x118] sm:$0xff] }
  0xac   : > { %v7379_v62 = vpop.permute.xlu0 %1229  ;;  %943 = vmatprep.subr.mxu0 %v682_v13  ;;  %1014 = vmatprep.subr.mxu1 %v746_v35 }
  0xad   : > { %11038 = vst [vmem:[#allocation18_spill] sm:$0xff] %v7379_v62  ;;  %944 = vmatpush2.msra.mxu0 %v681_v21  ;;  %1015 = vmatpush2.msra.mxu1 %v745_v29  ;;  %v733_v21 = vld [vmem:[#allocation5 + $0x330] sm:$0xff] }
  0xae   : > { %v7384_v33 = vpop.permute.xlu1 %1213  ;;  %945 = vmatprep.subr.mxu0 %v680_v23  ;;  %1016 = vmatprep.subr.mxu1 %v744_v39 }
  0xaf   : > { %11039 = vst [vmem:[#allocation19_spill] sm:$0xff] %v7384_v33  ;;  %946 = vmatpush2.msra.mxu0 %v679_v25  ;;  %1017 = vmatpush2.msra.mxu1 %v743_v42  ;;  %v663_v25 = vld [vmem:[#allocation5 + $0x100] sm:$0xff] }
  0xb0   : > { %v560_v17 = vpop.permute.xlu0 %559  ;;  %947 = vmatprep.subr.mxu0 %v678_v32  ;;  %1018 = vmatprep.subr.mxu1 %v742_v46 }
  0xb1   : > { %v569_v28 = vrot.slane %v560_v17, 4  ;;  %948 = vmatpush2.msra.mxu0 %v677_v36  ;;  %1019 = vmatpush2.msra.mxu1 %v741_v49  ;;  %v731_v36 = vld [vmem:[#allocation5 + $0x320] sm:$0xff] }
  0xb2   : > { %v7387_v44 = vpop.permute.xlu1 %1241  ;;  %949 = vmatprep.subr.mxu0 %v676_v38  ;;  %1020 = vmatprep.subr.mxu1 %v740_v51  ;;  %v730_v38 = vld [vmem:[#allocation5 + $0x318] sm:$0xff] }
  0xb3   : > { %11040 = vst [vmem:[#allocation20_spill] sm:$0xff] %v7387_v44  ;;  %950 = vmatpush2.msra.mxu0 %v675_v40  ;;  %1021 = vmatpush2.msra.mxu1 %v739_v53  ;;  %v727_v40 = vld [vmem:[#allocation5 + $0x300] sm:$0xff] }
  0xb4   : > { %v562_v34 = vpop.permute.xlu0 %561  ;;  %951 = vmatprep.subr.mxu0 %v674_v43  ;;  %v7432_v43 = vld [vmem:[%s10632_s6 + $0x40] sm:$0xff] }
  0xb5   : > { %v570_v37 = vrot.slane %v562_v34, 4  ;;  %952 = vmatpush2.msra.mxu0 %v673_v48 }
  0xb6   : > { %v564_v54 = vpop.permute.xlu1 %563  ;;  %953 = vmatprep.subr.mxu0 %v672_v50 }
  0xb7   : > { %v575_v41 = vsel %vm574_vm1, %v569_v28, %v570_v37  ;;  %v571_v57 = vrot.slane %v564_v54, 4  ;;  %954 = vmatpush2.msra.mxu0 %v671_v52 }
  0xb8   : > { %v577_v45 = vsel %vm11004_vm2, %v560_v17, %v575_v41  ;;  %955 = vmatprep.subr.mxu0 %v670_v56  ;;  %v854_v41 = vld [vmem:[#allocation5 + $0x6f8] sm:$0xff] }
  0xb9   : > { %v7391_v47 = vmax.f32 %v7278_v15, %v577_v45  ;;  %v738_v15 = vld [vmem:[#allocation5 + $0x358] sm:$0xff]  ;;  %v578_v63 = vsel %vm574_vm1, %v570_v37, %v571_v57  ;;  %956 = vmatpush2.msra.mxu0 %v669_v58 }
  0xba   : > { %1022 = vmatprep.subr.mxu1 %v738_v15  ;;  %v579_v7 = vsel %vm11004_vm2, %v562_v34, %v578_v63  ;;  %v566_v8 = vpop.permute.xlu1 %565  ;;  %957 = vmatprep.subr.mxu0 %v668_v60  ;;  %v790_v37 = vld [vmem:[#allocation5 + $0x4f8] sm:$0xff] }
  0xbb   : > { %599 = vrot.lane.b32.xlu1 %v7391_v47, %s10822_s19  ;;  %1023 = vmatpush2.msra.mxu1 %v737_v59  ;;  %v572_v12 = vrot.slane %v566_v8, 4  ;;  %v7399_v13 = vmax.f32 %v7280_v16, %v579_v7  ;;  %v732_v16 = vld [vmem:[#allocation5 + $0x328] sm:$0xff]  ;;  %v2045_v63 = vld [vmem:[#allocation3 + $0xc] sm:$0xf] }
  0xbc   : > { %1024 = vmatprep.subr.mxu1 %v736_v31  ;;  %958 = vmatpush2.msra.mxu0 %v667_v9 }
  0xbd   : > { %1025 = vmatpush2.msra.mxu1 %v735_v0  ;;  %v582_v23 = vsel %vm574_vm1, %v572_v12, %v573_v61  ;;  %601 = vrot.lane.b32.xlu0 %v7399_v13, %s10822_s19  ;;  %v580_v24 = vsel %vm574_vm1, %v571_v57, %v572_v12 }
  0xbe   : > { %959 = vmatprep.subr.mxu0 %v666_v11  ;;  %v583_v28 = vsel %vm11004_vm2, %v566_v8, %v582_v23  ;;  %v7408_v30 = vpop.permute.xlu1 %1314  ;;  %v581_v32 = vsel %vm11004_vm2, %v564_v54, %v580_v24  ;;  %1026 = vmatprep.subr.mxu1 %v734_v55  ;;  %v7480_v8 = vsub.s32 3, %v7246_v3  ;;  %v7485_v55 = vsub.s32 2, %v7246_v3 }
  0xbf   : > { %11041 = vst [vmem:[#allocation21_spill] sm:$0xff] %v7408_v30  ;;  %960 = vmatpush2.msra.mxu0 %v665_v20  ;;  %v7412_v34 = vmax.f32 %v7276_v14, %v583_v28  ;;  %v7415_v35 = vmax.f32 %v7267_v10, %v581_v32  ;;  %1027 = vmatpush2.msra.mxu1 %v733_v21  ;;  %v729_v14 = vld [vmem:[#allocation5 + $0x310] sm:$0xff]  ;;  %v728_v10 = vld [vmem:[#allocation5 + $0x308] sm:$0xff]  ;;  %v10671_v30 = vmov 4  }
  0xc0   : > { %961 = vmatprep.subr.mxu0 %v664_v22  ;;  %1028 = vmatprep.subr.mxu1 %v732_v16 }
  0xc1   : > { %v7401_v17 = vpop.permute.xlu0 %1506  ;;  %962 = vmatpush2.msra.mxu0 %v663_v25  ;;  %605 = vrot.lane.b32.xlu0 %v7412_v34, %s10822_s19 }
  0xc2   : > { %603 = vrot.lane.b32.xlu1 %v7415_v35, %s10822_s19  ;;  %1029 = vmatpush2.msra.mxu1 %v731_v36 }
  0xc3   : > { %1041 = vmatprep.subr.mxu0 %v790_v37  ;;  %v7423_v39 = vpop.permute.xlu1 %1351  ;;  %1030 = vmatprep.subr.mxu1 %v730_v38 }
  0xc4   : > { %11043 = vst [vmem:[#allocation23_spill] sm:$0xff] %v7423_v39  ;;  %1031 = vmatpush2.msra.mxu1 %v729_v14 }
  0xc5   : > { %v7417_v29 = vpop.permute.xlu0 %1692  ;;  %1032 = vmatprep.subr.mxu1 %v728_v10 }
  0xc6   : > { %11042 = vst [vmem:[#allocation22_spill] sm:$0xff] %v7417_v29  ;;  %2571 = vrot.lane.b32.xlu1 %v7313_v26, %s10650_s26  ;;  %1033 = vmatpush2.msra.mxu1 %v727_v40  ;;  %s7034_s26 = smov 83  }
  0xc7   : > { %1112 = vmatprep.subr.mxu1 %v854_v41 }
  0xc8   : > { %v7434_v45 = vpop.permute.xlu1 %1432 }
  0xc9   : > { %v7427_v42 = vpop.permute.xlu0 %1870 }
  0xca   : > { %11044 = vst [vmem:[#allocation24_spill] sm:$0xff] %v7427_v42  ;;  %2620 = vperm.xlu1 %6837, %v7432_v43  }
  0xcd   : > { %v7437_v46 = vpop.permute.xlu0 %2046  ;;  %v7439_v48 = vpop.permute.xlu1 %1469 }
  0xce   : > { %6838 = vset.pattern.permute.xlu1 %v10658_v19  ;;  %v10653_v31 = vrot.slane %v7437_v46, 4 }
  0xcf   : > { %2657 = vperm.xlu1 %6838, %v7432_v43  }
  0xd0   : > { %v2054_v0 = vmul.f32 %v10653_v31, %v2045_v63 }
  0xd1   : > { %v7443_v26 = vpop.permute.xlu1 %1569  ;;  %v7445_v49 = vpop.permute.xlu0 %2169 }
  0xd2   : > { %11045 = vst [vmem:[#allocation25_spill] sm:$0xff] %v7445_v49  ;;  %v2109_v11 = vrot.slane %v2054_v0, %v7254_v6  ;;  %v2075_v12 = vrot.slane %v2054_v0, %v7251_v5  ;;  %v2183_v21 = vrot.slane %v2054_v0, %v7480_v8  ;;  %v2146_v16 = vrot.slane %v2054_v0, %v7485_v55  ;;  %v2224_v0 = vld [vmem:[#allocation3 + $0xc] sm:$0xf] }
  0xd3   : > { %6840 = vset.pattern.permute.xlu1 %v10656_v1 }
  0xd4   : > { %v2124_v22 = vrot.slane %v2109_v11, %v7254_v6  ;;  %v2090_v24 = vrot.slane %v2075_v12, %v7251_v5  ;;  %v2198_v28 = vrot.slane %v2183_v21, %v7480_v8  ;;  %v2161_v36 = vrot.slane %v2146_v16, %v7485_v55 }
  0xd5   : > { %v7448_v50 = vpop.permute.xlu1 %1618  ;;  %v7450_v51 = vpop.permute.xlu0 %2348 }
  0xd6   : > { %11046 = vst [vmem:[#allocation26_spill] sm:$0xff] %v7448_v50  ;;  %11047 = vst [vmem:[#allocation27_spill] sm:$0xff] %v7450_v51  ;;  %v2201_v40 = vmul.f32 %v2198_v28, %v7445_v49 }
  0xda   : > { %v7452_v52 = vpop.permute.xlu1 %1655  ;;  %v7454_v53 = vpop.permute.xlu0 %1277 }
  0xdb   : > { %11048 = vst [vmem:[#allocation28_spill] sm:$0xff] %v7452_v52  ;;  %11049 = vst [vmem:[#allocation29_spill] sm:$0xff] %v7454_v53  ;;  %v7759_v52 = vsub.s32 5, %v7246_v3 }
  0xde   : > { %v7456_v54 = vpop.permute.xlu1 %1748  ;;  %v7460_v15 = vpop.permute.xlu0 %1954 }
  0xe2   : > { %v7458_v56 = vpop.permute.xlu1 %1796  ;;  %v7464_v58 = vpop.permute.xlu0 %2095 }
  0xe3   : > { %11050 = vst [vmem:[#allocation30_spill] sm:$0xff] %v7458_v56  ;;  %11052 = vst [vmem:[#allocation32_spill] sm:$0xff] %v7464_v58  ;;  %v2127_v32 = vmul.f32 %v2124_v22, %v7464_v58 }
  0xe6   : > { %v7468_v60 = vpop.permute.xlu0 %2443 }
  0xe7   : > { %v7462_v57 = vpop.permute.xlu1 %1833  ;;  %11053 = vst [vmem:[#allocation33_spill] sm:$0xff] %v7468_v60 }
  0xe8   : > { %11051 = vst [vmem:[#allocation31_spill] sm:$0xff] %v7462_v57 }
  0xeb   : > { %v7473_v9 = vpop.permute.xlu0 %1186 }
  0xec   : > { %v7466_v59 = vpop.permute.xlu1 %1929 }
  0xef   : > { %v7487_v20 = vpop.permute.xlu0 %1396 }
  0xf1   : > { %v7471_v61 = vpop.permute.xlu1 %1980 }
  0xf3   : > { %v7499_v37 = vpop.permute.xlu0 %1582 }
  0xf4   : > { %11055 = vst [vmem:[#allocation35_spill] sm:$0xff] %v7499_v37 }
  0xf6   : > { %v7477_v7 = vpop.permute.xlu1 %2006 }
  0xf7   : > { %v7508_v21 = vpop.permute.xlu0 %1760 }
  0xf8   : > { %11057 = vst [vmem:[#allocation37_spill] sm:$0xff] %v7508_v21 }
  0xfb   : > { %v7491_v23 = vpop.permute.xlu1 %2059 }
  0xfc   : > { %11054 = vst [vmem:[#allocation34_spill] sm:$0xff] %v7491_v23  ;;  %v2093_v25 = vmul.f32 %v2090_v24, %v7491_v23  ;;  %v2748_v24 = vld [vmem:[%s10634_s8] sm:$0xff] }
  0xfd   : > { %2751 = vperm.xlu1 %6840, %v2748_v24  }
  0xfe   : > { %v2130_v14 = vadd.f32 %v2127_v32, %v2093_v25 }
 0x100   : > { %v7501_v38 = vpop.permute.xlu1 %2132 }
 0x101   : > { %11056 = vst [vmem:[#allocation36_spill] sm:$0xff] %v7501_v38  ;;  %v2164_v10 = vmul.f32 %v2161_v36, %v7501_v38 }
 0x103   : > { %v2167_v41 = vadd.f32 %v2164_v10, %v2130_v14  ;;  %v2786_v14 = vld [vmem:[%s10637_s11] sm:$0xff] }
 0x104   : > { %v7505_v63 = vpop.permute.xlu1 %2225  ;;  %v7528_v10 = vld [vmem:[%s11037_s3 + $0x4] sm:$0x3]  ;;  %2789 = vperm.xlu1 %6840, %v2786_v14  }
 0x105   : > { %v10652_v11 = vrot.slane %v7505_v63, 4  ;;  %v2204_v12 = vadd.f32 %v2201_v40, %v2167_v41 }
 0x107   : > { %v2233_v22 = vmul.f32 %v10652_v11, %v2224_v0  ;;  %2212 = vrot.lane.b32.xlu0 %v2204_v12, %s10648_s23  ;;  %v7533_v12 = vpop.permute.xlu0 %2238  ;;  %s10828_s23 = smov 112  }
 0x108   : > { %v7516_v16 = vpop.permute.xlu1 %2274  ;;  %11059 = vst [vmem:[#allocation39_spill] sm:$0xff] %v7533_v12  ;;  %6841 = vset.pattern.permute.xlu1 %v10660_v27 }
 0x109   : > { %11058 = vst [vmem:[#allocation38_spill] sm:$0xff] %v7516_v16  ;;  %v2254_v25 = vrot.slane %v2233_v22, %v7251_v5  ;;  %v2288_v28 = vrot.slane %v2233_v22, %v7254_v6  ;;  %v2325_v32 = vrot.slane %v2233_v22, %v7485_v55  ;;  %v2362_v36 = vrot.slane %v2233_v22, %v7480_v8 }
 0x10a   : > { %v7537_v22 = vrot.slane %v7528_v10, %v7254_v6 }
 0x10b   : > { %v2269_v40 = vrot.slane %v2254_v25, %v7251_v5  ;;  %v2303_v41 = vrot.slane %v2288_v28, %v7254_v6  ;;  %v2340_v0 = vrot.slane %v2325_v32, %v7485_v55  ;;  %v2377_v2 = vrot.slane %v2362_v36, %v7480_v8  ;;  %v7544_v25 = vld [vmem:[#allocation3 + $0xc] sm:$0xf] }
 0x10c   : > { %v2423_v14 = vrot.slane %v7544_v25, %v7251_v5  ;;  %2807 = vrot.lane.b32.xlu1 %v7537_v22, %s10826_s17  ;;  %v2494_v36 = vrot.slane %v7544_v25, %v7485_v55 }
 0x10d   : > { %v2272_v24 = vmul.f32 %v2269_v40, %v7533_v12  ;;  %v2306_v11 = vmul.f32 %v2303_v41, %v7516_v16  ;;  %v7541_v31 = vpop.permute.xlu1 %2311  ;;  %v2457_v40 = vrot.slane %v7544_v25, %v7254_v6  ;;  %v2380_v41 = vmul.f32 %v2377_v2, %v7450_v51 }
 0x10e   : > { %11060 = vst [vmem:[#allocation40_spill] sm:$0xff] %v7541_v31  ;;  %v2343_v28 = vmul.f32 %v2340_v0, %v7541_v31  ;;  %v2509_v2 = vrot.slane %v2494_v36, %v7485_v55 }
 0x10f   : > { %v2309_v32 = vadd.f32 %v2306_v11, %v2272_v24  ;;  %v2438_v11 = vrot.slane %v2423_v14, %v7251_v5  ;;  %v7563_v24 = vld [vmem:[%s10636_s10] sm:$0xff] }
 0x110   : > { %2838 = vperm.xlu1 %6841, %v7563_v24  }
 0x111   : > { %v2346_v1 = vadd.f32 %v2343_v28, %v2309_v32  ;;  %v2472_v28 = vrot.slane %v2457_v40, %v7254_v6  ;;  %v2531_v32 = vrot.slane %v7544_v25, %v7480_v8 }
 0x112   : > { %v7557_v19 = vpop.permute.xlu1 %2407 }
 0x113   : > { %v2383_v0 = vadd.f32 %v2380_v41, %v2346_v1  ;;  %v2441_v27 = vmul.f32 %v2438_v11, %v7557_v19  ;;  %v2475_v1 = vmul.f32 %v2472_v28, %v7468_v60  ;;  %v2546_v33 = vrot.slane %v2531_v32, %v7480_v8 }
 0x114   : > { %6842 = vset.pattern.permute.xlu1 %v10665_v4  ;;  %v10667_v28 = vmov 6   ;;  %v11063_v32 = vmov 1  }
 0x115   : > { %2391 = vrot.lane.b32.xlu0 %v2383_v0, %s10822_s19  ;;  %2882 = vperm.xlu1 %6842, %v7563_v24   ;;  %v2478_v40 = vadd.f32 %v2475_v1, %v2441_v27 }
 0x117   : > { %v7572_v14 = vpop.permute.xlu1 %2480 }
 0x118   : > { %11061 = vst [vmem:[#allocation41_spill] sm:$0xff] %v7572_v14  ;;  %v2512_v41 = vmul.f32 %v2509_v2, %v7572_v14  ;;  %v11100_v14 = vrot.slane %v7437_v46, 4 }
 0x119   : > { %6843 = vset.pattern.permute.xlu1 %v10671_v30 }
 0x11a   : > { %v2515_v39 = vadd.f32 %v2512_v41, %v2478_v40  ;;  %2904 = vperm.xlu1 %6843, %v7563_v24   ;;  %v10678_v41 = vmov 5   ;;  %v2050_v60 = vsel %vm2049_vm4, %v11100_v14, %v7437_v46 }
 0x11c   : > { %v7579_v0 = vpop.permute.xlu1 %2517 }
 0x11d   : > { %11062 = vst [vmem:[#allocation42_spill] sm:$0xff] %v7579_v0  ;;  %v2549_v36 = vmul.f32 %v2546_v33, %v7579_v0  ;;  %v10669_v33 = vmov 7  }
 0x11e   : > { %6846 = vset.pattern.permute.xlu1 %v10667_v28 }
 0x11f   : > { %v2552_v11 = vadd.f32 %v2549_v36, %v2515_v39  ;;  %2948 = vperm.xlu1 %6846, %v7563_v24  }
 0x120   : > { %v608_v27 = vpop.permute.xlu1 %607 }
 0x121   : > { %2560 = vrot.lane.b32.xlu0 %v2552_v11, %s10824_s27  ;;  %v613_v36 = vrot.slane %v608_v27, 4  ;;  %v789_v27 = vld [vmem:[#allocation5 + $0x4f0] sm:$0xff] }
 0x123   : > { %6847 = vset.pattern.permute.xlu1 %v10669_v33 }
 0x124   : > { %2970 = vperm.xlu1 %6847, %v7563_v24  }
 0x125   : > { %2584 = vperm.xlu0 %6834, %v7432_v43  }
 0x128   : > { %6848 = vset.pattern.permute.xlu1 %v11063_v32 }
 0x129   : > { %6839 = vset.pattern.permute.xlu0 %v10665_v4 }
 0x12a   : > { %2694 = vperm.xlu0 %6839, %v7432_v43  }
 0x12d   : > { %v600_v39 = vpop.permute.xlu1 %599 }
 0x12e   : > { %v609_v2 = vrot.slane %v600_v39, 4  ;;  %6844 = vset.pattern.permute.xlu0 %v10678_v41 }
 0x12f   : > { %v602_v1 = vpop.permute.xlu0 %601 }
 0x130   : > { %v610_v40 = vrot.slane %v602_v1, 4 }
 0x132   : > { %v614_v11 = vsel %vm574_vm1, %v609_v2, %v610_v40 }
 0x133   : > { %v606_v28 = vpop.permute.xlu0 %605  ;;  %v616_v33 = vsel %vm615_vm3, %v600_v39, %v614_v11  ;;  %v788_v39 = vld [vmem:[#allocation5 + $0x4e8] sm:$0xff] }
 0x134   : > { %v604_v4 = vpop.permute.xlu1 %603  ;;  %v612_v30 = vrot.slane %v606_v28, 4  ;;  %v627_v53 = vmax.f32 %v7391_v47, %v616_v33  ;;  %v787_v33 = vld [vmem:[#allocation5 + $0x4e0] sm:$0xff] }
 0x135   : > { %v611_v43 = vrot.slane %v604_v4, 4 }
 0x136   : > { %v621_v62 = vsel %vm574_vm1, %v612_v30, %v613_v36  ;;  %v891_v51 = vcombine.high %v627_v53, %v627_v53  ;;  %v780_v36 = vld [vmem:[#allocation5 + $0x4a8] sm:$0xff] }
 0x137   : > { %v619_v44 = vsel %vm574_vm1, %v611_v43, %v612_v30  ;;  %v617_v41 = vsel %vm574_vm1, %v610_v40, %v611_v43  ;;  %v622_v31 = vsel %vm615_vm3, %v606_v28, %v621_v62  ;;  %v786_v62 = vld [vmem:[#allocation5 + $0x4d8] sm:$0xff]  ;;  %v848_v43 = vld [vmem:[#allocation5 + $0x6c8] sm:$0xff]  ;;  %vm5084_vm1 = vcmask 801792  }
 0x138   : > { %v618_v2 = vsel %vm615_vm3, %v602_v1, %v617_v41  ;;  %v620_v16 = vsel %vm615_vm3, %v604_v4, %v619_v44  ;;  %963 = vmatprep.mubr.f32.mxu0 %v891_v51  ;;  %v7608_v30 = vmax.f32 %v7412_v34, %v622_v31  ;;  %v785_v4 = vld [vmem:[#allocation5 + $0x4d0] sm:$0xff]  ;;  %v783_v51 = vld [vmem:[#allocation5 + $0x4c0] sm:$0xff]  ;;  %v782_v31 = vld [vmem:[#allocation5 + $0x4b8] sm:$0xff] }
 0x139   : > { %v628_v11 = vmax.f32 %v7399_v13, %v618_v2  ;;  %v7605_v47 = vmax.f32 %v7415_v35, %v620_v16  ;;  %964 = vmatmul.mubr.f32.vlgmr.msra.gmra.mxu0 %v627_v53  ;;  %v853_v44 = vld [vmem:[#allocation5 + $0x6f0] sm:$0xff]  ;;  %v784_v13 = vld [vmem:[#allocation5 + $0x4c8] sm:$0xff]  ;;  %v851_v53 = vld [vmem:[#allocation5 + $0x6e0] sm:$0xff] }
 0x13a   : > { %1042 = vmatpush1.msra.mxu0 %v789_v27  ;;  %v852_v35 = vld [vmem:[#allocation5 + $0x6e8] sm:$0xff]  ;;  %v894_v34 = vcombine.high %v7608_v30, %v7608_v30  ;;  %v850_v16 = vld [vmem:[#allocation5 + $0x6d8] sm:$0xff]  ;;  %v781_v1 = vld [vmem:[#allocation5 + $0x4b0] sm:$0xff] }
 0x13b   : > { %v892_v40 = vcombine.high %v628_v11, %v628_v11  ;;  %v893_v28 = vcombine.high %v7605_v47, %v7605_v47  ;;  %1043 = vmatprep.subr.mxu0 %v788_v39  ;;  %v849_v41 = vld [vmem:[#allocation5 + $0x6d0] sm:$0xff]  ;;  %v779_v27 = vld [vmem:[#allocation5 + $0x4a0] sm:$0xff]  ;;  %v778_v39 = vld [vmem:[#allocation5 + $0x498] sm:$0xff] }
 0x13c   : > { %1044 = vmatpush1.msra.mxu0 %v787_v33  ;;  %v847_v2 = vld [vmem:[#allocation5 + $0x6c0] sm:$0xff]  ;;  %v777_v33 = vld [vmem:[#allocation5 + $0x490] sm:$0xff] }
 0x13d   : > { %1034 = vmatprep.mubr.f32.mxu1 %v892_v40  ;;  %1045 = vmatprep.subr.mxu0 %v786_v62  ;;  %v845_v40 = vld [vmem:[#allocation5 + $0x6b0] sm:$0xff]  ;;  %v776_v62 = vld [vmem:[#allocation5 + $0x488] sm:$0xff] }
 0x13e   : > { %1105 = vmatprep.mubr.f32.mxu0 %v893_v28  ;;  %1035 = vmatmul.mubr.f32.vlgmr.msra.gmra.mxu1 %v628_v11  ;;  %v846_v11 = vld [vmem:[#allocation5 + $0x6b8] sm:$0xff]  ;;  %v844_v28 = vld [vmem:[#allocation5 + $0x6a8] sm:$0xff] }
 0x13f   : > { %1046 = vmatpush1.msra.mxu0 %v785_v4  ;;  %1113 = vmatpush1.msra.mxu1 %v853_v44  ;;  %v775_v4 = vld [vmem:[#allocation5 + $0x480] sm:$0xff] }
 0x140   : > { %1047 = vmatprep.subr.mxu0 %v784_v13  ;;  %1114 = vmatprep.subr.mxu1 %v852_v35  ;;  %v843_v44 = vld [vmem:[#allocation5 + $0x6a0] sm:$0xff]  ;;  %v774_v13 = vld [vmem:[#allocation5 + $0x478] sm:$0xff] }
 0x141   : > { %1176 = vmatprep.mubr.f32.mxu1 %v894_v34  ;;  %1048 = vmatpush1.msra.mxu0 %v783_v51  ;;  %v842_v35 = vld [vmem:[#allocation5 + $0x698] sm:$0xff]  ;;  %v773_v34 = vld [vmem:[#allocation5 + $0x470] sm:$0xff] }
 0x142   : > { %1115 = vmatpush1.msra.mxu1 %v851_v53  ;;  %1049 = vmatprep.subr.mxu0 %v782_v31  ;;  %v841_v51 = vld [vmem:[#allocation5 + $0x690] sm:$0xff]  ;;  %v772_v53 = vld [vmem:[#allocation5 + $0x468] sm:$0xff] }
 0x143   : > { %1116 = vmatprep.subr.mxu1 %v850_v16  ;;  %1050 = vmatpush1.msra.mxu0 %v781_v1  ;;  %v840_v31 = vld [vmem:[#allocation5 + $0x688] sm:$0xff]  ;;  %v771_v16 = vld [vmem:[#allocation5 + $0x460] sm:$0xff] }
 0x144   : > { %1117 = vmatpush1.msra.mxu1 %v849_v41  ;;  %1051 = vmatprep.subr.mxu0 %v780_v36  ;;  %v839_v1 = vld [vmem:[#allocation5 + $0x680] sm:$0xff]  ;;  %v770_v41 = vld [vmem:[#allocation5 + $0x458] sm:$0xff] }
 0x145   : > { %1118 = vmatprep.subr.mxu1 %v848_v43  ;;  %1052 = vmatpush1.msra.mxu0 %v779_v27  ;;  %v838_v36 = vld [vmem:[#allocation5 + $0x678] sm:$0xff]  ;;  %v769_v43 = vld [vmem:[#allocation5 + $0x450] sm:$0xff] }
 0x146   : > { %1119 = vmatpush1.msra.mxu1 %v847_v2  ;;  %1053 = vmatprep.subr.mxu0 %v778_v39  ;;  %v837_v27 = vld [vmem:[#allocation5 + $0x670] sm:$0xff]  ;;  %v768_v2 = vld [vmem:[#allocation5 + $0x448] sm:$0xff] }
 0x147   : > { %1120 = vmatprep.subr.mxu1 %v846_v11  ;;  %1054 = vmatpush1.msra.mxu0 %v777_v33  ;;  %v836_v39 = vld [vmem:[#allocation5 + $0x668] sm:$0xff]  ;;  %v767_v11 = vld [vmem:[#allocation5 + $0x440] sm:$0xff] }
 0x148   : > { %1121 = vmatpush1.msra.mxu1 %v845_v40  ;;  %1055 = vmatprep.subr.mxu0 %v776_v62  ;;  %v835_v33 = vld [vmem:[#allocation5 + $0x660] sm:$0xff]  ;;  %v766_v40 = vld [vmem:[#allocation5 + $0x438] sm:$0xff] }
 0x149   : > { %1122 = vmatprep.subr.mxu1 %v844_v28  ;;  %1056 = vmatpush1.msra.mxu0 %v775_v4  ;;  %v834_v62 = vld [vmem:[#allocation5 + $0x658] sm:$0xff]  ;;  %v765_v28 = vld [vmem:[#allocation5 + $0x430] sm:$0xff] }
 0x14a   : > { %1123 = vmatpush1.msra.mxu1 %v843_v44  ;;  %1057 = vmatprep.subr.mxu0 %v774_v13  ;;  %v833_v4 = vld [vmem:[#allocation5 + $0x650] sm:$0xff]  ;;  %v764_v44 = vld [vmem:[#allocation5 + $0x428] sm:$0xff] }
 0x14b   : > { %1124 = vmatprep.subr.mxu1 %v842_v35  ;;  %1058 = vmatpush1.msra.mxu0 %v773_v34  ;;  %v832_v13 = vld [vmem:[#allocation5 + $0x648] sm:$0xff]  ;;  %v763_v35 = vld [vmem:[#allocation5 + $0x420] sm:$0xff] }
 0x14c   : > { %1125 = vmatpush1.msra.mxu1 %v841_v51  ;;  %1059 = vmatprep.subr.mxu0 %v772_v53  ;;  %v831_v34 = vld [vmem:[#allocation5 + $0x640] sm:$0xff]  ;;  %v762_v51 = vld [vmem:[#allocation5 + $0x418] sm:$0xff] }
 0x14d   : > { %1126 = vmatprep.subr.mxu1 %v840_v31  ;;  %1060 = vmatpush1.msra.mxu0 %v771_v16  ;;  %v830_v53 = vld [vmem:[#allocation5 + $0x638] sm:$0xff]  ;;  %v761_v31 = vld [vmem:[#allocation5 + $0x410] sm:$0xff] }
 0x14e   : > { %1127 = vmatpush1.msra.mxu1 %v839_v1  ;;  %1061 = vmatprep.subr.mxu0 %v770_v41  ;;  %v829_v16 = vld [vmem:[#allocation5 + $0x630] sm:$0xff]  ;;  %v760_v1 = vld [vmem:[#allocation5 + $0x408] sm:$0xff] }
 0x14f   : > { %1128 = vmatprep.subr.mxu1 %v838_v36  ;;  %1062 = vmatpush1.msra.mxu0 %v769_v43  ;;  %v828_v41 = vld [vmem:[#allocation5 + $0x628] sm:$0xff]  ;;  %v759_v36 = vld [vmem:[#allocation5 + $0x400] sm:$0xff] }
 0x150   : > { %1129 = vmatpush1.msra.mxu1 %v837_v27  ;;  %1063 = vmatprep.subr.mxu0 %v768_v2  ;;  %v827_v43 = vld [vmem:[#allocation5 + $0x620] sm:$0xff]  ;;  %v822_v27 = vld [vmem:[#allocation5 + $0x5f8] sm:$0xff] }
 0x151   : > { %1130 = vmatprep.subr.mxu1 %v836_v39  ;;  %1064 = vmatpush1.msra.mxu0 %v767_v11  ;;  %v826_v2 = vld [vmem:[#allocation5 + $0x618] sm:$0xff]  ;;  %v821_v39 = vld [vmem:[#allocation5 + $0x5f0] sm:$0xff] }
 0x152   : > { %1131 = vmatpush1.msra.mxu1 %v835_v33  ;;  %1065 = vmatprep.subr.mxu0 %v766_v40  ;;  %v825_v11 = vld [vmem:[#allocation5 + $0x610] sm:$0xff]  ;;  %v820_v33 = vld [vmem:[#allocation5 + $0x5e8] sm:$0xff] }
 0x153   : > { %1132 = vmatprep.subr.mxu1 %v834_v62  ;;  %1066 = vmatpush1.msra.mxu0 %v765_v28  ;;  %v824_v40 = vld [vmem:[#allocation5 + $0x608] sm:$0xff]  ;;  %v819_v62 = vld [vmem:[#allocation5 + $0x5e0] sm:$0xff] }
 0x154   : > { %1133 = vmatpush1.msra.mxu1 %v833_v4  ;;  %1067 = vmatprep.subr.mxu0 %v764_v44  ;;  %v823_v28 = vld [vmem:[#allocation5 + $0x600] sm:$0xff]  ;;  %v818_v4 = vld [vmem:[#allocation5 + $0x5d8] sm:$0xff] }
 0x155   : > { %1134 = vmatprep.subr.mxu1 %v832_v13  ;;  %1068 = vmatpush1.msra.mxu0 %v763_v35  ;;  %v886_v44 = vld [vmem:[#allocation5 + $0x7f8] sm:$0xff]  ;;  %v817_v13 = vld [vmem:[#allocation5 + $0x5d0] sm:$0xff] }
 0x156   : > { %1135 = vmatpush1.msra.mxu1 %v831_v34  ;;  %1069 = vmatprep.subr.mxu0 %v762_v51  ;;  %v885_v35 = vld [vmem:[#allocation5 + $0x7f0] sm:$0xff]  ;;  %v816_v34 = vld [vmem:[#allocation5 + $0x5c8] sm:$0xff] }
 0x157   : > { %1136 = vmatprep.subr.mxu1 %v830_v53  ;;  %1070 = vmatpush1.msra.mxu0 %v761_v31  ;;  %v884_v51 = vld [vmem:[#allocation5 + $0x7e8] sm:$0xff]  ;;  %v815_v53 = vld [vmem:[#allocation5 + $0x5c0] sm:$0xff] }
 0x158   : > { %1137 = vmatpush1.msra.mxu1 %v829_v16  ;;  %1071 = vmatprep.subr.mxu0 %v760_v1  ;;  %v883_v31 = vld [vmem:[#allocation5 + $0x7e0] sm:$0xff]  ;;  %v814_v16 = vld [vmem:[#allocation5 + $0x5b8] sm:$0xff] }
 0x159   : > { %1138 = vmatprep.subr.mxu1 %v828_v41  ;;  %1072 = vmatpush1.msra.mxu0 %v759_v36  ;;  %v882_v1 = vld [vmem:[#allocation5 + $0x7d8] sm:$0xff]  ;;  %v813_v41 = vld [vmem:[#allocation5 + $0x5b0] sm:$0xff] }
 0x15a   : > { %1139 = vmatpush1.msra.mxu1 %v827_v43  ;;  %1073 = vmatprep.subr.mxu0 %v822_v27  ;;  %v881_v36 = vld [vmem:[#allocation5 + $0x7d0] sm:$0xff]  ;;  %v812_v43 = vld [vmem:[#allocation5 + $0x5a8] sm:$0xff] }
 0x15b   : > { %1140 = vmatprep.subr.mxu1 %v826_v2  ;;  %1074 = vmatpush2.msra.mxu0 %v821_v39  ;;  %v880_v27 = vld [vmem:[#allocation5 + $0x7c8] sm:$0xff]  ;;  %v811_v2 = vld [vmem:[#allocation5 + $0x5a0] sm:$0xff] }
 0x15c   : > { %1141 = vmatpush1.msra.mxu1 %v825_v11  ;;  %1075 = vmatprep.subr.mxu0 %v820_v33  ;;  %v879_v39 = vld [vmem:[#allocation5 + $0x7c0] sm:$0xff]  ;;  %v810_v11 = vld [vmem:[#allocation5 + $0x598] sm:$0xff] }
 0x15d   : > { %1142 = vmatprep.subr.mxu1 %v824_v40  ;;  %1076 = vmatpush2.msra.mxu0 %v819_v62  ;;  %v878_v33 = vld [vmem:[#allocation5 + $0x7b8] sm:$0xff]  ;;  %v809_v40 = vld [vmem:[#allocation5 + $0x590] sm:$0xff] }
 0x15e   : > { %1143 = vmatpush1.msra.mxu1 %v823_v28  ;;  %1077 = vmatprep.subr.mxu0 %v818_v4  ;;  %v877_v62 = vld [vmem:[#allocation5 + $0x7b0] sm:$0xff]  ;;  %v808_v28 = vld [vmem:[#allocation5 + $0x588] sm:$0xff] }
 0x15f   : > { %1144 = vmatprep.subr.mxu1 %v886_v44  ;;  %1078 = vmatpush2.msra.mxu0 %v817_v13  ;;  %v876_v4 = vld [vmem:[#allocation5 + $0x7a8] sm:$0xff]  ;;  %v807_v44 = vld [vmem:[#allocation5 + $0x580] sm:$0xff] }
 0x160   : > { %1145 = vmatpush2.msra.mxu1 %v885_v35  ;;  %1079 = vmatprep.subr.mxu0 %v816_v34  ;;  %v875_v13 = vld [vmem:[#allocation5 + $0x7a0] sm:$0xff]  ;;  %v806_v35 = vld [vmem:[#allocation5 + $0x578] sm:$0xff] }
 0x161   : > { %1146 = vmatprep.subr.mxu1 %v884_v51  ;;  %1080 = vmatpush2.msra.mxu0 %v815_v53  ;;  %v874_v34 = vld [vmem:[#allocation5 + $0x798] sm:$0xff]  ;;  %v805_v51 = vld [vmem:[#allocation5 + $0x570] sm:$0xff] }
 0x162   : > { %1147 = vmatpush2.msra.mxu1 %v883_v31  ;;  %1081 = vmatprep.subr.mxu0 %v814_v16  ;;  %v873_v53 = vld [vmem:[#allocation5 + $0x790] sm:$0xff]  ;;  %v804_v31 = vld [vmem:[#allocation5 + $0x568] sm:$0xff] }
 0x163   : > { %1148 = vmatprep.subr.mxu1 %v882_v1  ;;  %1082 = vmatpush2.msra.mxu0 %v813_v41  ;;  %v872_v16 = vld [vmem:[#allocation5 + $0x788] sm:$0xff]  ;;  %v803_v1 = vld [vmem:[#allocation5 + $0x560] sm:$0xff] }
 0x164   : > { %1149 = vmatpush2.msra.mxu1 %v881_v36  ;;  %1083 = vmatprep.subr.mxu0 %v812_v43  ;;  %v871_v41 = vld [vmem:[#allocation5 + $0x780] sm:$0xff]  ;;  %v802_v36 = vld [vmem:[#allocation5 + $0x558] sm:$0xff] }
 0x165   : > { %1150 = vmatprep.subr.mxu1 %v880_v27  ;;  %1084 = vmatpush2.msra.mxu0 %v811_v2  ;;  %v870_v43 = vld [vmem:[#allocation5 + $0x778] sm:$0xff]  ;;  %v801_v27 = vld [vmem:[#allocation5 + $0x550] sm:$0xff] }
 0x166   : > { %1151 = vmatpush2.msra.mxu1 %v879_v39  ;;  %1085 = vmatprep.subr.mxu0 %v810_v11  ;;  %v869_v2 = vld [vmem:[#allocation5 + $0x770] sm:$0xff]  ;;  %v800_v39 = vld [vmem:[#allocation5 + $0x548] sm:$0xff] }
 0x167   : > { %1152 = vmatprep.subr.mxu1 %v878_v33  ;;  %1086 = vmatpush2.msra.mxu0 %v809_v40  ;;  %v868_v11 = vld [vmem:[#allocation5 + $0x768] sm:$0xff]  ;;  %v799_v33 = vld [vmem:[#allocation5 + $0x540] sm:$0xff] }
 0x168   : > { %1153 = vmatpush2.msra.mxu1 %v877_v62  ;;  %1087 = vmatprep.subr.mxu0 %v808_v28  ;;  %v867_v40 = vld [vmem:[#allocation5 + $0x760] sm:$0xff]  ;;  %v798_v62 = vld [vmem:[#allocation5 + $0x538] sm:$0xff] }
 0x169   : > { %1154 = vmatprep.subr.mxu1 %v876_v4  ;;  %1088 = vmatpush2.msra.mxu0 %v807_v44  ;;  %v866_v28 = vld [vmem:[#allocation5 + $0x758] sm:$0xff]  ;;  %v797_v4 = vld [vmem:[#allocation5 + $0x530] sm:$0xff] }
 0x16a   : > { %1155 = vmatpush2.msra.mxu1 %v875_v13  ;;  %1089 = vmatprep.subr.mxu0 %v806_v35  ;;  %v865_v44 = vld [vmem:[#allocation5 + $0x750] sm:$0xff]  ;;  %v796_v13 = vld [vmem:[#allocation5 + $0x528] sm:$0xff] }
 0x16b   : > { %1156 = vmatprep.subr.mxu1 %v874_v34  ;;  %1090 = vmatpush2.msra.mxu0 %v805_v51  ;;  %v864_v35 = vld [vmem:[#allocation5 + $0x748] sm:$0xff]  ;;  %v795_v34 = vld [vmem:[#allocation5 + $0x520] sm:$0xff] }
 0x16c   : > { %1157 = vmatpush2.msra.mxu1 %v873_v53  ;;  %1091 = vmatprep.subr.mxu0 %v804_v31  ;;  %v863_v51 = vld [vmem:[#allocation5 + $0x740] sm:$0xff]  ;;  %v794_v53 = vld [vmem:[#allocation5 + $0x518] sm:$0xff] }
 0x16d   : > { %1158 = vmatprep.subr.mxu1 %v872_v16  ;;  %1092 = vmatpush2.msra.mxu0 %v803_v1  ;;  %v862_v31 = vld [vmem:[#allocation5 + $0x738] sm:$0xff]  ;;  %v793_v16 = vld [vmem:[#allocation5 + $0x510] sm:$0xff] }
 0x16e   : > { %1159 = vmatpush2.msra.mxu1 %v871_v41  ;;  %1093 = vmatprep.subr.mxu0 %v802_v36  ;;  %v861_v1 = vld [vmem:[#allocation5 + $0x730] sm:$0xff]  ;;  %v792_v41 = vld [vmem:[#allocation5 + $0x508] sm:$0xff] }
 0x16f   : > { %1160 = vmatprep.subr.mxu1 %v870_v43  ;;  %1094 = vmatpush2.msra.mxu0 %v801_v27  ;;  %v860_v36 = vld [vmem:[#allocation5 + $0x728] sm:$0xff]  ;;  %v791_v43 = vld [vmem:[#allocation5 + $0x500] sm:$0xff] }
 0x170   : > { %1161 = vmatpush2.msra.mxu1 %v869_v2  ;;  %1095 = vmatprep.subr.mxu0 %v800_v39  ;;  %v859_v27 = vld [vmem:[#allocation5 + $0x720] sm:$0xff]  ;;  %v858_v2 = vld [vmem:[#allocation5 + $0x718] sm:$0xff]  ;;  %v857_v39 = vld [vmem:[#allocation5 + $0x710] sm:$0xff] }
 0x171   : > { %1162 = vmatprep.subr.mxu1 %v868_v11  ;;  %1096 = vmatpush2.msra.mxu0 %v799_v33  ;;  %v6614_v11 = vld [vmem:[%s10636_s10 + $0x8] sm:$0xff]  ;;  %v856_v33 = vld [vmem:[#allocation5 + $0x708] sm:$0xff] }
 0x172   : > { %1163 = vmatpush2.msra.mxu1 %v867_v40  ;;  %1097 = vmatprep.subr.mxu0 %v798_v62  ;;  %v855_v40 = vld [vmem:[#allocation5 + $0x700] sm:$0xff]  ;;  %v11064_v62 = vmov 2  }
 0x173   : > { %1164 = vmatprep.subr.mxu1 %v866_v28  ;;  %1098 = vmatpush2.msra.mxu0 %v797_v4  ;;  %v11065_v28 = vmov 4   ;;  %v11066_v4 = vmov 5  }
 0x174   : > { %1165 = vmatpush2.msra.mxu1 %v865_v44  ;;  %1099 = vmatprep.subr.mxu0 %v796_v13  ;;  %v11067_v44 = vmov 7  }
 0x175   : > { %1166 = vmatprep.subr.mxu1 %v864_v35  ;;  %1100 = vmatpush2.msra.mxu0 %v795_v34 }
 0x176   : > { %1167 = vmatpush2.msra.mxu1 %v863_v51  ;;  %1101 = vmatprep.subr.mxu0 %v794_v53 }
 0x177   : > { %1168 = vmatprep.subr.mxu1 %v862_v31  ;;  %1102 = vmatpush2.msra.mxu0 %v793_v16 }
 0x178   : > { %1169 = vmatpush2.msra.mxu1 %v861_v1  ;;  %1103 = vmatprep.subr.mxu0 %v792_v41 }
 0x179   : > { %1170 = vmatprep.subr.mxu1 %v860_v36  ;;  %1104 = vmatpush2.msra.mxu0 %v791_v43  ;;  %v7627_v35 = vpop.permute.xlu0 %2212 }
 0x17a   : > { %1171 = vmatpush2.msra.mxu1 %v859_v27  ;;  %1106 = vmatmul.mubr.f32.vlgmr.msra.gmra.mxu0 %v7605_v47  ;;  %v7623_v47 = vpop.permute.xlu1 %2571  ;;  %11068 = vst [vmem:[#allocation43_spill] sm:$0xff] %v7627_v35 }
 0x17b   : > { %1172 = vmatprep.subr.mxu1 %v858_v2  ;;  %3017 = vperm.xlu1 %6848, %v6614_v11   ;;  %v10684_v13 = vrot.slane %v7623_v47, 4  ;;  %v11103_v14 = vrot.slane %v7623_v47, 4 }
 0x17c   : > { %1173 = vmatpush2.msra.mxu1 %v857_v39 }
 0x17d   : > { %1174 = vmatprep.subr.mxu1 %v856_v33 }
 0x17e   : > { %1175 = vmatpush2.msra.mxu1 %v855_v40  ;;  %v7635_v53 = vpop.permute.xlu1 %2620 }
 0x17f   : > { %1177 = vmatmul.mubr.f32.vlgmr.msra.gmra.mxu1 %v7608_v30  ;;  %6849 = vset.pattern.permute.xlu1 %v11064_v62  ;;  %v2579_v30 = vmul.f32 %v10684_v13, %v7544_v25  ;;  %11070 = vst [vmem:[#allocation45_spill] sm:$0xff] %v7635_v53 }
 0x180   : > { %3039 = vperm.xlu1 %6849, %v6614_v11  }
 0x181   : > { %v2634_v51 = vrot.slane %v2579_v30, %v7254_v6  ;;  %v2671_v31 = vrot.slane %v2579_v30, %v7485_v55  ;;  %v2600_v16 = vrot.slane %v2579_v30, %v7251_v5  ;;  %v2708_v2 = vrot.slane %v2579_v30, %v7480_v8 }
 0x182   : > { %v7644_v27 = vpop.permute.xlu1 %2657  ;;  %v7659_v30 = vrot.slane %v7528_v10, %v7251_v5  ;;  %v7673_v10 = vld [vmem:[%s11037_s3 + $0x8] sm:$0x3] }
 0x183   : > { %v2649_v41 = vrot.slane %v2634_v51, %v7254_v6  ;;  %v2686_v36 = vrot.slane %v2671_v31, %v7485_v55  ;;  %v2615_v43 = vrot.slane %v2600_v16, %v7251_v5  ;;  %11072 = vst [vmem:[#allocation47_spill] sm:$0xff] %v7644_v27  ;;  %v7831_v46 = vrot.slane %v7673_v10, %v7254_v6 }
 0x184   : > { %6850 = vset.pattern.permute.xlu1 %v11065_v28 }
 0x185   : > { %3083 = vperm.xlu1 %6850, %v6614_v11   ;;  %v2652_v39 = vmul.f32 %v2649_v41, %v7635_v53  ;;  %v2689_v40 = vmul.f32 %v2686_v36, %v7644_v27  ;;  %v2757_v41 = vld [vmem:[%s10635_s9] sm:$0xff]  ;;  %v7678_v36 = vrot.slane %v7673_v10, %v7251_v5  ;;  %v2575_v10 = vsel %vm11003_vm6, %v11103_v14, %v7623_v47 }
 0x187   : > { %v7632_v34 = vpop.permute.xlu0 %2391 }
 0x188   : > { %11069 = vst [vmem:[#allocation44_spill] sm:$0xff] %v7632_v34 }
 0x189   : > { %6851 = vset.pattern.permute.xlu1 %v11066_v4 }
 0x18a   : > { %3105 = vperm.xlu1 %6851, %v6614_v11  }
 0x18e   : > { %6854 = vset.pattern.permute.xlu1 %v11067_v44 }
 0x18f   : > { %3149 = vperm.xlu1 %6854, %v6614_v11  }
 0x193   : > { %6855 = vset.pattern.permute.xlu1 %v11063_v32  ;;  %v7639_v1 = vpop.permute.xlu0 %2560 }
 0x194   : > { %11071 = vst [vmem:[#allocation46_spill] sm:$0xff] %v7639_v1  ;;  %v2723_v1 = vrot.slane %v2708_v2, %v7480_v8 }
 0x1a0   : > { %v7646_v25 = vpop.permute.xlu0 %2584 }
 0x1a1   : > { %11073 = vst [vmem:[#allocation48_spill] sm:$0xff] %v7646_v25  ;;  %v2618_v33 = vmul.f32 %v2615_v43, %v7646_v25  ;;  %v7704_v43 = vpop.permute.xlu1 %2751 }
 0x1a2   : > { %11078 = vst [vmem:[#allocation50_spill] sm:$0xff] %v7704_v43 }
 0x1a3   : > { %v2655_v13 = vadd.f32 %v2652_v39, %v2618_v33 }
 0x1a5   : > { %v7653_v51 = vpop.permute.xlu0 %2694  ;;  %v2692_v31 = vadd.f32 %v2689_v40, %v2655_v13  ;;  %v11075_v13 = vmov 0   ;;  %v7706_v2 = vpop.permute.xlu1 %2789 }
 0x1a6   : > { %11074 = vst [vmem:[#allocation49_spill] sm:$0xff] %v7653_v51  ;;  %v2726_v16 = vmul.f32 %v2723_v1, %v7653_v51  ;;  %v11077_v1 = vmov 3   ;;  %11079 = vst [vmem:[#allocation51_spill] sm:$0xff] %v7706_v2 }
 0x1a8   : > { %v2729_v34 = vadd.f32 %v2726_v16, %v2692_v31 }
 0x1a9   : > { %v7708_v39 = vpop.permute.xlu1 %2807 }
 0x1aa   : > { %2737 = vrot.lane.b32.xlu0 %v2729_v34, %s10925_s29  ;;  %v11076_v34 = vmov 6   ;;  %11080 = vst [vmem:[#allocation52_spill] sm:$0xff] %v7708_v39 }
 0x1ad   : > { %v7710_v33 = vpop.permute.xlu1 %2838 }
 0x1ae   : > { %2805 = vrot.lane.b32.xlu0 %v7659_v30, %s10826_s17  ;;  %11081 = vst [vmem:[#allocation53_spill] sm:$0xff] %v7710_v33  ;;  %s10899_s17 = smov 79  }
 0x1b1   : > { %v7712_v40 = vpop.permute.xlu1 %2882 }
 0x1b2   : > { %2926 = vperm.xlu0 %6844, %v7563_v24   ;;  %11082 = vst [vmem:[#allocation54_spill] sm:$0xff] %v7712_v40 }
 0x1b5   : > { %v7714_v31 = vpop.permute.xlu1 %2904 }
 0x1b6   : > { %6845 = vset.pattern.permute.xlu0 %v11075_v13  ;;  %11083 = vst [vmem:[#allocation55_spill] sm:$0xff] %v7714_v31 }
 0x1b7   : > { %2760 = vperm.xlu0 %6845, %v2757_v41  }
 0x1b9   : > { %v7718_v41 = vpop.permute.xlu1 %2948 }
 0x1ba   : > { %11085 = vst [vmem:[#allocation57_spill] sm:$0xff] %v7718_v41  ;;  %v11093_v41 = vmov 0.0  }
 0x1bb   : > { %2819 = vperm.xlu0 %6845, %v7563_v24   ;;  %v7685_v24 = vld [vmem:[%s10636_s10 + $0x10] sm:$0xff]  ;;  %v7736_v25 = vrot.slane %v11093_v41, %v7251_v5  ;;  %v7742_v12 = vrot.slane %v11093_v41, %v7254_v6  ;;  %v7750_v23 = vrot.slane %v11093_v41, %v7485_v55 }
 0x1bd   : > { %v7722_v51 = vpop.permute.xlu1 %2970 }
 0x1be   : > { %11087 = vst [vmem:[#allocation59_spill] sm:$0xff] %v7722_v51 }
 0x1bf   : > { %2998 = vperm.xlu0 %6845, %v6614_v11  }
 0x1c3   : > { %6852 = vset.pattern.permute.xlu0 %v11076_v34 }
 0x1c4   : > { %3127 = vperm.xlu0 %6852, %v6614_v11  }
 0x1c8   : > { %6853 = vset.pattern.permute.xlu0 %v11077_v1 }
 0x1c9   : > { %3061 = vperm.xlu0 %6853, %v6614_v11   ;;  %v7697_v11 = vld [vmem:[%s10636_s10 + $0x18] sm:$0xff] }
 0x1cd   : > { %3196 = vrot.lane.b32.xlu0 %v7678_v36, %s10820_s20 }
 0x1d1   : > { %3274 = vperm.xlu0 %6853, %v7685_v24  }
 0x1d5   : > { %6859 = vset.pattern.permute.xlu0 %v11076_v34 }
 0x1d6   : > { %3340 = vperm.xlu0 %6859, %v7685_v24  }
 0x1da   : > { %6860 = vset.pattern.permute.xlu0 %v11075_v13 }
 0x1db   : > { %3211 = vperm.xlu0 %6860, %v7685_v24  }
 0x1df   : > { %3400 = vrot.lane.b32.xlu0 %v7659_v30, %s10846_s21 }
 0x1e3   : > { %3415 = vperm.xlu0 %6860, %v7697_v11  }
 0x1e7   : > { %6866 = vset.pattern.permute.xlu0 %v11076_v34 }
 0x1e8   : > { %3544 = vperm.xlu0 %6866, %v7697_v11  }
 0x1ec   : > { %6867 = vset.pattern.permute.xlu0 %v11077_v1 }
 0x1ed   : > { %3478 = vperm.xlu0 %6867, %v7697_v11  }
 0x1f6   : > { %v7726_v43 = vpop.permute.xlu1 %3017 }
 0x1f7   : > { %11089 = vst [vmem:[#allocation61_spill] sm:$0xff] %v7726_v43 }
 0x1f9   : > { %v965_v39 = vpop.f32.mrf.mxu0 }
 0x1fb   : > { %v7732_v40 = vpop.permute.xlu1 %3039  ;;  %v967_v31 = vpop.f32.mrf.mxu0 }
 0x1fc   : > { %11092 = vst [vmem:[#allocation64_spill] sm:$0xff] %v7732_v40 }
 0x1fe   : > { %v1036_v33 = vpop.f32.mrf.mxu1 }
 0x21c   : > { %v7716_v16 = vpop.permute.xlu0 %2737 }
 0x21d   : > { %11084 = vst [vmem:[#allocation56_spill] sm:$0xff] %v7716_v16  ;;  %v1038_v16 = vpop.f32.mrf.mxu1 }
 0x220   : > { %v7720_v35 = vpop.permute.xlu0 %2805 }
 0x221   : > { %11086 = vst [vmem:[#allocation58_spill] sm:$0xff] %v7720_v35 }
 0x22d   : > { %v7724_v27 = vpop.permute.xlu0 %2926 }
 0x22e   : > { %11088 = vst [vmem:[#allocation60_spill] sm:$0xff] %v7724_v27  ;;  %v1037_v27 = vadd.f32 %v1036_v33, %v965_v39  ;;  %v3032_v39 = vmul.f32 %v7742_v12, %v7726_v43  ;;  %v3054_v43 = vmul.f32 %v7750_v23, %v7732_v40 }
 0x232   : > { %v7728_v2 = vpop.permute.xlu0 %2760 }
 0x233   : > { %11090 = vst [vmem:[#allocation62_spill] sm:$0xff] %v7728_v2  ;;  %v7744_v2 = vpop.permute.xlu1 %3083 }
 0x234   : > { %11095 = vst [vmem:[#allocation66_spill] sm:$0xff] %v7744_v2 }
 0x236   : > { %v7730_v53 = vpop.permute.xlu0 %2819 }
 0x237   : > { %11091 = vst [vmem:[#allocation63_spill] sm:$0xff] %v7730_v53  ;;  %v1039_v53 = vadd.f32 %v1038_v16, %v967_v31  ;;  %v7766_v31 = vrot.slane %v11093_v41, %v7480_v8 }
 0x23a   : > { %v1107_v35 = vpop.f32.mrf.mxu0  ;;  %v7738_v51 = vpop.permute.xlu0 %2998 }
 0x23b   : > { %11094 = vst [vmem:[#allocation65_spill] sm:$0xff] %v7738_v51  ;;  %v1108_v38 = vadd.f32 %v1107_v35, %v1037_v27  ;;  %v3013_v58 = vmul.f32 %v7736_v25, %v7738_v51  ;;  %v7762_v27 = vsub.s32 4, %v7246_v3 }
 0x23c   : > { %v1109_v49 = vpop.f32.mrf.mxu0 }
 0x23d   : > { %v1110_v33 = vadd.f32 %v1109_v49, %v1039_v53  ;;  %v3035_v16 = vadd.f32 %v3032_v39, %v3013_v58  ;;  %v7778_v53 = vrot.slane %v11093_v41, %v7762_v27  ;;  %v7785_v58 = vrot.slane %v11093_v41, %v7759_v52 }
 0x23e   : > { %v7788_v39 = vsub.s32 7, %v7246_v3 }
 0x23f   : > { %v1178_v42 = vpop.f32.mrf.mxu1  ;;  %v7756_v29 = vpop.permute.xlu0 %3127  ;;  %v3057_v40 = vadd.f32 %v3054_v43, %v3035_v16  ;;  %v3098_v50 = vmul.f32 %v7778_v53, %v7744_v2  ;;  %v11101_v2 = vrot.slane %v7505_v63, 4 }
 0x240   : > { %v7754_v57 = vadd.f32 %v1178_v42, %v1108_v38  ;;  %11096 = vst [vmem:[#allocation67_spill] sm:$0xff] %v7756_v29  ;;  %v7774_v38 = vpop.permute.xlu1 %3105 }
 0x241   : > { %v1180_v35 = vpop.f32.mrf.mxu1  ;;  %11097 = vst [vmem:[#allocation68_spill] sm:$0xff] %v7774_v38 }
 0x242   : > { %v1189_v42 = vmul.f32 %v7473_v9, %v7754_v57  ;;  %v7772_v49 = vadd.f32 %v1180_v35, %v1110_v33  ;;  %v7791_v33 = vsub.s32 6, %v7246_v3  ;;  %v7806_v3 = vrot.slane %v11093_v41, %v7788_v39 }
 0x244   : > { %v1197_v51 = vadd.f32 %v7382_v18, %v1189_v42  ;;  %v1190_v56 = vmul.f32 %v7473_v9, %v7772_v49  ;;  %v7793_v35 = vpop.permute.xlu0 %3061  ;;  %v7800_v9 = vrot.slane %v11093_v41, %v7791_v33  ;;  %v2229_v41 = vsel %vm2228_vm5, %v11101_v2, %v7505_v63 }
 0x245   : > { %11098 = vst [vmem:[#allocation69_spill] sm:$0xff] %v7793_v35  ;;  %v3076_v42 = vmul.f32 %v7766_v31, %v7793_v35 }
 0x246   : > { %v1198_v21 = vadd.f32 %v7382_v18, %v1190_v56  ;;  %v1199_v37 = vmax.f32 %v1197_v51, 0.0  ;;  %v3120_v18 = vmul.f32 %v7785_v58, %v7774_v38  ;;  %v7810_v56 = vpop.permute.xlu1 %3149 }
 0x247   : > { %v3079_v43 = vadd.f32 %v3076_v42, %v3057_v40  ;;  %11099 = vst [vmem:[#allocation70_spill] sm:$0xff] %v7810_v56 }
 0x248   : > { %v1200_v0 = vmax.f32 %v1198_v21, 0.0  ;;  %v3164_v21 = vmul.f32 %v7806_v3, %v7810_v56  ;;  %v7862_v2 = vpop.permute.xlu0 %3196 }
 0x249   : > { %v3101_v35 = vadd.f32 %v3098_v50, %v3079_v43  ;;  %v3142_v50 = vmul.f32 %v7800_v9, %v7756_v29  ;;  %11105 = vst [vmem:[#allocation73_spill] sm:$0xff] %v7862_v2 }
 0x24a   : > { %v1203_v16 = vcombine.low %v1199_v37, %v1200_v0 }
 0x24b   : > { %v3123_v37 = vadd.f32 %v3120_v18, %v3101_v35 }
 0x24c   : > { %1205 = vst [vmem:[#allocation3 + $0x4] sm:$0xff] %v1203_v16  ;;  %v7822_v51 = vmul.f32 %v2050_v60, %v1203_v16  ;;  %v7824_v40 = vmul.f32 %v2229_v41, %v1203_v16  ;;  %v7848_v60 = vld [vmem:[%s10636_s10 + $0x20] sm:$0xff]  ;;  %v7866_v43 = vpop.permute.xlu0 %3274  ;;  %v3204_v41 = vmul.f32 0.0, %v7862_v2 }
 0x24d   : > { %v3145_v0 = vadd.f32 %v3142_v50, %v3123_v37  ;;  %3630 = vperm.xlu0 %6867, %v7848_v60   ;;  %11107 = vst [vmem:[#allocation75_spill] sm:$0xff] %v7866_v43 }
 0x24e   : > { %11102 = vst [vmem:[#allocation71_spill] sm:$0xff] %v7824_v40  ;;  %v3236_v47 = vrot.slane %v3204_v41, %v7254_v6  ;;  %v3302_v38 = vrot.slane %v3204_v41, %v7762_v27 }
 0x24f   : > { %v3167_v42 = vadd.f32 %v3164_v21, %v3145_v0  ;;  %v3217_v21 = vrot.slane %v3204_v41, %v7251_v5 }
 0x251   : > { %3173 = vrot.lane.b32.xlu1 %v3167_v42, %s10846_s21  ;;  %6873 = vset.pattern.permute.xlu0 %v11076_v34  ;;  %v7868_v18 = vpop.permute.xlu0 %3340 }
 0x252   : > { %3654 = vperm.xlu0 %6873, %v7848_v60   ;;  %11108 = vst [vmem:[#allocation76_spill] sm:$0xff] %v7868_v18 }
 0x253   : > { %v1924_v63 = vld [vmem:[#allocation3 + $0x4] sm:$0xff] }
 0x255   : > { %3198 = vrot.lane.b32.xlu1 %v7831_v46, %s10820_s20  ;;  %s10848_s20 = smov 77  }
 0x256   : > { %3687 = vrot.lane.b32.xlu0 %v7831_v46, %s10772_s1  ;;  %v7877_v37 = vpop.permute.xlu0 %3211 }
 0x257   : > { %6878 = vset.pattern.permute.xlu0 %v11065_v28  ;;  %11111 = vst [vmem:[#allocation79_spill] sm:$0xff] %v7877_v37  ;;  %v3226_v42 = vmul.f32 %v3217_v21, %v7877_v37  ;;  %v3346_v21 = vrot.slane %v3204_v41, %v7791_v33 }
 0x259   : > { %3230 = vperm.xlu1 %6855, %v7685_v24  }
 0x25d   : > { %6856 = vset.pattern.permute.xlu1 %v11064_v62 }
 0x25e   : > { %3252 = vperm.xlu1 %6856, %v7685_v24  }
 0x262   : > { %6857 = vset.pattern.permute.xlu1 %v11065_v28 }
 0x263   : > { %3296 = vperm.xlu1 %6857, %v7685_v24  }
 0x267   : > { %6858 = vset.pattern.permute.xlu1 %v11066_v4 }
 0x268   : > { %3318 = vperm.xlu1 %6858, %v7685_v24  }
 0x26c   : > { %6861 = vset.pattern.permute.xlu1 %v11067_v44 }
 0x26d   : > { %3362 = vperm.xlu1 %6861, %v7685_v24   ;;  %v7860_v24 = vmul.f32 %v2575_v10, %v1924_v63  ;;  %v3258_v63 = vrot.slane %v3204_v41, %v7485_v55  ;;  %v3280_v10 = vrot.slane %v3204_v41, %v7480_v8 }
 0x26f   : > { %11104 = vst [vmem:[#allocation72_spill] sm:$0xff] %v7860_v24  ;;  %v3289_v56 = vmul.f32 %v3280_v10, %v7866_v43 }
 0x271   : > { %6862 = vset.pattern.permute.xlu1 %v11063_v32 }
 0x2c3   : > { %v7864_v35 = vpop.permute.xlu1 %3173 }
 0x2c4   : > { %11106 = vst [vmem:[#allocation74_spill] sm:$0xff] %v7864_v35 }
 0x2c7   : > { %v7870_v16 = vpop.permute.xlu1 %3198 }
 0x2c8   : > { %11109 = vst [vmem:[#allocation77_spill] sm:$0xff] %v7870_v16 }
 0x2d4   : > { %v7874_v50 = vpop.permute.xlu1 %3230 }
 0x2d5   : > { %11110 = vst [vmem:[#allocation78_spill] sm:$0xff] %v7874_v50  ;;  %v3245_v0 = vmul.f32 %v3236_v47, %v7874_v50  ;;  %v3324_v50 = vrot.slane %v3204_v41, %v7759_v52 }
 0x2d7   : > { %v3248_v35 = vadd.f32 %v3245_v0, %v3226_v42  ;;  %v3368_v42 = vrot.slane %v3204_v41, %v7788_v39 }
 0x2d9   : > { %v7882_v14 = vpop.permute.xlu1 %3252 }
 0x2da   : > { %11112 = vst [vmem:[#allocation80_spill] sm:$0xff] %v7882_v14  ;;  %v3267_v2 = vmul.f32 %v3258_v63, %v7882_v14 }
 0x2dc   : > { %v3270_v16 = vadd.f32 %v3267_v2, %v3248_v35  ;;  %v3355_v2 = vmul.f32 %v3346_v21, %v7868_v18 }
 0x2de   : > { %v7887_v29 = vpop.permute.xlu1 %3296  ;;  %v3292_v24 = vadd.f32 %v3289_v56, %v3270_v16  ;;  %v7921_v16 = vpop.permute.xlu0 %3400 }
 0x2df   : > { %11113 = vst [vmem:[#allocation81_spill] sm:$0xff] %v7887_v29  ;;  %v3311_v47 = vmul.f32 %v3302_v38, %v7887_v29  ;;  %11117 = vst [vmem:[#allocation85_spill] sm:$0xff] %v7921_v16  ;;  %v3408_v41 = vmul.f32 0.0, %v7921_v16 }
 0x2e1   : > { %v3314_v40 = vadd.f32 %v3311_v47, %v3292_v24  ;;  %v3421_v47 = vrot.slane %v3408_v41, %v7251_v5 }
 0x2e3   : > { %v7893_v37 = vpop.permute.xlu1 %3318 }
 0x2e4   : > { %11114 = vst [vmem:[#allocation82_spill] sm:$0xff] %v7893_v37  ;;  %v3333_v0 = vmul.f32 %v3324_v50, %v7893_v37  ;;  %v7926_v50 = vpop.permute.xlu0 %3415 }
 0x2e5   : > { %11119 = vst [vmem:[#allocation87_spill] sm:$0xff] %v7926_v50 }
 0x2e6   : > { %v3336_v35 = vadd.f32 %v3333_v0, %v3314_v40  ;;  %v6618_v40 = vld [vmem:[%s10636_s10 + $0x28] sm:$0xff]  ;;  %v3440_v0 = vrot.slane %v3408_v41, %v7254_v6 }
 0x2e7   : > { %3785 = vperm.xlu0 %6878, %v6618_v40  }
 0x2e8   : > { %v7898_v63 = vpop.permute.xlu1 %3362  ;;  %v3358_v10 = vadd.f32 %v3355_v2, %v3336_v35  ;;  %v7932_v2 = vpop.permute.xlu0 %3544 }
 0x2e9   : > { %11115 = vst [vmem:[#allocation83_spill] sm:$0xff] %v7898_v63  ;;  %v3377_v56 = vmul.f32 %v3368_v42, %v7898_v63  ;;  %11121 = vst [vmem:[#allocation89_spill] sm:$0xff] %v7932_v2  ;;  %v3430_v42 = vmul.f32 %v3421_v47, %v7926_v50  ;;  %v3528_v50 = vrot.slane %v3408_v41, %v7759_v52 }
 0x2eb   : > { %v3380_v38 = vadd.f32 %v3377_v56, %v3358_v10  ;;  %6881 = vset.pattern.permute.xlu0 %v11067_v44  ;;  %v3462_v10 = vrot.slane %v3408_v41, %v7485_v55 }
 0x2ec   : > { %3851 = vperm.xlu0 %6881, %v6618_v40   ;;  %v7941_v63 = vpop.permute.xlu0 %3478 }
 0x2ed   : > { %3386 = vrot.lane.b32.xlu1 %v3380_v38, %s10844_s30  ;;  %v3484_v38 = vrot.slane %v3408_v41, %v7480_v8  ;;  %11123 = vst [vmem:[#allocation91_spill] sm:$0xff] %v7941_v63  ;;  %s7032_s30 = smov 81  }
 0x2ef   : > { %v3493_v37 = vmul.f32 %v3484_v38, %v7941_v63 }
 0x2f0   : > { %6882 = vset.pattern.permute.xlu0 %v11063_v32 }
 0x2f1   : > { %3402 = vrot.lane.b32.xlu1 %v7537_v22, %s10846_s21  ;;  %3719 = vperm.xlu0 %6882, %v6618_v40   ;;  %s7037_s21 = smov 124  }
 0x2f5   : > { %3434 = vperm.xlu1 %6862, %v7697_v11  }
 0x2f9   : > { %6863 = vset.pattern.permute.xlu1 %v11064_v62 }
 0x2fa   : > { %3456 = vperm.xlu1 %6863, %v7697_v11  }
 0x2fe   : > { %6864 = vset.pattern.permute.xlu1 %v11065_v28 }
 0x2ff   : > { %3500 = vperm.xlu1 %6864, %v7697_v11  }
 0x303   : > { %6865 = vset.pattern.permute.xlu1 %v11066_v4 }
 0x304   : > { %3522 = vperm.xlu1 %6865, %v7697_v11  }
 0x308   : > { %6868 = vset.pattern.permute.xlu1 %v11067_v44 }
 0x309   : > { %3566 = vperm.xlu1 %6868, %v7697_v11  }
 0x30d   : > { %6869 = vset.pattern.permute.xlu1 %v11063_v32 }
 0x35f   : > { %v7919_v24 = vpop.permute.xlu1 %3386 }
 0x360   : > { %11116 = vst [vmem:[#allocation84_spill] sm:$0xff] %v7919_v24 }
 0x363   : > { %v7924_v11 = vpop.permute.xlu1 %3402 }
 0x364   : > { %11118 = vst [vmem:[#allocation86_spill] sm:$0xff] %v7924_v11 }
 0x370   : > { %v7929_v21 = vpop.permute.xlu1 %3434 }
 0x371   : > { %11120 = vst [vmem:[#allocation88_spill] sm:$0xff] %v7929_v21  ;;  %v3449_v35 = vmul.f32 %v3440_v0, %v7929_v21  ;;  %v3506_v0 = vrot.slane %v3408_v41, %v7762_v27  ;;  %v3550_v21 = vrot.slane %v3408_v41, %v7791_v33 }
 0x373   : > { %v3452_v24 = vadd.f32 %v3449_v35, %v3430_v42 }
 0x375   : > { %v7937_v56 = vpop.permute.xlu1 %3456 }
 0x376   : > { %11122 = vst [vmem:[#allocation90_spill] sm:$0xff] %v7937_v56  ;;  %v3471_v16 = vmul.f32 %v3462_v10, %v7937_v56  ;;  %v3572_v10 = vrot.slane %v3408_v41, %v7788_v39  ;;  %v8026_v41 = vpop.permute.xlu0 %3630 }
 0x377   : > { %11130 = vst [vmem:[#allocation97_spill] sm:$0xff] %v8026_v41 }
 0x378   : > { %v3474_v18 = vadd.f32 %v3471_v16, %v3452_v24  ;;  %v3559_v24 = vmul.f32 %v3550_v21, %v7932_v2 }
 0x37a   : > { %v7944_v29 = vpop.permute.xlu1 %3500  ;;  %v3496_v43 = vadd.f32 %v3493_v37, %v3474_v18  ;;  %v8032_v21 = vpop.permute.xlu0 %3654 }
 0x37b   : > { %11124 = vst [vmem:[#allocation92_spill] sm:$0xff] %v7944_v29  ;;  %v3515_v47 = vmul.f32 %v3506_v0, %v7944_v29  ;;  %11132 = vst [vmem:[#allocation99_spill] sm:$0xff] %v8032_v21  ;;  %v4490_v0 = vld [vmem:[%s10638_s12] sm:$0xf] }
 0x37d   : > { %v3518_v35 = vadd.f32 %v3515_v47, %v3496_v43  ;;  %v7981_v43 = vld [vmem:[%s10636_s10 + $0x30] sm:$0xff] }
 0x37e   : > { %v8040_v47 = vpop.permute.xlu0 %3687 }
 0x37f   : > { %v7950_v14 = vpop.permute.xlu1 %3522  ;;  %11134 = vst [vmem:[#allocation101_spill] sm:$0xff] %v8040_v47 }
 0x380   : > { %11125 = vst [vmem:[#allocation93_spill] sm:$0xff] %v7950_v14  ;;  %v3537_v42 = vmul.f32 %v3528_v50, %v7950_v14 }
 0x382   : > { %v3540_v16 = vadd.f32 %v3537_v42, %v3518_v35 }
 0x384   : > { %v7955_v38 = vpop.permute.xlu1 %3566  ;;  %v3562_v63 = vadd.f32 %v3559_v24, %v3540_v16 }
 0x385   : > { %11126 = vst [vmem:[#allocation94_spill] sm:$0xff] %v7955_v38  ;;  %v3581_v18 = vmul.f32 %v3572_v10, %v7955_v38  ;;  %v3695_v10 = vmul.f32 0.0, %v8040_v47 }
 0x387   : > { %v3584_v37 = vadd.f32 %v3581_v18, %v3562_v63  ;;  %v8013_v63 = vld [vmem:[%s10636_s10 + $0x40] sm:$0xff]  ;;  %v3755_v14 = vrot.slane %v3695_v10, %v7485_v55  ;;  %v3777_v21 = vrot.slane %v3695_v10, %v7480_v8  ;;  %v3821_v41 = vrot.slane %v3695_v10, %v7759_v52 }
 0x389   : > { %3590 = vrot.lane.b32.xlu1 %v3584_v37, %s10828_s23  ;;  %v3733_v37 = vrot.slane %v3695_v10, %v7254_v6  ;;  %s11195_s23 = smov 126  }
 0x38d   : > { %3614 = vperm.xlu1 %6869, %v7848_v60  }
 0x391   : > { %6870 = vset.pattern.permute.xlu1 %v11064_v62 }
 0x392   : > { %3622 = vperm.xlu1 %6870, %v7848_v60  }
 0x396   : > { %6871 = vset.pattern.permute.xlu1 %v11065_v28 }
 0x397   : > { %3638 = vperm.xlu1 %6871, %v7848_v60  }
 0x39b   : > { %6872 = vset.pattern.permute.xlu1 %v11066_v4 }
 0x39c   : > { %3646 = vperm.xlu1 %6872, %v7848_v60  }
 0x3a0   : > { %6874 = vset.pattern.permute.xlu1 %v11067_v44 }
 0x3a1   : > { %3662 = vperm.xlu1 %6874, %v7848_v60  }
 0x3a5   : > { %3685 = vrot.lane.b32.xlu1 %v7678_v36, %s10772_s1  ;;  %s11146_s1 = smov 110  }
 0x3a6   : > { %6875 = vset.pattern.permute.xlu1 %v11075_v13 }
 0x3a9   : > { %3700 = vperm.xlu1 %6875, %v6618_v40  }
 0x3ad   : > { %6876 = vset.pattern.permute.xlu1 %v11064_v62 }
 0x3ae   : > { %3741 = vperm.xlu1 %6876, %v6618_v40  }
 0x3b2   : > { %6877 = vset.pattern.permute.xlu1 %v11077_v1 }
 0x3b3   : > { %3763 = vperm.xlu1 %6877, %v6618_v40  }
 0x3b7   : > { %6879 = vset.pattern.permute.xlu1 %v11066_v4 }
 0x3b8   : > { %3807 = vperm.xlu1 %6879, %v6618_v40  }
 0x3bc   : > { %6880 = vset.pattern.permute.xlu1 %v11076_v34 }
 0x3bd   : > { %3829 = vperm.xlu1 %6880, %v6618_v40  }
 0x3c1   : > { %3889 = vrot.lane.b32.xlu1 %v7659_v30, %s10818_s18  ;;  %v7995_v30 = vld [vmem:[%s10636_s10 + $0x38] sm:$0xff] }
 0x3c2   : > { %6883 = vset.pattern.permute.xlu1 %v11075_v13 }
 0x3c5   : > { %3904 = vperm.xlu1 %6883, %v7981_v43  }
 0x3c9   : > { %6884 = vset.pattern.permute.xlu1 %v11064_v62 }
 0x3ca   : > { %3945 = vperm.xlu1 %6884, %v7981_v43  }
 0x3ce   : > { %6885 = vset.pattern.permute.xlu1 %v11077_v1 }
 0x3cf   : > { %3967 = vperm.xlu1 %6885, %v7981_v43  }
 0x3d3   : > { %6886 = vset.pattern.permute.xlu1 %v11066_v4 }
 0x3d4   : > { %4011 = vperm.xlu1 %6886, %v7981_v43  }
 0x3d8   : > { %6887 = vset.pattern.permute.xlu1 %v11076_v34 }
 0x3d9   : > { %4033 = vperm.xlu1 %6887, %v7981_v43  }
 0x3dd   : > { %6890 = vset.pattern.permute.xlu1 %v11075_v13 }
 0x3de   : > { %4097 = vperm.xlu1 %6890, %v7995_v30  }
 0x3e2   : > { %6891 = vset.pattern.permute.xlu1 %v11064_v62 }
 0x3e3   : > { %4138 = vperm.xlu1 %6891, %v7995_v30  }
 0x3e7   : > { %6892 = vset.pattern.permute.xlu1 %v11077_v1 }
 0x3e8   : > { %4160 = vperm.xlu1 %6892, %v7995_v30  }
 0x3ec   : > { %6893 = vset.pattern.permute.xlu1 %v11066_v4 }
 0x3ed   : > { %4204 = vperm.xlu1 %6893, %v7995_v30  }
 0x3f1   : > { %6894 = vset.pattern.permute.xlu1 %v11076_v34 }
 0x3f2   : > { %4226 = vperm.xlu1 %6894, %v7995_v30  }
 0x3f6   : > { %4286 = vrot.lane.b32.xlu1 %v7678_v36, %s11127_s28 }
 0x3f7   : > { %6897 = vset.pattern.permute.xlu1 %v11075_v13 }
 0x3fa   : > { %4301 = vperm.xlu1 %6897, %v8013_v63  }
 0x3fb   : > { %v8019_v40 = vpop.permute.xlu1 %3590 }
 0x3fc   : > { %11128 = vst [vmem:[#allocation95_spill] sm:$0xff] %v8019_v40 }
 0x3fe   : > { %6898 = vset.pattern.permute.xlu1 %v11064_v62 }
 0x3ff   : > { %4342 = vperm.xlu1 %6898, %v8013_v63  }
 0x403   : > { %6899 = vset.pattern.permute.xlu1 %v11077_v1 }
 0x404   : > { %4364 = vperm.xlu1 %6899, %v8013_v63  }
 0x408   : > { %6901 = vset.pattern.permute.xlu1 %v11066_v4  ;;  %v8023_v36 = vpop.permute.xlu1 %3614 }
 0x409   : > { %11129 = vst [vmem:[#allocation96_spill] sm:$0xff] %v8023_v36  ;;  %4408 = vperm.xlu1 %6901, %v8013_v63  }
 0x40d   : > { %6902 = vset.pattern.permute.xlu1 %v11076_v34  ;;  %v8029_v50 = vpop.permute.xlu1 %3622  ;;  %v8044_v34 = vpop.permute.xlu0 %3785 }
 0x40e   : > { %11131 = vst [vmem:[#allocation98_spill] sm:$0xff] %v8029_v50  ;;  %4430 = vperm.xlu1 %6902, %v8013_v63   ;;  %11136 = vst [vmem:[#allocation103_spill] sm:$0xff] %v8044_v34 }
 0x411   : > { %v8050_v16 = vpop.permute.xlu0 %3851 }
 0x412   : > { %6905 = vset.pattern.permute.xlu1 %v11075_v13  ;;  %v8038_v4 = vpop.permute.xlu1 %3638  ;;  %11139 = vst [vmem:[#allocation106_spill] sm:$0xff] %v8050_v16 }
 0x413   : > { %11133 = vst [vmem:[#allocation100_spill] sm:$0xff] %v8038_v4  ;;  %4493 = vperm.xlu1 %6905, %v4490_v0   ;;  %v3714_v0 = vrot.slane %v3695_v10, %v7251_v5  ;;  %v3799_v4 = vrot.slane %v3695_v10, %v7762_v27 }
 0x415   : > { %v8057_v40 = vpop.permute.xlu0 %3719 }
 0x416   : > { %11141 = vst [vmem:[#allocation108_spill] sm:$0xff] %v8057_v40  ;;  %v3736_v29 = vmul.f32 %v3733_v37, %v8057_v40 }
 0x417   : > { %v8042_v35 = vpop.permute.xlu1 %3646 }
 0x418   : > { %11135 = vst [vmem:[#allocation102_spill] sm:$0xff] %v8042_v35 }
 0x41c   : > { %v8046_v42 = vpop.permute.xlu1 %3662 }
 0x41d   : > { %11137 = vst [vmem:[#allocation104_spill] sm:$0xff] %v8046_v42 }
 0x420   : > { %v8048_v24 = vpop.permute.xlu1 %3685 }
 0x421   : > { %11138 = vst [vmem:[#allocation105_spill] sm:$0xff] %v8048_v24 }
 0x424   : > { %v8053_v18 = vpop.permute.xlu1 %3700 }
 0x425   : > { %11140 = vst [vmem:[#allocation107_spill] sm:$0xff] %v8053_v18  ;;  %v3717_v38 = vmul.f32 %v3714_v0, %v8053_v18  ;;  %v3802_v0 = vmul.f32 %v3799_v4, %v8044_v34 }
 0x427   : > { %v3739_v42 = vadd.f32 %v3736_v29, %v3717_v38  ;;  %v3865_v29 = vrot.slane %v3695_v10, %v7788_v39  ;;  %v3843_v38 = vrot.slane %v3695_v10, %v7791_v33 }
 0x429   : > { %v8060_v2 = vpop.permute.xlu1 %3741 }
 0x42a   : > { %11142 = vst [vmem:[#allocation109_spill] sm:$0xff] %v8060_v2  ;;  %v3758_v56 = vmul.f32 %v3755_v14, %v8060_v2 }
 0x42c   : > { %v3761_v24 = vadd.f32 %v3758_v56, %v3739_v42 }
 0x42e   : > { %v8066_v35 = vpop.permute.xlu1 %3763 }
 0x42f   : > { %11143 = vst [vmem:[#allocation110_spill] sm:$0xff] %v8066_v35  ;;  %v3780_v47 = vmul.f32 %v3777_v21, %v8066_v35  ;;  %v3868_v21 = vmul.f32 %v3865_v29, %v8050_v16 }
 0x431   : > { %v3783_v11 = vadd.f32 %v3780_v47, %v3761_v24 }
 0x433   : > { %v8071_v18 = vpop.permute.xlu1 %3807  ;;  %v3805_v37 = vadd.f32 %v3802_v0, %v3783_v11 }
 0x434   : > { %11144 = vst [vmem:[#allocation111_spill] sm:$0xff] %v8071_v18  ;;  %v3824_v14 = vmul.f32 %v3821_v41, %v8071_v18 }
 0x436   : > { %v3827_v40 = vadd.f32 %v3824_v14, %v3805_v37 }
 0x438   : > { %v8077_v2 = vpop.permute.xlu1 %3829 }
 0x439   : > { %11145 = vst [vmem:[#allocation112_spill] sm:$0xff] %v8077_v2  ;;  %v3846_v56 = vmul.f32 %v3843_v38, %v8077_v2 }
 0x43b   : > { %v3849_v47 = vadd.f32 %v3846_v56, %v3827_v40 }
 0x43c   : > { %v8089_v11 = vpop.permute.xlu1 %3889 }
 0x43d   : > { %v3871_v4 = vadd.f32 %v3868_v21, %v3849_v47  ;;  %11147 = vst [vmem:[#allocation113_spill] sm:$0xff] %v8089_v11 }
 0x43f   : > { %3879 = vrot.lane.b32.xlu0 %v3871_v4, %s11146_s1 }
 0x440   : > { %v8093_v40 = vpop.permute.xlu1 %3904 }
 0x441   : > { %11149 = vst [vmem:[#allocation115_spill] sm:$0xff] %v8093_v40 }
 0x443   : > { %3891 = vrot.lane.b32.xlu0 %v7537_v22, %s10818_s18  ;;  %s10842_s18 = smov 78  }
 0x445   : > { %v8098_v24 = vpop.permute.xlu1 %3945 }
 0x446   : > { %11151 = vst [vmem:[#allocation117_spill] sm:$0xff] %v8098_v24 }
 0x447   : > { %3923 = vperm.xlu0 %6882, %v7981_v43  }
 0x44a   : > { %v8107_v38 = vpop.permute.xlu1 %3967 }
 0x44b   : > { %6888 = vset.pattern.permute.xlu0 %v11067_v44  ;;  %11153 = vst [vmem:[#allocation119_spill] sm:$0xff] %v8107_v38 }
 0x44c   : > { %4055 = vperm.xlu0 %6888, %v7981_v43  }
 0x44f   : > { %v8113_v16 = vpop.permute.xlu1 %4011 }
 0x450   : > { %6889 = vset.pattern.permute.xlu0 %v11065_v28  ;;  %11155 = vst [vmem:[#allocation121_spill] sm:$0xff] %v8113_v16 }
 0x451   : > { %3989 = vperm.xlu0 %6889, %v7981_v43  }
 0x454   : > { %v8123_v35 = vpop.permute.xlu1 %4033 }
 0x455   : > { %11157 = vst [vmem:[#allocation123_spill] sm:$0xff] %v8123_v35 }
 0x4b1   : > { %v8091_v41 = vpop.permute.xlu0 %3879 }
 0x4b2   : > { %11148 = vst [vmem:[#allocation114_spill] sm:$0xff] %v8091_v41 }
 0x4b5   : > { %v8095_v42 = vpop.permute.xlu0 %3891 }
 0x4b6   : > { %11150 = vst [vmem:[#allocation116_spill] sm:$0xff] %v8095_v42  ;;  %v3899_v22 = vmul.f32 0.0, %v8095_v42 }
 0x4b8   : > { %v3918_v10 = vrot.slane %v3899_v22, %v7251_v5  ;;  %v3937_v0 = vrot.slane %v3899_v22, %v7254_v6  ;;  %v3959_v14 = vrot.slane %v3899_v22, %v7485_v55  ;;  %v3981_v4 = vrot.slane %v3899_v22, %v7480_v8 }
 0x4b9   : > { %v4025_v18 = vrot.slane %v3899_v22, %v7759_v52 }
 0x4ba   : > { %v3921_v43 = vmul.f32 %v3918_v10, %v8093_v40  ;;  %v3962_v21 = vmul.f32 %v3959_v14, %v8098_v24  ;;  %v3984_v2 = vmul.f32 %v3981_v4, %v8107_v38  ;;  %v4003_v10 = vrot.slane %v3899_v22, %v7762_v27 }
 0x4bb   : > { %v4047_v14 = vrot.slane %v3899_v22, %v7791_v33 }
 0x4bd   : > { %v4050_v4 = vmul.f32 %v4047_v14, %v8123_v35 }
 0x4c2   : > { %v8102_v37 = vpop.permute.xlu0 %3923 }
 0x4c3   : > { %11152 = vst [vmem:[#allocation118_spill] sm:$0xff] %v8102_v37  ;;  %v3940_v29 = vmul.f32 %v3937_v0, %v8102_v37 }
 0x4c5   : > { %v3943_v56 = vadd.f32 %v3940_v29, %v3921_v43  ;;  %v4028_v29 = vmul.f32 %v4025_v18, %v8113_v16 }
 0x4c7   : > { %v8110_v47 = vpop.permute.xlu0 %4055  ;;  %v3965_v41 = vadd.f32 %v3962_v21, %v3943_v56  ;;  %v4069_v56 = vrot.slane %v3899_v22, %v7788_v39 }
 0x4c8   : > { %11154 = vst [vmem:[#allocation120_spill] sm:$0xff] %v8110_v47 }
 0x4c9   : > { %v3987_v0 = vadd.f32 %v3984_v2, %v3965_v41  ;;  %v4072_v38 = vmul.f32 %v4069_v56, %v8110_v47  ;;  %v8134_v2 = vpop.permute.xlu1 %4097 }
 0x4ca   : > { %11158 = vst [vmem:[#allocation124_spill] sm:$0xff] %v8134_v2 }
 0x4cc   : > { %v8118_v34 = vpop.permute.xlu0 %3989 }
 0x4cd   : > { %11156 = vst [vmem:[#allocation122_spill] sm:$0xff] %v8118_v34  ;;  %v4006_v43 = vmul.f32 %v4003_v10, %v8118_v34  ;;  %v8138_v41 = vpop.permute.xlu1 %4138 }
 0x4ce   : > { %11160 = vst [vmem:[#allocation126_spill] sm:$0xff] %v8138_v41 }
 0x4cf   : > { %v4009_v24 = vadd.f32 %v4006_v43, %v3987_v0  ;;  %v4155_v0 = vmul.f32 %v8138_v41, %v7750_v23 }
 0x4d1   : > { %v4031_v21 = vadd.f32 %v4028_v29, %v4009_v24 }
 0x4d3   : > { %v4053_v37 = vadd.f32 %v4050_v4, %v4031_v21 }
 0x4d5   : > { %v4075_v40 = vadd.f32 %v4072_v38, %v4053_v37  ;;  %v4114_v38 = vmul.f32 %v8134_v2, %v7736_v25 }
 0x4d7   : > { %4083 = vrot.lane.b32.xlu0 %v4075_v40, %s10822_s19  ;;  %v8144_v40 = vpop.permute.xlu1 %4160  ;;  %s10850_s19 = smov 82  }
 0x4d8   : > { %11163 = vst [vmem:[#allocation129_spill] sm:$0xff] %v8144_v40  ;;  %v4177_v14 = vmul.f32 %v8144_v40, %v7766_v31 }
 0x4db   : > { %4182 = vperm.xlu0 %6889, %v7995_v30   ;;  %v8152_v10 = vpop.permute.xlu1 %4204 }
 0x4dc   : > { %11165 = vst [vmem:[#allocation131_spill] sm:$0xff] %v8152_v10  ;;  %v4221_v25 = vmul.f32 %v8152_v10, %v7785_v58 }
 0x4df   : > { %6895 = vset.pattern.permute.xlu0 %v11067_v44  ;;  %v8160_v4 = vpop.permute.xlu1 %4226 }
 0x4e0   : > { %4248 = vperm.xlu0 %6895, %v7995_v30   ;;  %11166 = vst [vmem:[#allocation132_spill] sm:$0xff] %v8160_v4 }
 0x4e4   : > { %6896 = vset.pattern.permute.xlu0 %v11063_v32 }
 0x4e5   : > { %4116 = vperm.xlu0 %6896, %v7995_v30  }
 0x549   : > { %v8136_v18 = vpop.permute.xlu0 %4083 }
 0x54a   : > { %11159 = vst [vmem:[#allocation125_spill] sm:$0xff] %v8136_v18 }
 0x556   : > { %v8140_v22 = vpop.permute.xlu0 %4182 }
 0x557   : > { %11161 = vst [vmem:[#allocation127_spill] sm:$0xff] %v8140_v22  ;;  %v4199_v56 = vmul.f32 %v8140_v22, %v7778_v53  ;;  %v4508_v53 = vld [vmem:[%s11167_s2] sm:$0xff]  ;;  %s7047_s2 = smov 92  }
 0x558   : > { %4511 = vperm.xlu1 %6905, %v4508_v53  }
 0x55b   : > { %v8142_v24 = vpop.permute.xlu0 %4248 }
 0x55c   : > { %11162 = vst [vmem:[#allocation128_spill] sm:$0xff] %v8142_v24  ;;  %v4265_v23 = vmul.f32 %v8142_v24, %v7806_v3  ;;  %6906 = vset.pattern.permute.xlu1 %v11063_v32  ;;  %v4574_v32 = vld [vmem:[%s11037_s3] sm:$0x3]  ;;  %v8210_v3 = vpop.permute.xlu1 %4286 }
 0x55d   : > { %4525 = vperm.xlu1 %6906, %v4508_v53   ;;  %11171 = vst [vmem:[#allocation136_spill] sm:$0xff] %v8210_v3 }
 0x560   : > { %v8146_v37 = vpop.permute.xlu0 %4116 }
 0x561   : > { %11164 = vst [vmem:[#allocation130_spill] sm:$0xff] %v8146_v37  ;;  %v4133_v30 = vmul.f32 %v8146_v37, %v7742_v12  ;;  %v4243_v12 = vmul.f32 %v8160_v4, %v7800_v9  ;;  %6908 = vset.pattern.permute.xlu1 %v11077_v1  ;;  %v6622_v1 = vld [vmem:[%s11037_s3 + $0x2] sm:$0x3] }
 0x562   : > { %4557 = vperm.xlu1 %6908, %v4508_v53   ;;  %v8201_v58 = vrot.slane %v6622_v1, %v7251_v5  ;;  %v8206_v9 = vrot.slane %v6622_v1, %v7254_v6 }
 0x563   : > { %v4136_v43 = vadd.f32 %v4133_v30, %v4114_v38 }
 0x564   : > { %11169 = vst [vmem:[#allocation134_spill] sm:$0xff] %v8201_v58  ;;  %11170 = vst [vmem:[#allocation135_spill] sm:$0xff] %v8206_v9 }
 0x565   : > { %v4158_v29 = vadd.f32 %v4155_v0, %v4136_v43 }
 0x566   : > { %6909 = vset.pattern.permute.xlu1 %v11075_v13 }
 0x567   : > { %v4180_v21 = vadd.f32 %v4177_v14, %v4158_v29 }
 0x569   : > { %v4202_v18 = vadd.f32 %v4199_v56, %v4180_v21 }
 0x56b   : > { %v4224_v47 = vadd.f32 %v4221_v25, %v4202_v18 }
 0x56d   : > { %v4246_v38 = vadd.f32 %v4243_v12, %v4224_v47 }
 0x56f   : > { %v4268_v31 = vadd.f32 %v4265_v23, %v4246_v38 }
 0x571   : > { %4276 = vrot.lane.b32.xlu0 %v4268_v31, %s10824_s27  ;;  %s7038_s27 = smov 123  }
 0x575   : > { %4288 = vrot.lane.b32.xlu0 %v7831_v46, %s11127_s28 }
 0x579   : > { %4320 = vperm.xlu0 %6896, %v8013_v63  }
 0x57d   : > { %6900 = vset.pattern.permute.xlu0 %v11065_v28  ;;  %v6910_v28 = vld [vmem:[%s10636_s10] sm:$0xff] }
 0x57e   : > { %4386 = vperm.xlu0 %6900, %v8013_v63  }
 0x582   : > { %6903 = vset.pattern.permute.xlu0 %v11067_v44  ;;  %v4583_v44 = vld [vmem:[%s10641_s15] sm:$0xff] }
 0x583   : > { %4452 = vperm.xlu0 %6903, %v8013_v63   ;;  %4586 = vperm.xlu1 %6909, %v4583_v44   ;;  %v8214_v63 = vpop.permute.xlu1 %4301 }
 0x584   : > { %11173 = vst [vmem:[#allocation138_spill] sm:$0xff] %v8214_v63 }
 0x587   : > { %6904 = vset.pattern.permute.xlu0 %v11064_v62  ;;  %v8193_v62 = vrot.slane %v4574_v32, %v7254_v6  ;;  %v8218_v18 = vpop.permute.xlu1 %4342 }
 0x588   : > { %2860 = vperm.xlu0 %6904, %v6910_v28   ;;  %11175 = vst [vmem:[#allocation140_spill] sm:$0xff] %v8218_v18 }
 0x589   : > { %11168 = vst [vmem:[#allocation133_spill] sm:$0xff] %v8193_v62  ;;  %4604 = vrot.lane.b32.xlu1 %v8193_v62, %s10848_s20 }
 0x58b   : > { %v8222_v43 = vpop.permute.xlu1 %4364 }
 0x58c   : > { %11176 = vst [vmem:[#allocation141_spill] sm:$0xff] %v8222_v43 }
 0x58d   : > { %4635 = vrot.lane.b32.xlu1 %v8201_v58, %s10842_s18 }
 0x58f   : > { %v8232_v31 = vpop.permute.xlu1 %4408 }
 0x590   : > { %11178 = vst [vmem:[#allocation143_spill] sm:$0xff] %v8232_v31 }
 0x591   : > { %4637 = vrot.lane.b32.xlu1 %v8206_v9, %s10842_s18  ;;  %s10901_s18 = smov 125  }
 0x5e3   : > { %v8212_v46 = vpop.permute.xlu0 %4276 }
 0x5e4   : > { %11172 = vst [vmem:[#allocation137_spill] sm:$0xff] %v8212_v46 }
 0x5e7   : > { %v8216_v47 = vpop.permute.xlu0 %4288 }
 0x5e8   : > { %11174 = vst [vmem:[#allocation139_spill] sm:$0xff] %v8216_v47  ;;  %v4296_v30 = vmul.f32 0.0, %v8216_v47 }
 0x5ea   : > { %v4315_v0 = vrot.slane %v4296_v30, %v7251_v5  ;;  %v4334_v14 = vrot.slane %v4296_v30, %v7254_v6  ;;  %v4356_v29 = vrot.slane %v4296_v30, %v7485_v55  ;;  %v4378_v12 = vrot.slane %v4296_v30, %v7480_v8 }
 0x5eb   : > { %v4400_v28 = vrot.slane %v4296_v30, %v7762_v27  ;;  %v4422_v46 = vrot.slane %v4296_v30, %v7759_v52 }
 0x5ec   : > { %v4318_v21 = vmul.f32 %v4315_v0, %v8214_v63  ;;  %v4359_v23 = vmul.f32 %v4356_v29, %v8218_v18  ;;  %v4381_v1 = vmul.f32 %v4378_v12, %v8222_v43 }
 0x5ed   : > { %v4425_v34 = vmul.f32 %v4422_v46, %v8232_v31  ;;  %v4614_v46 = vld [vmem:[%s10640_s14] sm:$0xff] }
 0x5f4   : > { %v8226_v56 = vpop.permute.xlu0 %4320 }
 0x5f5   : > { %11177 = vst [vmem:[#allocation142_spill] sm:$0xff] %v8226_v56  ;;  %v4337_v25 = vmul.f32 %v4334_v14, %v8226_v56  ;;  %v4444_v14 = vrot.slane %v4296_v30, %v7791_v33 }
 0x5f7   : > { %v4340_v38 = vadd.f32 %v4337_v25, %v4318_v21  ;;  %v8242_v21 = vpop.permute.xlu1 %4430 }
 0x5f8   : > { %11180 = vst [vmem:[#allocation145_spill] sm:$0xff] %v8242_v21  ;;  %v4447_v12 = vmul.f32 %v4444_v14, %v8242_v21 }
 0x5f9   : > { %v4362_v44 = vadd.f32 %v4359_v23, %v4340_v38  ;;  %v8237_v35 = vpop.permute.xlu0 %4386  ;;  %v4466_v23 = vrot.slane %v4296_v30, %v7788_v39  ;;  %v8283_v30 = vld [vmem:[%s11037_s3 + $0x8] sm:$0x3] }
 0x5fa   : > { %11179 = vst [vmem:[#allocation144_spill] sm:$0xff] %v8237_v35  ;;  %v4403_v0 = vmul.f32 %v4400_v28, %v8237_v35  ;;  %v8297_v28 = vld [vmem:[%s11037_s3 + $0xa] sm:$0x3] }
 0x5fb   : > { %v4384_v16 = vadd.f32 %v4381_v1, %v4362_v44  ;;  %v8301_v44 = vrot.slane %v8297_v28, %v7251_v5  ;;  %v6631_v1 = vld [vmem:[%s10640_s14 + $0x28] sm:$0xff] }
 0x5fd   : > { %v4406_v29 = vadd.f32 %v4403_v0, %v4384_v16  ;;  %v4498_v16 = vld [vmem:[%s10639_s13] sm:$0xf]  ;;  %11185 = vst [vmem:[#allocation150_spill] sm:$0xff] %v8301_v44  ;;  %v8311_v0 = vld [vmem:[%s11037_s3 + $0xc] sm:$0x3] }
 0x5fe   : > { %v8244_v25 = vpop.permute.xlu0 %4452  ;;  %v8315_v14 = vrot.slane %v8311_v0, %v7251_v5 }
 0x5ff   : > { %11181 = vst [vmem:[#allocation146_spill] sm:$0xff] %v8244_v25  ;;  %v4428_v18 = vadd.f32 %v4425_v34, %v4406_v29  ;;  %v4469_v38 = vmul.f32 %v4466_v23, %v8244_v25  ;;  %v8256_v34 = vrot.slane %v4574_v32, %v7251_v5  ;;  %v6628_v32 = vld [vmem:[%s10640_s14 + $0x10] sm:$0xff]  ;;  %v6633_v23 = vld [vmem:[%s10640_s14 + $0x38] sm:$0xff] }
 0x600   : > { %11186 = vst [vmem:[#allocation151_spill] sm:$0xff] %v8315_v14  ;;  %v6632_v29 = vld [vmem:[%s10640_s14 + $0x30] sm:$0xff] }
 0x601   : > { %v4450_v43 = vadd.f32 %v4447_v12, %v4428_v18  ;;  %11182 = vst [vmem:[#allocation147_spill] sm:$0xff] %v8256_v34  ;;  %v6629_v18 = vld [vmem:[%s10640_s14 + $0x18] sm:$0xff]  ;;  %v4494_v12 = vpop.permute.xlu1 %4493 }
 0x603   : > { %v4472_v56 = vadd.f32 %v4469_v38, %v4450_v43  ;;  %v8287_v43 = vrot.slane %v8283_v30, %v7251_v5 }
 0x605   : > { %4480 = vrot.lane.b32.xlu0 %v4472_v56, %s10925_s29  ;;  %11184 = vst [vmem:[#allocation149_spill] sm:$0xff] %v8287_v43  ;;  %v6630_v56 = vld [vmem:[%s10640_s14 + $0x20] sm:$0xff]  ;;  %v8329_v38 = vpop.permute.xlu1 %4511 }
 0x609   : > { %4541 = vperm.xlu0 %6904, %v4508_v53  }
 0x60d   : > { %6907 = vset.pattern.permute.xlu0 %v11075_v13  ;;  %v6627_v13 = vld [vmem:[%s10640_s14 + $0x8] sm:$0xff] }
 0x60e   : > { %3608 = vperm.xlu0 %6907, %v7848_v60   ;;  %v6623_v60 = vld [vmem:[%s11037_s3 + $0x4] sm:$0x3]  ;;  %s11002_s3 = smov 50  }
 0x60f   : > { %v8270_v53 = vrot.slane %v6623_v60, %v7251_v5 }
 0x611   : > { %11183 = vst [vmem:[#allocation148_spill] sm:$0xff] %v8270_v53 }
 0x612   : > { %4501 = vperm.xlu0 %6907, %v4498_v16   ;;  %v8331_v16 = vpop.permute.xlu0 %2860 }
 0x613   : > { %11187 = vst [vmem:[#allocation152_spill] sm:$0xff] %v8331_v16 }
 0x616   : > { %4602 = vrot.lane.b32.xlu0 %v8256_v34, %s10848_s20  ;;  %s10903_s20 = smov 93  }
 0x61a   : > { %4617 = vperm.xlu0 %6907, %v4614_v46   ;;  %v8333_v46 = vpop.permute.xlu1 %4525 }
 0x61e   : > { %4651 = vperm.xlu0 %6907, %v6627_v13  }
 0x622   : > { %4683 = vrot.lane.b32.xlu0 %v8270_v53, %s10899_s17 }
 0x626   : > { %4699 = vperm.xlu0 %6907, %v6628_v32   ;;  %v8337_v32 = vpop.permute.xlu1 %4557 }
 0x62a   : > { %4726 = vperm.xlu0 %6907, %v6629_v18  }
 0x62e   : > { %4759 = vrot.lane.b32.xlu0 %v8287_v43, %s7032_s30 }
 0x632   : > { %4775 = vperm.xlu0 %6907, %v6630_v56  }
 0x636   : > { %4808 = vrot.lane.b32.xlu0 %v8301_v44, %s10850_s19  ;;  %s11194_s19 = smov 127  }
 0x63a   : > { %4824 = vperm.xlu0 %6907, %v6631_v1   ;;  %v8343_v1 = vpop.permute.xlu1 %4586 }
 0x63b   : > { %11190 = vst [vmem:[#allocation155_spill] sm:$0xff] %v8343_v1 }
 0x63e   : > { %4857 = vrot.lane.b32.xlu0 %v8315_v14, %s7034_s26  ;;  %v8346_v21 = vpop.permute.xlu1 %4604 }
 0x63f   : > { %11191 = vst [vmem:[#allocation156_spill] sm:$0xff] %v8346_v21 }
 0x642   : > { %4873 = vperm.xlu0 %6907, %v6632_v29   ;;  %v4496_v29 = vmul.f32 %v4494_v12, %v7754_v57  ;;  %v4636_v63 = vpop.permute.xlu1 %4635 }
 0x643   : > { %v4644_v10 = vmul.f32 0.0, %v4636_v63 }
 0x646   : > { %4897 = vrot.lane.b32.xlu0 %v8256_v34, %s10903_s20 }
 0x64a   : > { %4913 = vperm.xlu0 %6907, %v6633_v23  }
 0x64e   : > { %4936 = vrot.lane.b32.xlu0 %v8201_v58, %s10925_s29 }
 0x677   : > { %v8335_v13 = vpop.permute.xlu0 %4480 }
 0x678   : > { %11188 = vst [vmem:[#allocation153_spill] sm:$0xff] %v8335_v13 }
 0x684   : > { %v8339_v18 = vpop.permute.xlu0 %4541 }
 0x689   : > { %v8341_v56 = vpop.permute.xlu0 %3608 }
 0x68a   : > { %11189 = vst [vmem:[#allocation154_spill] sm:$0xff] %v8341_v56 }
 0x68d   : > { %v4502_v23 = vpop.permute.xlu0 %4501 }
 0x68e   : > { %v4504_v25 = vadd.f32 %v4502_v23, %v4496_v29 }
 0x690   : > { %v4506_v31 = vmax.f32 %v4504_v25, 0.0 }
 0x691   : > { %v8348_v16 = vpop.permute.xlu0 %4602 }
 0x692   : > { %11192 = vst [vmem:[#allocation157_spill] sm:$0xff] %v8348_v16  ;;  %v4517_v35 = vrot.slane %v4506_v31, %v7251_v5  ;;  %v4531_v13 = vrot.slane %v4506_v31, %v7254_v6  ;;  %v4547_v57 = vrot.slane %v4506_v31, %v7485_v55  ;;  %v4563_v3 = vrot.slane %v4506_v31, %v7480_v8  ;;  %v4638_v31 = vpop.permute.xlu1 %4637 }
 0x694   : > { %v4522_v4 = vmul.f32 %v4517_v35, %v8329_v38  ;;  %v4536_v1 = vmul.f32 %v4531_v13, %v8333_v46  ;;  %v4552_v16 = vmul.f32 %v4547_v57, %v8339_v18  ;;  %v4568_v47 = vmul.f32 %v4563_v3, %v8337_v32 }
 0x695   : > { %v8352_v24 = vpop.permute.xlu0 %4617 }
 0x696   : > { %11193 = vst [vmem:[#allocation158_spill] sm:$0xff] %v8352_v24  ;;  %v4538_v21 = vadd.f32 %v4536_v1, %v4522_v4  ;;  %v8364_v24 = vrot.slane %v6623_v60, %v7254_v6  ;;  %v4640_v60 = vsel %vm10957_vm7, %v4636_v63, %v4638_v31  ;;  %vm1915_vm7 = vcmask 916480  }
 0x698   : > { %v4554_v13 = vadd.f32 %v4552_v16, %v4538_v21 }
 0x699   : > { %v8357_v29 = vpop.permute.xlu0 %4651 }
 0x69a   : > { %v4654_v25 = vmul.f32 %v8357_v29, %v4644_v10  ;;  %v8374_v4 = vadd.f32 %v4568_v47, %v4554_v13  ;;  %v8385_v47 = vrot.slane %v8283_v30, %v7254_v6  ;;  %v8401_v30 = vrot.slane %v8297_v28, %v7254_v6 }
 0x69b   : > { %v8414_v28 = vrot.slane %v8311_v0, %v7254_v6 }
 0x69c   : > { %4660 = vrot.lane.b32.xlu1 %v4654_v25, %s11194_s19  ;;  %v4645_v3 = vmul.f32 %v4640_v60, %v8374_v4  ;;  %v4497_v60 = vmul.f32 %v4494_v12, %v7772_v49  ;;  %11196 = vst [vmem:[#allocation159_spill] sm:$0xff] %v8401_v30 }
 0x69d   : > { %v8366_v35 = vpop.permute.xlu0 %4683 }
 0x69e   : > { %v4692_v11 = vmul.f32 0.0, %v8366_v35  ;;  %v4655_v25 = vmul.f32 %v8357_v29, %v4645_v3 }
 0x6a0   : > { %4685 = vrot.lane.b32.xlu1 %v8364_v24, %s10899_s17  ;;  %s7041_s17 = smov 97  }
 0x6a1   : > { %v8372_v10 = vpop.permute.xlu0 %4699 }
 0x6a2   : > { %v4702_v1 = vmul.f32 %v8372_v10, %v4692_v11 }
 0x6a4   : > { %4708 = vrot.lane.b32.xlu1 %v4702_v1, %s11195_s23 }
 0x6a5   : > { %v4727_v21 = vpop.permute.xlu0 %4726 }
 0x6a6   : > { %v4729_v16 = vmul.f32 0.0, %v4727_v21  ;;  %v4730_v57 = vmul.f32 %v4727_v21, %v8374_v4 }
 0x6a8   : > { %4735 = vrot.lane.b32.xlu1 %v4729_v16, %s10901_s18  ;;  %4737 = vrot.lane.b32.xlu0 %v4730_v57, %s10901_s18  ;;  %v4505_v16 = vadd.f32 %v4502_v23, %v4497_v60 }
 0x6a9   : > { %v8387_v11 = vpop.permute.xlu0 %4759 }
 0x6aa   : > { %v4768_v63 = vmul.f32 0.0, %v8387_v11 }
 0x6ac   : > { %4761 = vrot.lane.b32.xlu1 %v8385_v47, %s7032_s30  ;;  %4662 = vrot.lane.b32.xlu0 %v4655_v25, %s11194_s19  ;;  %s11197_s30 = smov 82  }
 0x6ad   : > { %v8394_v13 = vpop.permute.xlu0 %4775 }
 0x6ae   : > { %v4778_v1 = vmul.f32 %v8394_v13, %v4768_v63  ;;  %v4507_v63 = vmax.f32 %v4505_v16, 0.0 }
 0x6b0   : > { %4784 = vrot.lane.b32.xlu1 %v4778_v1, %s7037_s21  ;;  %v4521_v23 = vrot.slane %v4507_v63, %v7251_v5  ;;  %v4535_v1 = vrot.slane %v4507_v63, %v7254_v6  ;;  %v4551_v42 = vrot.slane %v4507_v63, %v7485_v55  ;;  %v4567_v37 = vrot.slane %v4507_v63, %v7480_v8 }
 0x6b1   : > { %v8403_v3 = vpop.permute.xlu0 %4808 }
 0x6b2   : > { %v4817_v57 = vmul.f32 0.0, %v8403_v3  ;;  %v4553_v50 = vmul.f32 %v4551_v42, %v8339_v18 }
 0x6b4   : > { %4810 = vrot.lane.b32.xlu1 %v8401_v30, %s11197_s30  ;;  %s7039_s30 = smov 122  }
 0x6b5   : > { %v8408_v25 = vpop.permute.xlu0 %4824 }
 0x6b6   : > { %v4827_v49 = vmul.f32 %v8408_v25, %v4817_v57  ;;  %v4523_v57 = vmul.f32 %v4521_v23, %v8329_v38 }
 0x6b8   : > { %4833 = vrot.lane.b32.xlu1 %v4827_v49, %s7038_s27  ;;  %v4537_v49 = vmul.f32 %v4535_v1, %v8333_v46  ;;  %v4569_v1 = vmul.f32 %v4567_v37, %v8337_v32 }
 0x6b9   : > { %v8416_v12 = vpop.permute.xlu0 %4857 }
 0x6ba   : > { %v4866_v60 = vmul.f32 0.0, %v8416_v12  ;;  %v4539_v40 = vadd.f32 %v4537_v49, %v4523_v57 }
 0x6bc   : > { %4859 = vrot.lane.b32.xlu1 %v8414_v28, %s7034_s26  ;;  %v4555_v46 = vadd.f32 %v4553_v50, %v4539_v40  ;;  %s11198_s26 = smov 112  }
 0x6bd   : > { %v8423_v16 = vpop.permute.xlu0 %4873 }
 0x6be   : > { %v4876_v0 = vmul.f32 %v8423_v16, %v4866_v60  ;;  %v8442_v60 = vadd.f32 %v4569_v1, %v4555_v46  ;;  %v8471_v46 = vld [vmem:[#allocation3 + $0x8] sm:$0xf] }
 0x6bf   : > { %v1412_v1 = vrot.slane %v8471_v46, %v7251_v5 }
 0x6c0   : > { %4882 = vrot.lane.b32.xlu1 %v4876_v0, %s7039_s30  ;;  %11199 = vst [vmem:[#allocation160_spill] sm:$0xff] %v8442_v60  ;;  %v4646_v42 = vmul.f32 %v4638_v31, %v8442_v60  ;;  %v4731_v18 = vmul.f32 %v4727_v21, %v8442_v60 }
 0x6c1   : > { %v8430_v22 = vpop.permute.xlu0 %4897 }
 0x6c2   : > { %v4906_v41 = vmul.f32 0.0, %v8430_v22  ;;  %v4656_v63 = vmul.f32 %v8357_v29, %v4646_v42  ;;  %v8462_v29 = vld [vmem:[#allocation3] sm:$0xff]  ;;  %v1446_v42 = vrot.slane %v8471_v46, %v7254_v6 }
 0x6c3   : > { %v1438_v0 = vrot.slane %v8462_v29, %v7254_v6 }
 0x6c4   : > { %4899 = vrot.lane.b32.xlu1 %v8193_v62, %s10903_s20  ;;  %s7042_s20 = smov 108  }
 0x6c5   : > { %v8437_v38 = vpop.permute.xlu0 %4913 }
 0x6c6   : > { %v4916_v23 = vmul.f32 %v8437_v38, %v4906_v41 }
 0x6c8   : > { %4922 = vrot.lane.b32.xlu1 %v4916_v23, %s11198_s26  ;;  %v1475_v23 = vrot.slane %v8462_v29, %v7485_v55 }
 0x6cc   : > { %4938 = vrot.lane.b32.xlu1 %v8206_v9, %s10925_s29  ;;  %v11204_v9 = vrot.slane %v7443_v26, 4 }
 0x6d0   : > { %4739 = vrot.lane.b32.xlu1 %v4731_v18, %s10901_s18  ;;  %s10923_s18 = smov 109  }
 0x6d4   : > { %4664 = vrot.lane.b32.xlu1 %v4656_v63, %s11194_s19 }
 0x70e   : > { %v8451_v50 = vpop.permute.xlu1 %4660 }
 0x70f   : > { %11200 = vst [vmem:[#allocation161_spill] sm:$0xff] %v8451_v50 }
 0x712   : > { %v4686_v41 = vpop.permute.xlu1 %4685 }
 0x713   : > { %v4688_v40 = vsel %vm10958_vm8, %v8366_v35, %v4686_v41  ;;  %v4694_v37 = vmul.f32 %v4686_v41, %v8442_v60  ;;  %v1404_v35 = vrot.slane %v8462_v29, %v7251_v5  ;;  %vm5603_vm8 = vcmask 15360  }
 0x714   : > { %v4693_v32 = vmul.f32 %v4688_v40, %v8374_v4  ;;  %v1453_v40 = vrot.slane %v1438_v0, %v7254_v6  ;;  %v1217_v0 = vld [vmem:[#allocation3] sm:$0xff] }
 0x715   : > { %v4704_v31 = vmul.f32 %v8372_v10, %v4694_v37  ;;  %v1419_v41 = vrot.slane %v1404_v35, %v7251_v5  ;;  %v1512_v37 = vrot.slane %v8462_v29, %v7480_v8  ;;  %v1483_v35 = vrot.slane %v8471_v46, %v7485_v55 }
 0x716   : > { %v4703_v21 = vmul.f32 %v8372_v10, %v4693_v32  ;;  %v8459_v57 = vpop.permute.xlu1 %4708  ;;  %v1442_v10 = vrot.slane %v8462_v29, %v7759_v52 }
 0x717   : > { %11201 = vst [vmem:[#allocation162_spill] sm:$0xff] %v8459_v57  ;;  %4712 = vrot.lane.b32.xlu1 %v4704_v31, %s11195_s23  ;;  %v1490_v57 = vrot.slane %v1475_v23, %v7485_v55  ;;  %v1428_v36 = vmul.f32 %v1419_v41, %v7487_v20  ;;  %v1527_v56 = vrot.slane %v1512_v37, %v7480_v8  ;;  %v11205_v23 = vrot.slane %v7456_v54, 4 }
 0x718   : > { %4710 = vrot.lane.b32.xlu0 %v4703_v21, %s11195_s23  ;;  %v1408_v21 = vrot.slane %v8462_v29, %v7762_v27  ;;  %v1498_v41 = vrot.slane %v1483_v35, %v7485_v55 }
 0x71a   : > { %v8465_v49 = vpop.permute.xlu1 %4735 }
 0x71b   : > { %11202 = vst [vmem:[#allocation163_spill] sm:$0xff] %v8465_v49 }
 0x71e   : > { %v4762_v63 = vpop.permute.xlu1 %4761 }
 0x71f   : > { %v4764_v32 = vsel %vm4763_vm9, %v8387_v11, %v4762_v63  ;;  %v4770_v31 = vmul.f32 %v4762_v63, %v8442_v60  ;;  %v1427_v11 = vrot.slane %v1412_v1, %v7251_v5  ;;  %v1461_v63 = vrot.slane %v1446_v42, %v7254_v6 }
 0x720   : > { %v4769_v18 = vmul.f32 %v4764_v32, %v8374_v4  ;;  %v1462_v32 = vmul.f32 %v1453_v40, %v7434_v45  ;;  %v1751_v1 = vsel %vm11004_vm2, %v11205_v23, %v7456_v54  ;;  %v1457_v42 = vrot.slane %v1442_v10, %v7254_v6 }
 0x721   : > { %v4780_v49 = vmul.f32 %v8394_v13, %v4770_v31  ;;  %v8508_v31 = vsel %vm1572_vm10, %v11204_v9, %v7443_v26  ;;  %v1520_v9 = vrot.slane %v8471_v46, %v7480_v8  ;;  %v1499_v40 = vmul.f32 %v1490_v57, %v7439_v48 }
 0x722   : > { %v4779_v50 = vmul.f32 %v8394_v13, %v4769_v18  ;;  %v8499_v2 = vpop.permute.xlu1 %4784  ;;  %v1423_v13 = vrot.slane %v1408_v21, %v7251_v5  ;;  %v8517_v18 = vmul.f32 %v1751_v1, %v1217_v0  ;;  %v1430_v37 = vmul.f32 %v1427_v11, %v7487_v20 }
 0x723   : > { %11203 = vst [vmem:[#allocation164_spill] sm:$0xff] %v8499_v2  ;;  %4788 = vrot.lane.b32.xlu1 %v4780_v49, %s7037_s21  ;;  %v1464_v49 = vmul.f32 %v1461_v63, %v7434_v45  ;;  %v1479_v21 = vrot.slane %v8462_v29, %v7791_v33  ;;  %v1465_v0 = vadd.f32 %v1462_v32, %v1428_v36  ;;  %vm5124_vm9 = vcmask 809984  }
 0x724   : > { %4786 = vrot.lane.b32.xlu0 %v4779_v50, %s7037_s21  ;;  %v1536_v23 = vmul.f32 %v1527_v56, %v7401_v17  ;;  %v6911_v50 = vld [vmem:[#allocation3 + $0x4] sm:$0xff]  ;;  %v1429_v11 = vmul.f32 %v1423_v13, %v7487_v20  ;;  %v1463_v63 = vmul.f32 %v1457_v42, %v7434_v45  ;;  %v1535_v62 = vrot.slane %v1520_v9, %v7480_v8  ;;  %s11218_s21 = smov 111  }
 0x725   : > { %v1936_v1 = vrot.slane %v6911_v50, %v7251_v5  ;;  %v1960_v35 = vrot.slane %v6911_v50, %v7254_v6  ;;  %v1940_v36 = vrot.slane %v6911_v50, %v7762_v27  ;;  %v1964_v56 = vrot.slane %v6911_v50, %v7759_v52 }
 0x726   : > { %v4811_v10 = vpop.permute.xlu1 %4810  ;;  %v1467_v34 = vadd.f32 %v1464_v49, %v1430_v37  ;;  %v1494_v14 = vrot.slane %v1479_v21, %v7485_v55  ;;  %v1986_v42 = vrot.slane %v6911_v50, %v7485_v55  ;;  %v1502_v9 = vadd.f32 %v1499_v40, %v1465_v0 }
 0x727   : > { %v4813_v2 = vsel %vm4812_vm11, %v8403_v3, %v4811_v10  ;;  %v4819_v57 = vmul.f32 %v4811_v10, %v8442_v60  ;;  %v1516_v3 = vrot.slane %v8462_v29, %v7788_v39  ;;  %v1946_v45 = vrot.slane %v1936_v1, %v7251_v5 }
 0x728   : > { %v4818_v58 = vmul.f32 %v4813_v2, %v8374_v4  ;;  %v1970_v2 = vrot.slane %v1960_v35, %v7254_v6  ;;  %v1501_v37 = vmul.f32 %v1498_v41, %v7439_v48  ;;  %v1466_v49 = vadd.f32 %v1463_v63, %v1429_v11 }
 0x729   : > { %v4829_v32 = vmul.f32 %v8408_v25, %v4819_v57  ;;  %v2012_v21 = vrot.slane %v6911_v50, %v7480_v8  ;;  %v1990_v10 = vrot.slane %v6911_v50, %v7791_v33  ;;  %v1538_v35 = vmul.f32 %v1535_v62, %v7401_v17 }
 0x72a   : > { %v4828_v20 = vmul.f32 %v8408_v25, %v4818_v58  ;;  %v8544_v13 = vpop.permute.xlu1 %4833  ;;  %v1950_v58 = vrot.slane %v1940_v36, %v7251_v5  ;;  %v1974_v25 = vrot.slane %v1964_v56, %v7254_v6  ;;  %v1504_v1 = vadd.f32 %v1501_v37, %v1467_v34 }
 0x72b   : > { %11206 = vst [vmem:[#allocation165_spill] sm:$0xff] %v8544_v13  ;;  %4837 = vrot.lane.b32.xlu1 %v4829_v32, %s7038_s27  ;;  %v1500_v57 = vmul.f32 %v1494_v14, %v7439_v48  ;;  %v1531_v40 = vrot.slane %v1516_v3, %v7480_v8  ;;  %v1951_v0 = vmul.f32 %v1946_v45, %v7466_v59  ;;  %v11251_v13 = vld [vmem:[#allocation25_spill] sm:$0xff]  ;;  %vm5031_vm11 = vcmask 891904  }
 0x72c   : > { %4835 = vrot.lane.b32.xlu0 %v4828_v20, %s7038_s27  ;;  %v1975_v11 = vmul.f32 %v1970_v2, %v7460_v15  ;;  %v1996_v63 = vrot.slane %v1986_v42, %v7485_v55  ;;  %v2016_v36 = vrot.slane %v6911_v50, %v7788_v39  ;;  %v2022_v62 = vrot.slane %v2012_v21, %v7480_v8  ;;  %s11220_s27 = smov 95  }
 0x72d   : > { %v1503_v34 = vadd.f32 %v1500_v57, %v1466_v49  ;;  %v1952_v14 = vmul.f32 %v1950_v58, %v7466_v59  ;;  %v1976_v3 = vmul.f32 %v1974_v25, %v7460_v15  ;;  %v2000_v20 = vrot.slane %v1990_v10, %v7485_v55 }
 0x72e   : > { %v4860_v41 = vpop.permute.xlu1 %4859  ;;  %v1539_v42 = vadd.f32 %v1536_v23, %v1502_v9  ;;  %v1537_v50 = vmul.f32 %v1531_v40, %v7401_v17  ;;  %v1541_v57 = vadd.f32 %v1538_v35, %v1504_v1  ;;  %v1977_v59 = vadd.f32 %v1975_v11, %v1951_v0  ;;  %v11209_v35 = vld [vmem:[#allocation33_spill] sm:$0xff] }
 0x72f   : > { %v4862_v56 = vsel %vm4861_vm12, %v8416_v12, %v4860_v41  ;;  %v4868_v32 = vmul.f32 %v4860_v41, %v8442_v60  ;;  %v11207_v12 = vrot.slane %v7443_v26, 4  ;;  %v2026_v15 = vrot.slane %v2016_v36, %v7480_v8  ;;  %v11210_v0 = vld [vmem:[#allocation41_spill] sm:$0xff]  ;;  %v11211_v36 = vld [vmem:[#allocation42_spill] sm:$0xff] }
 0x730   : > { %v4867_v48 = vmul.f32 %v4862_v56, %v8374_v4  ;;  %v8582_v10 = vadd.f32 %v1537_v50, %v1503_v34  ;;  %v2001_v23 = vmul.f32 %v1996_v63, %v7471_v61  ;;  %v2027_v17 = vmul.f32 %v2022_v62, %v7477_v7 }
 0x731   : > { %v4878_v37 = vmul.f32 %v8423_v16, %v4868_v32  ;;  %v8575_v41 = vmul.f32 %v11207_v12, %v8471_v46  ;;  %v8588_v26 = vmul.f32 %v8508_v31, %v8462_v29  ;;  %v1747_v46 = vld [vmem:[#allocation3 + $0x8] sm:$0xf]  ;;  %v2002_v9 = vmul.f32 %v2000_v20, %v7471_v61 }
 0x732   : > { %v4877_v49 = vmul.f32 %v8423_v16, %v4867_v48  ;;  %v8578_v21 = vpop.permute.xlu1 %4882  ;;  %v1978_v16 = vadd.f32 %v1976_v3, %v1952_v14  ;;  %v2439_v1 = vmul.f32 %v7557_v19, %v1946_v45  ;;  %v2473_v40 = vmul.f32 %v11209_v35, %v1970_v2 }
 0x733   : > { %11208 = vst [vmem:[#allocation166_spill] sm:$0xff] %v8578_v21  ;;  %4886 = vrot.lane.b32.xlu1 %v4878_v37, %s7039_s30  ;;  %v2510_v11 = vmul.f32 %v11210_v0, %v1996_v63  ;;  %v2547_v56 = vmul.f32 %v11211_v36, %v2022_v62  ;;  %v1598_v32 = vrot.slane %v8575_v41, %v7251_v5  ;;  %v11212_v61 = vrot.slane %v7456_v54, 4 }
 0x734   : > { %4884 = vrot.lane.b32.xlu0 %v4877_v49, %s7039_s30  ;;  %v2003_v31 = vadd.f32 %v2001_v23, %v1977_v59  ;;  %v2028_v34 = vmul.f32 %v2026_v15, %v7477_v7  ;;  %v1632_v48 = vrot.slane %v8575_v41, %v7254_v6  ;;  %v1590_v63 = vrot.slane %v8588_v26, %v7251_v5  ;;  %s11285_s30 = smov 93  }
 0x735   : > { %v8603_v14 = vmul.f32 %v11212_v61, %v1747_v46  ;;  %v1624_v62 = vrot.slane %v8588_v26, %v7254_v6  ;;  %v2004_v3 = vadd.f32 %v2002_v9, %v1978_v16  ;;  %v2440_v37 = vmul.f32 %v7557_v19, %v1950_v58 }
 0x736   : > { %v4900_v29 = vpop.permute.xlu1 %4899  ;;  %v2474_v54 = vmul.f32 %v11209_v35, %v1974_v25  ;;  %v2476_v12 = vadd.f32 %v2473_v40, %v2439_v1  ;;  %v1613_v49 = vrot.slane %v1598_v32, %v7251_v5  ;;  %v1647_v23 = vrot.slane %v1632_v48, %v7254_v6  ;;  %v11213_v32 = vld [vmem:[#allocation35_spill] sm:$0xff]  ;;  %v11214_v48 = vld [vmem:[#allocation26_spill] sm:$0xff] }
 0x737   : > { %v4902_v45 = vsel %vm4901_vm13, %v8430_v22, %v4900_v29  ;;  %v4908_v2 = vmul.f32 %v4900_v29, %v8442_v60  ;;  %v2511_v22 = vmul.f32 %v11210_v0, %v2000_v20  ;;  %v1776_v46 = vrot.slane %v8603_v14, %v7251_v5 }
 0x738   : > { %v4907_v7 = vmul.f32 %v4902_v45, %v8374_v4  ;;  %v1810_v16 = vrot.slane %v8603_v14, %v7254_v6  ;;  %v2548_v19 = vmul.f32 %v11211_v36, %v2026_v15  ;;  %v1669_v58 = vrot.slane %v8575_v41, %v7485_v55 }
 0x739   : > { %v4918_v50 = vmul.f32 %v8437_v38, %v4908_v2  ;;  %v1605_v25 = vrot.slane %v1590_v63, %v7251_v5  ;;  %v1639_v20 = vrot.slane %v1624_v62, %v7254_v6  ;;  %v2030_v9 = vadd.f32 %v2028_v34, %v2004_v3 }
 0x73a   : > { %v4917_v59 = vmul.f32 %v8437_v38, %v4907_v7  ;;  %v2029_v38 = vadd.f32 %v2027_v17, %v2003_v31  ;;  %v2477_v1 = vadd.f32 %v2474_v54, %v2440_v37  ;;  %v1594_v35 = vrot.slane %v8588_v26, %v7762_v27 }
 0x73b   : > { %4926 = vrot.lane.b32.xlu1 %v4918_v50, %s11198_s26  ;;  %v2513_v40 = vadd.f32 %v2510_v11, %v2476_v12  ;;  %v1706_v0 = vrot.slane %v8575_v41, %v7480_v8  ;;  %v1661_v15 = vrot.slane %v8588_v26, %v7485_v55  ;;  %v1628_v36 = vrot.slane %v8588_v26, %v7759_v52  ;;  %v11215_v12 = vld [vmem:[#allocation37_spill] sm:$0xff] }
 0x73c   : > { %4924 = vrot.lane.b32.xlu0 %v4917_v59, %s11198_s26  ;;  %v1616_v29 = vmul.f32 %v1613_v49, %v11213_v32  ;;  %v1650_v61 = vmul.f32 %v1647_v23, %v11214_v48  ;;  %v1791_v17 = vrot.slane %v1776_v46, %v7251_v5  ;;  %v1825_v31 = vrot.slane %v1810_v16, %v7254_v6  ;;  %v11216_v49 = vld [vmem:[#allocation30_spill] sm:$0xff]  ;;  %v11217_v23 = vld [vmem:[#allocation28_spill] sm:$0xff] }
 0x73d   : > { %v1684_v11 = vrot.slane %v1669_v58, %v7485_v55  ;;  %v1614_v41 = vmul.f32 %v1605_v25, %v11213_v32  ;;  %v1648_v34 = vmul.f32 %v1639_v20, %v11214_v48  ;;  %v1698_v45 = vrot.slane %v8588_v26, %v7480_v8 }
 0x73e   : > { %v2514_v2 = vadd.f32 %v2511_v22, %v2477_v1  ;;  %v1847_v63 = vrot.slane %v8603_v14, %v7485_v55  ;;  %v1609_v62 = vrot.slane %v1594_v35, %v7251_v5  ;;  %v2550_v7 = vadd.f32 %v2547_v56, %v2513_v40 }
 0x73f   : > { %1545 = vrot.lane.b32.xlu1 %v1539_v42, %s11194_s19  ;;  %v1768_v42 = vrot.slane %v8517_v18, %v7251_v5  ;;  %v1721_v3 = vrot.slane %v1706_v0, %v7480_v8  ;;  %v1643_v37 = vrot.slane %v1628_v36, %v7254_v6  ;;  %v1802_v54 = vrot.slane %v8517_v18, %v7254_v6 }
 0x740   : > { %1549 = vrot.lane.b32.xlu0 %v1541_v57, %s11194_s19  ;;  %v1653_v50 = vadd.f32 %v1650_v61, %v1616_v29  ;;  %v1676_v57 = vrot.slane %v1661_v15, %v7485_v55  ;;  %v1794_v22 = vmul.f32 %v1791_v17, %v11215_v12  ;;  %v1828_v59 = vmul.f32 %v1825_v31, %v11216_v49  ;;  %v11219_v61 = vld [vmem:[#allocation22_spill] sm:$0xff] }
 0x741   : > { %v1687_v46 = vmul.f32 %v1684_v11, %v11217_v23  ;;  %v1651_v56 = vadd.f32 %v1648_v34, %v1614_v41  ;;  %v1713_v16 = vrot.slane %v1698_v45, %v7480_v8  ;;  %v1665_v58 = vrot.slane %v8588_v26, %v7791_v33  ;;  %v11221_v41 = vld [vmem:[#allocation31_spill] sm:$0xff] }
 0x742   : > { %v1862_v25 = vrot.slane %v1847_v63, %v7485_v55  ;;  %v1884_v20 = vrot.slane %v8603_v14, %v7480_v8  ;;  %v1615_v1 = vmul.f32 %v1609_v62, %v11213_v32  ;;  %v1783_v35 = vrot.slane %v1768_v42, %v7251_v5 }
 0x743   : > { %1547 = vrot.lane.b32.xlu1 %v8582_v10, %s11194_s19  ;;  %v1649_v10 = vmul.f32 %v1643_v37, %v11214_v48  ;;  %v1817_v40 = vrot.slane %v1802_v54, %v7254_v6  ;;  %v1772_v0 = vrot.slane %v8517_v18, %v7762_v27  ;;  %v1806_v15 = vrot.slane %v8517_v18, %v7759_v52 }
 0x744   : > { %2033 = vrot.lane.b32.xlu0 %v2029_v38, %s11218_s21  ;;  %v1690_v38 = vadd.f32 %v1687_v46, %v1653_v50  ;;  %v1685_v36 = vmul.f32 %v1676_v57, %v11217_v23  ;;  %v1831_v29 = vadd.f32 %v1828_v59, %v1794_v22  ;;  %v1702_v14 = vrot.slane %v8588_v26, %v7788_v39  ;;  %v11222_v59 = vld [vmem:[#allocation24_spill] sm:$0xff] }
 0x745   : > { %v2551_v32 = vadd.f32 %v2548_v19, %v2514_v2  ;;  %v1724_v48 = vmul.f32 %v1721_v3, %v11219_v61  ;;  %v1680_v17 = vrot.slane %v1665_v58, %v7485_v55  ;;  %v1839_v31 = vrot.slane %v8517_v18, %v7485_v55 }
 0x746   : > { %v1688_v11 = vadd.f32 %v1685_v36, %v1651_v56  ;;  %v1865_v34 = vmul.f32 %v1862_v25, %v11221_v41  ;;  %v1899_v45 = vrot.slane %v1884_v20, %v7480_v8  ;;  %v1792_v63 = vmul.f32 %v1783_v35, %v11215_v12 }
 0x747   : > { %2035 = vrot.lane.b32.xlu1 %v2030_v9, %s11218_s21  ;;  %v1652_v26 = vadd.f32 %v1649_v10, %v1615_v1  ;;  %v1826_v9 = vmul.f32 %v1817_v40, %v11216_v49  ;;  %v1787_v19 = vrot.slane %v1772_v0, %v7251_v5  ;;  %v1821_v2 = vrot.slane %v1806_v15, %v7254_v6 }
 0x748   : > { %2556 = vrot.lane.b32.xlu0 %v2550_v7, %s11220_s27  ;;  %v1727_v62 = vadd.f32 %v1724_v48, %v1690_v38  ;;  %v1722_v42 = vmul.f32 %v1713_v16, %v11219_v61  ;;  %v1868_v3 = vadd.f32 %v1865_v34, %v1831_v29  ;;  %v1717_v7 = vrot.slane %v1702_v14, %v7480_v8  ;;  %v4937_v48 = vpop.permute.xlu0 %4936 }
 0x749   : > { %v1686_v37 = vmul.f32 %v1680_v17, %v11217_v23  ;;  %v1854_v54 = vrot.slane %v1839_v31, %v7485_v55  ;;  %v1876_v50 = vrot.slane %v8517_v18, %v7480_v8  ;;  %v1843_v57 = vrot.slane %v8517_v18, %v7791_v33 }
 0x74a   : > { %v1725_v22 = vadd.f32 %v1722_v42, %v1688_v11  ;;  %v1902_v46 = vmul.f32 %v1899_v45, %v11222_v59  ;;  %v1829_v16 = vadd.f32 %v1826_v9, %v1792_v63  ;;  %v1793_v58 = vmul.f32 %v1787_v19, %v11215_v12  ;;  %v6634_v12 = vld [vmem:[%s10640_s14 + $0x40] sm:$0xff] }
 0x74b   : > { %2558 = vrot.lane.b32.xlu1 %v2551_v32, %s11220_s27  ;;  %v1689_v56 = vadd.f32 %v1686_v37, %v1652_v26  ;;  %v1827_v25 = vmul.f32 %v1821_v2, %v11216_v49  ;;  %v1723_v20 = vmul.f32 %v1717_v7, %v11219_v61  ;;  %v1863_v1 = vmul.f32 %v1854_v54, %v11221_v41  ;;  %v8746_v2 = vpop.permute.xlu1 %4922 }
 0x74c   : > { %1735 = vrot.lane.b32.xlu0 %v1727_v62, %s11195_s23  ;;  %v1905_v23 = vadd.f32 %v1902_v46, %v1868_v3  ;;  %v1891_v35 = vrot.slane %v1876_v50, %v7480_v8  ;;  %v1858_v10 = vrot.slane %v1843_v57, %v7485_v55  ;;  %v1880_v40 = vrot.slane %v8517_v18, %v7788_v39  ;;  %v8726_v17 = vpop.permute.xlu0 %4737 }
 0x74d   : > { %v1726_v0 = vadd.f32 %v1723_v20, %v1689_v56  ;;  %v1866_v49 = vadd.f32 %v1863_v1, %v1829_v16  ;;  %v1830_v15 = vadd.f32 %v1827_v25, %v1793_v58  ;;  %11223 = vst [vmem:[#allocation33_spill] sm:$0xff] %v8726_v17  ;;  %11230 = vst [vmem:[#allocation28_spill] sm:$0xff] %v8746_v2  ;;  %v4944_v37 = vmul.f32 0.0, %v4937_v48  ;;  %v6635_v56 = vld [vmem:[%s10640_s14 + $0x48] sm:$0xff] }
 0x74e   : > { %v1900_v38 = vmul.f32 %v1891_v35, %v11222_v59  ;;  %v1864_v36 = vmul.f32 %v1858_v10, %v11221_v41  ;;  %v1895_v29 = vrot.slane %v1880_v40, %v7480_v8  ;;  %v2142_v2 = vrot.slane %v7822_v51, %v7791_v33 }
 0x74f   : > { %1731 = vrot.lane.b32.xlu1 %v1725_v22, %s11195_s23  ;;  %v4939_v42 = vpop.permute.xlu1 %4938  ;;  %vm2214_vm12 = vcmask 900096  }
 0x750   : > { %1913 = vrot.lane.b32.xlu0 %v1905_v23, %s11198_s26  ;;  %v1903_v14 = vadd.f32 %v1900_v38, %v1866_v49  ;;  %v1867_v18 = vadd.f32 %v1864_v36, %v1830_v15  ;;  %v1901_v32 = vmul.f32 %v1895_v29, %v11222_v59  ;;  %v8728_v31 = vpop.permute.xlu0 %4662  ;;  %v4940_v3 = vsel %vm2739_vm14, %v4937_v48, %v4939_v42 }
 0x751   : > { %11224 = vst [vmem:[#allocation41_spill] sm:$0xff] %v8728_v31  ;;  %v4945_v54 = vmul.f32 %v4940_v3, %v8374_v4  ;;  %v4946_v59 = vmul.f32 %v4939_v42, %v8442_v60 }
 0x752   : > { %v1904_v61 = vadd.f32 %v1901_v32, %v1867_v18 }
 0x753   : > { %1733 = vrot.lane.b32.xlu1 %v1726_v0, %s11195_s23  ;;  %v8765_v16 = vpop.permute.xlu1 %4739 }
 0x754   : > { %4951 = vperm.xlu0 %6907, %v6634_v12   ;;  %11231 = vst [vmem:[#allocation22_spill] sm:$0xff] %v8765_v16  ;;  %v11253_v16 = vld [vmem:[#allocation38_spill] sm:$0xff] }
 0x757   : > { %1909 = vrot.lane.b32.xlu1 %v1903_v14, %s11198_s26  ;;  %v8767_v58 = vpop.permute.xlu1 %4664 }
 0x758   : > { %11232 = vst [vmem:[#allocation31_spill] sm:$0xff] %v8767_v58 }
 0x75b   : > { %1911 = vrot.lane.b32.xlu1 %v1904_v61, %s11198_s26 }
 0x789   : > { %v8769_v25 = vpop.permute.xlu1 %4712 }
 0x78a   : > { %v8730_v11 = vpop.permute.xlu0 %4710  ;;  %11233 = vst [vmem:[#allocation24_spill] sm:$0xff] %v8769_v25 }
 0x78b   : > { %11225 = vst [vmem:[#allocation42_spill] sm:$0xff] %v8730_v11 }
 0x795   : > { %v8771_v23 = vpop.permute.xlu1 %4788 }
 0x796   : > { %v8732_v41 = vpop.permute.xlu0 %4786  ;;  %11234 = vst [vmem:[#allocation167_spill] sm:$0xff] %v8771_v23  ;;  %v11252_v23 = vld [vmem:[#allocation39_spill] sm:$0xff] }
 0x797   : > { %11226 = vst [vmem:[#allocation35_spill] sm:$0xff] %v8732_v41 }
 0x79d   : > { %v8773_v20 = vpop.permute.xlu1 %4837 }
 0x79e   : > { %v8734_v34 = vpop.permute.xlu0 %4835  ;;  %11235 = vst [vmem:[#allocation168_spill] sm:$0xff] %v8773_v20 }
 0x79f   : > { %11227 = vst [vmem:[#allocation26_spill] sm:$0xff] %v8734_v34 }
 0x7a5   : > { %v8775_v1 = vpop.permute.xlu1 %4886 }
 0x7a6   : > { %v8736_v45 = vpop.permute.xlu0 %4884  ;;  %11236 = vst [vmem:[#allocation169_spill] sm:$0xff] %v8775_v1 }
 0x7a7   : > { %11228 = vst [vmem:[#allocation37_spill] sm:$0xff] %v8736_v45 }
 0x7ad   : > { %v8777_v35 = vpop.permute.xlu1 %4926 }
 0x7ae   : > { %v8738_v63 = vpop.permute.xlu0 %4924  ;;  %11237 = vst [vmem:[#allocation170_spill] sm:$0xff] %v8777_v35 }
 0x7af   : > { %11229 = vst [vmem:[#allocation30_spill] sm:$0xff] %v8738_v63 }
 0x7b1   : > { %v8779_v10 = vpop.permute.xlu1 %1545 }
 0x7b2   : > { %v8740_v26 = vpop.permute.xlu0 %1549 }
 0x7b5   : > { %v8781_v40 = vpop.permute.xlu1 %1547 }
 0x7b6   : > { %v8742_v9 = vpop.permute.xlu0 %2033 }
 0x7b9   : > { %v8783_v0 = vpop.permute.xlu1 %2035 }
 0x7ba   : > { %v8744_v19 = vpop.permute.xlu0 %2556 }
 0x7bd   : > { %v8785_v12 = vpop.permute.xlu1 %2558 }
 0x7be   : > { %v8748_v62 = vpop.permute.xlu0 %1735 }
 0x7c1   : > { %v8787_v49 = vpop.permute.xlu1 %1731 }
 0x7c2   : > { %v8751_v7 = vpop.permute.xlu0 %1913 }
 0x7c5   : > { %v8789_v15 = vpop.permute.xlu1 %1733 }
 0x7c9   : > { %v8791_v38 = vpop.permute.xlu1 %1909 }
 0x7cd   : > { %v8793_v36 = vpop.permute.xlu1 %1911 }
 0x7cf   : > { %v4952_v50 = vpop.permute.xlu0 %4951 }
 0x7d0   : > { %v4954_v57 = vmul.f32 %v4952_v50, %v4944_v37  ;;  %v4955_v22 = vmul.f32 %v4952_v50, %v4945_v54  ;;  %v4956_v46 = vmul.f32 %v4952_v50, %v4946_v59 }
 0x7d2   : > { %4962 = vrot.lane.b32.xlu0 %v4955_v22, %s11218_s21  ;;  %4960 = vrot.lane.b32.xlu1 %v4954_v57, %s11218_s21  ;;  %v6636_v22 = vld [vmem:[%s10640_s14 + $0x50] sm:$0xff] }
 0x7d6   : > { %4974 = vrot.lane.b32.xlu0 %v8270_v53, %s11220_s27  ;;  %4964 = vrot.lane.b32.xlu1 %v4956_v46, %s11218_s21 }
 0x7da   : > { %4989 = vperm.xlu0 %6907, %v6635_v56   ;;  %4976 = vrot.lane.b32.xlu1 %v8364_v24, %s11220_s27 }
 0x844   : > { %v8795_v29 = vpop.permute.xlu1 %4960  ;;  %v8799_v18 = vpop.permute.xlu0 %4962 }
 0x845   : > { %11238 = vst [vmem:[#allocation171_spill] sm:$0xff] %v8795_v29  ;;  %11240 = vst [vmem:[#allocation173_spill] sm:$0xff] %v8799_v18  ;;  %v11249_v29 = vld [vmem:[#allocation71_spill] sm:$0xff] }
 0x846   : > { %v2246_v18 = vrot.slane %v11249_v29, %v7251_v5  ;;  %v2280_v35 = vrot.slane %v11249_v29, %v7254_v6 }
 0x848   : > { %v8797_v14 = vpop.permute.xlu1 %4964  ;;  %v4975_v61 = vpop.permute.xlu0 %4974  ;;  %v2261_v45 = vrot.slane %v2246_v18, %v7251_v5 }
 0x849   : > { %11239 = vst [vmem:[#allocation172_spill] sm:$0xff] %v8797_v14  ;;  %v4982_v42 = vmul.f32 0.0, %v4975_v61 }
 0x84a   : > { %v2270_v41 = vmul.f32 %v2261_v45, %v11252_v23 }
 0x84c   : > { %v4977_v32 = vpop.permute.xlu1 %4976 }
 0x84d   : > { %v4978_v48 = vsel %vm2562_vm15, %v4975_v61, %v4977_v32  ;;  %v4984_v57 = vmul.f32 %v4977_v32, %v8442_v60 }
 0x84e   : > { %v4983_v3 = vmul.f32 %v4978_v48, %v8374_v4 }
 0x855   : > { %v4990_v37 = vpop.permute.xlu0 %4989 }
 0x856   : > { %v4992_v54 = vmul.f32 %v4990_v37, %v4982_v42  ;;  %v4993_v50 = vmul.f32 %v4990_v37, %v4983_v3  ;;  %v4994_v59 = vmul.f32 %v4990_v37, %v4984_v57  ;;  %v6637_v42 = vld [vmem:[%s10640_s14 + $0x58] sm:$0xff] }
 0x858   : > { %4998 = vrot.lane.b32.xlu1 %v4992_v54, %s11146_s1  ;;  %5000 = vrot.lane.b32.xlu0 %v4993_v50, %s11146_s1  ;;  %v2067_v54 = vrot.slane %v7822_v51, %v7251_v5  ;;  %v2101_v50 = vrot.slane %v7822_v51, %v7254_v6 }
 0x85c   : > { %5002 = vrot.lane.b32.xlu1 %v4994_v59, %s11146_s1  ;;  %5016 = vperm.xlu0 %6907, %v6636_v22   ;;  %v2082_v22 = vrot.slane %v2067_v54, %v7251_v5  ;;  %v2116_v59 = vrot.slane %v2101_v50, %v7254_v6  ;;  %v2175_v54 = vrot.slane %v7822_v51, %v7480_v8 }
 0x8ca   : > { %v8810_v46 = vpop.permute.xlu0 %5000  ;;  %v8822_v3 = vpop.permute.xlu1 %4998 }
 0x8cb   : > { %11241 = vst [vmem:[#allocation174_spill] sm:$0xff] %v8810_v46  ;;  %11242 = vst [vmem:[#allocation175_spill] sm:$0xff] %v8822_v3 }
 0x8ce   : > { %v8824_v37 = vpop.permute.xlu1 %5002 }
 0x8cf   : > { %11243 = vst [vmem:[#allocation176_spill] sm:$0xff] %v8824_v37  ;;  %v11247_v37 = vld [vmem:[#allocation34_spill] sm:$0xff] }
 0x8d0   : > { %v2091_v3 = vmul.f32 %v2082_v22, %v11247_v37 }
 0x8d7   : > { %v5017_v56 = vpop.permute.xlu0 %5016 }
 0x8d8   : > { %v5019_v61 = vmul.f32 0.0, %v5017_v56  ;;  %v5020_v48 = vmul.f32 %v5017_v56, %v8374_v4  ;;  %v5021_v32 = vmul.f32 %v5017_v56, %v8442_v60 }
 0x8da   : > { %5025 = vrot.lane.b32.xlu1 %v5019_v61, %s10923_s18  ;;  %5027 = vrot.lane.b32.xlu0 %v5020_v48, %s10923_s18  ;;  %v2138_v61 = vrot.slane %v7822_v51, %v7485_v55  ;;  %v2071_v48 = vrot.slane %v7822_v51, %v7762_v27 }
 0x8dc   : > { %v2153_v50 = vrot.slane %v2138_v61, %v7485_v55  ;;  %v2179_v61 = vrot.slane %v7822_v51, %v7788_v39 }
 0x8de   : > { %5029 = vrot.lane.b32.xlu1 %v5021_v32, %s10923_s18  ;;  %5040 = vrot.lane.b32.xlu0 %v8287_v43, %s7041_s17  ;;  %v2105_v32 = vrot.slane %v7822_v51, %v7759_v52  ;;  %s11259_s18 = smov 96  }
 0x8e0   : > { %v2120_v14 = vrot.slane %v2105_v32, %v7254_v6  ;;  %v11250_v32 = vld [vmem:[#allocation36_spill] sm:$0xff] }
 0x8e1   : > { %v2162_v63 = vmul.f32 %v2153_v50, %v11250_v32  ;;  %v2157_v50 = vrot.slane %v2142_v2, %v7485_v55 }
 0x8e2   : > { %5042 = vrot.lane.b32.xlu1 %v8385_v47, %s7041_s17  ;;  %5056 = vperm.xlu0 %6907, %v6637_v42   ;;  %s7043_s17 = smov 98  }
 0x94c   : > { %v8830_v57 = vpop.permute.xlu1 %5025  ;;  %v8842_v42 = vpop.permute.xlu0 %5027 }
 0x94d   : > { %11244 = vst [vmem:[#allocation177_spill] sm:$0xff] %v8830_v57  ;;  %11246 = vst [vmem:[#allocation179_spill] sm:$0xff] %v8842_v42  ;;  %v11248_v57 = vld [vmem:[#allocation32_spill] sm:$0xff] }
 0x94e   : > { %v2125_v46 = vmul.f32 %v2116_v59, %v11248_v57  ;;  %v2190_v59 = vrot.slane %v2175_v54, %v7480_v8  ;;  %v2126_v21 = vmul.f32 %v2120_v14, %v11248_v57  ;;  %v2284_v54 = vrot.slane %v11249_v29, %v7759_v52 }
 0x94f   : > { %v2317_v14 = vrot.slane %v11249_v29, %v7485_v55 }
 0x950   : > { %v8834_v56 = vpop.permute.xlu1 %5029  ;;  %v2128_v22 = vadd.f32 %v2125_v46, %v2091_v3  ;;  %v2295_v46 = vrot.slane %v2280_v35, %v7254_v6  ;;  %v2250_v3 = vrot.slane %v11249_v29, %v7762_v27  ;;  %v2199_v34 = vmul.f32 %v2190_v59, %v11251_v13 }
 0x951   : > { %11245 = vst [vmem:[#allocation178_spill] sm:$0xff] %v8834_v56  ;;  %v2086_v56 = vrot.slane %v2071_v48, %v7251_v5  ;;  %v5041_v48 = vpop.permute.xlu0 %5040  ;;  %v2194_v35 = vrot.slane %v2179_v61, %v7480_v8  ;;  %v2332_v45 = vrot.slane %v2317_v14, %v7485_v55  ;;  %v2354_v61 = vrot.slane %v11249_v29, %v7480_v8 }
 0x952   : > { %v2165_v51 = vadd.f32 %v2162_v63, %v2128_v22  ;;  %v2304_v17 = vmul.f32 %v2295_v46, %v11253_v16  ;;  %v2265_v63 = vrot.slane %v2250_v3, %v7251_v5  ;;  %v2299_v22 = vrot.slane %v2284_v54, %v7254_v6 }
 0x953   : > { %v2092_v1 = vmul.f32 %v2086_v56, %v11247_v37  ;;  %v5049_v37 = vmul.f32 0.0, %v5041_v48  ;;  %v2321_v46 = vrot.slane %v11249_v29, %v7791_v33  ;;  %v2200_v54 = vmul.f32 %v2194_v35, %v11251_v13 }
 0x954   : > { %v8855_v42 = vpop.permute.xlu1 %5042  ;;  %v2202_v3 = vadd.f32 %v2199_v34, %v2165_v51  ;;  %v2369_v13 = vrot.slane %v2354_v61, %v7480_v8  ;;  %v6638_v51 = vld [vmem:[%s10640_s14 + $0x60] sm:$0xff] }
 0x955   : > { %v5045_v20 = vsel %vm5044_vm0, %v5041_v48, %v8855_v42  ;;  %v2129_v57 = vadd.f32 %v2126_v21, %v2092_v1  ;;  %v11254_v48 = vld [vmem:[#allocation72_spill] sm:$0xff]  ;;  %v2163_v1 = vmul.f32 %v2157_v50, %v11250_v32  ;;  %v2271_v32 = vmul.f32 %v2265_v63, %v11252_v23 }
 0x956   : > { %v5050_v18 = vmul.f32 %v5045_v20, %v8374_v4  ;;  %v2592_v20 = vrot.slane %v11254_v48, %v7251_v5  ;;  %v2626_v21 = vrot.slane %v11254_v48, %v7254_v6  ;;  %v2305_v50 = vmul.f32 %v2299_v22, %v11253_v16  ;;  %v11256_v63 = vld [vmem:[#allocation48_spill] sm:$0xff] }
 0x957   : > { %v2596_v11 = vrot.slane %v11254_v48, %v7762_v27  ;;  %v2663_v16 = vrot.slane %v11254_v48, %v7485_v55  ;;  %vm1232_vm0 = vcmask 908288  }
 0x958   : > { %v2607_v14 = vrot.slane %v2592_v20, %v7251_v5  ;;  %v2641_v25 = vrot.slane %v2626_v21, %v7254_v6  ;;  %v2308_v35 = vadd.f32 %v2305_v50, %v2271_v32  ;;  %v11257_v20 = vld [vmem:[#allocation45_spill] sm:$0xff] }
 0x959   : > { %v2611_v21 = vrot.slane %v2596_v11, %v7251_v5 }
 0x95a   : > { %v2616_v22 = vmul.f32 %v2607_v14, %v11256_v63 }
 0x95b   : > { %v2617_v50 = vmul.f32 %v2611_v21, %v11256_v63 }
 0x95d   : > { %v8878_v56 = vpop.permute.xlu0 %5056 }
 0x95e   : > { %v5059_v2 = vmul.f32 %v8878_v56, %v5049_v37  ;;  %v5060_v59 = vmul.f32 %v8878_v56, %v5050_v18  ;;  %v2166_v37 = vadd.f32 %v2163_v1, %v2129_v57  ;;  %v2307_v18 = vadd.f32 %v2304_v17, %v2270_v41 }
 0x95f   : > { %v2336_v17 = vrot.slane %v2321_v46, %v7485_v55  ;;  %v2358_v41 = vrot.slane %v11249_v29, %v7788_v39  ;;  %v2650_v29 = vmul.f32 %v2641_v25, %v11257_v20  ;;  %v2667_v25 = vrot.slane %v11254_v48, %v7791_v33 }
 0x960   : > { %5065 = vrot.lane.b32.xlu1 %v5059_v2, %s7042_s20  ;;  %5067 = vrot.lane.b32.xlu0 %v5060_v59, %s7042_s20  ;;  %v2630_v2 = vrot.slane %v11254_v48, %v7759_v52  ;;  %v11255_v59 = vld [vmem:[#allocation40_spill] sm:$0xff]  ;;  %v2203_v23 = vadd.f32 %v2200_v54, %v2166_v37  ;;  %v2678_v54 = vrot.slane %v2663_v16, %v7485_v55 }
 0x961   : > { %v2341_v34 = vmul.f32 %v2332_v45, %v11255_v59  ;;  %v11258_v45 = vld [vmem:[#allocation27_spill] sm:$0xff]  ;;  %v2342_v46 = vmul.f32 %v2336_v17, %v11255_v59  ;;  %v2700_v37 = vrot.slane %v11254_v48, %v7480_v8  ;;  %v2653_v32 = vadd.f32 %v2650_v29, %v2616_v22 }
 0x962   : > { %v2645_v1 = vrot.slane %v2630_v2, %v7254_v6  ;;  %v2378_v61 = vmul.f32 %v2369_v13, %v11258_v45  ;;  %v11260_v59 = vld [vmem:[#allocation47_spill] sm:$0xff]  ;;  %v2682_v17 = vrot.slane %v2667_v25, %v7485_v55 }
 0x963   : > { %v2344_v57 = vadd.f32 %v2341_v34, %v2307_v18  ;;  %v2345_v18 = vadd.f32 %v2342_v46, %v2308_v35  ;;  %v2687_v34 = vmul.f32 %v2678_v54, %v11260_v59  ;;  %v2715_v13 = vrot.slane %v2700_v37, %v7480_v8 }
 0x964   : > { %2208 = vrot.lane.b32.xlu1 %v2202_v3, %s11146_s1  ;;  %5080 = vrot.lane.b32.xlu0 %v8301_v44, %s7043_s17  ;;  %v2373_v3 = vrot.slane %v2358_v41, %v7480_v8  ;;  %v2651_v14 = vmul.f32 %v2645_v1, %v11257_v20  ;;  %v2704_v41 = vrot.slane %v11254_v48, %v7788_v39 }
 0x965   : > { %v2381_v11 = vadd.f32 %v2378_v61, %v2344_v57  ;;  %v11261_v57 = vld [vmem:[#allocation49_spill] sm:$0xff]  ;;  %v2688_v63 = vmul.f32 %v2682_v17, %v11260_v59  ;;  %v5051_v48 = vmul.f32 %v8855_v42, %v8442_v60 }
 0x966   : > { %v2379_v2 = vmul.f32 %v2373_v3, %v11258_v45  ;;  %v2724_v35 = vmul.f32 %v2715_v13, %v11261_v57  ;;  %v2719_v22 = vrot.slane %v2704_v41, %v7480_v8 }
 0x967   : > { %v5061_v45 = vmul.f32 %v8878_v56, %v5051_v48 }
 0x968   : > { %2210 = vrot.lane.b32.xlu1 %v2203_v23, %s11146_s1  ;;  %5096 = vperm.xlu0 %6907, %v6638_v51   ;;  %v2382_v16 = vadd.f32 %v2379_v2, %v2345_v18  ;;  %v2690_v23 = vadd.f32 %v2687_v34, %v2653_v32  ;;  %v2654_v51 = vadd.f32 %v2651_v14, %v2617_v50 }
 0x969   : > { %v2725_v21 = vmul.f32 %v2719_v22, %v11261_v57 }
 0x96a   : > { %v2727_v20 = vadd.f32 %v2724_v35, %v2690_v23  ;;  %v2691_v29 = vadd.f32 %v2688_v63, %v2654_v51  ;;  %v6639_v23 = vld [vmem:[%s10640_s14 + $0x68] sm:$0xff] }
 0x96c   : > { %2387 = vrot.lane.b32.xlu1 %v2381_v11, %s11259_s18  ;;  %v2728_v1 = vadd.f32 %v2725_v21, %v2691_v29 }
 0x970   : > { %2389 = vrot.lane.b32.xlu1 %v2382_v16, %s11259_s18  ;;  %v11265_v16 = vld [vmem:[#allocation151_spill] sm:$0xff] }
 0x974   : > { %2733 = vrot.lane.b32.xlu1 %v2727_v20, %s10925_s29 }
 0x978   : > { %2735 = vrot.lane.b32.xlu1 %v2728_v1, %s10925_s29  ;;  %s7046_s29 = smov 106  }
 0x97c   : > { %5069 = vrot.lane.b32.xlu1 %v5061_v45, %s7042_s20  ;;  %s7044_s20 = smov 107  }
 0x980   : > { %5082 = vrot.lane.b32.xlu1 %v8401_v30, %s7043_s17  ;;  %s7045_s17 = smov 99  }
 0x9d2   : > { %v8955_v61 = vpop.permute.xlu1 %5065  ;;  %v8959_v3 = vpop.permute.xlu0 %5067 }
 0x9d3   : > { %11262 = vst [vmem:[#allocation34_spill] sm:$0xff] %v8955_v61  ;;  %11263 = vst [vmem:[#allocation32_spill] sm:$0xff] %v8959_v3 }
 0x9d6   : > { %v8957_v46 = vpop.permute.xlu1 %2208  ;;  %v5081_v37 = vpop.permute.xlu0 %5080 }
 0x9d7   : > { %v5089_v42 = vmul.f32 0.0, %v5081_v37 }
 0x9da   : > { %v8961_v54 = vpop.permute.xlu1 %2210 }
 0x9de   : > { %v8963_v25 = vpop.permute.xlu1 %2387 }
 0x9e2   : > { %v8965_v11 = vpop.permute.xlu1 %2389 }
 0x9e3   : > { %v5097_v56 = vpop.permute.xlu0 %5096 }
 0x9e4   : > { %v5099_v18 = vmul.f32 %v5097_v56, %v5089_v42 }
 0x9e6   : > { %5105 = vrot.lane.b32.xlu1 %v5099_v18, %s7044_s20  ;;  %v8967_v32 = vpop.permute.xlu1 %2733  ;;  %v6640_v18 = vld [vmem:[%s10640_s14 + $0x70] sm:$0xff] }
 0x9ea   : > { %v8969_v50 = vpop.permute.xlu1 %2735 }
 0x9ee   : > { %v8971_v14 = vpop.permute.xlu1 %5069 }
 0x9ef   : > { %11264 = vst [vmem:[#allocation71_spill] sm:$0xff] %v8971_v14  ;;  %v11296_v14 = vld [vmem:[#allocation23_spill] sm:$0xff] }
 0x9f2   : > { %v5083_v2 = vpop.permute.xlu1 %5082 }
 0x9f3   : > { %v5085_v59 = vsel %vm5084_vm1, %v5081_v37, %v5083_v2  ;;  %v5091_v34 = vmul.f32 %v5083_v2, %v8442_v60  ;;  %v11271_v2 = vld [vmem:[#allocation133_spill] sm:$0xff]  ;;  %vm5344_vm1 = vcmask 932864  }
 0x9f4   : > { %v5090_v13 = vmul.f32 %v5085_v59, %v8374_v4 }
 0x9f5   : > { %v5101_v17 = vmul.f32 %v5097_v56, %v5091_v34 }
 0x9f6   : > { %v5100_v41 = vmul.f32 %v5097_v56, %v5090_v13  ;;  %v11270_v56 = vld [vmem:[#allocation147_spill] sm:$0xff] }
 0x9f7   : > { %5109 = vrot.lane.b32.xlu1 %v5101_v17, %s7044_s20 }
 0x9f8   : > { %5107 = vrot.lane.b32.xlu0 %v5100_v41, %s7044_s20  ;;  %s11269_s20 = smov 109  }
 0x9fb   : > { %5122 = vrot.lane.b32.xlu1 %v8414_v28, %s7045_s17 }
 0x9fc   : > { %5120 = vrot.lane.b32.xlu0 %v11265_v16, %s7045_s17  ;;  %s11318_s17 = smov 79  }
 0xa00   : > { %5136 = vperm.xlu0 %6907, %v6639_v23  }
 0xa58   : > { %v8980_v51 = vpop.permute.xlu1 %5105 }
 0xa59   : > { %11266 = vst [vmem:[#allocation36_spill] sm:$0xff] %v8980_v51 }
 0xa69   : > { %v8982_v57 = vpop.permute.xlu1 %5109 }
 0xa6a   : > { %11267 = vst [vmem:[#allocation25_spill] sm:$0xff] %v8982_v57  ;;  %v8984_v35 = vpop.permute.xlu0 %5107 }
 0xa6b   : > { %11268 = vst [vmem:[#allocation39_spill] sm:$0xff] %v8984_v35 }
 0xa6d   : > { %v5123_v63 = vpop.permute.xlu1 %5122 }
 0xa6e   : > { %v5121_v22 = vpop.permute.xlu0 %5120  ;;  %v5131_v37 = vmul.f32 %v5123_v63, %v8442_v60 }
 0xa6f   : > { %v5125_v20 = vsel %vm5124_vm9, %v5121_v22, %v5123_v63  ;;  %v5129_v29 = vmul.f32 0.0, %v5121_v22  ;;  %vm5384_vm9 = vcmask 941056  }
 0xa70   : > { %v5130_v21 = vmul.f32 %v5125_v20, %v8374_v4 }
 0xa7b   : > { %v5137_v1 = vpop.permute.xlu0 %5136 }
 0xa7c   : > { %v5139_v48 = vmul.f32 %v5137_v1, %v5129_v29  ;;  %v5140_v45 = vmul.f32 %v5137_v1, %v5130_v21  ;;  %v5141_v42 = vmul.f32 %v5137_v1, %v5131_v37  ;;  %v6641_v37 = vld [vmem:[%s10640_s14 + $0x78] sm:$0xff] }
 0xa7e   : > { %5145 = vrot.lane.b32.xlu1 %v5139_v48, %s7046_s29  ;;  %5147 = vrot.lane.b32.xlu0 %v5140_v45, %s7046_s29  ;;  %v11275_v45 = vld [vmem:[#allocation134_spill] sm:$0xff] }
 0xa82   : > { %5149 = vrot.lane.b32.xlu1 %v5141_v42, %s7046_s29  ;;  %5160 = vrot.lane.b32.xlu0 %v11270_v56, %s11269_s20  ;;  %v11276_v42 = vld [vmem:[#allocation135_spill] sm:$0xff]  ;;  %s11283_s29 = smov 94  }
 0xa86   : > { %5162 = vrot.lane.b32.xlu1 %v11271_v2, %s11269_s20  ;;  %5175 = vperm.xlu0 %6907, %v6640_v18   ;;  %s11286_s20 = smov 113  }
 0xaf0   : > { %v8995_v59 = vpop.permute.xlu1 %5145  ;;  %v8999_v13 = vpop.permute.xlu0 %5147 }
 0xaf1   : > { %11272 = vst [vmem:[#allocation38_spill] sm:$0xff] %v8995_v59  ;;  %11274 = vst [vmem:[#allocation40_spill] sm:$0xff] %v8999_v13 }
 0xaf4   : > { %v8997_v34 = vpop.permute.xlu1 %5149  ;;  %v5161_v41 = vpop.permute.xlu0 %5160 }
 0xaf5   : > { %11273 = vst [vmem:[#allocation72_spill] sm:$0xff] %v8997_v34  ;;  %v5168_v63 = vmul.f32 0.0, %v5161_v41 }
 0xaf8   : > { %v5163_v17 = vpop.permute.xlu1 %5162 }
 0xaf9   : > { %v5164_v23 = vsel %vm5031_vm11, %v5161_v41, %v5163_v17  ;;  %v5170_v1 = vmul.f32 %v5163_v17, %v8442_v60 }
 0xafa   : > { %v5169_v22 = vmul.f32 %v5164_v23, %v8374_v4 }
 0xb01   : > { %v5176_v20 = vpop.permute.xlu0 %5175 }
 0xb02   : > { %v5178_v29 = vmul.f32 %v5176_v20, %v5168_v63  ;;  %v5179_v21 = vmul.f32 %v5176_v20, %v5169_v22  ;;  %v5180_v48 = vmul.f32 %v5176_v20, %v5170_v1 }
 0xb04   : > { %5184 = vrot.lane.b32.xlu1 %v5178_v29, %s11259_s18  ;;  %5186 = vrot.lane.b32.xlu0 %v5179_v21, %s11259_s18 }
 0xb08   : > { %5188 = vrot.lane.b32.xlu1 %v5180_v48, %s11259_s18  ;;  %5198 = vrot.lane.b32.xlu0 %v11275_v45, %s11146_s1 }
 0xb0c   : > { %5200 = vrot.lane.b32.xlu1 %v11276_v42, %s11146_s1  ;;  %5213 = vperm.xlu0 %6907, %v6641_v37  }
 0xb76   : > { %v9014_v18 = vpop.permute.xlu1 %5184  ;;  %v9018_v41 = vpop.permute.xlu0 %5186 }
 0xb77   : > { %11277 = vst [vmem:[#allocation48_spill] sm:$0xff] %v9014_v18  ;;  %11279 = vst [vmem:[#allocation27_spill] sm:$0xff] %v9018_v41 }
 0xb7a   : > { %v9016_v17 = vpop.permute.xlu1 %5188  ;;  %v5199_v63 = vpop.permute.xlu0 %5198 }
 0xb7b   : > { %11278 = vst [vmem:[#allocation45_spill] sm:$0xff] %v9016_v17  ;;  %v5206_v20 = vmul.f32 0.0, %v5199_v63 }
 0xb7e   : > { %v5201_v23 = vpop.permute.xlu1 %5200 }
 0xb7f   : > { %v5202_v22 = vsel %vm2214_vm12, %v5199_v63, %v5201_v23  ;;  %v5208_v34 = vmul.f32 %v5201_v23, %v8442_v60  ;;  %v6642_v63 = vld [vmem:[%s10640_s14 + $0x80] sm:$0xff] }
 0xb80   : > { %v5207_v29 = vmul.f32 %v5202_v22, %v8374_v4 }
 0xb87   : > { %v5214_v21 = vpop.permute.xlu0 %5213 }
 0xb88   : > { %v5216_v1 = vmul.f32 %v5214_v21, %v5206_v20  ;;  %v5217_v48 = vmul.f32 %v5214_v21, %v5207_v29  ;;  %v5218_v37 = vmul.f32 %v5214_v21, %v5208_v34 }
 0xb8a   : > { %5222 = vrot.lane.b32.xlu1 %v5216_v1, %s11220_s27  ;;  %5224 = vrot.lane.b32.xlu0 %v5217_v48, %s11220_s27 }
 0xb8e   : > { %5226 = vrot.lane.b32.xlu1 %v5218_v37, %s11220_s27  ;;  %5236 = vrot.lane.b32.xlu0 %v8270_v53, %s11218_s21 }
 0xb92   : > { %5238 = vrot.lane.b32.xlu1 %v8364_v24, %s11218_s21  ;;  %5251 = vperm.xlu0 %6907, %v6642_v63   ;;  %v6643_v63 = vld [vmem:[%s10640_s14 + $0x88] sm:$0xff] }
 0xbfc   : > { %v9033_v22 = vpop.permute.xlu1 %5222  ;;  %v9037_v20 = vpop.permute.xlu0 %5224 }
 0xbfd   : > { %11280 = vst [vmem:[#allocation47_spill] sm:$0xff] %v9033_v22  ;;  %11282 = vst [vmem:[#allocation151_spill] sm:$0xff] %v9037_v20 }
 0xc00   : > { %v9035_v23 = vpop.permute.xlu1 %5226  ;;  %v5237_v29 = vpop.permute.xlu0 %5236 }
 0xc01   : > { %11281 = vst [vmem:[#allocation49_spill] sm:$0xff] %v9035_v23  ;;  %v5244_v1 = vmul.f32 0.0, %v5237_v29 }
 0xc04   : > { %v5239_v34 = vpop.permute.xlu1 %5238 }
 0xc05   : > { %v5240_v21 = vsel %vm1232_vm0, %v5237_v29, %v5239_v34  ;;  %v5246_v41 = vmul.f32 %v5239_v34, %v8442_v60 }
 0xc06   : > { %v5245_v48 = vmul.f32 %v5240_v21, %v8374_v4 }
 0xc0d   : > { %v5252_v37 = vpop.permute.xlu0 %5251 }
 0xc0e   : > { %v5254_v17 = vmul.f32 %v5252_v37, %v5244_v1  ;;  %v5255_v18 = vmul.f32 %v5252_v37, %v5245_v48  ;;  %v5256_v23 = vmul.f32 %v5252_v37, %v5246_v41 }
 0xc10   : > { %5260 = vrot.lane.b32.xlu1 %v5254_v17, %s11283_s29  ;;  %5262 = vrot.lane.b32.xlu0 %v5255_v18, %s11283_s29  ;;  %v6644_v17 = vld [vmem:[%s10640_s14 + $0x90] sm:$0xff] }
 0xc14   : > { %5264 = vrot.lane.b32.xlu1 %v5256_v23, %s11283_s29  ;;  %5278 = vperm.xlu0 %6907, %v6643_v63  }
 0xc82   : > { %v9048_v29 = vpop.permute.xlu0 %5262  ;;  %v9062_v41 = vpop.permute.xlu1 %5260 }
 0xc83   : > { %11284 = vst [vmem:[#allocation180_spill] sm:$0xff] %v9048_v29  ;;  %11287 = vst [vmem:[#allocation181_spill] sm:$0xff] %v9062_v41 }
 0xc8f   : > { %v5279_v21 = vpop.permute.xlu0 %5278 }
 0xc90   : > { %v5281_v22 = vmul.f32 0.0, %v5279_v21  ;;  %v5282_v1 = vmul.f32 %v5279_v21, %v8374_v4  ;;  %v5283_v18 = vmul.f32 %v5279_v21, %v8442_v60 }
 0xc92   : > { %5287 = vrot.lane.b32.xlu1 %v5281_v22, %s11285_s30  ;;  %5289 = vrot.lane.b32.xlu0 %v5282_v1, %s11285_s30  ;;  %v9064_v22 = vpop.permute.xlu1 %5264 }
 0xc93   : > { %11288 = vst [vmem:[#allocation182_spill] sm:$0xff] %v9064_v22  ;;  %v11294_v22 = vld [vmem:[#allocation29_spill] sm:$0xff] }
 0xc96   : > { %5291 = vrot.lane.b32.xlu1 %v5283_v18, %s11285_s30  ;;  %5301 = vrot.lane.b32.xlu0 %v8287_v43, %s11286_s20  ;;  %s7048_s30 = smov 114  }
 0xc9a   : > { %5303 = vrot.lane.b32.xlu1 %v8385_v47, %s11286_s20  ;;  %5316 = vperm.xlu0 %6907, %v6644_v17   ;;  %s11322_s20 = smov 78  }
 0xd04   : > { %v9066_v23 = vpop.permute.xlu1 %5287  ;;  %v9070_v48 = vpop.permute.xlu0 %5289 }
 0xd05   : > { %11289 = vst [vmem:[#allocation183_spill] sm:$0xff] %v9066_v23  ;;  %11291 = vst [vmem:[#allocation185_spill] sm:$0xff] %v9070_v48 }
 0xd08   : > { %v9068_v34 = vpop.permute.xlu1 %5291  ;;  %v5302_v63 = vpop.permute.xlu0 %5301 }
 0xd09   : > { %11290 = vst [vmem:[#allocation184_spill] sm:$0xff] %v9068_v34  ;;  %v5309_v1 = vmul.f32 0.0, %v5302_v63  ;;  %v6645_v34 = vld [vmem:[%s10640_s14 + $0x98] sm:$0xff] }
 0xd0c   : > { %v5304_v37 = vpop.permute.xlu1 %5303 }
 0xd0d   : > { %v5305_v21 = vsel %vm1572_vm10, %v5302_v63, %v5304_v37  ;;  %v5311_v41 = vmul.f32 %v5304_v37, %v8442_v60  ;;  %v1218_v63 = vld [vmem:[#allocation3 + $0x8] sm:$0xf] }
 0xd0e   : > { %v5310_v18 = vmul.f32 %v5305_v21, %v8374_v4  ;;  %v11292_v21 = vld [vmem:[#allocation18_spill] sm:$0xff] }
 0xd15   : > { %v5317_v29 = vpop.permute.xlu0 %5316 }
 0xd16   : > { %v5319_v20 = vmul.f32 %v5317_v29, %v5309_v1  ;;  %v5320_v17 = vmul.f32 %v5317_v29, %v5310_v18  ;;  %v5321_v23 = vmul.f32 %v5317_v29, %v5311_v41  ;;  %v10938_v1 = vrot.slane %v11292_v21, 4 }
 0xd18   : > { %5325 = vrot.lane.b32.xlu1 %v5319_v20, %s7047_s2  ;;  %5327 = vrot.lane.b32.xlu0 %v5320_v17, %s7047_s2  ;;  %v1237_v37 = vmul.f32 %v10938_v1, %v1218_v63  ;;  %v11293_v17 = vld [vmem:[#allocation20_spill] sm:$0xff]  ;;  %v11295_v63 = vld [vmem:[#allocation21_spill] sm:$0xff] }
 0xd1a   : > { %v1257_v20 = vrot.slane %v1237_v37, %v7251_v5  ;;  %v1291_v29 = vrot.slane %v1237_v37, %v7254_v6  ;;  %v1328_v18 = vrot.slane %v1237_v37, %v7485_v55  ;;  %v1365_v13 = vrot.slane %v1237_v37, %v7480_v8 }
 0xd1c   : > { %5329 = vrot.lane.b32.xlu1 %v5321_v23, %s7047_s2  ;;  %5340 = vrot.lane.b32.xlu0 %v8301_v44, %s7048_s30  ;;  %v1272_v41 = vrot.slane %v1257_v20, %v7251_v5  ;;  %v1306_v23 = vrot.slane %v1291_v29, %v7254_v6  ;;  %v1343_v59 = vrot.slane %v1328_v18, %v7485_v55  ;;  %v11297_v29 = vld [vmem:[#allocation19_spill] sm:$0xff]  ;;  %s7049_s2 = smov 91  }
 0xd1d   : > { %v1380_v51 = vrot.slane %v1365_v13, %v7480_v8  ;;  %v11298_v18 = vld [vmem:[#allocation43_spill] sm:$0xff] }
 0xd1e   : > { %v1275_v48 = vmul.f32 %v1272_v41, %v11293_v17  ;;  %v1346_v1 = vmul.f32 %v1343_v59, %v11295_v63 }
 0xd1f   : > { %v1383_v20 = vmul.f32 %v1380_v51, %v11296_v14 }
 0xd20   : > { %5342 = vrot.lane.b32.xlu1 %v8401_v30, %s7048_s30  ;;  %5356 = vperm.xlu0 %6907, %v6645_v34   ;;  %v1309_v34 = vmul.f32 %v1306_v23, %v11294_v22  ;;  %v11306_v30 = vld [vmem:[#allocation62_spill] sm:$0xff]  ;;  %s7050_s30 = smov 115  }
 0xd22   : > { %v1312_v57 = vadd.f32 %v1309_v34, %v1275_v48  ;;  %v2216_v48 = vsel %vm2214_vm12, %v8961_v54, %v11298_v18  ;;  %v11304_v34 = vld [vmem:[#allocation56_spill] sm:$0xff] }
 0xd24   : > { %v1349_v35 = vadd.f32 %v1346_v1, %v1312_v57  ;;  %v11300_v57 = vld [vmem:[#allocation44_spill] sm:$0xff] }
 0xd25   : > { %v2394_v51 = vsel %vm615_vm3, %v8965_v11, %v11300_v57 }
 0xd26   : > { %v1386_v61 = vadd.f32 %v1383_v20, %v1349_v35  ;;  %v2741_v20 = vsel %vm2739_vm14, %v8969_v50, %v11304_v34 }
 0xd28   : > { %v1389_v3 = vadd.f32 %v1386_v61, %v11297_v29 }
 0xd2a   : > { %v1558_v58 = vadd.f32 %v8740_v26, %v1389_v3 }
 0xd2c   : > { %v1745_v41 = vadd.f32 %v8748_v62, %v1558_v58  ;;  %v11303_v58 = vld [vmem:[#allocation46_spill] sm:$0xff] }
 0xd2d   : > { %v2564_v1 = vsel %vm2562_vm15, %v8785_v12, %v11303_v58 }
 0xd2e   : > { %v1923_v23 = vadd.f32 %v8751_v7, %v1745_v41 }
 0xd30   : > { %v2043_v59 = vadd.f32 %v8783_v0, %v1923_v23 }
 0xd32   : > { %v2222_v35 = vadd.f32 %v2216_v48, %v2043_v59  ;;  %v11305_v48 = vld [vmem:[#allocation50_spill] sm:$0xff] }
 0xd34   : > { %v2400_v61 = vadd.f32 %v2394_v51, %v2222_v35 }
 0xd36   : > { %v2570_v41 = vadd.f32 %v2564_v1, %v2400_v61 }
 0xd38   : > { %v2747_v23 = vadd.f32 %v2741_v20, %v2570_v41 }
 0xd3a   : > { %v2756_v59 = vmul.f32 %v11305_v48, %v2747_v23 }
 0xd3c   : > { %v2765_v58 = vadd.f32 %v11306_v30, %v2756_v59 }
 0xd3e   : > { %v2768_v1 = vmax.f32 %v2765_v58, 0.0 }
 0xd8a   : > { %v9103_v37 = vpop.permute.xlu1 %5325  ;;  %v9110_v3 = vpop.permute.xlu0 %5327 }
 0xd8b   : > { %11299 = vst [vmem:[#allocation18_spill] sm:$0xff] %v9103_v37  ;;  %11302 = vst [vmem:[#allocation29_spill] sm:$0xff] %v9110_v3 }
 0xd8e   : > { %v9108_v13 = vpop.permute.xlu1 %5329  ;;  %v5341_v37 = vpop.permute.xlu0 %5340 }
 0xd8f   : > { %11301 = vst [vmem:[#allocation20_spill] sm:$0xff] %v9108_v13  ;;  %v5349_v51 = vmul.f32 0.0, %v5341_v37 }
 0xd92   : > { %v5343_v18 = vpop.permute.xlu1 %5342 }
 0xd93   : > { %v5345_v57 = vsel %vm5344_vm1, %v5341_v37, %v5343_v18  ;;  %v5351_v44 = vmul.f32 %v5343_v18, %v8442_v60  ;;  %v6646_v37 = vld [vmem:[%s10640_s14 + $0xa0] sm:$0xff]  ;;  %vm4741_vm1 = vcmask 1022976  }
 0xd94   : > { %v5350_v35 = vmul.f32 %v5345_v57, %v8374_v4 }
 0xd9b   : > { %v5357_v13 = vpop.permute.xlu0 %5356 }
 0xd9c   : > { %v5359_v3 = vmul.f32 %v5357_v13, %v5349_v51  ;;  %v5360_v31 = vmul.f32 %v5357_v13, %v5350_v35  ;;  %v5361_v61 = vmul.f32 %v5357_v13, %v5351_v44 }
 0xd9e   : > { %5365 = vrot.lane.b32.xlu1 %v5359_v3, %s7049_s2  ;;  %5367 = vrot.lane.b32.xlu0 %v5360_v31, %s7049_s2 }
 0xda2   : > { %5369 = vrot.lane.b32.xlu1 %v5361_v61, %s7049_s2  ;;  %2776 = vrot.lane.b32.xlu0 %v2768_v1, %s11127_s28  ;;  %s7051_s2 = smov 90   ;;  %v6647_v61 = vld [vmem:[%s10640_s14 + $0xa8] sm:$0xff] }
 0xda6   : > { %5382 = vrot.lane.b32.xlu1 %v8414_v28, %s7050_s30  ;;  %5380 = vrot.lane.b32.xlu0 %v11265_v16, %s7050_s30  ;;  %s11310_s30 = smov 125  }
 0xdaa   : > { %5396 = vperm.xlu0 %6907, %v6646_v37  }
 0xe10   : > { %v9128_v34 = vpop.permute.xlu0 %5367  ;;  %v9130_v20 = vpop.permute.xlu1 %5365 }
 0xe11   : > { %11307 = vst [vmem:[#allocation21_spill] sm:$0xff] %v9128_v34  ;;  %11308 = vst [vmem:[#allocation23_spill] sm:$0xff] %v9130_v20 }
 0xe14   : > { %v9132_v31 = vpop.permute.xlu0 %2776  ;;  %v9134_v44 = vpop.permute.xlu1 %5369 }
 0xe15   : > { %11309 = vst [vmem:[#allocation19_spill] sm:$0xff] %v9134_v44 }
 0xe18   : > { %v5381_v13 = vpop.permute.xlu0 %5380  ;;  %v5383_v3 = vpop.permute.xlu1 %5382 }
 0xe19   : > { %v5385_v41 = vsel %vm5384_vm9, %v5381_v13, %v5383_v3  ;;  %v5389_v23 = vmul.f32 0.0, %v5381_v13  ;;  %v5391_v35 = vmul.f32 %v5383_v3, %v8442_v60  ;;  %vm11006_vm9 = vcmask 1031168  }
 0xe1a   : > { %v5390_v18 = vmul.f32 %v5385_v41, %v8374_v4 }
 0xe25   : > { %v5397_v57 = vpop.permute.xlu0 %5396 }
 0xe26   : > { %v5399_v59 = vmul.f32 %v5397_v57, %v5389_v23  ;;  %v5400_v51 = vmul.f32 %v5397_v57, %v5390_v18  ;;  %v5401_v58 = vmul.f32 %v5397_v57, %v5391_v35 }
 0xe28   : > { %5405 = vrot.lane.b32.xlu1 %v5399_v59, %s7051_s2  ;;  %5407 = vrot.lane.b32.xlu0 %v5400_v51, %s7051_s2 }
 0xe2c   : > { %5409 = vrot.lane.b32.xlu1 %v5401_v58, %s7051_s2  ;;  %5420 = vrot.lane.b32.xlu0 %v11270_v56, %s11310_s30  ;;  %s7052_s2 = smov 80  }
 0xe30   : > { %5422 = vrot.lane.b32.xlu1 %v11271_v2, %s11310_s30  ;;  %5435 = vperm.xlu0 %6907, %v6647_v61   ;;  %s11333_s30 = smov 77  }
 0xe9a   : > { %v9145_v1 = vpop.permute.xlu1 %5405  ;;  %v9149_v13 = vpop.permute.xlu0 %5407 }
 0xe9b   : > { %11311 = vst [vmem:[#allocation43_spill] sm:$0xff] %v9145_v1  ;;  %11313 = vst [vmem:[#allocation46_spill] sm:$0xff] %v9149_v13 }
 0xe9e   : > { %v9147_v37 = vpop.permute.xlu1 %5409  ;;  %v5421_v41 = vpop.permute.xlu0 %5420 }
 0xe9f   : > { %11312 = vst [vmem:[#allocation44_spill] sm:$0xff] %v9147_v37  ;;  %v5428_v18 = vmul.f32 0.0, %v5421_v41  ;;  %v6648_v37 = vld [vmem:[%s10640_s14 + $0xb0] sm:$0xff] }
 0xea2   : > { %v5423_v3 = vpop.permute.xlu1 %5422 }
 0xea3   : > { %v5424_v23 = vsel %vm4741_vm1, %v5421_v41, %v5423_v3  ;;  %v5430_v58 = vmul.f32 %v5423_v3, %v8442_v60  ;;  %v11314_v41 = vrot.slane %v11292_v21, 4 }
 0xea4   : > { %v5429_v57 = vmul.f32 %v5424_v23, %v8374_v4  ;;  %v6912_v23 = vld [vmem:[#allocation3] sm:$0xff] }
 0xea5   : > { %v1233_v3 = vsel %vm1232_vm0, %v11314_v41, %v11292_v21 }
 0xeab   : > { %v5436_v59 = vpop.permute.xlu0 %5435 }
 0xeac   : > { %v5438_v51 = vmul.f32 %v5436_v59, %v5428_v18  ;;  %v5439_v35 = vmul.f32 %v5436_v59, %v5429_v57  ;;  %v5440_v61 = vmul.f32 %v5436_v59, %v5430_v58  ;;  %v1236_v18 = vmul.f32 %v6912_v23, %v1233_v3 }
 0xeae   : > { %5444 = vrot.lane.b32.xlu1 %v5438_v51, %s7052_s2  ;;  %5446 = vrot.lane.b32.xlu0 %v5439_v35, %s7052_s2  ;;  %v1249_v57 = vrot.slane %v1236_v18, %v7251_v5  ;;  %v1283_v59 = vrot.slane %v1236_v18, %v7254_v6  ;;  %v1253_v51 = vrot.slane %v1236_v18, %v7762_v27 }
 0xeaf   : > { %v1287_v58 = vrot.slane %v1236_v18, %v7759_v52  ;;  %v1324_v23 = vrot.slane %v1236_v18, %v7791_v33 }
 0xeb0   : > { %v1264_v35 = vrot.slane %v1249_v57, %v7251_v5  ;;  %v1268_v1 = vrot.slane %v1253_v51, %v7251_v5  ;;  %v1357_v57 = vrot.slane %v1236_v18, %v7480_v8 }
 0xeb1   : > { %v1302_v41 = vrot.slane %v1287_v58, %v7254_v6  ;;  %v1339_v34 = vrot.slane %v1324_v23, %v7485_v55 }
 0xeb2   : > { %5448 = vrot.lane.b32.xlu1 %v5440_v61, %s7052_s2  ;;  %5459 = vrot.lane.b32.xlu0 %v11275_v45, %s11195_s23  ;;  %v1298_v61 = vrot.slane %v1283_v59, %v7254_v6  ;;  %v1273_v21 = vmul.f32 %v1264_v35, %v11293_v17  ;;  %v1274_v44 = vmul.f32 %v1268_v1, %v11293_v17  ;;  %s11382_s2 = smov 15  }
 0xeb3   : > { %v1308_v59 = vmul.f32 %v1302_v41, %v11294_v22  ;;  %v1361_v35 = vrot.slane %v1236_v18, %v7788_v39  ;;  %v1372_v58 = vrot.slane %v1357_v57, %v7480_v8 }
 0xeb4   : > { %v1307_v3 = vmul.f32 %v1298_v61, %v11294_v22 }
 0xeb5   : > { %v1311_v61 = vadd.f32 %v1308_v59, %v1274_v44  ;;  %v1381_v2 = vmul.f32 %v1372_v58, %v11296_v14 }
 0xeb6   : > { %5461 = vrot.lane.b32.xlu1 %v11276_v42, %s11195_s23  ;;  %5474 = vperm.xlu0 %6907, %v6648_v37   ;;  %v1320_v37 = vrot.slane %v1236_v18, %v7485_v55  ;;  %v1310_v20 = vadd.f32 %v1307_v3, %v1273_v21  ;;  %v1345_v42 = vmul.f32 %v1339_v34, %v11295_v63 }
 0xeb8   : > { %v1335_v13 = vrot.slane %v1320_v37, %v7485_v55  ;;  %v1376_v37 = vrot.slane %v1361_v35, %v7480_v8  ;;  %v1348_v17 = vadd.f32 %v1345_v42, %v1311_v61  ;;  %v1739_v42 = vsel %vm11006_vm9, %v8789_v15, %v8748_v62 }
 0xeb9   : > { %v2215_v62 = vsel %vm2214_vm12, %v8957_v46, %v8961_v54  ;;  %v2740_v54 = vsel %vm2739_vm14, %v8967_v32, %v8969_v50 }
 0xeba   : > { %v1344_v51 = vmul.f32 %v1335_v13, %v11295_v63  ;;  %v1382_v22 = vmul.f32 %v1376_v37, %v11296_v14  ;;  %v1551_v13 = vsel %vm11004_vm2, %v8779_v10, %v8781_v40  ;;  %v1738_v63 = vsel %vm11006_vm9, %v8787_v49, %v8789_v15 }
 0xebb   : > { %v1916_v14 = vsel %vm1915_vm7, %v8791_v38, %v8793_v36  ;;  %v1917_v49 = vsel %vm1915_vm7, %v8793_v36, %v8751_v7  ;;  %v2393_v36 = vsel %vm615_vm3, %v8963_v25, %v8965_v11 }
 0xebc   : > { %v1347_v45 = vadd.f32 %v1344_v51, %v1310_v20  ;;  %v1385_v18 = vadd.f32 %v1382_v22, %v1348_v17 }
 0xebe   : > { %v1384_v1 = vadd.f32 %v1381_v2, %v1347_v45  ;;  %v1552_v2 = vsel %vm11004_vm2, %v8781_v40, %v8740_v26  ;;  %v1388_v10 = vadd.f32 %v1385_v18, %v11297_v29 }
 0xec0   : > { %v1387_v21 = vadd.f32 %v1384_v1, %v11297_v29  ;;  %v1557_v20 = vadd.f32 %v1552_v2, %v1388_v10  ;;  %v2037_v29 = vsel %vm1232_vm0, %v8742_v9, %v8783_v0 }
 0xec2   : > { %v1556_v34 = vadd.f32 %v1551_v13, %v1387_v21  ;;  %v1744_v41 = vadd.f32 %v1739_v42, %v1557_v20  ;;  %v6649_v21 = vld [vmem:[%s10640_s14 + $0xb8] sm:$0xff] }
 0xec4   : > { %v1743_v45 = vadd.f32 %v1738_v63, %v1556_v34  ;;  %v1922_v3 = vadd.f32 %v1917_v49, %v1744_v41 }
 0xec6   : > { %v1921_v44 = vadd.f32 %v1916_v14, %v1743_v45  ;;  %v2042_v15 = vadd.f32 %v2037_v29, %v1922_v3 }
 0xec8   : > { %v2041_v26 = vadd.f32 %v8742_v9, %v1921_v44  ;;  %v2221_v57 = vadd.f32 %v2215_v62, %v2042_v15  ;;  %v6650_v15 = vld [vmem:[%s10640_s14 + $0xc0] sm:$0xff] }
 0xeca   : > { %v2220_v38 = vadd.f32 %v8957_v46, %v2041_v26  ;;  %v2399_v51 = vadd.f32 %v2393_v36, %v2221_v57  ;;  %v2563_v46 = vsel %vm2562_vm15, %v8744_v19, %v8785_v12 }
 0xecc   : > { %v2398_v23 = vadd.f32 %v8963_v25, %v2220_v38  ;;  %v2569_v58 = vadd.f32 %v2563_v46, %v2399_v51  ;;  %v11324_v46 = vld [vmem:[#allocation61_spill] sm:$0xff] }
 0xece   : > { %v2568_v35 = vadd.f32 %v8744_v19, %v2398_v23  ;;  %v2746_v37 = vadd.f32 %v2740_v54, %v2569_v58 }
 0xed0   : > { %v2745_v9 = vadd.f32 %v8967_v32, %v2568_v35  ;;  %v2755_v18 = vmul.f32 %v11305_v48, %v2746_v37 }
 0xed2   : > { %v2754_v11 = vmul.f32 %v11305_v48, %v2745_v9  ;;  %v2764_v50 = vadd.f32 %v11306_v30, %v2755_v18  ;;  %v11323_v9 = vld [vmem:[#allocation65_spill] sm:$0xff] }
 0xed4   : > { %v2763_v13 = vadd.f32 %v11306_v30, %v2754_v11  ;;  %v2767_v63 = vmax.f32 %v2764_v50, 0.0 }
 0xed6   : > { %v2766_v32 = vmax.f32 %v2763_v13, 0.0 }
 0xf20   : > { %v9210_v40 = vpop.permute.xlu1 %5444  ;;  %v9225_v59 = vpop.permute.xlu0 %5446 }
 0xf21   : > { %11315 = vst [vmem:[#allocation56_spill] sm:$0xff] %v9210_v40  ;;  %11317 = vst [vmem:[#allocation62_spill] sm:$0xff] %v9225_v59  ;;  %v11363_v59 = vld [vmem:[#allocation79_spill] sm:$0xff] }
 0xf24   : > { %v9220_v7 = vpop.permute.xlu1 %5448  ;;  %v5460_v61 = vpop.permute.xlu0 %5459 }
 0xf25   : > { %11316 = vst [vmem:[#allocation50_spill] sm:$0xff] %v9220_v7  ;;  %v5467_v17 = vmul.f32 0.0, %v5460_v61  ;;  %v11362_v7 = vld [vmem:[#allocation129_spill] sm:$0xff] }
 0xf28   : > { %v5462_v0 = vpop.permute.xlu1 %5461 }
 0xf29   : > { %v5463_v25 = vsel %vm11006_vm9, %v5460_v61, %v5462_v0  ;;  %v5469_v48 = vmul.f32 %v5462_v0, %v8442_v60 }
 0xf2a   : > { %v5468_v1 = vmul.f32 %v5463_v25, %v8374_v4  ;;  %v11325_v25 = vld [vmem:[#allocation64_spill] sm:$0xff] }
 0xf31   : > { %v5475_v22 = vpop.permute.xlu0 %5474 }
 0xf32   : > { %v5477_v19 = vmul.f32 %v5475_v22, %v5467_v17  ;;  %v5478_v12 = vmul.f32 %v5475_v22, %v5468_v1  ;;  %v5479_v34 = vmul.f32 %v5475_v22, %v5469_v48  ;;  %v11326_v1 = vld [vmem:[#allocation69_spill] sm:$0xff] }
 0xf34   : > { %5483 = vrot.lane.b32.xlu1 %v5477_v19, %s11318_s17  ;;  %5485 = vrot.lane.b32.xlu0 %v5478_v12, %s11318_s17  ;;  %v11327_v19 = vld [vmem:[#allocation66_spill] sm:$0xff] }
 0xf38   : > { %2772 = vrot.lane.b32.xlu1 %v2766_v32, %s11127_s28  ;;  %5497 = vrot.lane.b32.xlu0 %v8270_v53, %s11194_s19 }
 0xf3c   : > { %2774 = vrot.lane.b32.xlu1 %v2767_v63, %s11127_s28  ;;  %5512 = vperm.xlu0 %6907, %v6649_v21   ;;  %v11328_v21 = vld [vmem:[#allocation68_spill] sm:$0xff] }
 0xf40   : > { %5487 = vrot.lane.b32.xlu1 %v5479_v34, %s11318_s17  ;;  %v11329_v34 = vld [vmem:[#allocation67_spill] sm:$0xff]  ;;  %s10993_s17 = smov 29  }
 0xf44   : > { %5499 = vrot.lane.b32.xlu1 %v8364_v24, %s11194_s19 }
 0xfa6   : > { %v9254_v30 = vpop.permute.xlu1 %5483  ;;  %v9258_v10 = vpop.permute.xlu0 %5485 }
 0xfa7   : > { %11319 = vst [vmem:[#allocation186_spill] sm:$0xff] %v9254_v30  ;;  %11320 = vst [vmem:[#allocation187_spill] sm:$0xff] %v9258_v10  ;;  %v11360_v30 = vld [vmem:[#allocation133_spill] sm:$0xff] }
 0xfaa   : > { %v2773_v2 = vpop.permute.xlu1 %2772  ;;  %v5498_v42 = vpop.permute.xlu0 %5497 }
 0xfab   : > { %v5505_v20 = vmul.f32 0.0, %v5498_v42 }
 0xfae   : > { %v9256_v14 = vpop.permute.xlu1 %2774 }
 0xfaf   : > { %v9273_v23 = vsel %vm11003_vm6, %v2773_v2, %v9256_v14 }
 0xfb0   : > { %v9277_v36 = vrot.slane %v9273_v23, %v7251_v5  ;;  %v9281_v57 = vrot.slane %v9273_v23, %v7254_v6  ;;  %v9285_v51 = vrot.slane %v9273_v23, %v7485_v55  ;;  %v9289_v35 = vrot.slane %v9273_v23, %v7480_v8 }
 0xfb1   : > { %v9297_v58 = vrot.slane %v9273_v23, %v7762_v27  ;;  %v9303_v37 = vrot.slane %v9273_v23, %v7759_v52  ;;  %v9309_v13 = vrot.slane %v9273_v23, %v7791_v33  ;;  %v9315_v32 = vrot.slane %v9273_v23, %v7788_v39 }
 0xfb2   : > { %v9260_v45 = vpop.permute.xlu1 %5487  ;;  %v3014_v0 = vmul.f32 %v9277_v36, %v11323_v9  ;;  %v3033_v54 = vmul.f32 %v9281_v57, %v11324_v46  ;;  %v3055_v11 = vmul.f32 %v9285_v51, %v11325_v25  ;;  %v3077_v22 = vmul.f32 %v9289_v35, %v11326_v1 }
 0xfb3   : > { %11321 = vst [vmem:[#allocation188_spill] sm:$0xff] %v9260_v45  ;;  %v3099_v12 = vmul.f32 %v9297_v58, %v11327_v19  ;;  %v3121_v63 = vmul.f32 %v9303_v37, %v11328_v21  ;;  %v3143_v2 = vmul.f32 %v9309_v13, %v11329_v34  ;;  %v11356_v45 = vld [vmem:[#allocation77_spill] sm:$0xff]  ;;  %v4175_v40 = vmul.f32 %v11362_v7, %v9289_v35 }
 0xfb4   : > { %v3036_v61 = vadd.f32 %v3033_v54, %v3014_v0 }
 0xfb6   : > { %v5500_v44 = vpop.permute.xlu1 %5499  ;;  %v3058_v17 = vadd.f32 %v3055_v11, %v3036_v61 }
 0xfb7   : > { %v5501_v49 = vsel %vm11004_vm2, %v5498_v42, %v5500_v44  ;;  %v5513_v41 = vpop.permute.xlu0 %5512  ;;  %v5507_v26 = vmul.f32 %v5500_v44, %v8442_v60 }
 0xfb8   : > { %v5506_v3 = vmul.f32 %v5501_v49, %v8374_v4  ;;  %v5515_v38 = vmul.f32 %v5513_v41, %v5505_v20  ;;  %v3080_v18 = vadd.f32 %v3077_v22, %v3058_v17  ;;  %v11330_v20 = vld [vmem:[#allocation70_spill] sm:$0xff] }
 0xfb9   : > { %v5517_v62 = vmul.f32 %v5513_v41, %v5507_v26  ;;  %v3165_v44 = vmul.f32 %v9315_v32, %v11330_v20 }
 0xfba   : > { %v5516_v29 = vmul.f32 %v5513_v41, %v5506_v3  ;;  %5521 = vrot.lane.b32.xlu1 %v5515_v38, %s11322_s20  ;;  %v3102_v50 = vadd.f32 %v3099_v12, %v3080_v18 }
 0xfbc   : > { %5523 = vrot.lane.b32.xlu0 %v5516_v29, %s11322_s20  ;;  %v3124_v48 = vadd.f32 %v3121_v63, %v3102_v50  ;;  %v6651_v29 = vld [vmem:[%s10640_s14 + $0xc8] sm:$0xff] }
 0xfbe   : > { %5525 = vrot.lane.b32.xlu1 %v5517_v62, %s11322_s20  ;;  %v3146_v42 = vadd.f32 %v3143_v2, %v3124_v48  ;;  %s11334_s20 = smov 1  }
 0xfc0   : > { %5539 = vperm.xlu0 %6907, %v6650_v15   ;;  %v9323_v49 = vadd.f32 %v3165_v44, %v3146_v42  ;;  %v11339_v42 = vld [vmem:[#allocation150_spill] sm:$0xff]  ;;  %v6652_v44 = vld [vmem:[%s10640_s14 + $0xd0] sm:$0xff] }
 0xfc2   : > { %11331 = vst [vmem:[#allocation65_spill] sm:$0xff] %v9323_v49 }
0x102c   : > { %v9338_v62 = vpop.permute.xlu1 %5521 }
0x102d   : > { %11335 = vst [vmem:[#allocation64_spill] sm:$0xff] %v9338_v62 }
0x102e   : > { %v9325_v41 = vpop.permute.xlu0 %5523 }
0x102f   : > { %11332 = vst [vmem:[#allocation61_spill] sm:$0xff] %v9325_v41 }
0x1030   : > { %v9340_v15 = vpop.permute.xlu1 %5525 }
0x1031   : > { %11336 = vst [vmem:[#allocation69_spill] sm:$0xff] %v9340_v15 }
0x103b   : > { %v5540_v3 = vpop.permute.xlu0 %5539 }
0x103c   : > { %v5542_v26 = vmul.f32 %v5540_v3, %v8374_v4  ;;  %v5543_v38 = vmul.f32 %v5540_v3, %v8442_v60  ;;  %v11340_v3 = vld [vmem:[#allocation159_spill] sm:$0xff] }
0x103e   : > { %5548 = vrot.lane.b32.xlu0 %v5543_v38, %s11333_s30  ;;  %5546 = vrot.lane.b32.xlu1 %v5542_v26, %s11333_s30  ;;  %s7053_s30 = smov 76  }
0x1042   : > { %5562 = vrot.lane.b32.xlu0 %v8385_v47, %s11334_s20  ;;  %5560 = vrot.lane.b32.xlu1 %v8287_v43, %s11334_s20  ;;  %s7054_s20 = smov 2  }
0x1046   : > { %5575 = vperm.xlu1 %6909, %v6651_v29  }
0x10b0   : > { %v9342_v0 = vpop.permute.xlu0 %5548  ;;  %v9344_v54 = vpop.permute.xlu1 %5546 }
0x10b1   : > { %11337 = vst [vmem:[#allocation66_spill] sm:$0xff] %v9342_v0  ;;  %11338 = vst [vmem:[#allocation68_spill] sm:$0xff] %v9344_v54 }
0x10b4   : > { %v5563_v61 = vpop.permute.xlu0 %5562  ;;  %v5561_v11 = vpop.permute.xlu1 %5560 }
0x10b5   : > { %v5564_v17 = vsel %vm2049_vm4, %v5561_v11, %v5563_v61  ;;  %v5568_v22 = vmul.f32 %v5561_v11, %v8374_v4  ;;  %v5570_v50 = vmul.f32 0.0, %v5563_v61 }
0x10b6   : > { %v5569_v18 = vmul.f32 %v5564_v17, %v8442_v60 }
0x10c1   : > { %v5576_v12 = vpop.permute.xlu1 %5575 }
0x10c2   : > { %v5578_v63 = vmul.f32 %v5576_v12, %v5568_v22  ;;  %v5579_v48 = vmul.f32 %v5576_v12, %v5569_v18  ;;  %v5580_v2 = vmul.f32 %v5576_v12, %v5570_v50 }
0x10c4   : > { %5586 = vrot.lane.b32.xlu1 %v5579_v48, %s7053_s30  ;;  %5584 = vrot.lane.b32.xlu0 %v5578_v63, %s7053_s30 }
0x10c8   : > { %5599 = vrot.lane.b32.xlu1 %v11339_v42, %s7054_s20  ;;  %5588 = vrot.lane.b32.xlu0 %v5580_v2, %s7053_s30  ;;  %s7055_s30 = smov 75  }
0x10cc   : > { %5615 = vperm.xlu1 %6909, %v6652_v44   ;;  %5601 = vrot.lane.b32.xlu0 %v11340_v3, %s7054_s20  ;;  %s7056_s20 = smov 3   ;;  %v6653_v44 = vld [vmem:[%s10640_s14 + $0xd8] sm:$0xff] }
0x1136   : > { %v9354_v26 = vpop.permute.xlu0 %5584  ;;  %v9358_v29 = vpop.permute.xlu1 %5586 }
0x1137   : > { %11341 = vst [vmem:[#allocation67_spill] sm:$0xff] %v9354_v26  ;;  %11343 = vst [vmem:[#allocation150_spill] sm:$0xff] %v9358_v29  ;;  %v11350_v26 = vld [vmem:[#allocation154_spill] sm:$0xff] }
0x1138   : > { %v3611_v29 = vmul.f32 %v11350_v26, %v9277_v36  ;;  %v11380_v26 = vld [vmem:[#allocation87_spill] sm:$0xff] }
0x113a   : > { %v9356_v38 = vpop.permute.xlu0 %5588  ;;  %v5600_v11 = vpop.permute.xlu1 %5599 }
0x113b   : > { %11342 = vst [vmem:[#allocation70_spill] sm:$0xff] %v9356_v38  ;;  %v5608_v22 = vmul.f32 %v5600_v11, %v8374_v4 }
0x113e   : > { %v5602_v61 = vpop.permute.xlu0 %5601 }
0x113f   : > { %v5604_v17 = vsel %vm5603_vm8, %v5600_v11, %v5602_v61  ;;  %v5610_v50 = vmul.f32 0.0, %v5602_v61  ;;  %vm5643_vm8 = vcmask 23552  }
0x1140   : > { %v5609_v18 = vmul.f32 %v5604_v17, %v8442_v60  ;;  %v9374_v17 = vsel %vm11003_vm6, %v9256_v14, %v9132_v31 }
0x1141   : > { %11346 = vst [vmem:[#allocation190_spill] sm:$0xff] %v9374_v17  ;;  %v9412_v41 = vrot.slane %v9374_v17, %v7762_v27 }
0x1147   : > { %v5616_v12 = vpop.permute.xlu1 %5615 }
0x1148   : > { %v5618_v63 = vmul.f32 %v5616_v12, %v5608_v22  ;;  %v5619_v48 = vmul.f32 %v5616_v12, %v5609_v18  ;;  %v5620_v2 = vmul.f32 %v5616_v12, %v5610_v50  ;;  %v9380_v18 = vrot.slane %v9374_v17, %v7251_v5 }
0x1149   : > { %v9384_v12 = vrot.slane %v9374_v17, %v7254_v6 }
0x114a   : > { %5624 = vrot.lane.b32.xlu0 %v5618_v63, %s7055_s30  ;;  %5626 = vrot.lane.b32.xlu1 %v5619_v48, %s7055_s30 }
0x114b   : > { %11348 = vst [vmem:[#allocation192_spill] sm:$0xff] %v9384_v12  ;;  %v3034_v31 = vmul.f32 %v9384_v12, %v11324_v46  ;;  %v9402_v46 = vrot.slane %v9374_v17, %v7480_v8 }
0x114d   : > { %11352 = vst [vmem:[#allocation194_spill] sm:$0xff] %v9402_v46 }
0x114e   : > { %5628 = vrot.lane.b32.xlu0 %v5620_v2, %s7055_s30  ;;  %5639 = vrot.lane.b32.xlu1 %v11265_v16, %s7056_s20  ;;  %v3015_v2 = vmul.f32 %v9380_v18, %v11323_v9  ;;  %v11351_v9 = vld [vmem:[#allocation96_spill] sm:$0xff]  ;;  %s7057_s30 = smov 74  }
0x114f   : > { %v3617_v15 = vmul.f32 %v11351_v9, %v9281_v57 }
0x1151   : > { %v3619_v62 = vadd.f32 %v3617_v15, %v3611_v29  ;;  %v6654_v15 = vld [vmem:[%s10640_s14 + $0xe0] sm:$0xff] }
0x1152   : > { %5641 = vrot.lane.b32.xlu0 %v8414_v28, %s7056_s20  ;;  %5655 = vperm.xlu1 %6909, %v6653_v44   ;;  %s7058_s20 = smov 13  }
0x11bc   : > { %v9367_v11 = vpop.permute.xlu0 %5624  ;;  %v9376_v22 = vpop.permute.xlu1 %5626 }
0x11bd   : > { %11344 = vst [vmem:[#allocation159_spill] sm:$0xff] %v9367_v11  ;;  %11347 = vst [vmem:[#allocation191_spill] sm:$0xff] %v9376_v22  ;;  %v9394_v11 = vrot.slane %v9374_v17, %v7485_v55 }
0x11bf   : > { %11349 = vst [vmem:[#allocation193_spill] sm:$0xff] %v9394_v11 }
0x11c0   : > { %v9369_v61 = vpop.permute.xlu0 %5628  ;;  %v5640_v63 = vpop.permute.xlu1 %5639 }
0x11c1   : > { %11345 = vst [vmem:[#allocation189_spill] sm:$0xff] %v9369_v61  ;;  %v5648_v14 = vmul.f32 %v5640_v63, %v8374_v4  ;;  %v3037_v61 = vadd.f32 %v3034_v31, %v3015_v2 }
0x11c4   : > { %v5642_v50 = vpop.permute.xlu0 %5641 }
0x11c5   : > { %v5644_v48 = vsel %vm5643_vm8, %v5640_v63, %v5642_v50  ;;  %v5650_v38 = vmul.f32 0.0, %v5642_v50  ;;  %v3056_v63 = vmul.f32 %v9394_v11, %v11325_v25  ;;  %v11354_v50 = vld [vmem:[#allocation130_spill] sm:$0xff]  ;;  %vm5909_vm8 = vcmask 154624  }
0x11c6   : > { %v5649_v44 = vmul.f32 %v5644_v48, %v8442_v60  ;;  %v11353_v48 = vld [vmem:[#allocation124_spill] sm:$0xff]  ;;  %v4131_v31 = vmul.f32 %v11354_v50, %v9281_v57  ;;  %v11357_v57 = vld [vmem:[#allocation98_spill] sm:$0xff]  ;;  %v4132_v29 = vmul.f32 %v11354_v50, %v9384_v12  ;;  %v11379_v12 = vld [vmem:[#allocation131_spill] sm:$0xff] }
0x11c7   : > { %v4112_v2 = vmul.f32 %v11353_v48, %v9277_v36  ;;  %11355 = vst [vmem:[#allocation124_spill] sm:$0xff] %v9412_v41  ;;  %v3078_v36 = vmul.f32 %v9402_v46, %v11326_v1  ;;  %v3625_v25 = vmul.f32 %v11357_v57, %v9285_v51  ;;  %v9434_v1 = vrot.slane %v9374_v17, %v7759_v52 }
0x11c9   : > { %11359 = vst [vmem:[#allocation130_spill] sm:$0xff] %v9434_v1 }
0x11cd   : > { %v5656_v22 = vpop.permute.xlu1 %5655 }
0x11ce   : > { %v5658_v54 = vmul.f32 %v5656_v22, %v5648_v14  ;;  %v5659_v0 = vmul.f32 %v5656_v22, %v5649_v44  ;;  %v5660_v14 = vmul.f32 %v5656_v22, %v5650_v38  ;;  %v3059_v44 = vadd.f32 %v3056_v63, %v3037_v61  ;;  %v11358_v63 = vld [vmem:[#allocation126_spill] sm:$0xff] }
0x11cf   : > { %v4113_v38 = vmul.f32 %v11353_v48, %v9380_v18  ;;  %v3627_v22 = vadd.f32 %v3625_v25, %v3619_v62  ;;  %v3100_v48 = vmul.f32 %v9412_v41, %v11327_v19  ;;  %v11361_v62 = vld [vmem:[#allocation97_spill] sm:$0xff]  ;;  %v11364_v19 = vld [vmem:[#allocation78_spill] sm:$0xff] }
0x11d0   : > { %5664 = vrot.lane.b32.xlu0 %v5658_v54, %s7057_s30  ;;  %5666 = vrot.lane.b32.xlu1 %v5659_v0, %s7057_s30  ;;  %v9416_v54 = vmul.f32 %v11356_v45, %v9374_v17  ;;  %v4134_v0 = vadd.f32 %v4131_v31, %v4112_v2  ;;  %v3081_v61 = vadd.f32 %v3078_v36, %v3059_v44  ;;  %v6655_v44 = vld [vmem:[%s10640_s14 + $0xe8] sm:$0xff] }
0x11d1   : > { %v3633_v50 = vmul.f32 %v11361_v62, %v9289_v35  ;;  %v4135_v36 = vadd.f32 %v4132_v29, %v4113_v38  ;;  %v11365_v62 = vld [vmem:[#allocation86_spill] sm:$0xff]  ;;  %v3122_v38 = vmul.f32 %v9434_v1, %v11328_v21  ;;  %v9462_v29 = vrot.slane %v9374_v17, %v7791_v33 }
0x11d2   : > { %v3225_v2 = vrot.slane %v9416_v54, %v7251_v5  ;;  %v3244_v31 = vrot.slane %v9416_v54, %v7254_v6  ;;  %v3103_v25 = vadd.f32 %v3100_v48, %v3081_v61  ;;  %v11367_v61 = vld [vmem:[#allocation101_spill] sm:$0xff]  ;;  %v3266_v48 = vrot.slane %v9416_v54, %v7485_v55 }
0x11d3   : > { %v3635_v10 = vadd.f32 %v3633_v50, %v3627_v22  ;;  %11366 = vst [vmem:[#allocation77_spill] sm:$0xff] %v9462_v29  ;;  %v11368_v22 = vld [vmem:[#allocation105_spill] sm:$0xff]  ;;  %v9473_v21 = vrot.slane %v9374_v17, %v7788_v39 }
0x11d4   : > { %5668 = vrot.lane.b32.xlu0 %v5660_v14, %s7057_s30  ;;  %5679 = vrot.lane.b32.xlu1 %v11270_v56, %s7058_s20  ;;  %v4153_v14 = vmul.f32 %v11358_v63, %v9285_v51  ;;  %v3228_v60 = vmul.f32 %v3225_v2, %v11363_v59  ;;  %v3247_v49 = vmul.f32 %v3244_v31, %v11364_v19  ;;  %v11375_v19 = vld [vmem:[#allocation136_spill] sm:$0xff]  ;;  %s10996_s30 = smov 45  }
0x11d5   : > { %v3125_v50 = vadd.f32 %v3122_v38, %v3103_v25  ;;  %11370 = vst [vmem:[#allocation126_spill] sm:$0xff] %v9473_v21  ;;  %v11373_v25 = vld [vmem:[#allocation113_spill] sm:$0xff]  ;;  %v11378_v59 = vld [vmem:[#allocation80_spill] sm:$0xff]  ;;  %v3288_v56 = vrot.slane %v9416_v54, %v7480_v8 }
0x11d6   : > { %v4156_v51 = vadd.f32 %v4153_v14, %v4134_v0  ;;  %v9456_v0 = vmul.f32 %v11365_v62, %v9374_v17  ;;  %v11369_v14 = vld [vmem:[#allocation100_spill] sm:$0xff] }
0x11d7   : > { %v3641_v2 = vmul.f32 %v11369_v14, %v9297_v58 }
0x11d8   : > { %5681 = vrot.lane.b32.xlu0 %v11360_v30, %s7058_s20  ;;  %5695 = vperm.xlu1 %6909, %v6654_v15   ;;  %v4154_v15 = vmul.f32 %v11358_v63, %v9394_v11  ;;  %v4178_v35 = vadd.f32 %v4175_v40, %v4156_v51  ;;  %v3689_v63 = vsel %vm2049_vm4, %v11368_v22, %v11367_v61  ;;  %v11374_v11 = vld [vmem:[#allocation139_spill] sm:$0xff]  ;;  %s10990_s20 = smov 14   ;;  %vm5683_vm4 = vcmask 105472  }
0x11d9   : > { %v4176_v40 = vmul.f32 %v11362_v7, %v9402_v46  ;;  %v3643_v51 = vadd.f32 %v3641_v2, %v3635_v10  ;;  %v3250_v61 = vadd.f32 %v3247_v49, %v3228_v60  ;;  %v3429_v14 = vrot.slane %v9456_v0, %v7251_v5  ;;  %v11376_v7 = vld [vmem:[#allocation135_spill] sm:$0xff]  ;;  %v11377_v49 = vld [vmem:[#allocation102_spill] sm:$0xff] }
0x11da   : > { %v4157_v31 = vadd.f32 %v4154_v15, %v4135_v36  ;;  %v3448_v36 = vrot.slane %v9456_v0, %v7254_v6  ;;  %v11372_v15 = vld [vmem:[#allocation116_spill] sm:$0xff]  ;;  %v3144_v60 = vmul.f32 %v9462_v29, %v11329_v34  ;;  %v3649_v2 = vmul.f32 %v11377_v49, %v9303_v37 }
0x11db   : > { %v9486_v38 = vsel %vm2228_vm5, %v11373_v25, %v11372_v15  ;;  %v3269_v15 = vmul.f32 %v3266_v48, %v11378_v59  ;;  %v3432_v49 = vmul.f32 %v3429_v14, %v11380_v26  ;;  %v11383_v48 = vld [vmem:[#allocation99_spill] sm:$0xff]  ;;  %v6657_v14 = vld [vmem:[%s10640_s14 + $0xf8] sm:$0xff] }
0x11dc   : > { %5735 = vperm.xlu1 %6909, %v6655_v44   ;;  %v11371_v44 = vld [vmem:[#allocation127_spill] sm:$0xff]  ;;  %v4179_v46 = vadd.f32 %v4176_v40, %v4157_v31  ;;  %v3147_v9 = vadd.f32 %v3144_v60, %v3125_v50  ;;  %v11381_v31 = vld [vmem:[#allocation88_spill] sm:$0xff]  ;;  %v3657_v50 = vmul.f32 %v11383_v48, %v9309_v13 }
0x11dd   : > { %v4197_v57 = vmul.f32 %v11371_v44, %v9297_v58  ;;  %v9491_v58 = vsel %vm11003_vm6, %v11375_v19, %v11374_v11  ;;  %v3166_v11 = vmul.f32 %v9473_v21, %v11330_v20  ;;  %v4198_v34 = vmul.f32 %v11371_v44, %v9412_v41  ;;  %v11384_v44 = vld [vmem:[#allocation104_spill] sm:$0xff] }
0x11de   : > { %v3451_v40 = vmul.f32 %v3448_v36, %v11381_v31  ;;  %v3310_v20 = vrot.slane %v9416_v54, %v7762_v27  ;;  %v11385_v36 = vld [vmem:[#allocation75_spill] sm:$0xff] }
0x11df   : > { %v4200_v10 = vadd.f32 %v4197_v57, %v4178_v35  ;;  %v3651_v57 = vadd.f32 %v3649_v2, %v3643_v51  ;;  %v3272_v35 = vadd.f32 %v3269_v15, %v3250_v61  ;;  %v3665_v51 = vmul.f32 %v11384_v44, %v9315_v32  ;;  %v11386_v15 = vld [vmem:[#allocation132_spill] sm:$0xff] }
0x11e0   : > { %5721 = vrot.lane.b32.xlu1 %v11376_v7, %s10990_s20  ;;  %v4219_v7 = vmul.f32 %v11379_v12, %v9303_v37  ;;  %v9518_v37 = vmul.f32 %v11368_v22, %v9273_v23  ;;  %v4201_v61 = vadd.f32 %v4198_v34, %v4179_v46  ;;  %v3291_v2 = vmul.f32 %v3288_v56, %v11385_v36  ;;  %v11387_v22 = vld [vmem:[#allocation128_spill] sm:$0xff]  ;;  %v11388_v34 = vld [vmem:[#allocation81_spill] sm:$0xff]  ;;  %s7063_s20 = smov 30  }
0x11e1   : > { %v4241_v48 = vmul.f32 %v11386_v15, %v9309_v13  ;;  %v4263_v41 = vmul.f32 %v11387_v22, %v9315_v32  ;;  %v3659_v59 = vadd.f32 %v3657_v50, %v3651_v57  ;;  %v3454_v26 = vadd.f32 %v3451_v40, %v3432_v49 }
0x11e2   : > { %v4222_v60 = vadd.f32 %v4219_v7, %v4200_v10  ;;  %v3470_v7 = vrot.slane %v9456_v0, %v7485_v55  ;;  %v3169_v10 = vadd.f32 %v3166_v11, %v3147_v9  ;;  %v3294_v31 = vadd.f32 %v3291_v2, %v3272_v35  ;;  %v11389_v11 = vld [vmem:[#allocation90_spill] sm:$0xff]  ;;  %v11391_v2 = vld [vmem:[#allocation108_spill] sm:$0xff] }
0x11e3   : > { %v9535_v46 = vmul.f32 %v3689_v63, %v9374_v17  ;;  %v3313_v44 = vmul.f32 %v3310_v20, %v11388_v34  ;;  %v3706_v9 = vrot.slane %v9518_v37, %v7251_v5  ;;  %v3725_v13 = vrot.slane %v9518_v37, %v7254_v6 }
0x11e4   : > { %5759 = vrot.lane.b32.xlu1 %v8270_v53, %s11382_s2  ;;  %v4220_v53 = vmul.f32 %v11379_v12, %v9434_v1  ;;  %v4244_v56 = vadd.f32 %v4241_v48, %v4222_v60  ;;  %v3332_v12 = vrot.slane %v9416_v54, %v7759_v52  ;;  %v3354_v49 = vrot.slane %v9416_v54, %v7791_v33  ;;  %v11402_v1 = vld [vmem:[#allocation118_spill] sm:$0xff] }
0x11e5   : > { %v3473_v63 = vmul.f32 %v3470_v7, %v11389_v11  ;;  %v4242_v57 = vmul.f32 %v11386_v15, %v9462_v29  ;;  %v4264_v35 = vmul.f32 %v11387_v22, %v9473_v21  ;;  %v3376_v40 = vrot.slane %v9416_v54, %v7788_v39 }
0x11e6   : > { %v4223_v32 = vadd.f32 %v4220_v53, %v4201_v61  ;;  %v3492_v53 = vrot.slane %v9456_v0, %v7480_v8  ;;  %v3667_v48 = vadd.f32 %v3665_v51, %v3659_v59  ;;  %v3316_v50 = vadd.f32 %v3313_v44, %v3294_v31  ;;  %v6659_v59 = vld [vmem:[%s10640_s14 + $0x108] sm:$0xff]  ;;  %v11393_v51 = vld [vmem:[#allocation76_spill] sm:$0xff] }
0x11e7   : > { %v3476_v60 = vadd.f32 %v3473_v63, %v3454_v26  ;;  %v9557_v20 = vmul.f32 %v11373_v25, %v9273_v23  ;;  %v3734_v7 = vmul.f32 %v3725_v13, %v11391_v2  ;;  %v3710_v54 = vrot.slane %v9535_v46, %v7251_v5  ;;  %v11392_v31 = vld [vmem:[#allocation82_spill] sm:$0xff]  ;;  %v11395_v13 = vld [vmem:[#allocation91_spill] sm:$0xff] }
0x11e8   : > { %5802 = vperm.xlu1 %6909, %v6657_v14   ;;  %v11390_v14 = vld [vmem:[#allocation107_spill] sm:$0xff]  ;;  %v3729_v15 = vrot.slane %v9535_v46, %v7254_v6  ;;  %v9570_v26 = vadd.f32 %v4263_v41, %v4244_v56  ;;  %v4245_v25 = vadd.f32 %v4242_v57, %v4223_v32  ;;  %v3335_v44 = vmul.f32 %v3332_v12, %v11392_v31 }
0x11e9   : > { %v3715_v61 = vmul.f32 %v3706_v9, %v11390_v14  ;;  %v3357_v22 = vmul.f32 %v3354_v49, %v11393_v51  ;;  %v11394_v9 = vld [vmem:[#allocation83_spill] sm:$0xff]  ;;  %v3495_v21 = vmul.f32 %v3492_v53, %v11395_v13  ;;  %v3514_v29 = vrot.slane %v9456_v0, %v7762_v27 }
0x11ea   : > { %v3379_v63 = vmul.f32 %v3376_v40, %v11394_v9  ;;  %v3338_v34 = vadd.f32 %v3335_v44, %v3316_v50  ;;  %v3536_v41 = vrot.slane %v9456_v0, %v7759_v52  ;;  %v3558_v56 = vrot.slane %v9456_v0, %v7791_v33  ;;  %v11401_v31 = vld [vmem:[#allocation115_spill] sm:$0xff] }
0x11eb   : > { %v3580_v32 = vrot.slane %v9456_v0, %v7788_v39  ;;  %v3498_v12 = vadd.f32 %v3495_v21, %v3476_v60  ;;  %v3737_v49 = vadd.f32 %v3734_v7, %v3715_v61  ;;  %v3716_v57 = vmul.f32 %v3710_v54, %v11390_v14  ;;  %v11396_v0 = vld [vmem:[#allocation92_spill] sm:$0xff]  ;;  %v11397_v21 = vld [vmem:[#allocation109_spill] sm:$0xff] }
0x11ec   : > { %5826 = vrot.lane.b32.xlu1 %v8287_v43, %s11127_s28  ;;  %v3747_v43 = vrot.slane %v9518_v37, %v7485_v55  ;;  %v3735_v40 = vmul.f32 %v3729_v15, %v11391_v2  ;;  %v9588_v53 = vadd.f32 %v4264_v35, %v4245_v25  ;;  %v3910_v50 = vrot.slane %v9557_v20, %v7251_v5  ;;  %v11398_v61 = vld [vmem:[#allocation93_spill] sm:$0xff]  ;;  %v11400_v15 = vld [vmem:[#allocation94_spill] sm:$0xff] }
0x11ed   : > { %v3929_v44 = vrot.slane %v9557_v20, %v7254_v6  ;;  %v9596_v9 = vmul.f32 %v9486_v38, %v9374_v17  ;;  %v3769_v14 = vrot.slane %v9518_v37, %v7480_v8  ;;  %v3791_v35 = vrot.slane %v9518_v37, %v7762_v27  ;;  %v11399_v7 = vld [vmem:[#allocation89_spill] sm:$0xff] }
0x11ee   : > { %v3756_v60 = vmul.f32 %v3747_v43, %v11397_v21  ;;  %v3539_v2 = vmul.f32 %v3536_v41, %v11398_v61  ;;  %v3561_v54 = vmul.f32 %v3558_v56, %v11399_v7  ;;  %v3583_v25 = vmul.f32 %v3580_v32, %v11400_v15  ;;  %v11403_v32 = vld [vmem:[#allocation110_spill] sm:$0xff]  ;;  %v11404_v7 = vld [vmem:[#allocation103_spill] sm:$0xff] }
0x11ef   : > { %v3751_v38 = vrot.slane %v9535_v46, %v7485_v55  ;;  %v3919_v13 = vmul.f32 %v3910_v50, %v11401_v31  ;;  %v3938_v11 = vmul.f32 %v3929_v44, %v11402_v1  ;;  %v3914_v41 = vrot.slane %v9596_v9, %v7251_v5 }
0x11f0   : > { %5881 = vperm.xlu1 %6909, %v6659_v59   ;;  %v3517_v59 = vmul.f32 %v3514_v29, %v11396_v0  ;;  %v3360_v29 = vadd.f32 %v3357_v22, %v3338_v34  ;;  %v3759_v43 = vadd.f32 %v3756_v60, %v3737_v49  ;;  %v3738_v0 = vadd.f32 %v3735_v40, %v3716_v57 }
0x11f1   : > { %v3933_v56 = vrot.slane %v9596_v9, %v7254_v6  ;;  %v3778_v15 = vmul.f32 %v3769_v14, %v11403_v32  ;;  %v3800_v61 = vmul.f32 %v3791_v35, %v11404_v7  ;;  %v9622_v34 = vmul.f32 %v11375_v19, %v9273_v23  ;;  %v11405_v35 = vld [vmem:[#allocation111_spill] sm:$0xff] }
0x11f2   : > { %v3520_v51 = vadd.f32 %v3517_v59, %v3498_v12  ;;  %v3835_v22 = vrot.slane %v9518_v37, %v7791_v33  ;;  %v3757_v12 = vmul.f32 %v3751_v38, %v11397_v21  ;;  %v3773_v49 = vrot.slane %v9535_v46, %v7480_v8 }
0x11f3   : > { %v3951_v57 = vrot.slane %v9557_v20, %v7485_v55  ;;  %v3382_v40 = vadd.f32 %v3379_v63, %v3360_v29  ;;  %v3781_v44 = vadd.f32 %v3778_v15, %v3759_v43  ;;  %v3857_v19 = vrot.slane %v9518_v37, %v7788_v39  ;;  %v11408_v15 = vld [vmem:[#allocation106_spill] sm:$0xff] }
0x11f4   : > { %3177 = vrot.lane.b32.xlu1 %v3169_v10, %s11194_s19  ;;  %v3813_v10 = vrot.slane %v9518_v37, %v7759_v52  ;;  %v3542_v50 = vadd.f32 %v3539_v2, %v3520_v51  ;;  %v3760_v59 = vadd.f32 %v3757_v12, %v3738_v0  ;;  %v3941_v60 = vadd.f32 %v3938_v11, %v3919_v13  ;;  %v11407_v0 = vld [vmem:[#allocation112_spill] sm:$0xff] }
0x11f5   : > { %v3920_v14 = vmul.f32 %v3914_v41, %v11401_v31  ;;  %v3939_v21 = vmul.f32 %v3933_v56, %v11402_v1  ;;  %v4307_v36 = vrot.slane %v9622_v34, %v7251_v5  ;;  %v9643_v51 = vmul.f32 %v9491_v58, %v9374_v17  ;;  %v11406_v31 = vld [vmem:[#allocation117_spill] sm:$0xff] }
0x11f6   : > { %v3822_v38 = vmul.f32 %v3813_v10, %v11405_v35  ;;  %v3779_v37 = vmul.f32 %v3773_v49, %v11403_v32  ;;  %v3795_v11 = vrot.slane %v9535_v46, %v7762_v27  ;;  %v3960_v63 = vmul.f32 %v3951_v57, %v11406_v31  ;;  %v11409_v10 = vld [vmem:[#allocation138_spill] sm:$0xff] }
0x11f7   : > { %v3973_v1 = vrot.slane %v9557_v20, %v7480_v8  ;;  %v3564_v13 = vadd.f32 %v3561_v54, %v3542_v50  ;;  %v3844_v2 = vmul.f32 %v3835_v22, %v11407_v0  ;;  %v3866_v29 = vmul.f32 %v3857_v19, %v11408_v15  ;;  %v11410_v49 = vld [vmem:[#allocation142_spill] sm:$0xff]  ;;  %v11411_v50 = vld [vmem:[#allocation119_spill] sm:$0xff] }
0x11f8   : > { %3671 = vrot.lane.b32.xlu1 %v3667_v48, %s11218_s21  ;;  %v4326_v48 = vrot.slane %v9622_v34, %v7254_v6  ;;  %v3955_v58 = vrot.slane %v9596_v9, %v7485_v55  ;;  %v3803_v43 = vadd.f32 %v3800_v61, %v3781_v44  ;;  %v3782_v41 = vadd.f32 %v3779_v37, %v3760_v59 }
0x11f9   : > { %v3963_v56 = vadd.f32 %v3960_v63, %v3941_v60  ;;  %v3942_v32 = vadd.f32 %v3939_v21, %v3920_v14  ;;  %v4316_v12 = vmul.f32 %v4307_v36, %v11409_v10  ;;  %v4311_v17 = vrot.slane %v9643_v51, %v7251_v5 }
0x11fa   : > { %v4335_v57 = vmul.f32 %v4326_v48, %v11410_v49  ;;  %v3801_v54 = vmul.f32 %v3795_v11, %v11404_v7  ;;  %v3817_v22 = vrot.slane %v9535_v46, %v7759_v52  ;;  %v3982_v61 = vmul.f32 %v3973_v1, %v11411_v50 }
0x11fb   : > { %v3995_v44 = vrot.slane %v9557_v20, %v7762_v27  ;;  %v3839_v36 = vrot.slane %v9535_v46, %v7791_v33  ;;  %v3961_v19 = vmul.f32 %v3955_v58, %v11406_v31  ;;  %v3977_v59 = vrot.slane %v9596_v9, %v7480_v8 }
0x11fc   : > { %4272 = vrot.lane.b32.xlu1 %v9570_v26, %s11220_s27  ;;  %v4330_v26 = vrot.slane %v9643_v51, %v7254_v6  ;;  %v4348_v7 = vrot.slane %v9622_v34, %v7485_v55  ;;  %v3586_v60 = vadd.f32 %v3583_v25, %v3564_v13  ;;  %v3825_v14 = vadd.f32 %v3822_v38, %v3803_v43  ;;  %v11412_v6 = vld [vmem:[#allocation122_spill] sm:$0xff]  ;;  %v11413_v38 = vld [vmem:[#allocation140_spill] sm:$0xff] }
0x11fd   : > { %v3804_v21 = vadd.f32 %v3801_v54, %v3782_v41  ;;  %v3985_v48 = vadd.f32 %v3982_v61, %v3963_v56  ;;  %v3964_v37 = vadd.f32 %v3961_v19, %v3942_v32  ;;  %v4338_v11 = vadd.f32 %v4335_v57, %v4316_v12  ;;  %v11414_v57 = vld [vmem:[#allocation121_spill] sm:$0xff] }
0x11fe   : > { %v4317_v63 = vmul.f32 %v4311_v17, %v11409_v10  ;;  %v3823_v1 = vmul.f32 %v3817_v22, %v11405_v35  ;;  %v4004_v31 = vmul.f32 %v3995_v44, %v11412_v6  ;;  %v4017_v58 = vrot.slane %v9557_v20, %v7759_v52 }
0x11ff   : > { %v3999_v5 = vrot.slane %v9596_v9, %v7762_v27  ;;  %v3983_v25 = vmul.f32 %v3977_v59, %v11411_v50  ;;  %v4357_v13 = vmul.f32 %v4348_v7, %v11413_v38  ;;  %v4370_v17 = vrot.slane %v9622_v34, %v7480_v8 }
0x1200   : > { %4274 = vrot.lane.b32.xlu1 %v9588_v53, %s11220_s27  ;;  %v4336_v53 = vmul.f32 %v4330_v26, %v11410_v49  ;;  %v4352_v35 = vrot.slane %v9643_v51, %v7485_v55  ;;  %v3847_v43 = vadd.f32 %v3844_v2, %v3825_v14  ;;  %v3826_v41 = vadd.f32 %v3823_v1, %v3804_v21  ;;  %v11416_v21 = vld [vmem:[#allocation123_spill] sm:$0xff]  ;;  %s10992_s27 = smov 19  }
0x1201   : > { %v3845_v56 = vmul.f32 %v3839_v36, %v11407_v0  ;;  %v3861_v32 = vrot.slane %v9535_v46, %v7788_v39  ;;  %v4007_v10 = vadd.f32 %v4004_v31, %v3985_v48  ;;  %v3986_v12 = vadd.f32 %v3983_v25, %v3964_v37  ;;  %v11415_v0 = vld [vmem:[#allocation141_spill] sm:$0xff] }
0x1202   : > { %v4339_v49 = vadd.f32 %v4336_v53, %v4317_v63  ;;  %v4026_v26 = vmul.f32 %v4017_v58, %v11414_v57  ;;  %v4039_v54 = vrot.slane %v9557_v20, %v7791_v33  ;;  %v4005_v22 = vmul.f32 %v3999_v5, %v11412_v6 }
0x1203   : > { %v4021_v2 = vrot.slane %v9596_v9, %v7759_v52  ;;  %v4379_v50 = vmul.f32 %v4370_v17, %v11415_v0  ;;  %v4392_v46 = vrot.slane %v9622_v34, %v7762_v27  ;;  %v4358_v61 = vmul.f32 %v4352_v35, %v11413_v38 }
0x1204   : > { %3390 = vrot.lane.b32.xlu1 %v3382_v40, %s11195_s23  ;;  %v4360_v40 = vadd.f32 %v4357_v13, %v4338_v11  ;;  %v4374_v44 = vrot.slane %v9643_v51, %v7480_v8  ;;  %v3869_v36 = vadd.f32 %v3866_v29, %v3847_v43  ;;  %v3848_v19 = vadd.f32 %v3845_v56, %v3826_v41  ;;  %v11417_v29 = vld [vmem:[#allocation144_spill] sm:$0xff]  ;;  %v11419_v41 = vld [vmem:[#allocation143_spill] sm:$0xff] }
0x1205   : > { %v3867_v59 = vmul.f32 %v3861_v32, %v11408_v15  ;;  %v4029_v5 = vadd.f32 %v4026_v26, %v4007_v10  ;;  %v4008_v6 = vadd.f32 %v4005_v22, %v3986_v12  ;;  %v4361_v14 = vadd.f32 %v4358_v61, %v4339_v49  ;;  %v11418_v13 = vld [vmem:[#allocation120_spill] sm:$0xff] }
0x1206   : > { %v4382_v7 = vadd.f32 %v4379_v50, %v4360_v40  ;;  %v4061_v48 = vrot.slane %v9557_v20, %v7788_v39  ;;  %v4027_v37 = vmul.f32 %v4021_v2, %v11414_v57  ;;  %v4043_v11 = vrot.slane %v9596_v9, %v7791_v33 }
0x1207   : > { %v4401_v63 = vmul.f32 %v4392_v46, %v11417_v29  ;;  %v4414_v15 = vrot.slane %v9622_v34, %v7759_v52  ;;  %v4380_v53 = vmul.f32 %v4374_v44, %v11415_v0  ;;  %v4396_v1 = vrot.slane %v9643_v51, %v7762_v27 }
0x1208   : > { %3594 = vrot.lane.b32.xlu1 %v3586_v60, %s11198_s26  ;;  %v4048_v60 = vmul.f32 %v4039_v54, %v11416_v21  ;;  %v3870_v31 = vadd.f32 %v3867_v59, %v3848_v19  ;;  %v4030_v20 = vadd.f32 %v4027_v37, %v4008_v6  ;;  %v4070_v17 = vmul.f32 %v4061_v48, %v11418_v13  ;;  %v6665_v48 = vld [vmem:[%s10640_s14 + $0x138] sm:$0xff] }
0x1209   : > { %v4404_v25 = vadd.f32 %v4401_v63, %v4382_v7  ;;  %v4383_v38 = vadd.f32 %v4380_v53, %v4361_v14  ;;  %v4049_v35 = vmul.f32 %v4043_v11, %v11416_v21  ;;  %v4065_v43 = vrot.slane %v9596_v9, %v7788_v39  ;;  %v11420_v9 = vld [vmem:[#allocation145_spill] sm:$0xff]  ;;  %v11422_v21 = vld [vmem:[#allocation134_spill] sm:$0xff] }
0x120a   : > { %v4051_v58 = vadd.f32 %v4048_v60, %v4029_v5  ;;  %v4423_v56 = vmul.f32 %v4414_v15, %v11419_v41  ;;  %v4436_v32 = vrot.slane %v9622_v34, %v7791_v33  ;;  %v4402_v10 = vmul.f32 %v4396_v1, %v11417_v29  ;;  %v6663_v60 = vld [vmem:[%s10640_s14 + $0x128] sm:$0xff]  ;;  %v11423_v29 = vld [vmem:[#allocation73_spill] sm:$0xff] }
0x120b   : > { %v4418_v12 = vrot.slane %v9643_v51, %v7759_v52  ;;  %v4052_v49 = vadd.f32 %v4049_v35, %v4030_v20  ;;  %v4071_v54 = vmul.f32 %v4065_v43, %v11418_v13  ;;  %v4458_v2 = vrot.slane %v9622_v34, %v7788_v39  ;;  %v6667_v11 = vld [vmem:[%s10640_s14 + $0x148] sm:$0xff]  ;;  %v11427_v13 = vld [vmem:[#allocation96_spill] sm:$0xff] }
0x120c   : > { %3875 = vrot.lane.b32.xlu1 %v3869_v36, %s11146_s1  ;;  %v4073_v40 = vadd.f32 %v4070_v17, %v4051_v58  ;;  %v4426_v57 = vadd.f32 %v4423_v56, %v4404_v25  ;;  %v4405_v26 = vadd.f32 %v4402_v10, %v4383_v38  ;;  %v4445_v22 = vmul.f32 %v4436_v32, %v11420_v9  ;;  %v11421_v36 = vld [vmem:[#allocation146_spill] sm:$0xff]  ;;  %v11426_v38 = vld [vmem:[#allocation192_spill] sm:$0xff]  ;;  %v11428_v43 = vld [vmem:[#allocation147_spill] sm:$0xff] }
0x120d   : > { %v4424_v0 = vmul.f32 %v4418_v12, %v11419_v41  ;;  %v4440_v50 = vrot.slane %v9643_v51, %v7791_v33  ;;  %v4074_v46 = vadd.f32 %v4071_v54, %v4052_v49  ;;  %v4467_v19 = vmul.f32 %v4458_v2, %v11421_v36  ;;  %v11429_v41 = vld [vmem:[#allocation16_spill] sm:$0xff]  ;;  %v11430_v32 = vld [vmem:[#allocation17_spill] sm:$0xff]  ;;  %v11435_v2 = vld [vmem:[#allocation98_spill] sm:$0xff] }
0x120e   : > { %v4448_v61 = vadd.f32 %v4445_v22, %v4426_v57  ;;  %v4462_v5 = vrot.slane %v9643_v51, %v7788_v39  ;;  %v6661_v51 = vld [vmem:[%s10640_s14 + $0x118] sm:$0xff]  ;;  %v3200_v63 = vsel %vm1572_vm10, %v11423_v29, %v11356_v45  ;;  %v11425_v45 = vld [vmem:[#allocation154_spill] sm:$0xff]  ;;  %v3618_v17 = vmul.f32 %v11427_v13, %v11426_v38 }
0x120f   : > { %v4427_v44 = vadd.f32 %v4424_v0, %v4405_v26  ;;  %v4446_v59 = vmul.f32 %v4440_v50, %v11420_v9  ;;  %v9786_v53 = vmul.f32 %v3200_v63, %v9273_v23  ;;  %v3612_v25 = vmul.f32 %v11425_v45, %v9380_v18  ;;  %v6669_v18 = vld [vmem:[%s10640_s14 + $0x158] sm:$0xff]  ;;  %v11432_v57 = vld [vmem:[#allocation78_spill] sm:$0xff] }
0x1210   : > { %3877 = vrot.lane.b32.xlu1 %v3870_v31, %s11146_s1  ;;  %v4470_v6 = vadd.f32 %v4467_v19, %v4448_v61  ;;  %v4468_v34 = vmul.f32 %v4462_v5, %v11421_v36  ;;  %s10991_s1 = smov 18   ;;  %v11424_v31 = vld [vmem:[#allocation85_spill] sm:$0xff]  ;;  %v11436_v61 = vld [vmem:[#allocation135_spill] sm:$0xff]  ;;  %v11438_v5 = vld [vmem:[#allocation88_spill] sm:$0xff]  ;;  %vm5723_vm10 = vcmask 113664  }
0x1211   : > { %v4449_v7 = vadd.f32 %v4446_v59, %v4427_v44  ;;  %v3404_v58 = vsel %vm11004_vm2, %v11424_v31, %v11365_v62  ;;  %v3221_v56 = vrot.slane %v9786_v53, %v11429_v41  ;;  %v3240_v62 = vrot.slane %v9786_v53, %v11430_v32  ;;  %v11434_v22 = vld [vmem:[#allocation193_spill] sm:$0xff]  ;;  %v11437_v19 = vld [vmem:[#allocation87_spill] sm:$0xff]  ;;  %v11442_v63 = vld [vmem:[#allocation148_spill] sm:$0xff] }
0x1212   : > { %v9807_v10 = vmul.f32 %v3404_v58, %v9273_v23  ;;  %v3620_v12 = vadd.f32 %v3618_v17, %v3612_v25  ;;  %v3626_v0 = vmul.f32 %v11435_v2, %v11434_v22  ;;  %v3262_v50 = vrot.slane %v9786_v53, %v7485_v55  ;;  %v6671_v45 = vld [vmem:[%s10640_s14 + $0x168] sm:$0xff]  ;;  %v11443_v25 = vld [vmem:[#allocation124_spill] sm:$0xff] }
0x1213   : > { %v4471_v14 = vadd.f32 %v4468_v34, %v4449_v7  ;;  %v3246_v26 = vmul.f32 %v3240_v62, %v11432_v57  ;;  %v11439_v34 = vld [vmem:[#allocation194_spill] sm:$0xff]  ;;  %v11444_v38 = vld [vmem:[#allocation100_spill] sm:$0xff]  ;;  %v3306_v62 = vrot.slane %v9786_v53, %v7762_v27 }
0x1214   : > { %4079 = vrot.lane.b32.xlu1 %v4073_v40, %s11259_s18  ;;  %v11431_v40 = vld [vmem:[#allocation79_spill] sm:$0xff]  ;;  %v3425_v54 = vrot.slane %v9807_v10, %v11429_v41  ;;  %v3444_v9 = vrot.slane %v9807_v10, %v11430_v32  ;;  %v3628_v44 = vadd.f32 %v3626_v0, %v3620_v12  ;;  %v3466_v29 = vrot.slane %v9807_v10, %v7485_v55  ;;  %v6658_v57 = vld [vmem:[%s10640_s14 + $0x100] sm:$0xff] }
0x1215   : > { %v3227_v49 = vmul.f32 %v3221_v56, %v11431_v40  ;;  %v3642_v13 = vmul.f32 %v11444_v38, %v11443_v25  ;;  %v3488_v40 = vrot.slane %v9807_v10, %v7480_v8  ;;  %v11447_v22 = vld [vmem:[#allocation130_spill] sm:$0xff]  ;;  %v11455_v25 = vld [vmem:[#allocation92_spill] sm:$0xff] }
0x1216   : > { %v3431_v59 = vmul.f32 %v3425_v54, %v11437_v19  ;;  %v11448_v2 = vld [vmem:[#allocation102_spill] sm:$0xff] }
0x1217   : > { %v3249_v36 = vadd.f32 %v3246_v26, %v3227_v49  ;;  %v3650_v0 = vmul.f32 %v11448_v2, %v11447_v22  ;;  %v11460_v2 = vld [vmem:[#allocation93_spill] sm:$0xff] }
0x1218   : > { %4081 = vrot.lane.b32.xlu1 %v4074_v46, %s11259_s18  ;;  %s10995_s18 = smov 35   ;;  %v6656_v46 = vld [vmem:[%s10640_s14 + $0xf0] sm:$0xff] }
0x121c   : > { %4476 = vrot.lane.b32.xlu1 %v4470_v6, %s11283_s29  ;;  %v3450_v6 = vmul.f32 %v3444_v9, %v11438_v5 }
0x121e   : > { %v3453_v58 = vadd.f32 %v3450_v6, %v3431_v59  ;;  %v3510_v59 = vrot.slane %v9807_v10, %v7762_v27  ;;  %v11451_v6 = vld [vmem:[#allocation149_spill] sm:$0xff] }
0x1220   : > { %4478 = vrot.lane.b32.xlu1 %v4471_v14, %s11283_s29  ;;  %v11440_v14 = vld [vmem:[#allocation97_spill] sm:$0xff]  ;;  %v3516_v38 = vmul.f32 %v3510_v59, %v11455_v25  ;;  %v11461_v59 = vld [vmem:[#allocation83_spill] sm:$0xff]  ;;  %s7078_s29 = smov 60  }
0x1224   : > { %5867 = vrot.lane.b32.xlu1 %v11340_v3, %s10991_s1  ;;  %s7064_s1 = smov 31  }
0x1228   : > { %5905 = vrot.lane.b32.xlu1 %v11265_v16, %s10992_s27  ;;  %s7065_s27 = smov 33  }
0x122c   : > { %5961 = vperm.xlu1 %6909, %v6661_v51   ;;  %v3634_v51 = vmul.f32 %v11440_v14, %v11439_v34 }
0x1230   : > { %5947 = vrot.lane.b32.xlu1 %v11360_v30, %s10993_s17  ;;  %s10998_s17 = smov 34  }
0x1234   : > { %5985 = vrot.lane.b32.xlu1 %v11422_v21, %s7063_s20 }
0x1238   : > { %6041 = vperm.xlu1 %6909, %v6663_v60   ;;  %v11441_v60 = vld [vmem:[#allocation80_spill] sm:$0xff] }
0x123c   : > { %6027 = vrot.lane.b32.xlu1 %v8364_v24, %s7064_s1 }
0x1240   : > { %6109 = vperm.xlu1 %6909, %v6665_v48   ;;  %v3268_v48 = vmul.f32 %v3262_v50, %v11441_v60  ;;  %v11449_v50 = vld [vmem:[#allocation81_spill] sm:$0xff] }
0x1242   : > { %v9773_v37 = vpop.permute.xlu1 %5666  ;;  %v3271_v31 = vadd.f32 %v3268_v48, %v3249_v36  ;;  %v9848_v17 = vpop.permute.xlu0 %5664  ;;  %v11450_v36 = vld [vmem:[#allocation91_spill] sm:$0xff]  ;;  %v6673_v48 = vld [vmem:[%s10640_s14 + $0x178] sm:$0xff] }
0x1243   : > { %v3494_v19 = vmul.f32 %v3488_v40, %v11450_v36 }
0x1244   : > { %6095 = vrot.lane.b32.xlu1 %v8385_v47, %s7065_s27 }
0x1246   : > { %v9781_v15 = vpop.permute.xlu1 %5679  ;;  %v9871_v5 = vpop.permute.xlu0 %5668 }
0x1247   : > { %v5688_v1 = vmul.f32 %v9781_v15, %v8374_v4 }
0x1248   : > { %6133 = vrot.lane.b32.xlu1 %v11339_v42, %s10998_s17  ;;  %s7070_s17 = smov 46  }
0x124c   : > { %6189 = vperm.xlu1 %6909, %v6667_v11   ;;  %v3284_v11 = vrot.slane %v9786_v53, %v7480_v8 }
0x1250   : > { %6175 = vrot.lane.b32.xlu1 %v8414_v28, %s10995_s18  ;;  %s11001_s18 = smov 64  }
0x1253   : > { %v9793_v20 = vpop.permute.xlu1 %5695 }
0x1254   : > { %v5698_v35 = vmul.f32 %v9793_v20, %v5688_v1  ;;  %6213 = vrot.lane.b32.xlu1 %v11428_v43, %s10996_s30  ;;  %s11433_s30 = smov 14   ;;  %v3636_v1 = vadd.f32 %v3634_v51, %v3628_v44  ;;  %v3328_v44 = vrot.slane %v9786_v53, %v7759_v52 }
0x1256   : > { %5704 = vrot.lane.b32.xlu0 %v5698_v35, %s11001_s18  ;;  %v11445_v35 = vld [vmem:[#allocation75_spill] sm:$0xff]  ;;  %v3644_v26 = vadd.f32 %v3642_v13, %v3636_v1  ;;  %v3532_v13 = vrot.slane %v9807_v10, %v7759_v52 }
0x1257   : > { %v9832_v7 = vpop.permute.xlu1 %5735  ;;  %v3290_v56 = vmul.f32 %v3284_v11, %v11445_v35  ;;  %v11452_v11 = vld [vmem:[#allocation77_spill] sm:$0xff] }
0x1258   : > { %6267 = vperm.xlu1 %6909, %v6669_v18   ;;  %v11446_v18 = vld [vmem:[#allocation90_spill] sm:$0xff]  ;;  %v3652_v34 = vadd.f32 %v3650_v0, %v3644_v26  ;;  %v9894_v26 = vpop.permute.xlu0 %5681  ;;  %v3538_v0 = vmul.f32 %v3532_v13, %v11460_v2  ;;  %v6660_v13 = vld [vmem:[%s10640_s14 + $0x110] sm:$0xff] }
0x1259   : > { %v3472_v12 = vmul.f32 %v3466_v29, %v11446_v18  ;;  %v3293_v54 = vadd.f32 %v3290_v56, %v3271_v31  ;;  %v11453_v29 = vld [vmem:[#allocation99_spill] sm:$0xff]  ;;  %v11454_v31 = vld [vmem:[#allocation82_spill] sm:$0xff] }
0x125a   : > { %5719 = vrot.lane.b32.xlu0 %v11422_v21, %s11433_s30  ;;  %s7071_s30 = smov 47   ;;  %v3658_v1 = vmul.f32 %v11453_v29, %v11452_v11  ;;  %v11456_v18 = vld [vmem:[#allocation126_spill] sm:$0xff]  ;;  %v11463_v11 = vld [vmem:[#allocation160_spill] sm:$0xff] }
0x125b   : > { %v9858_v49 = vpop.permute.xlu1 %5721  ;;  %v3475_v9 = vadd.f32 %v3472_v12, %v3453_v58  ;;  %v3334_v58 = vmul.f32 %v3328_v44, %v11454_v31  ;;  %v11457_v12 = vld [vmem:[#allocation104_spill] sm:$0xff] }
0x125c   : > { %6254 = vrot.lane.b32.xlu1 %v11436_v61, %s7070_s17  ;;  %v3660_v35 = vadd.f32 %v3658_v1, %v3652_v34  ;;  %v3666_v40 = vmul.f32 %v11457_v12, %v11456_v18  ;;  %v6672_v2 = vld [vmem:[%s10640_s14 + $0x170] sm:$0xff] }
0x125d   : > { %v3497_v51 = vadd.f32 %v3494_v19, %v3475_v9  ;;  %v11459_v9 = vld [vmem:[#allocation76_spill] sm:$0xff]  ;;  %v5684_v19 = vsel %vm5683_vm4, %v9781_v15, %v9894_v26  ;;  %vm11005_vm4 = vcmask 236544  }
0x125e   : > { %5774 = vperm.xlu0 %6907, %v6656_v46   ;;  %v3312_v46 = vmul.f32 %v3306_v62, %v11449_v50  ;;  %v3554_v50 = vrot.slane %v9807_v10, %v7791_v33  ;;  %v5689_v29 = vmul.f32 %v5684_v19, %v11463_v11  ;;  %v5690_v19 = vmul.f32 0.0, %v9894_v26 }
0x125f   : > { %v9875_v60 = vpop.permute.xlu1 %5759  ;;  %v3519_v62 = vadd.f32 %v3516_v38, %v3497_v51 }
0x1260   : > { %6290 = vrot.lane.b32.xlu1 %v11442_v63, %s7071_s30  ;;  %v3315_v14 = vadd.f32 %v3312_v46, %v3293_v54  ;;  %v11458_v54 = vld [vmem:[#allocation65_spill] sm:$0xff]  ;;  %v5699_v15 = vmul.f32 %v9793_v20, %v5689_v29 }
0x1261   : > { %v3541_v36 = vadd.f32 %v3538_v0, %v3519_v62  ;;  %v6662_v62 = vld [vmem:[%s10640_s14 + $0x120] sm:$0xff] }
0x1262   : > { %5761 = vrot.lane.b32.xlu0 %v8364_v24, %s11382_s2  ;;  %s7072_s2 = smov 49   ;;  %v3337_v56 = vadd.f32 %v3334_v58, %v3315_v14  ;;  %v11462_v14 = vld [vmem:[#allocation89_spill] sm:$0xff] }
0x1263   : > { %v9902_v46 = vpop.permute.xlu1 %5802  ;;  %v3560_v51 = vmul.f32 %v3554_v50, %v11462_v14 }
0x1264   : > { %6332 = vperm.xlu1 %6909, %v6671_v45   ;;  %v3350_v45 = vrot.slane %v9786_v53, %v7791_v33 }
0x1265   : > { %v3563_v31 = vadd.f32 %v3560_v51, %v3541_v36 }
0x1266   : > { %5841 = vperm.xlu0 %6907, %v6658_v57   ;;  %v3372_v57 = vrot.slane %v9786_v53, %v7788_v39  ;;  %v3356_v22 = vmul.f32 %v3350_v45, %v11459_v9  ;;  %v3668_v53 = vadd.f32 %v3666_v40, %v3660_v35  ;;  %v11464_v45 = vld [vmem:[#allocation94_spill] sm:$0xff]  ;;  %v6664_v40 = vld [vmem:[%s10640_s14 + $0x130] sm:$0xff] }
0x1267   : > { %v9916_v58 = vpop.permute.xlu1 %5826 }
0x1268   : > { %6355 = vrot.lane.b32.xlu1 %v11451_v6, %s7072_s2  ;;  %v3359_v44 = vadd.f32 %v3356_v22, %v3337_v56  ;;  %v3378_v34 = vmul.f32 %v3372_v57, %v11461_v59 }
0x126a   : > { %5828 = vrot.lane.b32.xlu0 %v8385_v47, %s11127_s28  ;;  %v3381_v1 = vadd.f32 %v3378_v34, %v3359_v44  ;;  %v5730_v44 = vmul.f32 0.0, %v9858_v49  ;;  %v5700_v34 = vmul.f32 %v9793_v20, %v5690_v19 }
0x126c   : > { %6411 = vperm.xlu1 %6909, %v6673_v48   ;;  %v3576_v48 = vrot.slane %v9807_v10, %v7788_v39  ;;  %v9923_v10 = vpop.permute.xlu1 %5881 }
0x126e   : > { %3175 = vrot.lane.b32.xlu0 %v11458_v54, %s11194_s19  ;;  %s11000_s19 = smov 51   ;;  %v3582_v25 = vmul.f32 %v3576_v48, %v11464_v45 }
0x1270   : > { %6397 = vrot.lane.b32.xlu1 %v11340_v3, %s11002_s3  ;;  %v3585_v38 = vadd.f32 %v3582_v25, %v3563_v31  ;;  %v9930_v35 = vpop.permute.xlu1 %3177  ;;  %s7077_s3 = smov 61  }
0x1271   : > { %11466 = vst [vmem:[#allocation133_spill] sm:$0xff] %v9930_v35 }
0x1272   : > { %3673 = vrot.lane.b32.xlu0 %v3668_v53, %s11218_s21  ;;  %s11465_s21 = smov 18  }
0x1274   : > { %6435 = vrot.lane.b32.xlu1 %v11265_v16, %s11000_s19  ;;  %v9934_v56 = vpop.permute.xlu1 %3671  ;;  %s11485_s19 = smov 64  }
0x1275   : > { %11468 = vst [vmem:[#allocation129_spill] sm:$0xff] %v9934_v56 }
0x1276   : > { %3388 = vrot.lane.b32.xlu0 %v3381_v1, %s11195_s23  ;;  %s11467_s23 = smov 19  }
0x1278   : > { %5706 = vrot.lane.b32.xlu1 %v5699_v15, %s11001_s18  ;;  %s11469_s18 = smov 29   ;;  %v9941_v18 = vpop.permute.xlu1 %4272 }
0x1279   : > { %11470 = vst [vmem:[#allocation86_spill] sm:$0xff] %v9941_v18 }
0x127a   : > { %3592 = vrot.lane.b32.xlu0 %v3585_v38, %s11198_s26  ;;  %s11476_s26 = smov 35  }
0x127c   : > { %v9945_v12 = vpop.permute.xlu1 %4274 }
0x127d   : > { %11471 = vst [vmem:[#allocation101_spill] sm:$0xff] %v9945_v12 }
0x127e   : > { %5865 = vrot.lane.b32.xlu0 %v11339_v42, %s11465_s21  ;;  %s11483_s21 = smov 50  }
0x1282   : > { %5921 = vperm.xlu0 %6907, %v6660_v13   ;;  %v5806_v13 = vmul.f32 %v9902_v46, %v11463_v11 }
0x1286   : > { %5907 = vrot.lane.b32.xlu0 %v8414_v28, %s11467_s23  ;;  %s11475_s23 = smov 34  }
0x128a   : > { %5945 = vrot.lane.b32.xlu0 %v11428_v43, %s11469_s18  ;;  %v9952_v43 = vpop.permute.xlu1 %3390 }
0x128b   : > { %11472 = vst [vmem:[#allocation105_spill] sm:$0xff] %v9952_v43 }
0x128e   : > { %6001 = vperm.xlu0 %6907, %v6662_v62   ;;  %v9956_v57 = vpop.permute.xlu1 %3594  ;;  %v5805_v62 = vmul.f32 %v9902_v46, %v8374_v4 }
0x128f   : > { %11473 = vst [vmem:[#allocation127_spill] sm:$0xff] %v9956_v57 }
0x1292   : > { %5987 = vrot.lane.b32.xlu0 %v11436_v61, %s7063_s20  ;;  %v6666_v61 = vld [vmem:[%s10640_s14 + $0x140] sm:$0xff]  ;;  %v9961_v54 = vpop.permute.xlu1 %3875 }
0x1293   : > { %11474 = vst [vmem:[#allocation116_spill] sm:$0xff] %v9961_v54 }
0x1296   : > { %6025 = vrot.lane.b32.xlu0 %v11442_v63, %s7064_s1  ;;  %v9967_v63 = vpop.permute.xlu1 %3877 }
0x1297   : > { %11477 = vst [vmem:[#allocation113_spill] sm:$0xff] %v9967_v63 }
0x129a   : > { %6069 = vperm.xlu0 %6907, %v6664_v40   ;;  %v9972_v9 = vpop.permute.xlu1 %4079 }
0x129b   : > { %11478 = vst [vmem:[#allocation139_spill] sm:$0xff] %v9972_v9 }
0x129e   : > { %6093 = vrot.lane.b32.xlu0 %v11451_v6, %s7065_s27  ;;  %v6668_v6 = vld [vmem:[%s10640_s14 + $0x150] sm:$0xff]  ;;  %s11479_s27 = smov 45   ;;  %v9978_v22 = vpop.permute.xlu1 %4081 }
0x129f   : > { %11480 = vst [vmem:[#allocation136_spill] sm:$0xff] %v9978_v22 }
0x12a2   : > { %6149 = vperm.xlu0 %6907, %v6666_v61  }
0x12a6   : > { %6135 = vrot.lane.b32.xlu0 %v11340_v3, %s11475_s23  ;;  %v9983_v3 = vpop.permute.xlu1 %4476 }
0x12a7   : > { %11481 = vst [vmem:[#allocation131_spill] sm:$0xff] %v9983_v3 }
0x12aa   : > { %6173 = vrot.lane.b32.xlu0 %v11265_v16, %s11476_s26  ;;  %v6670_v16 = vld [vmem:[%s10640_s14 + $0x160] sm:$0xff]  ;;  %s11484_s26 = smov 51  }
0x12ae   : > { %6228 = vperm.xlu0 %6907, %v6668_v6  }
0x12b2   : > { %6215 = vrot.lane.b32.xlu0 %v11360_v30, %s11479_s27  ;;  %v9990_v30 = vpop.permute.xlu1 %4478 }
0x12b3   : > { %11482 = vst [vmem:[#allocation132_spill] sm:$0xff] %v9990_v30 }
0x12b6   : > { %6252 = vrot.lane.b32.xlu0 %v11422_v21, %s7070_s17  ;;  %v9996_v0 = vpop.permute.xlu1 %5867 }
0x12ba   : > { %6305 = vperm.xlu0 %6907, %v6670_v16   ;;  %v10005_v36 = vpop.permute.xlu1 %5905 }
0x12be   : > { %6292 = vrot.lane.b32.xlu0 %v8364_v24, %s7071_s30  ;;  %v6674_v24 = vld [vmem:[%s10640_s14 + $0x180] sm:$0xff]  ;;  %v10015_v51 = vpop.permute.xlu1 %5961 }
0x12c2   : > { %6371 = vperm.xlu0 %6907, %v6672_v2   ;;  %v10021_v29 = vpop.permute.xlu1 %5947 }
0x12c6   : > { %6357 = vrot.lane.b32.xlu0 %v8385_v47, %s7072_s2  ;;  %s7075_s2 = smov 63   ;;  %v10026_v25 = vpop.permute.xlu1 %5985 }
0x12c8   : > { %v9994_v21 = vpop.permute.xlu0 %5704 }
0x12ca   : > { %6395 = vrot.lane.b32.xlu0 %v11339_v42, %s11483_s21  ;;  %v5740_v42 = vmul.f32 %v9832_v7, %v5730_v44  ;;  %s7076_s21 = smov 62   ;;  %v10036_v6 = vpop.permute.xlu1 %6041 }
0x12cc   : > { %v5720_v50 = vpop.permute.xlu0 %5719 }
0x12cd   : > { %v5728_v53 = vmul.f32 %v5720_v50, %v8374_v4  ;;  %v5724_v59 = vsel %vm5723_vm10, %v5720_v50, %v9858_v49  ;;  %v5767_v49 = vmul.f32 %v9875_v60, %v8374_v4  ;;  %vm4606_vm10 = vcmask 629760  }
0x12ce   : > { %6451 = vperm.xlu0 %6907, %v6674_v24   ;;  %v5729_v14 = vmul.f32 %v5724_v59, %v11463_v11  ;;  %v5807_v24 = vmul.f32 0.0, %v9902_v46 }
0x12cf   : > { %v5738_v47 = vmul.f32 %v9832_v7, %v5728_v53 }
0x12d0   : > { %v5739_v26 = vmul.f32 %v9832_v7, %v5729_v14 }
0x12d1   : > { %5744 = vrot.lane.b32.xlu1 %v5738_v47, %s7075_s2  ;;  %v10042_v47 = vpop.permute.xlu1 %6027 }
0x12d2   : > { %6437 = vrot.lane.b32.xlu0 %v8414_v28, %s11484_s26  ;;  %s7080_s26 = smov 58  }
0x12d5   : > { %5748 = vrot.lane.b32.xlu1 %v5740_v42, %s7075_s2  ;;  %v10048_v42 = vpop.permute.xlu1 %6109 }
0x12d6   : > { %5708 = vrot.lane.b32.xlu0 %v5700_v34, %s11485_s19  ;;  %s7081_s19 = smov 48  }
0x12d9   : > { %v5775_v48 = vpop.permute.xlu0 %5774  ;;  %v10052_v34 = vpop.permute.xlu1 %6095 }
0x12da   : > { %5746 = vrot.lane.b32.xlu0 %v5739_v26, %s7075_s2  ;;  %v5777_v28 = vmul.f32 %v5775_v48, %v5767_v49  ;;  %s7079_s2 = smov 59  }
0x12dd   : > { %v5762_v1 = vpop.permute.xlu0 %5761 }
0x12de   : > { %v5763_v20 = vsel %vm2228_vm5, %v9875_v60, %v5762_v1  ;;  %v5769_v31 = vmul.f32 0.0, %v5762_v1  ;;  %5783 = vrot.lane.b32.xlu0 %v5777_v28, %s7076_s21  ;;  %v5834_v60 = vmul.f32 %v9916_v58, %v8374_v4  ;;  %vm5869_vm5 = vcmask 146432  }
0x12df   : > { %v5768_v15 = vmul.f32 %v5763_v20, %v11463_v11  ;;  %v5876_v28 = vmul.f32 0.0, %v9996_v0 }
0x12e0   : > { %v5779_v45 = vmul.f32 %v5775_v48, %v5769_v31 }
0x12e1   : > { %v5778_v7 = vmul.f32 %v5775_v48, %v5768_v15  ;;  %v5842_v38 = vpop.permute.xlu0 %5841  ;;  %v5914_v15 = vmul.f32 %v10005_v36, %v8374_v4 }
0x12e2   : > { %5787 = vrot.lane.b32.xlu0 %v5779_v45, %s7076_s21  ;;  %v5844_v16 = vmul.f32 %v5842_v38, %v5834_v60  ;;  %v10062_v45 = vpop.permute.xlu1 %6133 }
0x12e3   : > { %5785 = vrot.lane.b32.xlu1 %v5778_v7, %s7076_s21  ;;  %v5886_v7 = vmul.f32 %v9923_v10, %v5876_v28  ;;  %s7085_s21 = smov 32  }
0x12e5   : > { %v5829_v40 = vpop.permute.xlu0 %5828 }
0x12e6   : > { %v5830_v61 = vsel %vm11003_vm6, %v9916_v58, %v5829_v40  ;;  %5813 = vrot.lane.b32.xlu0 %v5806_v13, %s7077_s3  ;;  %v5836_v2 = vmul.f32 0.0, %v5829_v40  ;;  %vm6097_vm6 = vcmask 269312  }
0x12e7   : > { %5811 = vrot.lane.b32.xlu1 %v5805_v62, %s7077_s3  ;;  %v5835_v50 = vmul.f32 %v5830_v61, %v11463_v11  ;;  %v10067_v61 = vpop.permute.xlu1 %6189 }
0x12e8   : > { %v5846_v44 = vmul.f32 %v5842_v38, %v5836_v2 }
0x12e9   : > { %v10040_v53 = vpop.permute.xlu0 %3175  ;;  %v5845_v58 = vmul.f32 %v5842_v38, %v5835_v50 }
0x12ea   : > { %5850 = vrot.lane.b32.xlu0 %v5844_v16, %s7078_s29 }
0x12eb   : > { %5815 = vrot.lane.b32.xlu1 %v5807_v24, %s7077_s3 }
0x12ed   : > { %v10044_v19 = vpop.permute.xlu0 %3673 }
0x12ee   : > { %11486 = vst [vmem:[#allocation128_spill] sm:$0xff] %v10044_v19  ;;  %5854 = vrot.lane.b32.xlu0 %v5846_v44, %s7078_s29  ;;  %v5956_v44 = vmul.f32 0.0, %v10021_v29 }
0x12ef   : > { %5852 = vrot.lane.b32.xlu1 %v5845_v58, %s7078_s29 }
0x12f1   : > { %v10046_v59 = vpop.permute.xlu0 %3388 }
0x12f5   : > { %v10050_v46 = vpop.permute.xlu0 %3592 }
0x12f9   : > { %v5866_v14 = vpop.permute.xlu0 %5865 }
0x12fa   : > { %v5870_v26 = vsel %vm5869_vm5, %v5866_v14, %v9996_v0  ;;  %v5874_v48 = vmul.f32 %v5866_v14, %v8374_v4  ;;  %vm5989_vm5 = vcmask 244736  }
0x12fb   : > { %v5875_v49 = vmul.f32 %v5870_v26, %v11463_v11  ;;  %v5994_v26 = vmul.f32 %v10026_v25, %v8374_v4 }
0x12fc   : > { %v5884_v1 = vmul.f32 %v9923_v10, %v5874_v48  ;;  %v10078_v48 = vpop.permute.xlu1 %6175 }
0x12fd   : > { %v5885_v20 = vmul.f32 %v9923_v10, %v5875_v49  ;;  %v5922_v31 = vpop.permute.xlu0 %5921  ;;  %v11487_v49 = vld [vmem:[#allocation156_spill] sm:$0xff] }
0x12fe   : > { %5890 = vrot.lane.b32.xlu1 %v5884_v1, %s7079_s2  ;;  %v5924_v38 = vmul.f32 %v5922_v31, %v5914_v15  ;;  %v4613_v28 = vmul.f32 %v11487_v49, %v11463_v11  ;;  %v11488_v1 = vld [vmem:[#allocation157_spill] sm:$0xff] }
0x12ff   : > { %5892 = vrot.lane.b32.xlu0 %v5885_v20, %s7079_s2  ;;  %v5966_v20 = vmul.f32 %v10015_v51, %v5956_v44  ;;  %v11490_v44 = vld [vmem:[#allocation41_spill] sm:$0xff] }
0x1301   : > { %v5908_v13 = vpop.permute.xlu0 %5907 }
0x1302   : > { %v5910_v0 = vsel %vm5909_vm8, %v10005_v36, %v5908_v13  ;;  %v5916_v62 = vmul.f32 0.0, %v5908_v13  ;;  %5894 = vrot.lane.b32.xlu1 %v5886_v7, %s7079_s2  ;;  %v4611_v7 = vmul.f32 0.0, %v11488_v1  ;;  %vm6029_vm8 = vcmask 252928  }
0x1303   : > { %v5915_v40 = vmul.f32 %v5910_v0, %v11463_v11  ;;  %5930 = vrot.lane.b32.xlu0 %v5924_v38, %s7080_s26 }
0x1304   : > { %v5926_v60 = vmul.f32 %v5922_v31, %v5916_v62 }
0x1305   : > { %v5925_v16 = vmul.f32 %v5922_v31, %v5915_v40  ;;  %v5946_v2 = vpop.permute.xlu0 %5945  ;;  %v11489_v40 = vld [vmem:[#allocation158_spill] sm:$0xff] }
0x1306   : > { %v5950_v24 = vsel %vm11005_vm4, %v5946_v2, %v10021_v29  ;;  %v5954_v10 = vmul.f32 %v5946_v2, %v8374_v4  ;;  %v4607_v29 = vsel %vm4606_vm10, %v11488_v1, %v11487_v49  ;;  %v10094_v2 = vpop.permute.xlu1 %6213  ;;  %vm4839_vm4 = vcmask 1006592  }
0x1307   : > { %v5955_v50 = vmul.f32 %v5950_v24, %v11463_v11  ;;  %5934 = vrot.lane.b32.xlu0 %v5926_v60, %s7080_s26  ;;  %5932 = vrot.lane.b32.xlu1 %v5925_v16, %s7080_s26  ;;  %v4612_v38 = vmul.f32 %v4607_v29, %v8374_v4  ;;  %v4620_v60 = vmul.f32 %v11489_v40, %v4611_v7  ;;  %v11495_v7 = vld [vmem:[#allocation162_spill] sm:$0xff]  ;;  %s6681_s26 = sshll.u32 %s7196_s25, 8 }
0x1308   : > { %v5964_v36 = vmul.f32 %v10015_v51, %v5954_v10 }
0x1309   : > { %v5965_v58 = vmul.f32 %v10015_v51, %v5955_v50  ;;  %v6002_v14 = vpop.permute.xlu0 %6001  ;;  %v4622_v51 = vmul.f32 %v11489_v40, %v4613_v28  ;;  %v4621_v50 = vmul.f32 %v11489_v40, %v4612_v38  ;;  %v11492_v28 = vld [vmem:[#allocation155_spill] sm:$0xff] }
0x130a   : > { %v6004_v31 = vmul.f32 %v6002_v14, %v5994_v26 }
0x130b   : > { %5970 = vrot.lane.b32.xlu1 %v5964_v36, %s7081_s19  ;;  %5972 = vrot.lane.b32.xlu0 %v5965_v58, %s7081_s19  ;;  %v11491_v58 = vld [vmem:[#allocation161_spill] sm:$0xff]  ;;  %v4625_v1 = vadd.f32 %v4622_v51, %v11492_v28  ;;  %v4624_v40 = vadd.f32 %v4621_v50, %v11492_v28 }
0x130c   : > { %v4666_v26 = vsel %vm11004_vm2, %v11491_v58, %v11490_v44 }
0x130d   : > { %v5988_v15 = vpop.permute.xlu0 %5987 }
0x130e   : > { %v5990_v13 = vsel %vm5989_vm5, %v10026_v25, %v5988_v15  ;;  %v5996_v0 = vmul.f32 0.0, %v5988_v15  ;;  %v11494_v15 = vld [vmem:[#allocation42_spill] sm:$0xff] }
0x130f   : > { %v5995_v62 = vmul.f32 %v5990_v13, %v11463_v11  ;;  %5974 = vrot.lane.b32.xlu1 %v5966_v20, %s7081_s19  ;;  %6010 = vrot.lane.b32.xlu0 %v6004_v31, %s7071_s30  ;;  %v11493_v20 = vld [vmem:[#allocation31_spill] sm:$0xff]  ;;  %v4714_v38 = vsel %vm11006_vm9, %v11495_v7, %v11494_v15  ;;  %v6036_v13 = vmul.f32 0.0, %v10042_v47 }
0x1310   : > { %v6006_v16 = vmul.f32 %v6002_v14, %v5996_v0  ;;  %v4667_v31 = vsel %vm11004_vm2, %v11490_v44, %v11493_v20  ;;  %v4673_v51 = vadd.f32 %v11493_v20, %v4625_v1  ;;  %vm4790_vm2 = vcmask 1014784  }
0x1311   : > { %v6005_v24 = vmul.f32 %v6002_v14, %v5995_v62  ;;  %v6026_v10 = vpop.permute.xlu0 %6025  ;;  %v4623_v14 = vadd.f32 %v4620_v60, %v11492_v28  ;;  %v6046_v50 = vmul.f32 %v10036_v6, %v6036_v13  ;;  %v11497_v28 = vld [vmem:[#allocation33_spill] sm:$0xff]  ;;  %v11502_v13 = vld [vmem:[#allocation167_spill] sm:$0xff] }
0x1312   : > { %v6030_v25 = vsel %vm6029_vm8, %v6026_v10, %v10042_v47  ;;  %v6034_v36 = vmul.f32 %v6026_v10, %v8374_v4  ;;  %v10122_v10 = vpop.permute.xlu1 %6267  ;;  %v4672_v47 = vadd.f32 %v4667_v31, %v4624_v40  ;;  %v11500_v31 = vld [vmem:[#allocation35_spill] sm:$0xff]  ;;  %v11503_v40 = vld [vmem:[#allocation26_spill] sm:$0xff] }
0x1313   : > { %v6035_v49 = vmul.f32 %v6030_v25, %v11463_v11  ;;  %6014 = vrot.lane.b32.xlu0 %v6006_v16, %s7071_s30  ;;  %6012 = vrot.lane.b32.xlu1 %v6005_v24, %s7071_s30  ;;  %v4671_v60 = vadd.f32 %v4666_v26, %v4623_v14  ;;  %v11496_v16 = vld [vmem:[#allocation24_spill] sm:$0xff]  ;;  %v11498_v14 = vld [vmem:[#allocation163_spill] sm:$0xff]  ;;  %s7083_s30 = smov 43  }
0x1314   : > { %v6044_v29 = vmul.f32 %v10036_v6, %v6034_v36  ;;  %v4715_v24 = vsel %vm11006_vm9, %v11494_v15, %v11496_v16  ;;  %v4721_v25 = vadd.f32 %v11496_v16, %v4673_v51  ;;  %v4742_v1 = vsel %vm4741_vm1, %v11498_v14, %v11497_v28  ;;  %v11501_v15 = vld [vmem:[#allocation164_spill] sm:$0xff] }
0x1315   : > { %v6045_v0 = vmul.f32 %v10036_v6, %v6035_v49  ;;  %v6070_v62 = vpop.permute.xlu0 %6069  ;;  %v4719_v36 = vadd.f32 %v4714_v38, %v4671_v60  ;;  %v4720_v26 = vadd.f32 %v4715_v24, %v4672_v47  ;;  %v4791_v7 = vsel %vm4790_vm2, %v11501_v15, %v11500_v31  ;;  %v11504_v60 = vld [vmem:[#allocation165_spill] sm:$0xff]  ;;  %v11507_v15 = vld [vmem:[#allocation166_spill] sm:$0xff] }
0x1316   : > { %v6072_v44 = vmul.f32 %v6070_v62, %v8374_v4  ;;  %vm4888_vm9 = vcmask 998400   ;;  %v4840_v51 = vsel %vm4839_vm4, %v11504_v60, %v11503_v40  ;;  %v10146_v16 = vpop.permute.xlu1 %6254  ;;  %v6073_v24 = vmul.f32 %v6070_v62, %v11463_v11 }
0x1317   : > { %6050 = vrot.lane.b32.xlu1 %v6044_v29, %s7070_s17  ;;  %6052 = vrot.lane.b32.xlu0 %v6045_v0, %s7070_s17  ;;  %v11499_v29 = vld [vmem:[#allocation22_spill] sm:$0xff]  ;;  %v4747_v38 = vadd.f32 %v4742_v1, %v4719_v36  ;;  %v4792_v0 = vsel %vm4790_vm2, %v11500_v31, %v11502_v13  ;;  %v6074_v47 = vmul.f32 0.0, %v6070_v62  ;;  %v11505_v1 = vld [vmem:[#allocation168_spill] sm:$0xff]  ;;  %v11506_v31 = vld [vmem:[#allocation37_spill] sm:$0xff]  ;;  %vm11009_vm2 = vcmask 277504  }
0x1318   : > { %v4743_v20 = vsel %vm4741_vm1, %v11497_v28, %v11499_v29  ;;  %v4749_v6 = vadd.f32 %v11499_v29, %v4721_v25  ;;  %v4841_v29 = vsel %vm4839_vm4, %v11503_v40, %v11505_v1  ;;  %v4889_v60 = vsel %vm4888_vm9, %v11507_v15, %v11506_v31 }
0x1319   : > { %v6094_v58 = vpop.permute.xlu0 %6093  ;;  %v4748_v14 = vadd.f32 %v4743_v20, %v4720_v26  ;;  %v4796_v36 = vadd.f32 %v4791_v7, %v4747_v38  ;;  %v11509_v7 = vld [vmem:[#allocation30_spill] sm:$0xff]  ;;  %vm5071_vm1 = vcmask 883712   ;;  %vm5151_vm4 = vcmask 867328  }
0x131a   : > { %v6098_v49 = vsel %vm6097_vm6, %v6094_v58, %v10052_v34  ;;  %v6102_v28 = vmul.f32 %v6094_v58, %v8374_v4  ;;  %v4798_v25 = vadd.f32 %v11502_v13, %v4749_v6  ;;  %v11510_v6 = vld [vmem:[#allocation28_spill] sm:$0xff]  ;;  %v6104_v13 = vmul.f32 0.0, %v10052_v34 }
0x131b   : > { %6054 = vrot.lane.b32.xlu1 %v6046_v50, %s7070_s17  ;;  %6078 = vrot.lane.b32.xlu0 %v6072_v44, %s11479_s27  ;;  %v6103_v50 = vmul.f32 %v6098_v49, %v11463_v11  ;;  %v4797_v62 = vadd.f32 %v4792_v0, %v4748_v14  ;;  %v4845_v26 = vadd.f32 %v4840_v51, %v4796_v36  ;;  %v11508_v49 = vld [vmem:[#allocation169_spill] sm:$0xff]  ;;  %s7082_s17 = smov 44   ;;  %vm6177_vm6 = vcmask 285696  }
0x131c   : > { %v4847_v58 = vadd.f32 %v11505_v1, %v4798_v25  ;;  %v4890_v20 = vsel %vm4888_vm9, %v11506_v31, %v11508_v49  ;;  %v4928_v38 = vsel %vm1915_vm7, %v11510_v6, %v11509_v7  ;;  %v6112_v40 = vmul.f32 %v10048_v42, %v6102_v28  ;;  %v11511_v25 = vld [vmem:[#allocation170_spill] sm:$0xff]  ;;  %v11512_v1 = vld [vmem:[#allocation173_spill] sm:$0xff]  ;;  %v11513_v31 = vld [vmem:[#allocation171_spill] sm:$0xff] }
0x131d   : > { %v6150_v44 = vpop.permute.xlu0 %6149  ;;  %v4846_v15 = vadd.f32 %v4841_v29, %v4797_v62  ;;  %v4894_v14 = vadd.f32 %v4889_v60, %v4845_v26  ;;  %v4929_v36 = vsel %vm1915_vm7, %v11509_v7, %v11511_v25  ;;  %v4966_v34 = vsel %vm1232_vm0, %v11513_v31, %v11512_v1 }
0x131e   : > { %v4896_v0 = vadd.f32 %v11508_v49, %v4847_v58  ;;  %v6142_v28 = vmul.f32 %v10062_v45, %v8374_v4  ;;  %v11514_v58 = vld [vmem:[#allocation172_spill] sm:$0xff]  ;;  %v6114_v49 = vmul.f32 %v10048_v42, %v6104_v13  ;;  %v11518_v13 = vld [vmem:[#allocation179_spill] sm:$0xff]  ;;  %vm5111_vm9 = vcmask 875520  }
0x131f   : > { %6080 = vrot.lane.b32.xlu1 %v6073_v24, %s11479_s27  ;;  %6082 = vrot.lane.b32.xlu0 %v6074_v47, %s11479_s27  ;;  %v6113_v24 = vmul.f32 %v10048_v42, %v6103_v50  ;;  %v10181_v50 = vpop.permute.xlu1 %6290  ;;  %v4895_v29 = vadd.f32 %v4890_v20, %v4846_v15  ;;  %v4933_v62 = vadd.f32 %v4928_v38, %v4894_v14  ;;  %v11516_v15 = vld [vmem:[#allocation175_spill] sm:$0xff]  ;;  %s7084_s27 = smov 42  }
0x1320   : > { %v4935_v60 = vadd.f32 %v11511_v25, %v4896_v0  ;;  %v4967_v26 = vsel %vm1232_vm0, %v11512_v1, %v11514_v58  ;;  %v6152_v7 = vmul.f32 %v6150_v44, %v6142_v28  ;;  %v11517_v0 = vld [vmem:[#allocation176_spill] sm:$0xff]  ;;  %v11520_v25 = vld [vmem:[#allocation178_spill] sm:$0xff] }
0x1321   : > { %v6136_v47 = vpop.permute.xlu0 %6135  ;;  %v4934_v30 = vadd.f32 %v4929_v36, %v4895_v29  ;;  %v4971_v12 = vadd.f32 %v4966_v34, %v4933_v62  ;;  %v5033_v36 = vsel %vm5031_vm11, %v11518_v13, %v11520_v25 }
0x1322   : > { %v6138_v51 = vsel %vm11009_vm2, %v10062_v45, %v6136_v47  ;;  %v6144_v45 = vmul.f32 0.0, %v6136_v47  ;;  %v4973_v20 = vadd.f32 %v11514_v58, %v4935_v60  ;;  %v11519_v47 = vld [vmem:[#allocation177_spill] sm:$0xff] }
0x1323   : > { %6118 = vrot.lane.b32.xlu1 %v6112_v40, %s7082_s17  ;;  %6120 = vrot.lane.b32.xlu0 %v6113_v24, %s7082_s17  ;;  %v6143_v6 = vmul.f32 %v6138_v51, %v11463_v11  ;;  %v11515_v24 = vld [vmem:[#allocation174_spill] sm:$0xff]  ;;  %v4972_v42 = vadd.f32 %v4967_v26, %v4934_v30  ;;  %v5032_v51 = vsel %vm5031_vm11, %v11519_v47, %v11518_v13  ;;  %v10203_v1 = vpop.permute.xlu1 %6332  ;;  %vm6084_vm11 = vcmask 367616  }
0x1324   : > { %v5004_v38 = vsel %vm2214_vm12, %v11516_v15, %v11515_v24  ;;  %v5005_v14 = vsel %vm2214_vm12, %v11515_v24, %v11517_v0  ;;  %v6154_v28 = vmul.f32 %v6150_v44, %v6144_v45  ;;  %v5011_v26 = vadd.f32 %v11517_v0, %v4973_v20  ;;  %v11523_v15 = vld [vmem:[#allocation71_spill] sm:$0xff] }
0x1325   : > { %v6174_v31 = vpop.permute.xlu0 %6173  ;;  %v6153_v34 = vmul.f32 %v6150_v44, %v6143_v6  ;;  %v5009_v58 = vadd.f32 %v5004_v38, %v4971_v12  ;;  %v5010_v30 = vadd.f32 %v5005_v14, %v4972_v42  ;;  %v11525_v12 = vld [vmem:[#allocation36_spill] sm:$0xff]  ;;  %v6184_v20 = vmul.f32 0.0, %v10078_v48 }
0x1326   : > { %v6178_v40 = vsel %vm6177_vm6, %v6174_v31, %v10078_v48  ;;  %v6182_v29 = vmul.f32 %v6174_v31, %v8374_v4  ;;  %v5039_v45 = vadd.f32 %v11520_v25, %v5011_v26  ;;  %v11524_v31 = vld [vmem:[#allocation39_spill] sm:$0xff]  ;;  %v11526_v25 = vld [vmem:[#allocation25_spill] sm:$0xff]  ;;  %vm6056_vm6 = vcmask 375808  }
0x1327   : > { %6122 = vrot.lane.b32.xlu1 %v6114_v49, %s7082_s17  ;;  %6158 = vrot.lane.b32.xlu0 %v6152_v7, %s7083_s30  ;;  %v6183_v60 = vmul.f32 %v6178_v40, %v11463_v11  ;;  %v11521_v49 = vld [vmem:[#allocation32_spill] sm:$0xff]  ;;  %v11522_v7 = vld [vmem:[#allocation34_spill] sm:$0xff]  ;;  %v5037_v44 = vadd.f32 %v5032_v51, %v5009_v58  ;;  %v5038_v6 = vadd.f32 %v5033_v36, %v5010_v30 }
0x1328   : > { %v5072_v24 = vsel %vm5071_vm1, %v11522_v7, %v11521_v49  ;;  %v5073_v13 = vsel %vm5071_vm1, %v11521_v49, %v11523_v15  ;;  %v5112_v40 = vsel %vm5111_vm9, %v11525_v12, %v11524_v31  ;;  %v6192_v38 = vmul.f32 %v10067_v61, %v6182_v29  ;;  %v11528_v58 = vld [vmem:[#allocation38_spill] sm:$0xff]  ;;  %v11529_v49 = vld [vmem:[#allocation72_spill] sm:$0xff] }
0x1329   : > { %v6229_v62 = vpop.permute.xlu0 %6228  ;;  %v6193_v0 = vmul.f32 %v10067_v61, %v6183_v60  ;;  %v5077_v42 = vadd.f32 %v5072_v24, %v5037_v44  ;;  %v5078_v47 = vadd.f32 %v5073_v13, %v5038_v6  ;;  %v5113_v36 = vsel %vm5111_vm9, %v11524_v31, %v11526_v25  ;;  %v10230_v60 = vpop.permute.xlu1 %6355  ;;  %v11530_v24 = vld [vmem:[#allocation27_spill] sm:$0xff] }
0x132a   : > { %v6221_v29 = vmul.f32 %v10094_v2, %v8374_v4  ;;  %v6194_v44 = vmul.f32 %v10067_v61, %v6184_v20  ;;  %vm6016_vm1 = vcmask 384000   ;;  %vm5331_vm9 = vcmask 752640  }
0x132b   : > { %6162 = vrot.lane.b32.xlu0 %v6154_v28, %s7083_s30  ;;  %6160 = vrot.lane.b32.xlu1 %v6153_v34, %s7083_s30  ;;  %v5079_v34 = vadd.f32 %v11523_v15, %v5039_v45  ;;  %v11527_v28 = vld [vmem:[#allocation40_spill] sm:$0xff]  ;;  %v5117_v26 = vadd.f32 %v5112_v40, %v5077_v42  ;;  %v5118_v12 = vadd.f32 %v5113_v36, %v5078_v47  ;;  %v11532_v42 = vld [vmem:[#allocation45_spill] sm:$0xff]  ;;  %s10583_s30 = scalar_lea.hbm %s10642_s16, %s6681_s26 }
0x132c   : > { %v5152_v48 = vsel %vm5151_vm4, %v11528_v58, %v11527_v28  ;;  %v5153_v7 = vsel %vm5151_vm4, %v11527_v28, %v11529_v49  ;;  %v11531_v15 = vld [vmem:[#allocation48_spill] sm:$0xff]  ;;  %v11535_v47 = vld [vmem:[#allocation49_spill] sm:$0xff]  ;;  %vm5371_vm4 = vcmask 744448  }
0x132d   : > { %v6216_v14 = vpop.permute.xlu0 %6215  ;;  %v5119_v30 = vadd.f32 %v11526_v25, %v5079_v34  ;;  %v5190_v13 = vsel %vm615_vm3, %v11531_v15, %v11530_v24  ;;  %v5191_v34 = vsel %vm615_vm3, %v11530_v24, %v11532_v42  ;;  %v5158_v61 = vadd.f32 %v5153_v7, %v5118_v12  ;;  %v11533_v25 = vld [vmem:[#allocation151_spill] sm:$0xff]  ;;  %v10253_v28 = vpop.permute.xlu1 %6411  ;;  %v11536_v15 = vld [vmem:[#allocation180_spill] sm:$0xff] }
0x132e   : > { %v6217_v51 = vsel %vm6084_vm11, %v10094_v2, %v6216_v14  ;;  %v6231_v2 = vmul.f32 %v6229_v62, %v6221_v29  ;;  %v6223_v45 = vmul.f32 0.0, %v6216_v14  ;;  %v5229_v36 = vsel %vm2562_vm15, %v11533_v25, %v11535_v47  ;;  %v11540_v12 = vld [vmem:[#allocation183_spill] sm:$0xff] }
0x132f   : > { %6198 = vrot.lane.b32.xlu1 %v6192_v38, %s7084_s27  ;;  %6200 = vrot.lane.b32.xlu0 %v6193_v0, %s7084_s27  ;;  %v6222_v6 = vmul.f32 %v6217_v51, %v11463_v11  ;;  %v5157_v38 = vadd.f32 %v5152_v48, %v5117_v26  ;;  %v5159_v0 = vadd.f32 %v11529_v49, %v5119_v30  ;;  %v11534_v51 = vld [vmem:[#allocation47_spill] sm:$0xff] }
0x1330   : > { %v5228_v14 = vsel %vm2562_vm15, %v11534_v51, %v11533_v25  ;;  %v6233_v48 = vmul.f32 %v6229_v62, %v6223_v45  ;;  %v5196_v49 = vadd.f32 %v5191_v34, %v5158_v61 }
0x1331   : > { %v6253_v31 = vpop.permute.xlu0 %6252  ;;  %v5195_v20 = vadd.f32 %v5190_v13, %v5157_v38  ;;  %v6232_v58 = vmul.f32 %v6229_v62, %v6222_v6  ;;  %v5197_v7 = vadd.f32 %v11532_v42, %v5159_v0  ;;  %v11537_v13 = vld [vmem:[#allocation181_spill] sm:$0xff]  ;;  %v11538_v62 = vld [vmem:[#allocation182_spill] sm:$0xff] }
0x1332   : > { %v6256_v40 = vsel %vm6056_vm6, %v6253_v31, %v10146_v16  ;;  %v6260_v29 = vmul.f32 %v6253_v31, %v8374_v4  ;;  %v5267_v45 = vsel %vm2739_vm14, %v11536_v15, %v11538_v62  ;;  %v11539_v31 = vld [vmem:[#allocation185_spill] sm:$0xff] }
0x1333   : > { %6202 = vrot.lane.b32.xlu1 %v6194_v44, %s7084_s27  ;;  %6237 = vrot.lane.b32.xlu0 %v6231_v2, %s7085_s21  ;;  %v6261_v30 = vmul.f32 %v6256_v40, %v11463_v11  ;;  %v5233_v24 = vadd.f32 %v5228_v14, %v5195_v20  ;;  %v5266_v44 = vsel %vm2739_vm14, %v11537_v13, %v11536_v15  ;;  %v6262_v40 = vmul.f32 0.0, %v10146_v16  ;;  %v11541_v14 = vld [vmem:[#allocation184_spill] sm:$0xff]  ;;  %s7089_s27 = smov [#allocation8]  }
0x1334   : > { %v5234_v2 = vadd.f32 %v5229_v36, %v5196_v49  ;;  %v5235_v6 = vadd.f32 %v11535_v47, %v5197_v7  ;;  %v5293_v38 = vsel %vm4901_vm13, %v11540_v12, %v11539_v31  ;;  %v6270_v0 = vmul.f32 %v10122_v10, %v6260_v29  ;;  %v10279_v36 = vpop.permute.xlu1 %6397  ;;  %v11543_v29 = vld [vmem:[#allocation18_spill] sm:$0xff]  ;;  %v11544_v49 = vld [vmem:[#allocation20_spill] sm:$0xff] }
0x1335   : > { %v6306_v26 = vpop.permute.xlu0 %6305  ;;  %v6271_v42 = vmul.f32 %v10122_v10, %v6261_v30  ;;  %v5271_v61 = vadd.f32 %v5266_v44, %v5233_v24  ;;  %v5294_v47 = vsel %vm4901_vm13, %v11539_v31, %v11541_v14  ;;  %v6298_v16 = vmul.f32 %v10181_v50, %v8374_v4 }
0x1336   : > { %v5273_v20 = vadd.f32 %v11538_v62, %v5235_v6  ;;  %v5272_v51 = vadd.f32 %v5267_v45, %v5234_v2  ;;  %vm5411_vm13 = vcmask 736256   ;;  %v6272_v24 = vmul.f32 %v10122_v10, %v6262_v40  ;;  %v11545_v62 = vld [vmem:[#allocation21_spill] sm:$0xff]  ;;  %v11546_v45 = vld [vmem:[#allocation23_spill] sm:$0xff] }
0x1337   : > { %6241 = vrot.lane.b32.xlu0 %v6233_v48, %s7085_s21  ;;  %6239 = vrot.lane.b32.xlu1 %v6232_v58, %s7085_s21  ;;  %v5298_v58 = vadd.f32 %v5293_v38, %v5271_v61  ;;  %v11542_v48 = vld [vmem:[#allocation29_spill] sm:$0xff]  ;;  %v6308_v15 = vmul.f32 %v6306_v26, %v6298_v16  ;;  %v5372_v31 = vsel %vm5371_vm4, %v11546_v45, %v11545_v62  ;;  %v11547_v38 = vld [vmem:[#allocation19_spill] sm:$0xff]  ;;  %s6943_s21 = sshll.u32 %s7089_s27, 4  ;;  %s6944_s21 = int_to_ptr.vmem [resolvable:$false] %s6943_s21 }
0x1338   : > { %v5332_v30 = vsel %vm5331_vm9, %v11543_v29, %v11542_v48  ;;  %v5333_v7 = vsel %vm5331_vm9, %v11542_v48, %v11544_v49  ;;  %v5299_v2 = vadd.f32 %v5294_v47, %v5272_v51  ;;  %v5300_v6 = vadd.f32 %v11541_v14, %v5273_v20  ;;  %v10309_v14 = vpop.permute.xlu1 %6435 }
0x1339   : > { %v6293_v34 = vpop.permute.xlu0 %6292  ;;  %v5337_v12 = vadd.f32 %v5332_v30, %v5298_v58  ;;  %vm5450_vm9 = vcmask 654336   ;;  %v11551_v30 = vld [vmem:[#allocation62_spill] sm:$0xff] }
0x133a   : > { %v6294_v25 = vsel %vm6016_vm1, %v10181_v50, %v6293_v34  ;;  %v6300_v13 = vmul.f32 0.0, %v6293_v34  ;;  %v5338_v10 = vadd.f32 %v5333_v7, %v5299_v2  ;;  %v5339_v40 = vadd.f32 %v11544_v49, %v5300_v6  ;;  %v11549_v34 = vld [vmem:[#allocation43_spill] sm:$0xff]  ;;  %v11552_v7 = vld [vmem:[#allocation56_spill] sm:$0xff]  ;;  %v11555_v6 = vld [vmem:[#allocation186_spill] sm:$0xff] }
0x133b   : > { %6276 = vrot.lane.b32.xlu1 %v6270_v0, %s7064_s1  ;;  %6278 = vrot.lane.b32.xlu0 %v6271_v42, %s7064_s1  ;;  %v6299_v50 = vmul.f32 %v6294_v25, %v11463_v11  ;;  %v5373_v0 = vsel %vm5371_vm4, %v11545_v62, %v11547_v38  ;;  %v11548_v42 = vld [vmem:[#allocation46_spill] sm:$0xff]  ;;  %v5377_v20 = vadd.f32 %v5372_v31, %v5337_v12  ;;  %v11550_v25 = vld [vmem:[#allocation44_spill] sm:$0xff]  ;;  %vm6359_vm4 = vcmask 400384  }
0x133c   : > { %v5412_v61 = vsel %vm5411_vm13, %v11549_v34, %v11548_v42  ;;  %v5413_v51 = vsel %vm5411_vm13, %v11548_v42, %v11550_v25  ;;  %v6310_v16 = vmul.f32 %v6306_v26, %v6300_v13  ;;  %v5378_v48 = vadd.f32 %v5373_v0, %v5338_v10  ;;  %v11554_v13 = vld [vmem:[#allocation187_spill] sm:$0xff]  ;;  %v11557_v31 = vld [vmem:[#allocation188_spill] sm:$0xff] }
0x133d   : > { %v10291_v44 = vpop.permute.xlu0 %6371  ;;  %v6309_v47 = vmul.f32 %v6306_v26, %v6299_v50  ;;  %v5379_v29 = vadd.f32 %v11547_v38, %v5339_v40  ;;  %v5451_v49 = vsel %vm5450_vm9, %v11552_v7, %v11551_v30  ;;  %vm11556_vm13 = vcmask 646144  }
0x133e   : > { %v5418_v50 = vadd.f32 %v5413_v51, %v5378_v48  ;;  %v5489_v62 = vsel %vm11556_vm13, %v11555_v6, %v11554_v13  ;;  %vm11558_vm2 = vmmov %vm11556_vm13  ;;  %v6335_v38 = vmul.f32 %v10203_v1, %v8374_v4  ;;  %v6336_v0 = vmul.f32 %v10203_v1, %v11463_v11 }
0x133f   : > { %6280 = vrot.lane.b32.xlu1 %v6272_v24, %s7064_s1  ;;  %6314 = vrot.lane.b32.xlu0 %v6308_v15, %s7063_s20  ;;  %v5417_v24 = vadd.f32 %v5412_v61, %v5377_v20  ;;  %v11553_v15 = vld [vmem:[#allocation50_spill] sm:$0xff]  ;;  %v5419_v26 = vadd.f32 %v11550_v25, %v5379_v29  ;;  %v5490_v12 = vsel %vm11558_vm2, %v11554_v13, %v11557_v31  ;;  %v11559_v20 = vld [vmem:[#allocation61_spill] sm:$0xff]  ;;  %v11560_v25 = vld [vmem:[#allocation64_spill] sm:$0xff]  ;;  %vm6399_vm2 = vcmask 408576   ;;  %s7087_s1 = smov 27  }
0x1340   : > { %v5452_v2 = vsel %vm5450_vm9, %v11551_v30, %v11553_v15  ;;  %vm11561_vm9 = vcmask 637952   ;;  %v11562_v30 = vld [vmem:[#allocation69_spill] sm:$0xff]  ;;  %vm5590_vm13 = vcmask 621568  }
0x1341   : > { %v6358_v58 = vpop.permute.xlu0 %6357  ;;  %v5456_v45 = vadd.f32 %v5451_v49, %v5417_v24  ;;  %v5457_v40 = vadd.f32 %v5452_v2, %v5418_v50  ;;  %v5458_v42 = vadd.f32 %v11553_v15, %v5419_v26  ;;  %v5527_v51 = vsel %vm11561_vm9, %v11560_v25, %v11559_v20 }
0x1342   : > { %v6360_v34 = vsel %vm6359_vm4, %v10230_v60, %v6358_v58  ;;  %vm11563_vm4 = vmmov %vm11561_vm9  ;;  %v6337_v49 = vmul.f32 0.0, %v10203_v1  ;;  %v6366_v15 = vmul.f32 0.0, %v6358_v58  ;;  %vm5630_vm9 = vcmask 613376  }
0x1343   : > { %6318 = vrot.lane.b32.xlu0 %v6310_v16, %s7063_s20  ;;  %6316 = vrot.lane.b32.xlu1 %v6309_v47, %s7063_s20  ;;  %v5494_v61 = vadd.f32 %v5489_v62, %v5456_v45  ;;  %v6364_v47 = vmul.f32 %v10230_v60, %v8374_v4  ;;  %v10338_v16 = vpop.permute.xlu1 %5706  ;;  %v5495_v48 = vadd.f32 %v5490_v12, %v5457_v40  ;;  %v11564_v62 = vld [vmem:[#allocation66_spill] sm:$0xff]  ;;  %v11565_v45 = vld [vmem:[#allocation68_spill] sm:$0xff]  ;;  %s7086_s20 = smov 28  }
0x1344   : > { %v5496_v29 = vadd.f32 %v11557_v31, %v5458_v42  ;;  %v5528_v7 = vsel %vm11563_vm4, %v11559_v20, %v11562_v30  ;;  %v6365_v60 = vmul.f32 %v6360_v34, %v11463_v11  ;;  %v5550_v31 = vsel %vm4606_vm10, %v11565_v45, %v11564_v62  ;;  %v11566_v12 = vld [vmem:[#allocation70_spill] sm:$0xff]  ;;  %v11568_v42 = vld [vmem:[#allocation67_spill] sm:$0xff] }
0x1345   : > { %v6396_v10 = vpop.permute.xlu0 %6395  ;;  %v6374_v24 = vmul.f32 %v10291_v44, %v6364_v47  ;;  %v5532_v50 = vadd.f32 %v5527_v51, %v5494_v61  ;;  %v5533_v6 = vadd.f32 %v5528_v7, %v5495_v48  ;;  %v11569_v61 = vld [vmem:[#allocation189_spill] sm:$0xff]  ;;  %v11570_v20 = vld [vmem:[#allocation191_spill] sm:$0xff]  ;;  %v6376_v47 = vmul.f32 %v10291_v44, %v6366_v15 }
0x1346   : > { %v5534_v26 = vadd.f32 %v11562_v30, %v5496_v29  ;;  %v6400_v13 = vsel %vm6399_vm2, %v6396_v10, %v10279_v36  ;;  %v5632_v25 = vsel %vm5630_vm9, %v11570_v20, %v11569_v61  ;;  %v6375_v51 = vmul.f32 %v10291_v44, %v6365_v60 }
0x1347   : > { %6343 = vrot.lane.b32.xlu0 %v6336_v0, %s11469_s18  ;;  %6341 = vrot.lane.b32.xlu1 %v6335_v38, %s11469_s18  ;;  %v11567_v38 = vld [vmem:[#allocation150_spill] sm:$0xff]  ;;  %v5745_v0 = vpop.permute.xlu1 %5744  ;;  %v5554_v40 = vadd.f32 %v11565_v45, %v5532_v50  ;;  %v6404_v48 = vmul.f32 %v6396_v10, %v8374_v4  ;;  %v6405_v29 = vmul.f32 %v6400_v13, %v11463_v11  ;;  %vm5670_vm10 = vcmask 605184   ;;  %v11571_v50 = vld [vmem:[#allocation159_spill] sm:$0xff] }
0x1348   : > { %v5592_v1 = vsel %vm5590_vm13, %v11567_v38, %v11566_v12  ;;  %v5556_v58 = vadd.f32 %v11564_v62, %v5534_v26  ;;  %v5591_v34 = vsel %vm5590_vm13, %v11568_v42, %v11567_v38  ;;  %v5555_v7 = vadd.f32 %v5550_v31, %v5533_v6 }
0x1349   : > { %v10349_v2 = vpop.permute.xlu0 %6451  ;;  %v5631_v26 = vsel %vm5630_vm9, %v11571_v50, %v11570_v20  ;;  %vm6439_vm2 = vcmask 416768   ;;  %v5672_v44 = vsel %vm5670_vm10, %v9773_v37, %v9871_v5  ;;  %v6406_v10 = vmul.f32 0.0, %v10279_v36 }
0x134a   : > { %v5597_v60 = vadd.f32 %v5591_v34, %v5555_v7  ;;  %v5671_v15 = vsel %vm5670_vm10, %v9848_v17, %v9773_v37  ;;  %vm5710_vm4 = vcmask 523264   ;;  %v6414_v13 = vmul.f32 %v10253_v28, %v6404_v48 }
0x134b   : > { %6345 = vrot.lane.b32.xlu1 %v6337_v49, %s11469_s18  ;;  %6380 = vrot.lane.b32.xlu0 %v6374_v24, %s7086_s20  ;;  %v5598_v49 = vadd.f32 %v5592_v1, %v5556_v58  ;;  %v5596_v24 = vadd.f32 %v11568_v42, %v5554_v40  ;;  %v6415_v6 = vmul.f32 %v10253_v28, %v6405_v29  ;;  %v5749_v45 = vpop.permute.xlu1 %5748  ;;  %vm5750_vm13 = vcmask 515072   ;;  %s7088_s18 = smov 26  }
0x134c   : > { %v5637_v38 = vadd.f32 %v5631_v26, %v5597_v60  ;;  %v6444_v36 = vmul.f32 %v10309_v14, %v8374_v4  ;;  %v6416_v42 = vmul.f32 %v10253_v28, %v6406_v10  ;;  %v5711_v34 = vsel %vm5710_vm4, %v9994_v21, %v10338_v16 }
0x134d   : > { %v6438_v30 = vpop.permute.xlu0 %6437  ;;  %v5638_v62 = vadd.f32 %v5632_v25, %v5598_v49  ;;  %v5636_v12 = vadd.f32 %v11571_v50, %v5596_v24  ;;  %vm5789_vm9 = vcmask 506880   ;;  %vm5817_vm10 = vcmask 498688  }
0x134e   : > { %v6440_v1 = vsel %vm6439_vm2, %v10309_v14, %v6438_v30  ;;  %v5677_v40 = vadd.f32 %v5671_v15, %v5637_v38  ;;  %v6454_v61 = vmul.f32 %v10349_v2, %v6444_v36  ;;  %v6446_v25 = vmul.f32 0.0, %v6438_v30 }
0x134f   : > { %6384 = vrot.lane.b32.xlu0 %v6376_v47, %s7086_s20  ;;  %6382 = vrot.lane.b32.xlu1 %v6375_v51, %s7086_s20  ;;  %v5678_v58 = vadd.f32 %v5672_v44, %v5638_v62  ;;  %v5676_v37 = vadd.f32 %v9848_v17, %v5636_v12  ;;  %v6445_v20 = vmul.f32 %v6440_v1, %v11463_v11  ;;  %vm5856_vm2 = vcmask 490496   ;;  %s6945_s20 = scalar_lea.vmem %s6944_s21, 512 }
0x1350   : > { %v5717_v17 = vadd.f32 %v5711_v34, %v5677_v40  ;;  %v6456_v49 = vmul.f32 %v10349_v2, %v6446_v25 }
0x1351   : > { %v5709_v31 = vpop.permute.xlu0 %5708  ;;  %v5716_v47 = vadd.f32 %v9994_v21, %v5676_v37 }
0x1352   : > { %v5712_v5 = vsel %vm5710_vm4, %v10338_v16, %v5709_v31  ;;  %v6455_v16 = vmul.f32 %v10349_v2, %v6445_v20  ;;  %vm5896_vm4 = vcmask 482304  }
0x1353   : > { %6420 = vrot.lane.b32.xlu1 %v6414_v13, %s7087_s1  ;;  %6422 = vrot.lane.b32.xlu0 %v6415_v6, %s7087_s1  ;;  %v5718_v51 = vadd.f32 %v5712_v5, %v5678_v58  ;;  %v5756_v28 = vadd.f32 %v5745_v0, %v5716_v47 }
0x1355   : > { %v5786_v4 = vpop.permute.xlu1 %5785  ;;  %v5747_v14 = vpop.permute.xlu0 %5746 }
0x1356   : > { %v5751_v48 = vsel %vm5750_vm13, %v5745_v0, %v5747_v14  ;;  %v5752_v29 = vsel %vm5750_vm13, %v5747_v14, %v5749_v45  ;;  %vm5936_vm13 = vcmask 474112  }
0x1357   : > { %v5758_v7 = vadd.f32 %v5752_v29, %v5718_v51  ;;  %6424 = vrot.lane.b32.xlu1 %v6416_v42, %s7087_s1  ;;  %6460 = vrot.lane.b32.xlu0 %v6454_v61, %s7088_s18  ;;  %v5757_v11 = vadd.f32 %v5751_v48, %v5717_v17 }
0x1359   : > { %v5812_v30 = vpop.permute.xlu1 %5811  ;;  %v5784_v24 = vpop.permute.xlu0 %5783 }
0x135a   : > { %v5790_v50 = vsel %vm5789_vm9, %v5784_v24, %v5786_v4  ;;  %v5795_v26 = vadd.f32 %v5784_v24, %v5756_v28 }
0x135b   : > { %v5796_v60 = vadd.f32 %v5790_v50, %v5757_v11  ;;  %6464 = vrot.lane.b32.xlu0 %v6456_v49, %s7088_s18  ;;  %6462 = vrot.lane.b32.xlu1 %v6455_v16, %s7088_s18 }
0x135c   : > { %v5823_v21 = vadd.f32 %v5812_v30, %v5795_v26 }
0x135d   : > { %v5788_v62 = vpop.permute.xlu0 %5787  ;;  %v5816_v10 = vpop.permute.xlu1 %5815 }
0x135e   : > { %v5791_v44 = vsel %vm5789_vm9, %v5786_v4, %v5788_v62  ;;  %vm5976_vm9 = vcmask 392192  }
0x135f   : > { %v5797_v15 = vadd.f32 %v5791_v44, %v5758_v7 }
0x1361   : > { %v5814_v13 = vpop.permute.xlu0 %5813  ;;  %v5853_v2 = vpop.permute.xlu1 %5852 }
0x1362   : > { %v5818_v0 = vsel %vm5817_vm10, %v5812_v30, %v5814_v13  ;;  %v5819_v6 = vsel %vm5817_vm10, %v5814_v13, %v5816_v10  ;;  %vm6124_vm10 = vcmask 359424  }
0x1363   : > { %v5824_v45 = vadd.f32 %v5818_v0, %v5796_v60  ;;  %v5825_v31 = vadd.f32 %v5819_v6, %v5797_v15 }
0x1365   : > { %v5851_v12 = vpop.permute.xlu0 %5850 }
0x1366   : > { %v5857_v38 = vsel %vm5856_vm2, %v5851_v12, %v5853_v2  ;;  %v5862_v1 = vadd.f32 %v5851_v12, %v5823_v21 }
0x1367   : > { %v5863_v5 = vadd.f32 %v5857_v38, %v5824_v45 }
0x1369   : > { %v5855_v58 = vpop.permute.xlu0 %5854 }
0x136a   : > { %v5858_v36 = vsel %vm5856_vm2, %v5853_v2, %v5855_v58  ;;  %vm6243_vm2 = vcmask 261120  }
0x136b   : > { %v5864_v37 = vadd.f32 %v5858_v36, %v5825_v31 }
0x1370   : > { %v5891_v40 = vpop.permute.xlu1 %5890 }
0x1371   : > { %v5893_v42 = vpop.permute.xlu0 %5892  ;;  %v5902_v6 = vadd.f32 %v5891_v40, %v5862_v1 }
0x1372   : > { %v5897_v2 = vsel %vm5896_vm4, %v5891_v40, %v5893_v42 }
0x1373   : > { %v5903_v22 = vadd.f32 %v5897_v2, %v5863_v5 }
0x1374   : > { %v5895_v34 = vpop.permute.xlu1 %5894 }
0x1375   : > { %v5931_v61 = vpop.permute.xlu0 %5930  ;;  %v5898_v12 = vsel %vm5896_vm4, %v5893_v42, %v5895_v34  ;;  %vm11572_vm4 = vcmask 236544  }
0x1376   : > { %v5942_v38 = vadd.f32 %v5931_v61, %v5902_v6  ;;  %v5904_v18 = vadd.f32 %v5898_v12, %v5864_v37 }
0x1379   : > { %v5933_v20 = vpop.permute.xlu1 %5932  ;;  %v5935_v25 = vpop.permute.xlu0 %5934 }
0x137a   : > { %v5937_v58 = vsel %vm5936_vm13, %v5931_v61, %v5933_v20  ;;  %v5938_v36 = vsel %vm5936_vm13, %v5933_v20, %v5935_v25  ;;  %vm11573_vm13 = vmmov %vm11572_vm4 }
0x137b   : > { %v5943_v1 = vadd.f32 %v5937_v58, %v5903_v22  ;;  %v5944_v57 = vadd.f32 %v5938_v36, %v5904_v18 }
0x137d   : > { %v5971_v51 = vpop.permute.xlu1 %5970  ;;  %v5973_v4 = vpop.permute.xlu0 %5972 }
0x137e   : > { %v5982_v3 = vadd.f32 %v5971_v51, %v5942_v38  ;;  %v5977_v19 = vsel %vm5976_vm9, %v5971_v51, %v5973_v4 }
0x137f   : > { %v5983_v42 = vadd.f32 %v5977_v19, %v5943_v1 }
0x1381   : > { %v5975_v14 = vpop.permute.xlu1 %5974  ;;  %v6011_v47 = vpop.permute.xlu0 %6010 }
0x1382   : > { %v5978_v54 = vsel %vm5976_vm9, %v5973_v4, %v5975_v14  ;;  %v6022_v56 = vadd.f32 %v6011_v47, %v5982_v3  ;;  %vm11586_vm9 = vcmask 1039360  }
0x1383   : > { %v5984_v34 = vadd.f32 %v5978_v54, %v5944_v57 }
0x1385   : > { %v6013_v48 = vpop.permute.xlu1 %6012  ;;  %v6015_v29 = vpop.permute.xlu0 %6014 }
0x1386   : > { %v6017_v43 = vsel %vm6016_vm1, %v6011_v47, %v6013_v48  ;;  %v6018_v35 = vsel %vm6016_vm1, %v6013_v48, %v6015_v29  ;;  %vm6164_vm1 = vcmask 351232  }
0x1387   : > { %v6023_v25 = vadd.f32 %v6017_v43, %v5983_v42  ;;  %v6024_v51 = vadd.f32 %v6018_v35, %v5984_v34 }
0x1389   : > { %v6051_v17 = vpop.permute.xlu1 %6050  ;;  %v6053_v7 = vpop.permute.xlu0 %6052 }
0x138a   : > { %v6062_v40 = vadd.f32 %v6051_v17, %v6022_v56  ;;  %v6057_v20 = vsel %vm6056_vm6, %v6051_v17, %v6053_v7 }
0x138b   : > { %v6063_v4 = vadd.f32 %v6057_v20, %v6023_v25 }
0x138d   : > { %v6055_v28 = vpop.permute.xlu1 %6054  ;;  %v6079_v16 = vpop.permute.xlu0 %6078 }
0x138e   : > { %v6058_v5 = vsel %vm6056_vm6, %v6053_v7, %v6055_v28  ;;  %v6090_v37 = vadd.f32 %v6079_v16, %v6062_v40  ;;  %vm6204_vm6 = vcmask 343040  }
0x138f   : > { %v6064_v14 = vadd.f32 %v6058_v5, %v6024_v51 }
0x1391   : > { %v6081_v49 = vpop.permute.xlu1 %6080  ;;  %v6083_v11 = vpop.permute.xlu0 %6082 }
0x1392   : > { %v6085_v22 = vsel %vm6084_vm11, %v6079_v16, %v6081_v49  ;;  %v6086_v18 = vsel %vm6084_vm11, %v6081_v49, %v6083_v11  ;;  %vm6386_vm11 = vcmask 228352  }
0x1393   : > { %v6091_v48 = vadd.f32 %v6085_v22, %v6063_v4  ;;  %v6092_v29 = vadd.f32 %v6086_v18, %v6064_v14 }
0x1395   : > { %v6119_v30 = vpop.permute.xlu1 %6118  ;;  %v6121_v24 = vpop.permute.xlu0 %6120 }
0x1396   : > { %v6130_v3 = vadd.f32 %v6119_v30, %v6090_v37  ;;  %v6125_v54 = vsel %vm6124_vm10, %v6119_v30, %v6121_v24 }
0x1397   : > { %v6131_v7 = vadd.f32 %v6125_v54, %v6091_v48 }
0x1399   : > { %v6123_v50 = vpop.permute.xlu1 %6122  ;;  %v6159_v26 = vpop.permute.xlu0 %6158 }
0x139a   : > { %v6126_v19 = vsel %vm6124_vm10, %v6121_v24, %v6123_v50  ;;  %v6170_v47 = vadd.f32 %v6159_v26, %v6130_v3  ;;  %vm11589_vm10 = vcmask 1031168  }
0x139b   : > { %v6132_v28 = vadd.f32 %v6126_v19, %v6092_v29 }
0x139d   : > { %v6161_v60 = vpop.permute.xlu1 %6160  ;;  %v6163_v21 = vpop.permute.xlu0 %6162 }
0x139e   : > { %v6165_v17 = vsel %vm6164_vm1, %v6159_v26, %v6161_v60  ;;  %v6166_v43 = vsel %vm6164_vm1, %v6161_v60, %v6163_v21  ;;  %vm11592_vm1 = vmmov %vm11586_vm9 }
0x139f   : > { %v6171_v24 = vadd.f32 %v6165_v17, %v6131_v7  ;;  %v6172_v50 = vadd.f32 %v6166_v43, %v6132_v28  ;;  %v11574_v28 = vld [vmem:[#allocation58_spill] sm:$0xff] }
0x13a1   : > { %v10399_v62 = vpop.permute.xlu1 %6198  ;;  %v10401_v44 = vpop.permute.xlu0 %6200 }
0x13a2   : > { %v6210_v35 = vadd.f32 %v10399_v62, %v6170_v47  ;;  %v6205_v11 = vsel %vm6204_vm6, %v10399_v62, %v10401_v44 }
0x13a3   : > { %v6211_v12 = vadd.f32 %v6205_v11, %v6171_v24 }
0x13a5   : > { %v6203_v10 = vpop.permute.xlu1 %6202  ;;  %v10403_v15 = vpop.permute.xlu0 %6237 }
0x13a6   : > { %v6206_v2 = vsel %vm6204_vm6, %v10401_v44, %v6203_v10  ;;  %v6249_v30 = vadd.f32 %v10403_v15, %v6210_v35  ;;  %vm11594_vm6 = vmmov %vm11589_vm10 }
0x13a7   : > { %v6212_v38 = vadd.f32 %v6206_v2, %v6172_v50  ;;  %v11576_v50 = vld [vmem:[#allocation190_spill] sm:$0xff] }
0x13a9   : > { %v10405_v13 = vpop.permute.xlu1 %6239  ;;  %v10407_v0 = vpop.permute.xlu0 %6241 }
0x13aa   : > { %v6244_v26 = vsel %vm6243_vm2, %v10403_v15, %v10405_v13  ;;  %v6245_v60 = vsel %vm6243_vm2, %v10405_v13, %v10407_v0 }
0x13ab   : > { %v6250_v1 = vadd.f32 %v6244_v26, %v6211_v12  ;;  %v6251_v40 = vadd.f32 %v6245_v60, %v6212_v38  ;;  %v11577_v60 = vld [vmem:[#allocation63_spill] sm:$0xff] }
0x13ad   : > { %v10409_v45 = vpop.permute.xlu1 %6276  ;;  %v10411_v31 = vpop.permute.xlu0 %6278 }
0x13ae   : > { %v6287_v21 = vadd.f32 %v10409_v45, %v6249_v30  ;;  %v6282_v62 = vsel %vm6029_vm8, %v10409_v45, %v10411_v31 }
0x13af   : > { %v6288_v42 = vadd.f32 %v6282_v62, %v6250_v1  ;;  %v11579_v62 = vld [vmem:[#allocation152_spill] sm:$0xff] }
0x13b1   : > { %v6281_v63 = vpop.permute.xlu1 %6280  ;;  %v6315_v9 = vpop.permute.xlu0 %6314 }
0x13b2   : > { %v6283_v44 = vsel %vm6029_vm8, %v10411_v31, %v6281_v63  ;;  %v6325_v10 = vadd.f32 %v6315_v9, %v6287_v21  ;;  %vm6426_vm8 = vcmask 220160  }
0x13b3   : > { %v6289_v34 = vadd.f32 %v6283_v44, %v6251_v40 }
0x13b5   : > { %v6317_v6 = vpop.permute.xlu1 %6316  ;;  %v6319_v61 = vpop.permute.xlu0 %6318 }
0x13b6   : > { %v6320_v15 = vsel %vm5989_vm5, %v6315_v9, %v6317_v6  ;;  %v6321_v13 = vsel %vm5989_vm5, %v6317_v6, %v6319_v61  ;;  %vm6466_vm5 = vcmask 211968  }
0x13b7   : > { %v6326_v51 = vadd.f32 %v6320_v15, %v6288_v42  ;;  %v6327_v63 = vadd.f32 %v6321_v13, %v6289_v34 }
0x13b9   : > { %v6342_v56 = vpop.permute.xlu1 %6341  ;;  %v6344_v57 = vpop.permute.xlu0 %6343 }
0x13ba   : > { %v6352_v0 = vadd.f32 %v6342_v56, %v6325_v10  ;;  %v6347_v37 = vsel %vm11572_vm4, %v6342_v56, %v6344_v57 }
0x13bb   : > { %v6353_v9 = vadd.f32 %v6347_v37, %v6326_v51  ;;  %v11580_v37 = vld [vmem:[#allocation54_spill] sm:$0xff] }
0x13bd   : > { %v6346_v16 = vpop.permute.xlu1 %6345  ;;  %v6381_v49 = vpop.permute.xlu0 %6380 }
0x13be   : > { %v6348_v45 = vsel %vm11573_vm13, %v6344_v57, %v6346_v16  ;;  %v6392_v25 = vadd.f32 %v6381_v49, %v6352_v0  ;;  %v2813_v16 = vmul.f32 0.0, %v11574_v28 }
0x13bf   : > { %v6354_v3 = vadd.f32 %v6348_v45, %v6327_v63 }
0x13c0   : > { %v2825_v30 = vrot.slane %v2813_v16, %v11429_v41  ;;  %v2844_v24 = vrot.slane %v2813_v16, %v11430_v32  ;;  %v2866_v12 = vrot.slane %v2813_v16, %v7485_v55  ;;  %v2888_v15 = vrot.slane %v2813_v16, %v7480_v8 }
0x13c1   : > { %v6383_v58 = vpop.permute.xlu1 %6382  ;;  %v6385_v36 = vpop.permute.xlu0 %6384  ;;  %v2910_v45 = vrot.slane %v2813_v16, %v7762_v27 }
0x13c2   : > { %v6387_v31 = vsel %vm6386_vm11, %v6381_v49, %v6383_v58  ;;  %v6388_v22 = vsel %vm6386_vm11, %v6383_v58, %v6385_v36  ;;  %v11575_v49 = vld [vmem:[#allocation52_spill] sm:$0xff]  ;;  %v2834_v21 = vmul.f32 %v2825_v30, %v11577_v60  ;;  %v2875_v44 = vmul.f32 %v2866_v12, %v11579_v62 }
0x13c3   : > { %v6393_v19 = vadd.f32 %v6387_v31, %v6353_v9  ;;  %v6394_v47 = vadd.f32 %v6388_v22, %v6354_v3  ;;  %v2809_v11 = vsel %vm1232_vm0, %v11574_v28, %v11575_v49  ;;  %v10452_v26 = vmul.f32 %v11575_v49, %v11576_v50 }
0x13c4   : > { %v10446_v2 = vmul.f32 %v2809_v11, %v9273_v23  ;;  %v11578_v23 = vld [vmem:[#allocation53_spill] sm:$0xff]  ;;  %v2976_v28 = vrot.slane %v2813_v16, %v7788_v39 }
0x13c5   : > { %v6421_v20 = vpop.permute.xlu1 %6420  ;;  %v6423_v5 = vpop.permute.xlu0 %6422  ;;  %v2853_v36 = vmul.f32 %v2844_v24, %v11578_v23  ;;  %v2833_v10 = vrot.slane %v10452_v26, %v11429_v41  ;;  %v2852_v1 = vrot.slane %v10452_v26, %v11430_v32  ;;  %v2940_v11 = vrot.slane %v10452_v26, %v7759_v52  ;;  %v11583_v24 = vld [vmem:[#allocation57_spill] sm:$0xff] }
0x13c6   : > { %v6432_v18 = vadd.f32 %v6421_v20, %v6392_v25  ;;  %v6427_v4 = vsel %vm6426_vm8, %v6421_v20, %v6423_v5  ;;  %v2829_v38 = vrot.slane %v10446_v2, %v11429_v41  ;;  %v2848_v58 = vrot.slane %v10446_v2, %v11430_v32 }
0x13c7   : > { %v6433_v56 = vadd.f32 %v6427_v4, %v6393_v19  ;;  %v2856_v40 = vadd.f32 %v2853_v36, %v2834_v21  ;;  %v2836_v34 = vmul.f32 %v2833_v10, %v11577_v60  ;;  %v2855_v20 = vmul.f32 %v2852_v1, %v11578_v23 }
0x13c8   : > { %v2835_v13 = vmul.f32 %v2829_v38, %v11577_v60  ;;  %v2854_v0 = vmul.f32 %v2848_v58, %v11578_v23  ;;  %v2897_v41 = vmul.f32 %v2888_v15, %v11580_v37  ;;  %v2874_v32 = vrot.slane %v10452_v26, %v7485_v55  ;;  %v11584_v38 = vld [vmem:[#allocation59_spill] sm:$0xff] }
0x13c9   : > { %v6425_v6 = vpop.permute.xlu1 %6424  ;;  %v6461_v61 = vpop.permute.xlu0 %6460  ;;  %v2878_v42 = vadd.f32 %v2875_v44, %v2856_v40  ;;  %v2858_v63 = vadd.f32 %v2855_v20, %v2836_v34  ;;  %v2892_v22 = vrot.slane %v10446_v2, %v7480_v8  ;;  %v2932_v4 = vrot.slane %v2813_v16, %v7759_v52  ;;  %v11587_v34 = vld [vmem:[#allocation51_spill] sm:$0xff] }
0x13ca   : > { %v6428_v14 = vsel %vm6426_vm8, %v6423_v5, %v6425_v6  ;;  %v6472_v54 = vadd.f32 %v6461_v61, %v6432_v18  ;;  %v2870_v5 = vrot.slane %v10446_v2, %v7485_v55  ;;  %v2857_v25 = vadd.f32 %v2854_v0, %v2835_v13  ;;  %v11581_v18 = vld [vmem:[#allocation55_spill] sm:$0xff]  ;;  %v11585_v13 = vld [vmem:[#allocation74_spill] sm:$0xff] }
0x13cb   : > { %v6434_v57 = vadd.f32 %v6428_v14, %v6394_v47  ;;  %v2900_v51 = vadd.f32 %v2897_v41, %v2878_v42  ;;  %v2919_v9 = vmul.f32 %v2910_v45, %v11581_v18  ;;  %v2877_v3 = vmul.f32 %v2874_v32, %v11579_v62 }
0x13cc   : > { %6478 = vrot.lane.b32.xlu1 %v6472_v54, %s11475_s23  ;;  %v2876_v31 = vmul.f32 %v2870_v5, %v11579_v62  ;;  %v2896_v6 = vrot.slane %v10452_v26, %v7480_v8  ;;  %v2898_v54 = vmul.f32 %v2892_v22, %v11580_v37  ;;  %v2914_v19 = vrot.slane %v10446_v2, %v7762_v27  ;;  %v11588_v5 = vld [vmem:[#allocation84_spill] sm:$0xff] }
0x13cd   : > { %v6463_v48 = vpop.permute.xlu1 %6462  ;;  %v6465_v29 = vpop.permute.xlu0 %6464  ;;  %v2922_v14 = vadd.f32 %v2919_v9, %v2900_v51  ;;  %v2880_v55 = vadd.f32 %v2877_v3, %v2858_v63  ;;  %v2954_v47 = vrot.slane %v2813_v16, %v7791_v33  ;;  %v2958_v21 = vrot.slane %v10446_v2, %v7791_v33  ;;  %v11591_v51 = vld [vmem:[#allocation133_spill] sm:$0xff] }
0x13ce   : > { %v6467_v17 = vsel %vm6466_vm5, %v6461_v61, %v6463_v48  ;;  %v6468_v43 = vsel %vm6466_vm5, %v6463_v48, %v6465_v29  ;;  %v2879_v61 = vadd.f32 %v2876_v31, %v2857_v25  ;;  %v2899_v48 = vmul.f32 %v2896_v6, %v11580_v37 }
0x13cf   : > { %v6473_v35 = vadd.f32 %v6467_v17, %v6433_v56  ;;  %v6474_v7 = vadd.f32 %v6468_v43, %v6434_v57  ;;  %v11582_v56 = vld [vmem:[#allocation60_spill] sm:$0xff]  ;;  %v2918_v29 = vrot.slane %v10452_v26, %v7762_v27  ;;  %v2920_v43 = vmul.f32 %v2914_v19, %v11581_v18 }
0x13d0   : > { %v2941_v57 = vmul.f32 %v2932_v4, %v11582_v56  ;;  %v2901_v8 = vadd.f32 %v2898_v54, %v2879_v61  ;;  %v2902_v17 = vadd.f32 %v2899_v48, %v2880_v55  ;;  %v2963_v50 = vmul.f32 %v2954_v47, %v11583_v24  ;;  %v11595_v61 = vld [vmem:[#allocation127_spill] sm:$0xff]  ;;  %v11596_v54 = vld [vmem:[#allocation129_spill] sm:$0xff] }
0x13d1   : > { %6480 = vrot.lane.b32.xlu0 %v6473_v35, %s11475_s23  ;;  %6482 = vrot.lane.b32.xlu1 %v6474_v7, %s11475_s23  ;;  %v2936_v35 = vrot.slane %v10446_v2, %v7759_v52  ;;  %v2921_v49 = vmul.f32 %v2918_v29, %v11581_v18  ;;  %v2985_v58 = vmul.f32 %v2976_v28, %v11584_v38  ;;  %v11593_v18 = vld [vmem:[#allocation105_spill] sm:$0xff]  ;;  %v11601_v28 = vld [vmem:[#allocation114_spill] sm:$0xff]  ;;  %s527_s23 = sand.u32 1, %s6995_s22  }
0x13d2   : > { %v2944_v7 = vadd.f32 %v2941_v57, %v2922_v14  ;;  %v2923_v30 = vadd.f32 %v2920_v43, %v2901_v8  ;;  %v2943_v23 = vmul.f32 %v2940_v11, %v11582_v56  ;;  %v2962_v16 = vrot.slane %v10452_v26, %v7791_v33  ;;  %v11597_v57 = vld [vmem:[#allocation116_spill] sm:$0xff]  ;;  %s6599_s3 = sshll.u32 %s527_s23, 4 }
0x13d3   : > { %v2924_v60 = vadd.f32 %v2921_v49, %v2902_v17  ;;  %v2942_v27 = vmul.f32 %v2936_v35, %v11582_v56  ;;  %v2964_v52 = vmul.f32 %v2958_v21, %v11583_v24  ;;  %v2980_v44 = vrot.slane %v10446_v2, %v7788_v39  ;;  %v11600_v35 = vld [vmem:[#allocation113_spill] sm:$0xff]  ;;  %s529_s29 = scalar_lea.vmem [#allocation8], %s6599_s3 }
0x13d4   : > { %v2966_v12 = vadd.f32 %v2963_v50, %v2944_v7  ;;  %v2965_v1 = vmul.f32 %v2962_v16, %v11583_v24  ;;  %v2984_v40 = vrot.slane %v10452_v26, %v7788_v39  ;;  %v3179_v0 = vsel %vm11586_vm9, %v11585_v13, %v10040_v53  ;;  %v11590_v39 = vld [vmem:[#allocation95_spill] sm:$0xff]  ;;  %v11602_v24 = vld [vmem:[#allocation86_spill] sm:$0xff]  ;;  %v11604_v21 = vld [vmem:[#allocation125_spill] sm:$0xff]  ;;  %s6522_s2 = sshll.u32 %s529_s29, 4  ;;  %s10585_s2 = int_to_ptr.vmem [resolvable:$true] %s6522_s2 }
0x13d5   : > { %v2945_v36 = vadd.f32 %v2942_v27, %v2923_v30  ;;  %v2946_v62 = vadd.f32 %v2943_v23, %v2924_v60  ;;  %v2986_v33 = vmul.f32 %v2980_v44, %v11584_v38  ;;  %v3392_v2 = vsel %vm11589_vm10, %v11588_v5, %v10046_v59  ;;  %v11603_v60 = vld [vmem:[#allocation136_spill] sm:$0xff]  ;;  %v11605_v23 = vld [vmem:[#allocation131_spill] sm:$0xff]  ;;  %s6939_s25 = scalar_lea.vmem %s10585_s2, 256  ;;  %p6946_p11 = scmp.lt.s32.totalorder %s10585_s2, %s6944_s21 }
0x13d6   : > { %v2988_v10 = vadd.f32 %v2985_v58, %v2966_v12  ;;  %v2987_v37 = vmul.f32 %v2984_v40, %v11584_v38  ;;  %v3596_v26 = vsel %vm1915_vm7, %v11590_v39, %v10050_v46  ;;  %v3180_v63 = vsel %vm11592_vm1, %v10040_v53, %v11591_v51  ;;  %v11608_v13 = vld [vmem:[#allocation132_spill] sm:$0xff]  ;;  %p6940_p8 = scmp.ne.s32.totalorder %s10585_s2, %s6939_s25  ;;  %p6947_p12 = scmp.lt.s32.totalorder %s6945_s20, %s6939_s25 }
0x13d7   : > { %v2967_v15 = vadd.f32 %v2964_v52, %v2945_v36  ;;  %v2968_v42 = vadd.f32 %v2965_v1, %v2946_v62  ;;  %v3393_v9 = vsel %vm11594_vm6, %v10046_v59, %v11593_v18  ;;  %v3597_v4 = vsel %vm1915_vm7, %v10050_v46, %v11595_v61  ;;  %v11598_v59 = vld [vmem:[#allocation128_spill] sm:$0xff]  ;;  %v11599_v46 = vld [vmem:[#allocation139_spill] sm:$0xff]  ;;  %v11606_v36 = vld [vmem:[#allocation101_spill] sm:$0xff] }
0x13d8   : > { %v2991_v20 = vadd.f32 %v2988_v10, %v11587_v34  ;;  %v3675_v29 = vsel %vm1232_vm0, %v11596_v54, %v11598_v59  ;;  %v3881_v7 = vsel %vm2214_vm12, %v11597_v57, %v11600_v35  ;;  %v3882_v49 = vsel %vm2214_vm12, %v11600_v35, %v11601_v28  ;;  %v11607_v52 = vld [vmem:[#allocation137_spill] sm:$0xff]  ;;  %p6941_p9 = pnand %p6940_p8, %p7213_p5  ;;  %p6948_p13 = por %p6947_p12, %p6946_p11 }
0x13d9   : > { %v2989_v41 = vadd.f32 %v2986_v33, %v2967_v15  ;;  %v2990_v32 = vadd.f32 %v2987_v37, %v2968_v42  ;;  %v4085_v27 = vsel %vm615_vm3, %v11599_v46, %v11603_v60  ;;  %v4086_v12 = vsel %vm615_vm3, %v11603_v60, %v11604_v21  ;;  %v11609_v42 = vld [vmem:[#allocation153_spill] sm:$0xff] }
0x13da   : > { %v3184_v45 = vadd.f32 %v3179_v0, %v2991_v20  ;;  %v4278_v62 = vsel %vm2562_vm15, %v11602_v24, %v11606_v36  ;;  %v4279_v44 = vsel %vm2562_vm15, %v11606_v36, %v11607_v52  ;;  %v4482_v0 = vsel %vm2739_vm14, %v11605_v23, %v11608_v13  ;;  %p6942_p10 = pneg %p6941_p9 }
0x13db   : > { %v2992_v31 = vadd.f32 %v2989_v41, %v11587_v34  ;;  %v2993_v3 = vadd.f32 %v2990_v32, %v11587_v34  ;;  %v4483_v33 = vsel %vm2739_vm14, %v11608_v13, %v11609_v42  ;;  %vm11610_vm3 = vcmask 277504  }
0x13dc   : > { %v3397_v25 = vadd.f32 %v3392_v2, %v3184_v45  ;;  %vm11611_vm7 = vmmov %vm11610_vm3  ;;  %vm11612_vm14 = vcmask 138240   ;;  %p6949_p0 = pnand %p6948_p13, %p6942_p10 }
0x13dd   : > { %v3185_v6 = vadd.f32 %v3180_v63, %v2992_v31  ;;  %v3186_v14 = vadd.f32 %v11591_v51, %v2993_v3  ;;  %vm11613_vm15 = vmmov %vm11612_vm14 }
0x13de   : > { %v3601_v22 = vadd.f32 %v3596_v26, %v3397_v25 }
0x13df   : > { %v3398_v55 = vadd.f32 %v3393_v9, %v3185_v6  ;;  %v3399_v53 = vadd.f32 %v11593_v18, %v3186_v14 }
0x13e0   : > { %v3679_v19 = vadd.f32 %v11596_v54, %v3601_v22 }
0x13e1   : > { %v3602_v47 = vadd.f32 %v3597_v4, %v3398_v55  ;;  %v3603_v56 = vadd.f32 %v11595_v61, %v3399_v53 }
0x13e2   : > { %v3886_v48 = vadd.f32 %v11597_v57, %v3679_v19 }
0x13e3   : > { %v3681_v8 = vadd.f32 %v11598_v59, %v3603_v56  ;;  %v3680_v17 = vadd.f32 %v3675_v29, %v3602_v47 }
0x13e4   : > { %v4090_v43 = vadd.f32 %v11599_v46, %v3886_v48 }
0x13e5   : > { %v3888_v11 = vadd.f32 %v3882_v49, %v3681_v8  ;;  %v3887_v30 = vadd.f32 %v3881_v7, %v3680_v17 }
0x13e6   : > { %v4283_v50 = vadd.f32 %v11602_v24, %v4090_v43 }
0x13e7   : > { %v4092_v38 = vadd.f32 %v4086_v12, %v3888_v11  ;;  %v4091_v58 = vadd.f32 %v4085_v27, %v3887_v30 }
0x13e8   : > { %v4487_v16 = vadd.f32 %v11605_v23, %v4283_v50 }
0x13e9   : > { %v4284_v40 = vadd.f32 %v4278_v62, %v4091_v58  ;;  %v4285_v15 = vadd.f32 %v4279_v44, %v4092_v38 }
0x13eb   : > { %v4488_v20 = vadd.f32 %v4482_v0, %v4284_v40  ;;  %v4489_v5 = vadd.f32 %v4483_v33, %v4285_v15 }
0x143e   : > { %v6479_v10 = vpop.permute.xlu1 %6478 }
0x143f   : > { %v6489_v1 = vadd.f32 %v6479_v10, %v4487_v16 }
0x1441   : > { %6495 = vrot.lane.b32.xlu0 %v6489_v1, %s11127_s28 }
0x1443   : > { %v6483_v34 = vpop.permute.xlu1 %6482  ;;  %v6481_v2 = vpop.permute.xlu0 %6480 }
0x1444   : > { %v6484_v37 = vsel %vm11610_vm3, %v6479_v10, %v6481_v2  ;;  %v6485_v41 = vsel %vm11611_vm7, %v6481_v2, %v6483_v34 }
0x1445   : > { %v6490_v45 = vadd.f32 %v6484_v37, %v4488_v20  ;;  %v6491_v39 = vadd.f32 %v6485_v41, %v4489_v5 }
0x1447   : > { %6499 = vrot.lane.b32.xlu0 %v6491_v39, %s11127_s28  ;;  %6497 = vrot.lane.b32.xlu1 %v6490_v45, %s11127_s28  ;;  %s6508_s28 = scalar_lea.sflag [#allocation7], %s527_s23 }
0x14b3   : > { %v6496_v26 = vpop.permute.xlu0 %6495 }
0x14b9   : > { %v6498_v32 = vpop.permute.xlu1 %6497  ;;  %v6500_v25 = vpop.permute.xlu0 %6499 }
0x14ba   : > { %v6501_v51 = vsel %vm11612_vm14, %v6496_v26, %v6498_v32  ;;  %v6502_v63 = vsel %vm11613_vm15, %v6498_v32, %v6500_v25 }
0x14bb   : > { %6505 = vst [vmem:[%s529_s29] sm:$0xff] %v6501_v51  ;;  %6506 = vst [vmem:[%s529_s29 + $0x8] sm:$0xff] %v6502_v63 }
0x14bc   : > { %6952 = shalt.err (!%p6949_p0)
}
0x14bd   : > { %s6953_s1 = scalar_lea.hbm %s10583_s30, 256  ;;  %s6957_s3 = scalar_lea.hbm %s10642_s16, 512 }
0x14be   : > { %p6954_p1 = scmp.ne.s32.totalorder %s10583_s30, %s6953_s1  ;;  %p6958_p4 = scmp.lt.s32.totalorder %s10583_s30, %s10642_s16 }
0x14bf   : > { %p6959_p7 = scmp.lt.s32.totalorder %s6957_s3, %s6953_s1 }
0x14c0   : > { %p6955_p2 = pnand %p6954_p1, %p7213_p5 }
0x14c1   : > { %p6960_p6 = por %p6959_p7, %p6958_p4 }
0x14c2   : > { %p6956_p3 = pneg %p6955_p2 }
0x14c4   : > { %p6961_p8 = pnand %p6960_p6, %p6956_p3 }
0x14c6   : > { %6964 = shalt.err (!%p6961_p8)
}
0x14c7   : > { %6686 = dma.vmem_to_hbm [thread:$0]  (%p7213_p5), %s10585_s2, 256, %s10583_s30, %s6508_s28  }
0x14c8 PF: > { %s11614_s19 = sld [smem:[#allocation11_spill]]  ;;  %p6698_p9 = scmp.ge.s32.totalorder %s7003_s24, 2 }
0x14c9   : > { %s11615_s17 = sld [smem:[#allocation15_spill]] }
0x14ce   : > { %s6534_s25 = sand.u32 1, %s11614_s19  }
0x14cf   : > { %p11616_p10 = scmp.ne.s32.totalorder %s11615_s17, 0  ;;  %s6535_s27 = scalar_lea.sflag [#allocation7], %s6534_s25 }
0x14d1   : > { %p6693_p11 = pnand %p6698_p9, %p11616_p10 }
0x14d3   : > { %p6694_p12 = pneg %p6693_p11 }
0x14d5   : > { %6986 = dma.done.wait (%p6694_p12), %s6535_s27, 256  }
0x14d6   : > { %6988 = vsyncadd (%p6694_p12), %s6535_s27, 4294967040  ;;  %s11617_s24 = sld [smem:[#allocation13_spill]]  ;;  %s11620_s21 = smov %s6995_s22 }
0x14d7   : > { %s11618_s20 = sld [smem:[#allocation12_spill]] }
0x14d8   : > { %s11619_s23 = sld [smem:[#allocation14_spill]] }
0x14dc   : > { %p27_p13 = scmp.ge.s32.totalorder %s11617_s24, 4  }
0x14dd   : > { %s11621_s22 = smov %s11618_s20 }
0x14de   :  { %29 = sbr.rel (!%p27_p13) target bundleno = 9 (0x9), region = 193 }
0x14e3   :  { %6540 = vsyncpa [#allocation6], 1 }
0x14e4   :  { %6542 = vsyncpa [#allocation6 + $0x1], 1 }
0x14e5   :  { %6543 = vsyncpa [#allocation7], 1 }
0x14e6   :  { %6545 = vsyncpa [#allocation7 + $0x1], 1 }

</bundles_post_ra>
